<compile_context>
chip_gen: v5e
topology: v5e:2x2
jax: 0.10.0
libtpu: 0.0.40
codegen_flags: <defaults>
</compile_context>

<pallas_src>
import functools

import jax
import jax.numpy as jnp
from jax.experimental import pallas as pl
from jax.experimental.pallas import tpu as pltpu

BN_EPS = 1e-5
INTERM_DTYPE = jnp.bfloat16          # inter-call activations (halves HBM traffic)
MXU_DTYPE = jnp.bfloat16             # conv operands (staged activations + weights)
VMEM_LIMIT_BYTES = 48 * 1024 * 1024  # above v5e/v6e scoped defaults, < v7x physical
SCRATCH_BUDGET_BYTES = 20 * 1024 * 1024


# ----------------------------------------------------------------------------
# helpers
# ----------------------------------------------------------------------------
def _round_up(x, m):
    return (x + m - 1) // m * m


def _cout_tile(cout):
    # lane-dense output tiles (256/128) when the channel count allows it.
    # TODO(synk): prefer 128 on v5e (4x128 MXU) via pltpu.get_tpu_info.
    if cout % 256 == 0:
        return 256
    if cout % 128 == 0:
        return 128
    return cout


def _pick_tile_rows(H, W, k0, tc):
    """Largest divisor of H whose per-step working set fits the VMEM budget."""
    Wp = _round_up(W + 2, 16)
    best = 1
    for th in range(1, min(H, 128) + 1):
        if H % th:
            continue
        staged = (th + 2) * Wp * 3 * k0 * 2                 # bf16 staged scratch
        acc = th * Wp * tc * 4                              # f32 accumulator
        io = 2 * (th * W * (k0 + tc) * 4 + 4 * W * k0 * 4)  # double-buffered blocks
        if staged + acc + io <= SCRATCH_BUDGET_BYTES:
            best = th
    return best


# ----------------------------------------------------------------------------
# fused conv3x3 kernel
# ----------------------------------------------------------------------------
def _fused_conv3x3_kernel(*refs, modes, residual, post_relu):
    staged = refs[-1]        # (TH+2, Wp, 3*K0) bf16 scratch, persists across grid
    o_ref = refs[-2]         # (1, TH, W, tc)
    ins = refs[:-2]

    n_in = len(modes)
    TH = o_ref.shape[1]
    W = o_ref.shape[2]
    tc = o_ref.shape[3]
    Wp = staged.shape[1]
    Ktot = staged.shape[2]
    K0 = Ktot // 3

    # ---- unpack positional refs (must match the wrapper's ordering) ----
    idx = 0
    acts = []
    for _ in range(n_in):
        acts.append(ins[idx:idx + 3])      # (main, top-halo, bottom-halo)
        idx += 3
    res_ref = None
    if residual:
        res_ref = ins[idx]
        idx += 1
    w_ref = ins[idx]                        # (3, 3*K0, tc) bf16
    idx += 1
    sbs = []
    for m in modes:
        if m == "none":
            sbs.append(None)
        else:
            sbs.append((ins[idx], ins[idx + 1]))
            idx += 2
    bo_ref = ins[idx]                       # (1, tc) f32
    idx += 1
    assert idx == len(ins)

    i = pl.program_id(1)                    # row-tile index
    j = pl.program_id(2)                    # Cout-tile index (innermost)
    n_rt = pl.num_programs(1)

    # ---- stage pre-activated, zero-padded activations once per spatial tile ----
    @pl.when(j == 0)
    def _fill():
        c0 = 0
        for t in range(n_in):
            x_m, x_t, x_b = acts[t]
            C = x_m.shape[3]
            mode = modes[t]

            def pre(v):
                y = v.astype(jnp.float32)
                if mode != "none":
                    s_ref, b_ref = sbs[t]
                    y = y * s_ref[0] + b_ref[0]
                if mode == "bn_relu":
                    y = jnp.maximum(y, 0.0)
                return y

            # halo rows are masked to zero at the image border (conv padding=1)
            y_top = jnp.where(i > 0, pre(x_t[0]), 0.0)
            y_bot = jnp.where(i < n_rt - 1, pre(x_b[0]), 0.0)
            y = jnp.concatenate([y_top, pre(x_m[0]), y_bot], axis=0)
            y = y.astype(MXU_DTYPE)                       # (TH+2, W, C)

            def zeros(ncols):
                return jnp.zeros((TH + 2, ncols, C), MXU_DTYPE)

            # staged[:, c, dx*K0 + ci] = xpad[:, c + dx, ci]
            # dx = 0
            staged[:, 0:1, c0:c0 + C] = zeros(1)
            staged[:, 1:W + 1, c0:c0 + C] = y
            staged[:, W + 1:Wp, c0:c0 + C] = zeros(Wp - W - 1)
            # dx = 1
            o1 = K0 + c0
            staged[:, 0:W, o1:o1 + C] = y
            staged[:, W:Wp, o1:o1 + C] = zeros(Wp - W)
            # dx = 2
            o2 = 2 * K0 + c0
            staged[:, 0:W - 1, o2:o2 + C] = y[:, 1:W]
            staged[:, W - 1:Wp, o2:o2 + C] = zeros(Wp - W + 1)
            c0 += C

    # ---- 3 sublane-aligned MXU matmuls, K = 3*K0, f32 accumulation ----
    acc = None
    for dy in range(3):
        lhs = staged[dy:dy + TH].reshape(TH * Wp, Ktot)   # layout preserving (Wp%16==0)
        d = jnp.dot(lhs, w_ref[dy], preferred_element_type=jnp.float32)
        acc = d if acc is None else acc + d

    out = acc.reshape(TH, Wp, tc)[:, :W, :] + bo_ref[0]
    if residual:
        out = out + res_ref[0].astype(jnp.float32)
    if post_relu:
        out = jnp.maximum(out, 0.0)
    o_ref[0] = out.astype(o_ref.dtype)


# ----------------------------------------------------------------------------
# wrapper
# ----------------------------------------------------------------------------
def fused_conv3x3(inputs, w, bo, *, modes, scale_biases, residual=None,
                  post_relu=False, out_dtype=None, tile_rows=None):
    """y = conv3x3(concat_ch([preact_t(x_t)]), w) + bo (+residual) (ReLU?).

    modes[t] in {"none", "bn", "bn_relu"}; "bn*" uses scale_biases[t] = (s, b)
    applied to the UN-padded activation (zero padding happens afterwards,
    matching PyTorch Conv2d(padding=1) applied to a BN+ReLU input)."""
    N, H, W, _ = inputs[0].shape
    chans = [int(x.shape[3]) for x in inputs]
    K0 = sum(chans)
    Cout = int(w.shape[3])
    assert w.shape == (3, 3, K0, Cout), w.shape
    for x in inputs:
        assert x.shape[:3] == (N, H, W)
    if residual is not None:
        assert residual.shape == (N, H, W, Cout)

    tc = _cout_tile(Cout)
    n_ct = Cout // tc
    Wp = _round_up(W + 2, 16)            # 16: keep bf16 sublane packing aligned
    TH = tile_rows if tile_rows is not None else _pick_tile_rows(H, W, K0, tc)
    assert H % TH == 0, (H, TH)
    n_rt = H // TH
    Ktot = 3 * K0
    out_dtype = out_dtype or inputs[0].dtype
    f32 = jnp.float32

    # fold the 3 dx taps into the contraction dim: (3,3,K0,Cout)->(3, 3*K0, Cout)
    w3 = w.reshape(3, Ktot, Cout).astype(MXU_DTYPE)

    in_specs, args = [], []
    for x, C in zip(inputs, chans):
        in_specs += [
            pl.BlockSpec((1, TH, W, C), lambda n, i, j: (n, i, 0, 0)),
            # 1-row halos above/below the tile; clamped at the border and masked
            # to zero inside the kernel (== the conv's zero row padding).
            pl.BlockSpec((1, 1, W, C),
                         lambda n, i, j: (n, jnp.maximum(i * TH - 1, 0), 0, 0)),
            pl.BlockSpec((1, 1, W, C),
                         lambda n, i, j: (n, jnp.minimum((i + 1) * TH, H - 1), 0, 0)),
        ]
        args += [x, x, x]
    if residual is not None:
        in_specs.append(pl.BlockSpec((1, TH, W, tc), lambda n, i, j: (n, i, 0, j)))
        args.append(residual)
    in_specs.append(pl.BlockSpec((3, Ktot, tc), lambda n, i, j: (0, 0, j)))
    args.append(w3)
    for mode, sb, C in zip(modes, scale_biases, chans):
        if mode == "none":
            continue
        s, b = sb
        in_specs.append(pl.BlockSpec((1, C), lambda n, i, j: (0, 0)))
        in_specs.append(pl.BlockSpec((1, C), lambda n, i, j: (0, 0)))
        args += [jnp.asarray(s, f32).reshape(1, C),
                 jnp.asarray(b, f32).reshape(1, C)]
    in_specs.append(pl.BlockSpec((1, tc), lambda n, i, j: (0, j)))
    args.append(jnp.asarray(bo, f32).reshape(1, Cout))

    kernel = functools.partial(_fused_conv3x3_kernel, modes=tuple(modes),
                               residual=residual is not None,
                               post_relu=post_relu)

    return pl.pallas_call(
        kernel,
        out_shape=jax.ShapeDtypeStruct((N, H, W, Cout), out_dtype),
        grid=(N, n_rt, n_ct),
        in_specs=in_specs,
        out_specs=pl.BlockSpec((1, TH, W, tc), lambda n, i, j: (n, i, 0, j)),
        scratch_shapes=[pltpu.VMEM((TH + 2, Wp, Ktot), MXU_DTYPE)],
        compiler_params=pltpu.CompilerParams(
            # Cout-tile axis must stay "arbitrary": the staged scratch is filled
            # at j == 0 and reused for j > 0 on the same core.
            dimension_semantics=("parallel", "parallel", "arbitrary"),
            vmem_limit_bytes=VMEM_LIMIT_BYTES),
    )(*args)


# ----------------------------------------------------------------------------
# glue (stays in plain JAX)
# ----------------------------------------------------------------------------
def fold_bn(gamma, beta, mean, var, eps=BN_EPS):
    scale = gamma / jnp.sqrt(var + eps)
    bias = beta - mean * scale
    return scale, bias


def resize_bilinear_align_corners(x, ho, wo):
    """F.upsample(..., mode='bilinear', align_corners=True) on NHWC."""
    n, h, w, c = x.shape
    ys = jnp.zeros((ho,), jnp.float32) if h == 1 else jnp.linspace(0.0, h - 1.0, ho)
    xs = jnp.zeros((wo,), jnp.float32) if w == 1 else jnp.linspace(0.0, w - 1.0, wo)
    y0 = jnp.floor(ys).astype(jnp.int32)
    y1 = jnp.minimum(y0 + 1, h - 1)
    wy = (ys - y0.astype(jnp.float32)).astype(x.dtype)
    x0 = jnp.floor(xs).astype(jnp.int32)
    x1 = jnp.minimum(x0 + 1, w - 1)
    wx = (xs - x0.astype(jnp.float32)).astype(x.dtype)

    r0 = x[:, y0]
    r1 = x[:, y1]
    top = r0[:, :, x0] * (1 - wx)[None, None, :, None] + r0[:, :, x1] * wx[None, None, :, None]
    bot = r1[:, :, x0] * (1 - wx)[None, None, :, None] + r1[:, :, x1] * wx[None, None, :, None]
    return top * (1 - wy)[None, :, None, None] + bot * wy[None, :, None, None]


# ----------------------------------------------------------------------------
# decoder_module forward (fusing=True branch): three fused Pallas calls
# ----------------------------------------------------------------------------
def decoder_forward(enc_fea, depth_fea, dec_fea, p, tile_rows=None):
    N, H, W, Cin = enc_fea.shape
    Cout = p["dec1_w"].shape[-1]

    if dec_fea.shape[1] != H or dec_fea.shape[2] != W:
        dec_fea = resize_bilinear_align_corners(dec_fea, H, W)

    # decoding1[0]:  conv3x3([relu(bn_enc(enc)), dec_up], W1) + b1
    s_e, b_e = fold_bn(*p["enc_bn"])
    out1 = fused_conv3x3(
        [enc_fea, dec_fea], p["dec1_w"], p["dec1_b"],
        modes=("bn_relu", "none"), scale_biases=[(s_e, b_e), None],
        residual=None, post_relu=False, out_dtype=INTERM_DTYPE,
        tile_rows=tile_rows)

    # ResPart:  out1 + conv3x3(relu(bn_res([out1, depth])), Wr) + br
    s_r, b_r = fold_bn(*p["res_bn"])
    out2 = fused_conv3x3(
        [out1, depth_fea], p["res_w"], p["res_b"],
        modes=("bn_relu", "bn_relu"),
        scale_biases=[(s_r[:Cout], b_r[:Cout]), (s_r[Cout:], b_r[Cout:])],
        residual=out1, post_relu=False, out_dtype=INTERM_DTYPE,
        tile_rows=tile_rows)

    # decoding1[1:] (BN+ReLU) as pre-activation of decoding2's conv;
    # decoding2's BN folded into the conv weight columns + bias; ReLU epilogue.
    s_1, b_1 = fold_bn(*p["dec1_bn"])
    s_2, b_2 = fold_bn(*p["dec2_bn"])
    w2 = p["dec2_w"] * s_2[None, None, None, :]
    bias2 = s_2 * p["dec2_b"] + b_2
    out = fused_conv3x3(
        [out2], w2, bias2,
        modes=("bn_relu",), scale_biases=[(s_1, b_1)],
        residual=None, post_relu=True, out_dtype=jnp.float32,
        tile_rows=tile_rows)
    return out


# ----------------------------------------------------------------------------
# pure-JAX reference (mirrors the PyTorch module) for the correctness check
# ----------------------------------------------------------------------------
def _ref_conv3x3(x, w, b):
    y = jax.lax.conv_general_dilated(
        x, w, window_strides=(1, 1), padding=((1, 1), (1, 1)),
        dimension_numbers=("NHWC", "HWIO", "NHWC"),
        precision=jax.lax.Precision.HIGHEST)
    return y + b


def decoder_forward_ref(enc_fea, depth_fea, dec_fea, p):
    s, b = fold_bn(*p["enc_bn"])
    x = jnp.maximum(enc_fea * s + b, 0.0)
    if dec_fea.shape[1] != x.shape[1] or dec_fea.shape[2] != x.shape[2]:
        dec_fea = resize_bilinear_align_corners(dec_fea, x.shape[1], x.shape[2])
    x = jnp.concatenate([x, dec_fea], axis=-1)
    out = _ref_conv3x3(x, p["dec1_w"], p["dec1_b"])
    cat = jnp.concatenate([out, depth_fea], axis=-1)
    s, b = fold_bn(*p["res_bn"])
    cat = jnp.maximum(cat * s + b, 0.0)
    out = out + _ref_conv3x3(cat, p["res_w"], p["res_b"])
    s, b = fold_bn(*p["dec1_bn"])
    out = jnp.maximum(out * s + b, 0.0)
    out = _ref_conv3x3(out, p["dec2_w"], p["dec2_b"])
    s, b = fold_bn(*p["dec2_bn"])
    out = jnp.maximum(out * s + b, 0.0)
    return out


# ----------------------------------------------------------------------------
# deterministic synthetic parameters (shapes from the module's __init__)
# ----------------------------------------------------------------------------
def init_params(key, cin, cout):
    ks = jax.random.split(key, 16)

    def bn(k, c):
        k1, k2, k3, k4 = jax.random.split(k, 4)
        gamma = 1.0 + 0.1 * jax.random.normal(k1, (c,), jnp.float32)
        beta = 0.1 * jax.random.normal(k2, (c,), jnp.float32)
        mean = 0.1 * jax.random.normal(k3, (c,), jnp.float32)
        var = jax.random.uniform(k4, (c,), jnp.float32, 0.5, 1.5)
        return (gamma, beta, mean, var)

    def conv(kw, kb, ci, co):
        w = 0.1 * jax.random.normal(kw, (3, 3, ci, co), jnp.float32)  # HWIO
        b = 0.05 * jax.random.normal(kb, (co,), jnp.float32)
        return w, b

    p = {}
    p["enc_bn"] = bn(ks[0], cin)                                   # enc_fea_proc BN(cin)
    p["dec1_w"], p["dec1_b"] = conv(ks[1], ks[2], 2 * cin, cout)   # decoding1 conv
    p["res_bn"] = bn(ks[3], 2 * cout)                              # Res_part BN(2*cout)
    p["res_w"], p["res_b"] = conv(ks[4], ks[5], 2 * cout, cout)    # Res_part conv
    p["dec1_bn"] = bn(ks[6], cout)                                 # decoding1 BN(cout)
    p["dec2_w"], p["dec2_b"] = conv(ks[7], ks[8], cout, cout)      # decoding2 conv
    p["dec2_bn"] = bn(ks[9], cout)                                 # decoding2 BN(cout)
    return p


if __name__ == "__main__":
    key = jax.random.PRNGKey(0)
    N, H, W = 2, 16, 16
    CIN, COUT = 4, 8

    k1, k2, k3, k4 = jax.random.split(key, 4)
    enc_fea = jax.random.normal(k1, (N, H, W, CIN), jnp.float32)
    depth_fea = jax.random.normal(k2, (N, H, W, COUT), jnp.float32)
    dec_fea = jax.random.normal(k3, (N, H // 2, W // 2, CIN), jnp.float32)  # exercises upsample

    params = init_params(k4, CIN, COUT)

    fwd = jax.jit(decoder_forward, static_argnames=("tile_rows",))
    ref = jax.block_until_ready(
        decoder_forward_ref(enc_fea, depth_fea, dec_fea, params))

    # tile_rows=8 -> 2 row tiles per image (exercises the halo/boundary path);
    # tile_rows=None -> VMEM-budget heuristic picks the tile size.
    for tr in (8, None):
        out = jax.block_until_ready(
            fwd(enc_fea, depth_fea, dec_fea, params, tile_rows=tr))
        assert out.shape == (N, H, W, COUT), out.shape
        assert bool(jnp.all(jnp.isfinite(out)))
        assert bool(jnp.all(out >= 0.0))          # final op is ReLU
        max_err = float(jnp.max(jnp.abs(out - ref)))
        mean_err = float(jnp.mean(jnp.abs(out - ref)))
        # bf16 MXU operands + bf16 inter-call activations vs. an f32 reference.
        assert max_err < 8e-2, f"tile_rows={tr}: max abs err {max_err}"
        assert mean_err < 2e-2, f"tile_rows={tr}: mean abs err {mean_err}"
    print("KERNEL_OK")
</pallas_src>

<mosaic_0001>
module attributes {stable_mosaic.version = 11 : i64} {
  func.func @_fused_conv3x3_kernel(%arg0: i32, %arg1: i32, %arg2: i32, %arg3: memref<1x8x16x4xf32, #tpu.memory_space<vmem>>, %arg4: memref<1x1x16x4xf32, #tpu.memory_space<vmem>>, %arg5: memref<1x1x16x4xf32, #tpu.memory_space<vmem>>, %arg6: memref<1x8x16x4xf32, #tpu.memory_space<vmem>>, %arg7: memref<1x1x16x4xf32, #tpu.memory_space<vmem>>, %arg8: memref<1x1x16x4xf32, #tpu.memory_space<vmem>>, %arg9: memref<3x24x8xbf16, #tpu.memory_space<vmem>>, %arg10: memref<1x4xf32, #tpu.memory_space<vmem>>, %arg11: memref<1x4xf32, #tpu.memory_space<vmem>>, %arg12: memref<1x8xf32, #tpu.memory_space<vmem>>, %arg13: memref<1x8x16x8xbf16, #tpu.memory_space<vmem>>, %arg14: memref<10x32x24xbf16, #tpu.memory_space<vmem>>) attributes {dimension_semantics = [#tpu.dimension_semantics<parallel>, #tpu.dimension_semantics<parallel>, #tpu.dimension_semantics<arbitrary>], iteration_bounds = array<i64: 2, 2, 1>, scalar_prefetch = 0 : i64, scratch_operands = 1 : i64, tpu.core_type = #tpu.core_type<tc>, window_params = [{transform_indices = @transform_0, window_bounds = array<i64: 1, 8, 16, 4>}, {transform_indices = @transform_1, window_bounds = array<i64: 1, 1, 16, 4>}, {transform_indices = @transform_2, window_bounds = array<i64: 1, 1, 16, 4>}, {transform_indices = @transform_3, window_bounds = array<i64: 1, 8, 16, 4>}, {transform_indices = @transform_4, window_bounds = array<i64: 1, 1, 16, 4>}, {transform_indices = @transform_5, window_bounds = array<i64: 1, 1, 16, 4>}, {transform_indices = @transform_6, window_bounds = array<i64: 3, 24, 8>}, {pipeline_mode = #tpu.pipeline_mode<synchronous>, transform_indices = @transform_7, window_bounds = array<i64: 1, 4>}, {pipeline_mode = #tpu.pipeline_mode<synchronous>, transform_indices = @transform_8, window_bounds = array<i64: 1, 4>}, {transform_indices = @transform_9, window_bounds = array<i64: 1, 8>}, {transform_indices = @transform_10, window_bounds = array<i64: 1, 8, 16, 8>}]} {
    %c0_i32 = arith.constant 0 : i32
    %0 = arith.cmpi eq, %arg2, %c0_i32 : i32
    %1 = arith.extui %0 : i1 to i32
    %c0_i32_0 = arith.constant 0 : i32
    %2 = arith.cmpi ne, %1, %c0_i32_0 : i32
    scf.if %2 {
      %c0_i32_24 = arith.constant 0 : i32
      %31 = arith.cmpi sgt, %arg1, %c0_i32_24 : i32
      %c0_25 = arith.constant 0 : index
      %c0_26 = arith.constant 0 : index
      %c0_27 = arith.constant 0 : index
      %c0_28 = arith.constant 0 : index
      %32 = vector.load %arg4[%c0_25, %c0_26, %c0_27, %c0_28] : memref<1x1x16x4xf32, #tpu.memory_space<vmem>>, vector<1x1x16x4xf32>
      %33 = vector.shape_cast %32 : vector<1x1x16x4xf32> to vector<1x16x4xf32>
      %c0_29 = arith.constant 0 : index
      %c0_30 = arith.constant 0 : index
      %34 = vector.load %arg10[%c0_29, %c0_30] : memref<1x4xf32, #tpu.memory_space<vmem>>, vector<1x4xf32>
      %35 = vector.shape_cast %34 : vector<1x4xf32> to vector<4xf32>
      %36 = vector.shape_cast %35 : vector<4xf32> to vector<1x1x4xf32>
      %37 = vector.broadcast %36 : vector<1x1x4xf32> to vector<1x16x4xf32>
      %38 = arith.mulf %33, %37 : vector<1x16x4xf32>
      %c0_31 = arith.constant 0 : index
      %c0_32 = arith.constant 0 : index
      %39 = vector.load %arg11[%c0_31, %c0_32] : memref<1x4xf32, #tpu.memory_space<vmem>>, vector<1x4xf32>
      %40 = vector.shape_cast %39 : vector<1x4xf32> to vector<4xf32>
      %41 = vector.shape_cast %40 : vector<4xf32> to vector<1x1x4xf32>
      %42 = vector.broadcast %41 : vector<1x1x4xf32> to vector<1x16x4xf32>
      %43 = arith.addf %38, %42 : vector<1x16x4xf32>
      %cst_33 = arith.constant 0.000000e+00 : f32
      %44 = vector.broadcast %cst_33 : f32 to vector<1x16x4xf32>
      %45 = arith.maximumf %43, %44 : vector<1x16x4xf32>
      %cst_34 = arith.constant 0.000000e+00 : f32
      %46 = vector.broadcast %cst_34 : f32 to vector<1x16x4xf32>
      %47 = arith.select %31, %45, %46 : vector<1x16x4xf32>
      %c1_i32 = arith.constant 1 : i32
      %48 = arith.cmpi slt, %arg1, %c1_i32 : i32
      %c0_35 = arith.constant 0 : index
      %c0_36 = arith.constant 0 : index
      %c0_37 = arith.constant 0 : index
      %c0_38 = arith.constant 0 : index
      %49 = vector.load %arg5[%c0_35, %c0_36, %c0_37, %c0_38] : memref<1x1x16x4xf32, #tpu.memory_space<vmem>>, vector<1x1x16x4xf32>
      %50 = vector.shape_cast %49 : vector<1x1x16x4xf32> to vector<1x16x4xf32>
      %c0_39 = arith.constant 0 : index
      %c0_40 = arith.constant 0 : index
      %51 = vector.load %arg10[%c0_39, %c0_40] : memref<1x4xf32, #tpu.memory_space<vmem>>, vector<1x4xf32>
      %52 = vector.shape_cast %51 : vector<1x4xf32> to vector<4xf32>
      %53 = vector.shape_cast %52 : vector<4xf32> to vector<1x1x4xf32>
      %54 = vector.broadcast %53 : vector<1x1x4xf32> to vector<1x16x4xf32>
      %55 = arith.mulf %50, %54 : vector<1x16x4xf32>
      %c0_41 = arith.constant 0 : index
      %c0_42 = arith.constant 0 : index
      %56 = vector.load %arg11[%c0_41, %c0_42] : memref<1x4xf32, #tpu.memory_space<vmem>>, vector<1x4xf32>
      %57 = vector.shape_cast %56 : vector<1x4xf32> to vector<4xf32>
      %58 = vector.shape_cast %57 : vector<4xf32> to vector<1x1x4xf32>
      %59 = vector.broadcast %58 : vector<1x1x4xf32> to vector<1x16x4xf32>
      %60 = arith.addf %55, %59 : vector<1x16x4xf32>
      %cst_43 = arith.constant 0.000000e+00 : f32
      %61 = vector.broadcast %cst_43 : f32 to vector<1x16x4xf32>
      %62 = arith.maximumf %60, %61 : vector<1x16x4xf32>
      %cst_44 = arith.constant 0.000000e+00 : f32
      %63 = vector.broadcast %cst_44 : f32 to vector<1x16x4xf32>
      %64 = arith.select %48, %62, %63 : vector<1x16x4xf32>
      %c0_45 = arith.constant 0 : index
      %c0_46 = arith.constant 0 : index
      %c0_47 = arith.constant 0 : index
      %c0_48 = arith.constant 0 : index
      %65 = vector.load %arg3[%c0_45, %c0_46, %c0_47, %c0_48] : memref<1x8x16x4xf32, #tpu.memory_space<vmem>>, vector<1x8x16x4xf32>
      %66 = vector.shape_cast %65 : vector<1x8x16x4xf32> to vector<8x16x4xf32>
      %c0_49 = arith.constant 0 : index
      %c0_50 = arith.constant 0 : index
      %67 = vector.load %arg10[%c0_49, %c0_50] : memref<1x4xf32, #tpu.memory_space<vmem>>, vector<1x4xf32>
      %68 = vector.shape_cast %67 : vector<1x4xf32> to vector<4xf32>
      %69 = vector.shape_cast %68 : vector<4xf32> to vector<1x1x4xf32>
      %70 = vector.broadcast %69 : vector<1x1x4xf32> to vector<8x16x4xf32>
      %71 = arith.mulf %66, %70 : vector<8x16x4xf32>
      %c0_51 = arith.constant 0 : index
      %c0_52 = arith.constant 0 : index
      %72 = vector.load %arg11[%c0_51, %c0_52] : memref<1x4xf32, #tpu.memory_space<vmem>>, vector<1x4xf32>
      %73 = vector.shape_cast %72 : vector<1x4xf32> to vector<4xf32>
      %74 = vector.shape_cast %73 : vector<4xf32> to vector<1x1x4xf32>
      %75 = vector.broadcast %74 : vector<1x1x4xf32> to vector<8x16x4xf32>
      %76 = arith.addf %71, %75 : vector<8x16x4xf32>
      %cst_53 = arith.constant 0.000000e+00 : f32
      %77 = vector.broadcast %cst_53 : f32 to vector<8x16x4xf32>
      %78 = arith.maximumf %76, %77 : vector<8x16x4xf32>
      %79 = tpu.concatenate %47, %78, %64 in 0 : vector<1x16x4xf32>, vector<8x16x4xf32>, vector<1x16x4xf32> -> vector<10x16x4xf32>
      %80 = arith.truncf %79 : vector<10x16x4xf32> to vector<10x16x4xbf16>
      %cst_54 = arith.constant 0.000000e+00 : bf16
      %81 = vector.broadcast %cst_54 : bf16 to vector<10x1x4xbf16>
      %c0_55 = arith.constant 0 : index
      %c0_56 = arith.constant 0 : index
      %c0_57 = arith.constant 0 : index
      %82 = vector.load %arg14[%c0_55, %c0_56, %c0_57] : memref<10x32x24xbf16, #tpu.memory_space<vmem>>, vector<10x1x4xbf16>
      tpu.vector_store %arg14[%c0_55, %c0_56, %c0_57], %81 {strides = array<i32>} : memref<10x32x24xbf16, #tpu.memory_space<vmem>>, vector<10x1x4xbf16>,
      %c0_58 = arith.constant 0 : index
      %c1_59 = arith.constant 1 : index
      %c0_60 = arith.constant 0 : index
      %83 = vector.load %arg14[%c0_58, %c1_59, %c0_60] : memref<10x32x24xbf16, #tpu.memory_space<vmem>>, vector<10x16x4xbf16>
      tpu.vector_store %arg14[%c0_58, %c1_59, %c0_60], %80 {strides = array<i32>} : memref<10x32x24xbf16, #tpu.memory_space<vmem>>, vector<10x16x4xbf16>,
      %cst_61 = arith.constant 0.000000e+00 : bf16
      %84 = vector.broadcast %cst_61 : bf16 to vector<10x15x4xbf16>
      %c0_62 = arith.constant 0 : index
      %c17 = arith.constant 17 : index
      %c0_63 = arith.constant 0 : index
      %85 = vector.load %arg14[%c0_62, %c17, %c0_63] : memref<10x32x24xbf16, #tpu.memory_space<vmem>>, vector<10x15x4xbf16>
      tpu.vector_store %arg14[%c0_62, %c17, %c0_63], %84 {strides = array<i32>} : memref<10x32x24xbf16, #tpu.memory_space<vmem>>, vector<10x15x4xbf16>,
      %c0_64 = arith.constant 0 : index
      %c0_65 = arith.constant 0 : index
      %c8 = arith.constant 8 : index
      %86 = vector.load %arg14[%c0_64, %c0_65, %c8] : memref<10x32x24xbf16, #tpu.memory_space<vmem>>, vector<10x16x4xbf16>
      tpu.vector_store %arg14[%c0_64, %c0_65, %c8], %80 {strides = array<i32>} : memref<10x32x24xbf16, #tpu.memory_space<vmem>>, vector<10x16x4xbf16>,
      %cst_66 = arith.constant 0.000000e+00 : bf16
      %87 = vector.broadcast %cst_66 : bf16 to vector<10x16x4xbf16>
      %c0_67 = arith.constant 0 : index
      %c16 = arith.constant 16 : index
      %c8_68 = arith.constant 8 : index
      %88 = vector.load %arg14[%c0_67, %c16, %c8_68] : memref<10x32x24xbf16, #tpu.memory_space<vmem>>, vector<10x16x4xbf16>
      tpu.vector_store %arg14[%c0_67, %c16, %c8_68], %87 {strides = array<i32>} : memref<10x32x24xbf16, #tpu.memory_space<vmem>>, vector<10x16x4xbf16>,
      %89 = vector.extract_strided_slice %80 {offsets = [0, 1, 0], sizes = [10, 15, 4], strides = [1, 1, 1]} : vector<10x16x4xbf16> to vector<10x15x4xbf16>
      %c0_69 = arith.constant 0 : index
      %c0_70 = arith.constant 0 : index
      %c16_71 = arith.constant 16 : index
      %90 = vector.load %arg14[%c0_69, %c0_70, %c16_71] : memref<10x32x24xbf16, #tpu.memory_space<vmem>>, vector<10x15x4xbf16>
      tpu.vector_store %arg14[%c0_69, %c0_70, %c16_71], %89 {strides = array<i32>} : memref<10x32x24xbf16, #tpu.memory_space<vmem>>, vector<10x15x4xbf16>,
      %cst_72 = arith.constant 0.000000e+00 : bf16
      %91 = vector.broadcast %cst_72 : bf16 to vector<10x17x4xbf16>
      %c0_73 = arith.constant 0 : index
      %c15 = arith.constant 15 : index
      %c16_74 = arith.constant 16 : index
      %92 = vector.load %arg14[%c0_73, %c15, %c16_74] : memref<10x32x24xbf16, #tpu.memory_space<vmem>>, vector<10x17x4xbf16>
      tpu.vector_store %arg14[%c0_73, %c15, %c16_74], %91 {strides = array<i32>} : memref<10x32x24xbf16, #tpu.memory_space<vmem>>, vector<10x17x4xbf16>,
      %c0_i32_75 = arith.constant 0 : i32
      %93 = arith.cmpi sgt, %arg1, %c0_i32_75 : i32
      %c0_76 = arith.constant 0 : index
      %c0_77 = arith.constant 0 : index
      %c0_78 = arith.constant 0 : index
      %c0_79 = arith.constant 0 : index
      %94 = vector.load %arg7[%c0_76, %c0_77, %c0_78, %c0_79] : memref<1x1x16x4xf32, #tpu.memory_space<vmem>>, vector<1x1x16x4xf32>
      %95 = vector.shape_cast %94 : vector<1x1x16x4xf32> to vector<1x16x4xf32>
      %cst_80 = arith.constant 0.000000e+00 : f32
      %96 = vector.broadcast %cst_80 : f32 to vector<1x16x4xf32>
      %97 = arith.select %93, %95, %96 : vector<1x16x4xf32>
      %c1_i32_81 = arith.constant 1 : i32
      %98 = arith.cmpi slt, %arg1, %c1_i32_81 : i32
      %c0_82 = arith.constant 0 : index
      %c0_83 = arith.constant 0 : index
      %c0_84 = arith.constant 0 : index
      %c0_85 = arith.constant 0 : index
      %99 = vector.load %arg8[%c0_82, %c0_83, %c0_84, %c0_85] : memref<1x1x16x4xf32, #tpu.memory_space<vmem>>, vector<1x1x16x4xf32>
      %100 = vector.shape_cast %99 : vector<1x1x16x4xf32> to vector<1x16x4xf32>
      %cst_86 = arith.constant 0.000000e+00 : f32
      %101 = vector.broadcast %cst_86 : f32 to vector<1x16x4xf32>
      %102 = arith.select %98, %100, %101 : vector<1x16x4xf32>
      %c0_87 = arith.constant 0 : index
      %c0_88 = arith.constant 0 : index
      %c0_89 = arith.constant 0 : index
      %c0_90 = arith.constant 0 : index
      %103 = vector.load %arg6[%c0_87, %c0_88, %c0_89, %c0_90] : memref<1x8x16x4xf32, #tpu.memory_space<vmem>>, vector<1x8x16x4xf32>
      %104 = vector.shape_cast %103 : vector<1x8x16x4xf32> to vector<8x16x4xf32>
      %105 = tpu.concatenate %97, %104, %102 in 0 : vector<1x16x4xf32>, vector<8x16x4xf32>, vector<1x16x4xf32> -> vector<10x16x4xf32>
      %106 = arith.truncf %105 : vector<10x16x4xf32> to vector<10x16x4xbf16>
      %cst_91 = arith.constant 0.000000e+00 : bf16
      %107 = vector.broadcast %cst_91 : bf16 to vector<10x1x4xbf16>
      %c0_92 = arith.constant 0 : index
      %c0_93 = arith.constant 0 : index
      %c4 = arith.constant 4 : index
      %108 = vector.load %arg14[%c0_92, %c0_93, %c4] : memref<10x32x24xbf16, #tpu.memory_space<vmem>>, vector<10x1x4xbf16>
      tpu.vector_store %arg14[%c0_92, %c0_93, %c4], %107 {strides = array<i32>} : memref<10x32x24xbf16, #tpu.memory_space<vmem>>, vector<10x1x4xbf16>,
      %c0_94 = arith.constant 0 : index
      %c1_95 = arith.constant 1 : index
      %c4_96 = arith.constant 4 : index
      %109 = vector.load %arg14[%c0_94, %c1_95, %c4_96] : memref<10x32x24xbf16, #tpu.memory_space<vmem>>, vector<10x16x4xbf16>
      tpu.vector_store %arg14[%c0_94, %c1_95, %c4_96], %106 {strides = array<i32>} : memref<10x32x24xbf16, #tpu.memory_space<vmem>>, vector<10x16x4xbf16>,
      %cst_97 = arith.constant 0.000000e+00 : bf16
      %110 = vector.broadcast %cst_97 : bf16 to vector<10x15x4xbf16>
      %c0_98 = arith.constant 0 : index
      %c17_99 = arith.constant 17 : index
      %c4_100 = arith.constant 4 : index
      %111 = vector.load %arg14[%c0_98, %c17_99, %c4_100] : memref<10x32x24xbf16, #tpu.memory_space<vmem>>, vector<10x15x4xbf16>
      tpu.vector_store %arg14[%c0_98, %c17_99, %c4_100], %110 {strides = array<i32>} : memref<10x32x24xbf16, #tpu.memory_space<vmem>>, vector<10x15x4xbf16>,
      %c0_101 = arith.constant 0 : index
      %c0_102 = arith.constant 0 : index
      %c12 = arith.constant 12 : index
      %112 = vector.load %arg14[%c0_101, %c0_102, %c12] : memref<10x32x24xbf16, #tpu.memory_space<vmem>>, vector<10x16x4xbf16>
      tpu.vector_store %arg14[%c0_101, %c0_102, %c12], %106 {strides = array<i32>} : memref<10x32x24xbf16, #tpu.memory_space<vmem>>, vector<10x16x4xbf16>,
      %cst_103 = arith.constant 0.000000e+00 : bf16
      %113 = vector.broadcast %cst_103 : bf16 to vector<10x16x4xbf16>
      %c0_104 = arith.constant 0 : index
      %c16_105 = arith.constant 16 : index
      %c12_106 = arith.constant 12 : index
      %114 = vector.load %arg14[%c0_104, %c16_105, %c12_106] : memref<10x32x24xbf16, #tpu.memory_space<vmem>>, vector<10x16x4xbf16>
      tpu.vector_store %arg14[%c0_104, %c16_105, %c12_106], %113 {strides = array<i32>} : memref<10x32x24xbf16, #tpu.memory_space<vmem>>, vector<10x16x4xbf16>,
      %115 = vector.extract_strided_slice %106 {offsets = [0, 1, 0], sizes = [10, 15, 4], strides = [1, 1, 1]} : vector<10x16x4xbf16> to vector<10x15x4xbf16>
      %c0_107 = arith.constant 0 : index
      %c0_108 = arith.constant 0 : index
      %c20 = arith.constant 20 : index
      %116 = vector.load %arg14[%c0_107, %c0_108, %c20] : memref<10x32x24xbf16, #tpu.memory_space<vmem>>, vector<10x15x4xbf16>
      tpu.vector_store %arg14[%c0_107, %c0_108, %c20], %115 {strides = array<i32>} : memref<10x32x24xbf16, #tpu.memory_space<vmem>>, vector<10x15x4xbf16>,
      %cst_109 = arith.constant 0.000000e+00 : bf16
      %117 = vector.broadcast %cst_109 : bf16 to vector<10x17x4xbf16>
      %c0_110 = arith.constant 0 : index
      %c15_111 = arith.constant 15 : index
      %c20_112 = arith.constant 20 : index
      %118 = vector.load %arg14[%c0_110, %c15_111, %c20_112] : memref<10x32x24xbf16, #tpu.memory_space<vmem>>, vector<10x17x4xbf16>
      tpu.vector_store %arg14[%c0_110, %c15_111, %c20_112], %117 {strides = array<i32>} : memref<10x32x24xbf16, #tpu.memory_space<vmem>>, vector<10x17x4xbf16>,
    } else {
    }
    %c0 = arith.constant 0 : index
    %c0_1 = arith.constant 0 : index
    %c0_2 = arith.constant 0 : index
    %3 = vector.load %arg14[%c0, %c0_1, %c0_2] : memref<10x32x24xbf16, #tpu.memory_space<vmem>>, vector<8x32x24xbf16>
    %4 = vector.shape_cast %3 : vector<8x32x24xbf16> to vector<256x24xbf16>
    %c0_3 = arith.constant 0 : index
    %c0_4 = arith.constant 0 : index
    %c0_5 = arith.constant 0 : index
    %5 = vector.load %arg9[%c0_3, %c0_4, %c0_5] : memref<3x24x8xbf16, #tpu.memory_space<vmem>>, vector<1x24x8xbf16>
    %6 = vector.shape_cast %5 : vector<1x24x8xbf16> to vector<24x8xbf16>
    %cst = arith.constant dense<0.000000e+00> : vector<256x8xf32>
    %7 = tpu.matmul %4, %6, %cst {dimension_numbers = #tpu.dot_dimension_numbers<[1], [0], [0], [1], [0, 0, 1, 1], [], []>} : vector<256x24xbf16>, vector<24x8xbf16>, vector<256x8xf32> -> vector<256x8xf32>
    %c1 = arith.constant 1 : index
    %c0_6 = arith.constant 0 : index
    %c0_7 = arith.constant 0 : index
    %8 = vector.load %arg14[%c1, %c0_6, %c0_7] : memref<10x32x24xbf16, #tpu.memory_space<vmem>>, vector<8x32x24xbf16>
    %9 = vector.shape_cast %8 : vector<8x32x24xbf16> to vector<256x24xbf16>
    %c1_8 = arith.constant 1 : index
    %c0_9 = arith.constant 0 : index
    %c0_10 = arith.constant 0 : index
    %10 = vector.load %arg9[%c1_8, %c0_9, %c0_10] : memref<3x24x8xbf16, #tpu.memory_space<vmem>>, vector<1x24x8xbf16>
    %11 = vector.shape_cast %10 : vector<1x24x8xbf16> to vector<24x8xbf16>
    %cst_11 = arith.constant dense<0.000000e+00> : vector<256x8xf32>
    %12 = tpu.matmul %9, %11, %cst_11 {dimension_numbers = #tpu.dot_dimension_numbers<[1], [0], [0], [1], [0, 0, 1, 1], [], []>} : vector<256x24xbf16>, vector<24x8xbf16>, vector<256x8xf32> -> vector<256x8xf32>
    %13 = arith.addf %7, %12 : vector<256x8xf32>
    %c2 = arith.constant 2 : index
    %c0_12 = arith.constant 0 : index
    %c0_13 = arith.constant 0 : index
    %14 = vector.load %arg14[%c2, %c0_12, %c0_13] : memref<10x32x24xbf16, #tpu.memory_space<vmem>>, vector<8x32x24xbf16>
    %15 = vector.shape_cast %14 : vector<8x32x24xbf16> to vector<256x24xbf16>
    %c2_14 = arith.constant 2 : index
    %c0_15 = arith.constant 0 : index
    %c0_16 = arith.constant 0 : index
    %16 = vector.load %arg9[%c2_14, %c0_15, %c0_16] : memref<3x24x8xbf16, #tpu.memory_space<vmem>>, vector<1x24x8xbf16>
    %17 = vector.shape_cast %16 : vector<1x24x8xbf16> to vector<24x8xbf16>
    %cst_17 = arith.constant dense<0.000000e+00> : vector<256x8xf32>
    %18 = tpu.matmul %15, %17, %cst_17 {dimension_numbers = #tpu.dot_dimension_numbers<[1], [0], [0], [1], [0, 0, 1, 1], [], []>} : vector<256x24xbf16>, vector<24x8xbf16>, vector<256x8xf32> -> vector<256x8xf32>
    %19 = arith.addf %13, %18 : vector<256x8xf32>
    %20 = vector.shape_cast %19 : vector<256x8xf32> to vector<8x32x8xf32>
    %21 = vector.extract_strided_slice %20 {offsets = [0, 0, 0], sizes = [8, 16, 8], strides = [1, 1, 1]} : vector<8x32x8xf32> to vector<8x16x8xf32>
    %c0_18 = arith.constant 0 : index
    %c0_19 = arith.constant 0 : index
    %22 = vector.load %arg12[%c0_18, %c0_19] : memref<1x8xf32, #tpu.memory_space<vmem>>, vector<1x8xf32>
    %23 = vector.shape_cast %22 : vector<1x8xf32> to vector<8xf32>
    %24 = vector.shape_cast %23 : vector<8xf32> to vector<1x1x8xf32>
    %25 = vector.broadcast %24 : vector<1x1x8xf32> to vector<8x16x8xf32>
    %26 = arith.addf %21, %25 : vector<8x16x8xf32>
    %27 = arith.truncf %26 : vector<8x16x8xf32> to vector<8x16x8xbf16>
    %c0_20 = arith.constant 0 : index
    %c0_21 = arith.constant 0 : index
    %c0_22 = arith.constant 0 : index
    %c0_23 = arith.constant 0 : index
    %28 = vector.load %arg13[%c0_20, %c0_21, %c0_22, %c0_23] : memref<1x8x16x8xbf16, #tpu.memory_space<vmem>>, vector<1x8x16x8xbf16>
    %29 = vector.shape_cast %28 : vector<1x8x16x8xbf16> to vector<8x16x8xbf16>
    %30 = vector.shape_cast %27 : vector<8x16x8xbf16> to vector<1x8x16x8xbf16>
    tpu.vector_store %arg13[%c0_20, %c0_21, %c0_22, %c0_23], %30 {strides = array<i32>} : memref<1x8x16x8xbf16, #tpu.memory_space<vmem>>, vector<1x8x16x8xbf16>,
    return
  }
  func.func @transform_0(%arg0: i32, %arg1: i32, %arg2: i32) -> (i32, i32, i32, i32) {
    %c0_i32 = arith.constant 0 : i32
    %c0_i32_0 = arith.constant 0 : i32
    %c0_i32_1 = arith.constant 0 : i32
    return %arg0, %arg1, %c0_i32, %c0_i32_0 : i32, i32, i32, i32
  }
  func.func @transform_1(%arg0: i32, %arg1: i32, %arg2: i32) -> (i32, i32, i32, i32) {
    %c8_i32 = arith.constant 8 : i32
    %0 = arith.muli %arg1, %c8_i32 : i32
    %c1_i32 = arith.constant 1 : i32
    %1 = arith.subi %0, %c1_i32 : i32
    %c0_i32 = arith.constant 0 : i32
    %2 = arith.maxsi %1, %c0_i32 : i32
    %c0_i32_0 = arith.constant 0 : i32
    %c0_i32_1 = arith.constant 0 : i32
    %c0_i32_2 = arith.constant 0 : i32
    return %arg0, %2, %c0_i32_0, %c0_i32_1 : i32, i32, i32, i32
  }
  func.func @transform_2(%arg0: i32, %arg1: i32, %arg2: i32) -> (i32, i32, i32, i32) {
    %c1_i32 = arith.constant 1 : i32
    %0 = arith.addi %arg1, %c1_i32 : i32
    %c8_i32 = arith.constant 8 : i32
    %1 = arith.muli %0, %c8_i32 : i32
    %c15_i32 = arith.constant 15 : i32
    %2 = arith.minsi %1, %c15_i32 : i32
    %c0_i32 = arith.constant 0 : i32
    %c0_i32_0 = arith.constant 0 : i32
    %c0_i32_1 = arith.constant 0 : i32
    return %arg0, %2, %c0_i32, %c0_i32_0 : i32, i32, i32, i32
  }
  func.func @transform_3(%arg0: i32, %arg1: i32, %arg2: i32) -> (i32, i32, i32, i32) {
    %c0_i32 = arith.constant 0 : i32
    %c0_i32_0 = arith.constant 0 : i32
    %c0_i32_1 = arith.constant 0 : i32
    return %arg0, %arg1, %c0_i32, %c0_i32_0 : i32, i32, i32, i32
  }
  func.func @transform_4(%arg0: i32, %arg1: i32, %arg2: i32) -> (i32, i32, i32, i32) {
    %c8_i32 = arith.constant 8 : i32
    %0 = arith.muli %arg1, %c8_i32 : i32
    %c1_i32 = arith.constant 1 : i32
    %1 = arith.subi %0, %c1_i32 : i32
    %c0_i32 = arith.constant 0 : i32
    %2 = arith.maxsi %1, %c0_i32 : i32
    %c0_i32_0 = arith.constant 0 : i32
    %c0_i32_1 = arith.constant 0 : i32
    %c0_i32_2 = arith.constant 0 : i32
    return %arg0, %2, %c0_i32_0, %c0_i32_1 : i32, i32, i32, i32
  }
  func.func @transform_5(%arg0: i32, %arg1: i32, %arg2: i32) -> (i32, i32, i32, i32) {
    %c1_i32 = arith.constant 1 : i32
    %0 = arith.addi %arg1, %c1_i32 : i32
    %c8_i32 = arith.constant 8 : i32
    %1 = arith.muli %0, %c8_i32 : i32
    %c15_i32 = arith.constant 15 : i32
    %2 = arith.minsi %1, %c15_i32 : i32
    %c0_i32 = arith.constant 0 : i32
    %c0_i32_0 = arith.constant 0 : i32
    %c0_i32_1 = arith.constant 0 : i32
    return %arg0, %2, %c0_i32, %c0_i32_0 : i32, i32, i32, i32
  }
  func.func @transform_6(%arg0: i32, %arg1: i32, %arg2: i32) -> (i32, i32, i32) {
    %c0_i32 = arith.constant 0 : i32
    %c0_i32_0 = arith.constant 0 : i32
    %c0_i32_1 = arith.constant 0 : i32
    return %c0_i32, %c0_i32_0, %arg2 : i32, i32, i32
  }
  func.func @transform_7(%arg0: i32, %arg1: i32, %arg2: i32) -> (i32, i32) {
    %c0_i32 = arith.constant 0 : i32
    %c0_i32_0 = arith.constant 0 : i32
    %c0_i32_1 = arith.constant 0 : i32
    return %c0_i32, %c0_i32_0 : i32, i32
  }
  func.func @transform_8(%arg0: i32, %arg1: i32, %arg2: i32) -> (i32, i32) {
    %c0_i32 = arith.constant 0 : i32
    %c0_i32_0 = arith.constant 0 : i32
    %c0_i32_1 = arith.constant 0 : i32
    return %c0_i32, %c0_i32_0 : i32, i32
  }
  func.func @transform_9(%arg0: i32, %arg1: i32, %arg2: i32) -> (i32, i32) {
    %c0_i32 = arith.constant 0 : i32
    %c0_i32_0 = arith.constant 0 : i32
    return %c0_i32, %arg2 : i32, i32
  }
  func.func @transform_10(%arg0: i32, %arg1: i32, %arg2: i32) -> (i32, i32, i32, i32) {
    %c0_i32 = arith.constant 0 : i32
    %c0_i32_0 = arith.constant 0 : i32
    return %arg0, %arg1, %c0_i32, %arg2 : i32, i32, i32, i32
  }
}

module attributes {stable_mosaic.version = 11 : i64} {
  func.func @_fused_conv3x3_kernel(%arg0: i32, %arg1: i32, %arg2: i32, %arg3: memref<1x8x16x8xbf16, #tpu.memory_space<vmem>>, %arg4: memref<1x1x16x8xbf16, #tpu.memory_space<vmem>>, %arg5: memref<1x1x16x8xbf16, #tpu.memory_space<vmem>>, %arg6: memref<1x8x16x8xf32, #tpu.memory_space<vmem>>, %arg7: memref<1x1x16x8xf32, #tpu.memory_space<vmem>>, %arg8: memref<1x1x16x8xf32, #tpu.memory_space<vmem>>, %arg9: memref<1x8x16x8xbf16, #tpu.memory_space<vmem>>, %arg10: memref<3x48x8xbf16, #tpu.memory_space<vmem>>, %arg11: memref<1x8xf32, #tpu.memory_space<vmem>>, %arg12: memref<1x8xf32, #tpu.memory_space<vmem>>, %arg13: memref<1x8xf32, #tpu.memory_space<vmem>>, %arg14: memref<1x8xf32, #tpu.memory_space<vmem>>, %arg15: memref<1x8xf32, #tpu.memory_space<vmem>>, %arg16: memref<1x8x16x8xbf16, #tpu.memory_space<vmem>>, %arg17: memref<10x32x48xbf16, #tpu.memory_space<vmem>>) attributes {dimension_semantics = [#tpu.dimension_semantics<parallel>, #tpu.dimension_semantics<parallel>, #tpu.dimension_semantics<arbitrary>], iteration_bounds = array<i64: 2, 2, 1>, scalar_prefetch = 0 : i64, scratch_operands = 1 : i64, tpu.core_type = #tpu.core_type<tc>, window_params = [{transform_indices = @transform_0, window_bounds = array<i64: 1, 8, 16, 8>}, {transform_indices = @transform_1, window_bounds = array<i64: 1, 1, 16, 8>}, {transform_indices = @transform_2, window_bounds = array<i64: 1, 1, 16, 8>}, {transform_indices = @transform_3, window_bounds = array<i64: 1, 8, 16, 8>}, {transform_indices = @transform_4, window_bounds = array<i64: 1, 1, 16, 8>}, {transform_indices = @transform_5, window_bounds = array<i64: 1, 1, 16, 8>}, {transform_indices = @transform_6, window_bounds = array<i64: 1, 8, 16, 8>}, {transform_indices = @transform_7, window_bounds = array<i64: 3, 48, 8>}, {pipeline_mode = #tpu.pipeline_mode<synchronous>, transform_indices = @transform_8, window_bounds = array<i64: 1, 8>}, {pipeline_mode = #tpu.pipeline_mode<synchronous>, transform_indices = @transform_9, window_bounds = array<i64: 1, 8>}, {pipeline_mode = #tpu.pipeline_mode<synchronous>, transform_indices = @transform_10, window_bounds = array<i64: 1, 8>}, {pipeline_mode = #tpu.pipeline_mode<synchronous>, transform_indices = @transform_11, window_bounds = array<i64: 1, 8>}, {transform_indices = @transform_12, window_bounds = array<i64: 1, 8>}, {transform_indices = @transform_13, window_bounds = array<i64: 1, 8, 16, 8>}]} {
    %c0_i32 = arith.constant 0 : i32
    %0 = arith.cmpi eq, %arg2, %c0_i32 : i32
    %1 = arith.extui %0 : i1 to i32
    %c0_i32_0 = arith.constant 0 : i32
    %2 = arith.cmpi ne, %1, %c0_i32_0 : i32
    scf.if %2 {
      %c0_i32_28 = arith.constant 0 : i32
      %35 = arith.cmpi sgt, %arg1, %c0_i32_28 : i32
      %c0_29 = arith.constant 0 : index
      %c0_30 = arith.constant 0 : index
      %c0_31 = arith.constant 0 : index
      %c0_32 = arith.constant 0 : index
      %36 = vector.load %arg4[%c0_29, %c0_30, %c0_31, %c0_32] : memref<1x1x16x8xbf16, #tpu.memory_space<vmem>>, vector<1x1x16x8xbf16>
      %37 = vector.shape_cast %36 : vector<1x1x16x8xbf16> to vector<1x16x8xbf16>
      %38 = arith.extf %37 : vector<1x16x8xbf16> to vector<1x16x8xf32>
      %c0_33 = arith.constant 0 : index
      %c0_34 = arith.constant 0 : index
      %39 = vector.load %arg11[%c0_33, %c0_34] : memref<1x8xf32, #tpu.memory_space<vmem>>, vector<1x8xf32>
      %40 = vector.shape_cast %39 : vector<1x8xf32> to vector<8xf32>
      %41 = vector.shape_cast %40 : vector<8xf32> to vector<1x1x8xf32>
      %42 = vector.broadcast %41 : vector<1x1x8xf32> to vector<1x16x8xf32>
      %43 = arith.mulf %38, %42 : vector<1x16x8xf32>
      %c0_35 = arith.constant 0 : index
      %c0_36 = arith.constant 0 : index
      %44 = vector.load %arg12[%c0_35, %c0_36] : memref<1x8xf32, #tpu.memory_space<vmem>>, vector<1x8xf32>
      %45 = vector.shape_cast %44 : vector<1x8xf32> to vector<8xf32>
      %46 = vector.shape_cast %45 : vector<8xf32> to vector<1x1x8xf32>
      %47 = vector.broadcast %46 : vector<1x1x8xf32> to vector<1x16x8xf32>
      %48 = arith.addf %43, %47 : vector<1x16x8xf32>
      %cst_37 = arith.constant 0.000000e+00 : f32
      %49 = vector.broadcast %cst_37 : f32 to vector<1x16x8xf32>
      %50 = arith.maximumf %48, %49 : vector<1x16x8xf32>
      %cst_38 = arith.constant 0.000000e+00 : f32
      %51 = vector.broadcast %cst_38 : f32 to vector<1x16x8xf32>
      %52 = arith.select %35, %50, %51 : vector<1x16x8xf32>
      %c1_i32 = arith.constant 1 : i32
      %53 = arith.cmpi slt, %arg1, %c1_i32 : i32
      %c0_39 = arith.constant 0 : index
      %c0_40 = arith.constant 0 : index
      %c0_41 = arith.constant 0 : index
      %c0_42 = arith.constant 0 : index
      %54 = vector.load %arg5[%c0_39, %c0_40, %c0_41, %c0_42] : memref<1x1x16x8xbf16, #tpu.memory_space<vmem>>, vector<1x1x16x8xbf16>
      %55 = vector.shape_cast %54 : vector<1x1x16x8xbf16> to vector<1x16x8xbf16>
      %56 = arith.extf %55 : vector<1x16x8xbf16> to vector<1x16x8xf32>
      %c0_43 = arith.constant 0 : index
      %c0_44 = arith.constant 0 : index
      %57 = vector.load %arg11[%c0_43, %c0_44] : memref<1x8xf32, #tpu.memory_space<vmem>>, vector<1x8xf32>
      %58 = vector.shape_cast %57 : vector<1x8xf32> to vector<8xf32>
      %59 = vector.shape_cast %58 : vector<8xf32> to vector<1x1x8xf32>
      %60 = vector.broadcast %59 : vector<1x1x8xf32> to vector<1x16x8xf32>
      %61 = arith.mulf %56, %60 : vector<1x16x8xf32>
      %c0_45 = arith.constant 0 : index
      %c0_46 = arith.constant 0 : index
      %62 = vector.load %arg12[%c0_45, %c0_46] : memref<1x8xf32, #tpu.memory_space<vmem>>, vector<1x8xf32>
      %63 = vector.shape_cast %62 : vector<1x8xf32> to vector<8xf32>
      %64 = vector.shape_cast %63 : vector<8xf32> to vector<1x1x8xf32>
      %65 = vector.broadcast %64 : vector<1x1x8xf32> to vector<1x16x8xf32>
      %66 = arith.addf %61, %65 : vector<1x16x8xf32>
      %cst_47 = arith.constant 0.000000e+00 : f32
      %67 = vector.broadcast %cst_47 : f32 to vector<1x16x8xf32>
      %68 = arith.maximumf %66, %67 : vector<1x16x8xf32>
      %cst_48 = arith.constant 0.000000e+00 : f32
      %69 = vector.broadcast %cst_48 : f32 to vector<1x16x8xf32>
      %70 = arith.select %53, %68, %69 : vector<1x16x8xf32>
      %c0_49 = arith.constant 0 : index
      %c0_50 = arith.constant 0 : index
      %c0_51 = arith.constant 0 : index
      %c0_52 = arith.constant 0 : index
      %71 = vector.load %arg3[%c0_49, %c0_50, %c0_51, %c0_52] : memref<1x8x16x8xbf16, #tpu.memory_space<vmem>>, vector<1x8x16x8xbf16>
      %72 = vector.shape_cast %71 : vector<1x8x16x8xbf16> to vector<8x16x8xbf16>
      %73 = arith.extf %72 : vector<8x16x8xbf16> to vector<8x16x8xf32>
      %c0_53 = arith.constant 0 : index
      %c0_54 = arith.constant 0 : index
      %74 = vector.load %arg11[%c0_53, %c0_54] : memref<1x8xf32, #tpu.memory_space<vmem>>, vector<1x8xf32>
      %75 = vector.shape_cast %74 : vector<1x8xf32> to vector<8xf32>
      %76 = vector.shape_cast %75 : vector<8xf32> to vector<1x1x8xf32>
      %77 = vector.broadcast %76 : vector<1x1x8xf32> to vector<8x16x8xf32>
      %78 = arith.mulf %73, %77 : vector<8x16x8xf32>
      %c0_55 = arith.constant 0 : index
      %c0_56 = arith.constant 0 : index
      %79 = vector.load %arg12[%c0_55, %c0_56] : memref<1x8xf32, #tpu.memory_space<vmem>>, vector<1x8xf32>
      %80 = vector.shape_cast %79 : vector<1x8xf32> to vector<8xf32>
      %81 = vector.shape_cast %80 : vector<8xf32> to vector<1x1x8xf32>
      %82 = vector.broadcast %81 : vector<1x1x8xf32> to vector<8x16x8xf32>
      %83 = arith.addf %78, %82 : vector<8x16x8xf32>
      %cst_57 = arith.constant 0.000000e+00 : f32
      %84 = vector.broadcast %cst_57 : f32 to vector<8x16x8xf32>
      %85 = arith.maximumf %83, %84 : vector<8x16x8xf32>
      %86 = tpu.concatenate %52, %85, %70 in 0 : vector<1x16x8xf32>, vector<8x16x8xf32>, vector<1x16x8xf32> -> vector<10x16x8xf32>
      %87 = arith.truncf %86 : vector<10x16x8xf32> to vector<10x16x8xbf16>
      %cst_58 = arith.constant 0.000000e+00 : bf16
      %88 = vector.broadcast %cst_58 : bf16 to vector<10x1x8xbf16>
      %c0_59 = arith.constant 0 : index
      %c0_60 = arith.constant 0 : index
      %c0_61 = arith.constant 0 : index
      %89 = vector.load %arg17[%c0_59, %c0_60, %c0_61] : memref<10x32x48xbf16, #tpu.memory_space<vmem>>, vector<10x1x8xbf16>
      tpu.vector_store %arg17[%c0_59, %c0_60, %c0_61], %88 {strides = array<i32>} : memref<10x32x48xbf16, #tpu.memory_space<vmem>>, vector<10x1x8xbf16>,
      %c0_62 = arith.constant 0 : index
      %c1_63 = arith.constant 1 : index
      %c0_64 = arith.constant 0 : index
      %90 = vector.load %arg17[%c0_62, %c1_63, %c0_64] : memref<10x32x48xbf16, #tpu.memory_space<vmem>>, vector<10x16x8xbf16>
      tpu.vector_store %arg17[%c0_62, %c1_63, %c0_64], %87 {strides = array<i32>} : memref<10x32x48xbf16, #tpu.memory_space<vmem>>, vector<10x16x8xbf16>,
      %cst_65 = arith.constant 0.000000e+00 : bf16
      %91 = vector.broadcast %cst_65 : bf16 to vector<10x15x8xbf16>
      %c0_66 = arith.constant 0 : index
      %c17 = arith.constant 17 : index
      %c0_67 = arith.constant 0 : index
      %92 = vector.load %arg17[%c0_66, %c17, %c0_67] : memref<10x32x48xbf16, #tpu.memory_space<vmem>>, vector<10x15x8xbf16>
      tpu.vector_store %arg17[%c0_66, %c17, %c0_67], %91 {strides = array<i32>} : memref<10x32x48xbf16, #tpu.memory_space<vmem>>, vector<10x15x8xbf16>,
      %c0_68 = arith.constant 0 : index
      %c0_69 = arith.constant 0 : index
      %c16 = arith.constant 16 : index
      %93 = vector.load %arg17[%c0_68, %c0_69, %c16] : memref<10x32x48xbf16, #tpu.memory_space<vmem>>, vector<10x16x8xbf16>
      tpu.vector_store %arg17[%c0_68, %c0_69, %c16], %87 {strides = array<i32>} : memref<10x32x48xbf16, #tpu.memory_space<vmem>>, vector<10x16x8xbf16>,
      %cst_70 = arith.constant 0.000000e+00 : bf16
      %94 = vector.broadcast %cst_70 : bf16 to vector<10x16x8xbf16>
      %c0_71 = arith.constant 0 : index
      %c16_72 = arith.constant 16 : index
      %c16_73 = arith.constant 16 : index
      %95 = vector.load %arg17[%c0_71, %c16_72, %c16_73] : memref<10x32x48xbf16, #tpu.memory_space<vmem>>, vector<10x16x8xbf16>
      tpu.vector_store %arg17[%c0_71, %c16_72, %c16_73], %94 {strides = array<i32>} : memref<10x32x48xbf16, #tpu.memory_space<vmem>>, vector<10x16x8xbf16>,
      %96 = vector.extract_strided_slice %87 {offsets = [0, 1, 0], sizes = [10, 15, 8], strides = [1, 1, 1]} : vector<10x16x8xbf16> to vector<10x15x8xbf16>
      %c0_74 = arith.constant 0 : index
      %c0_75 = arith.constant 0 : index
      %c32 = arith.constant 32 : index
      %97 = vector.load %arg17[%c0_74, %c0_75, %c32] : memref<10x32x48xbf16, #tpu.memory_space<vmem>>, vector<10x15x8xbf16>
      tpu.vector_store %arg17[%c0_74, %c0_75, %c32], %96 {strides = array<i32>} : memref<10x32x48xbf16, #tpu.memory_space<vmem>>, vector<10x15x8xbf16>,
      %cst_76 = arith.constant 0.000000e+00 : bf16
      %98 = vector.broadcast %cst_76 : bf16 to vector<10x17x8xbf16>
      %c0_77 = arith.constant 0 : index
      %c15 = arith.constant 15 : index
      %c32_78 = arith.constant 32 : index
      %99 = vector.load %arg17[%c0_77, %c15, %c32_78] : memref<10x32x48xbf16, #tpu.memory_space<vmem>>, vector<10x17x8xbf16>
      tpu.vector_store %arg17[%c0_77, %c15, %c32_78], %98 {strides = array<i32>} : memref<10x32x48xbf16, #tpu.memory_space<vmem>>, vector<10x17x8xbf16>,
      %c0_i32_79 = arith.constant 0 : i32
      %100 = arith.cmpi sgt, %arg1, %c0_i32_79 : i32
      %c0_80 = arith.constant 0 : index
      %c0_81 = arith.constant 0 : index
      %c0_82 = arith.constant 0 : index
      %c0_83 = arith.constant 0 : index
      %101 = vector.load %arg7[%c0_80, %c0_81, %c0_82, %c0_83] : memref<1x1x16x8xf32, #tpu.memory_space<vmem>>, vector<1x1x16x8xf32>
      %102 = vector.shape_cast %101 : vector<1x1x16x8xf32> to vector<1x16x8xf32>
      %c0_84 = arith.constant 0 : index
      %c0_85 = arith.constant 0 : index
      %103 = vector.load %arg13[%c0_84, %c0_85] : memref<1x8xf32, #tpu.memory_space<vmem>>, vector<1x8xf32>
      %104 = vector.shape_cast %103 : vector<1x8xf32> to vector<8xf32>
      %105 = vector.shape_cast %104 : vector<8xf32> to vector<1x1x8xf32>
      %106 = vector.broadcast %105 : vector<1x1x8xf32> to vector<1x16x8xf32>
      %107 = arith.mulf %102, %106 : vector<1x16x8xf32>
      %c0_86 = arith.constant 0 : index
      %c0_87 = arith.constant 0 : index
      %108 = vector.load %arg14[%c0_86, %c0_87] : memref<1x8xf32, #tpu.memory_space<vmem>>, vector<1x8xf32>
      %109 = vector.shape_cast %108 : vector<1x8xf32> to vector<8xf32>
      %110 = vector.shape_cast %109 : vector<8xf32> to vector<1x1x8xf32>
      %111 = vector.broadcast %110 : vector<1x1x8xf32> to vector<1x16x8xf32>
      %112 = arith.addf %107, %111 : vector<1x16x8xf32>
      %cst_88 = arith.constant 0.000000e+00 : f32
      %113 = vector.broadcast %cst_88 : f32 to vector<1x16x8xf32>
      %114 = arith.maximumf %112, %113 : vector<1x16x8xf32>
      %cst_89 = arith.constant 0.000000e+00 : f32
      %115 = vector.broadcast %cst_89 : f32 to vector<1x16x8xf32>
      %116 = arith.select %100, %114, %115 : vector<1x16x8xf32>
      %c1_i32_90 = arith.constant 1 : i32
      %117 = arith.cmpi slt, %arg1, %c1_i32_90 : i32
      %c0_91 = arith.constant 0 : index
      %c0_92 = arith.constant 0 : index
      %c0_93 = arith.constant 0 : index
      %c0_94 = arith.constant 0 : index
      %118 = vector.load %arg8[%c0_91, %c0_92, %c0_93, %c0_94] : memref<1x1x16x8xf32, #tpu.memory_space<vmem>>, vector<1x1x16x8xf32>
      %119 = vector.shape_cast %118 : vector<1x1x16x8xf32> to vector<1x16x8xf32>
      %c0_95 = arith.constant 0 : index
      %c0_96 = arith.constant 0 : index
      %120 = vector.load %arg13[%c0_95, %c0_96] : memref<1x8xf32, #tpu.memory_space<vmem>>, vector<1x8xf32>
      %121 = vector.shape_cast %120 : vector<1x8xf32> to vector<8xf32>
      %122 = vector.shape_cast %121 : vector<8xf32> to vector<1x1x8xf32>
      %123 = vector.broadcast %122 : vector<1x1x8xf32> to vector<1x16x8xf32>
      %124 = arith.mulf %119, %123 : vector<1x16x8xf32>
      %c0_97 = arith.constant 0 : index
      %c0_98 = arith.constant 0 : index
      %125 = vector.load %arg14[%c0_97, %c0_98] : memref<1x8xf32, #tpu.memory_space<vmem>>, vector<1x8xf32>
      %126 = vector.shape_cast %125 : vector<1x8xf32> to vector<8xf32>
      %127 = vector.shape_cast %126 : vector<8xf32> to vector<1x1x8xf32>
      %128 = vector.broadcast %127 : vector<1x1x8xf32> to vector<1x16x8xf32>
      %129 = arith.addf %124, %128 : vector<1x16x8xf32>
      %cst_99 = arith.constant 0.000000e+00 : f32
      %130 = vector.broadcast %cst_99 : f32 to vector<1x16x8xf32>
      %131 = arith.maximumf %129, %130 : vector<1x16x8xf32>
      %cst_100 = arith.constant 0.000000e+00 : f32
      %132 = vector.broadcast %cst_100 : f32 to vector<1x16x8xf32>
      %133 = arith.select %117, %131, %132 : vector<1x16x8xf32>
      %c0_101 = arith.constant 0 : index
      %c0_102 = arith.constant 0 : index
      %c0_103 = arith.constant 0 : index
      %c0_104 = arith.constant 0 : index
      %134 = vector.load %arg6[%c0_101, %c0_102, %c0_103, %c0_104] : memref<1x8x16x8xf32, #tpu.memory_space<vmem>>, vector<1x8x16x8xf32>
      %135 = vector.shape_cast %134 : vector<1x8x16x8xf32> to vector<8x16x8xf32>
      %c0_105 = arith.constant 0 : index
      %c0_106 = arith.constant 0 : index
      %136 = vector.load %arg13[%c0_105, %c0_106] : memref<1x8xf32, #tpu.memory_space<vmem>>, vector<1x8xf32>
      %137 = vector.shape_cast %136 : vector<1x8xf32> to vector<8xf32>
      %138 = vector.shape_cast %137 : vector<8xf32> to vector<1x1x8xf32>
      %139 = vector.broadcast %138 : vector<1x1x8xf32> to vector<8x16x8xf32>
      %140 = arith.mulf %135, %139 : vector<8x16x8xf32>
      %c0_107 = arith.constant 0 : index
      %c0_108 = arith.constant 0 : index
      %141 = vector.load %arg14[%c0_107, %c0_108] : memref<1x8xf32, #tpu.memory_space<vmem>>, vector<1x8xf32>
      %142 = vector.shape_cast %141 : vector<1x8xf32> to vector<8xf32>
      %143 = vector.shape_cast %142 : vector<8xf32> to vector<1x1x8xf32>
      %144 = vector.broadcast %143 : vector<1x1x8xf32> to vector<8x16x8xf32>
      %145 = arith.addf %140, %144 : vector<8x16x8xf32>
      %cst_109 = arith.constant 0.000000e+00 : f32
      %146 = vector.broadcast %cst_109 : f32 to vector<8x16x8xf32>
      %147 = arith.maximumf %145, %146 : vector<8x16x8xf32>
      %148 = tpu.concatenate %116, %147, %133 in 0 : vector<1x16x8xf32>, vector<8x16x8xf32>, vector<1x16x8xf32> -> vector<10x16x8xf32>
      %149 = arith.truncf %148 : vector<10x16x8xf32> to vector<10x16x8xbf16>
      %cst_110 = arith.constant 0.000000e+00 : bf16
      %150 = vector.broadcast %cst_110 : bf16 to vector<10x1x8xbf16>
      %c0_111 = arith.constant 0 : index
      %c0_112 = arith.constant 0 : index
      %c8 = arith.constant 8 : index
      %151 = vector.load %arg17[%c0_111, %c0_112, %c8] : memref<10x32x48xbf16, #tpu.memory_space<vmem>>, vector<10x1x8xbf16>
      tpu.vector_store %arg17[%c0_111, %c0_112, %c8], %150 {strides = array<i32>} : memref<10x32x48xbf16, #tpu.memory_space<vmem>>, vector<10x1x8xbf16>,
      %c0_113 = arith.constant 0 : index
      %c1_114 = arith.constant 1 : index
      %c8_115 = arith.constant 8 : index
      %152 = vector.load %arg17[%c0_113, %c1_114, %c8_115] : memref<10x32x48xbf16, #tpu.memory_space<vmem>>, vector<10x16x8xbf16>
      tpu.vector_store %arg17[%c0_113, %c1_114, %c8_115], %149 {strides = array<i32>} : memref<10x32x48xbf16, #tpu.memory_space<vmem>>, vector<10x16x8xbf16>,
      %cst_116 = arith.constant 0.000000e+00 : bf16
      %153 = vector.broadcast %cst_116 : bf16 to vector<10x15x8xbf16>
      %c0_117 = arith.constant 0 : index
      %c17_118 = arith.constant 17 : index
      %c8_119 = arith.constant 8 : index
      %154 = vector.load %arg17[%c0_117, %c17_118, %c8_119] : memref<10x32x48xbf16, #tpu.memory_space<vmem>>, vector<10x15x8xbf16>
      tpu.vector_store %arg17[%c0_117, %c17_118, %c8_119], %153 {strides = array<i32>} : memref<10x32x48xbf16, #tpu.memory_space<vmem>>, vector<10x15x8xbf16>,
      %c0_120 = arith.constant 0 : index
      %c0_121 = arith.constant 0 : index
      %c24 = arith.constant 24 : index
      %155 = vector.load %arg17[%c0_120, %c0_121, %c24] : memref<10x32x48xbf16, #tpu.memory_space<vmem>>, vector<10x16x8xbf16>
      tpu.vector_store %arg17[%c0_120, %c0_121, %c24], %149 {strides = array<i32>} : memref<10x32x48xbf16, #tpu.memory_space<vmem>>, vector<10x16x8xbf16>,
      %cst_122 = arith.constant 0.000000e+00 : bf16
      %156 = vector.broadcast %cst_122 : bf16 to vector<10x16x8xbf16>
      %c0_123 = arith.constant 0 : index
      %c16_124 = arith.constant 16 : index
      %c24_125 = arith.constant 24 : index
      %157 = vector.load %arg17[%c0_123, %c16_124, %c24_125] : memref<10x32x48xbf16, #tpu.memory_space<vmem>>, vector<10x16x8xbf16>
      tpu.vector_store %arg17[%c0_123, %c16_124, %c24_125], %156 {strides = array<i32>} : memref<10x32x48xbf16, #tpu.memory_space<vmem>>, vector<10x16x8xbf16>,
      %158 = vector.extract_strided_slice %149 {offsets = [0, 1, 0], sizes = [10, 15, 8], strides = [1, 1, 1]} : vector<10x16x8xbf16> to vector<10x15x8xbf16>
      %c0_126 = arith.constant 0 : index
      %c0_127 = arith.constant 0 : index
      %c40 = arith.constant 40 : index
      %159 = vector.load %arg17[%c0_126, %c0_127, %c40] : memref<10x32x48xbf16, #tpu.memory_space<vmem>>, vector<10x15x8xbf16>
      tpu.vector_store %arg17[%c0_126, %c0_127, %c40], %158 {strides = array<i32>} : memref<10x32x48xbf16, #tpu.memory_space<vmem>>, vector<10x15x8xbf16>,
      %cst_128 = arith.constant 0.000000e+00 : bf16
      %160 = vector.broadcast %cst_128 : bf16 to vector<10x17x8xbf16>
      %c0_129 = arith.constant 0 : index
      %c15_130 = arith.constant 15 : index
      %c40_131 = arith.constant 40 : index
      %161 = vector.load %arg17[%c0_129, %c15_130, %c40_131] : memref<10x32x48xbf16, #tpu.memory_space<vmem>>, vector<10x17x8xbf16>
      tpu.vector_store %arg17[%c0_129, %c15_130, %c40_131], %160 {strides = array<i32>} : memref<10x32x48xbf16, #tpu.memory_space<vmem>>, vector<10x17x8xbf16>,
    } else {
    }
    %c0 = arith.constant 0 : index
    %c0_1 = arith.constant 0 : index
    %c0_2 = arith.constant 0 : index
    %3 = vector.load %arg17[%c0, %c0_1, %c0_2] : memref<10x32x48xbf16, #tpu.memory_space<vmem>>, vector<8x32x48xbf16>
    %4 = vector.shape_cast %3 : vector<8x32x48xbf16> to vector<256x48xbf16>
    %c0_3 = arith.constant 0 : index
    %c0_4 = arith.constant 0 : index
    %c0_5 = arith.constant 0 : index
    %5 = vector.load %arg10[%c0_3, %c0_4, %c0_5] : memref<3x48x8xbf16, #tpu.memory_space<vmem>>, vector<1x48x8xbf16>
    %6 = vector.shape_cast %5 : vector<1x48x8xbf16> to vector<48x8xbf16>
    %cst = arith.constant dense<0.000000e+00> : vector<256x8xf32>
    %7 = tpu.matmul %4, %6, %cst {dimension_numbers = #tpu.dot_dimension_numbers<[1], [0], [0], [1], [0, 0, 1, 1], [], []>} : vector<256x48xbf16>, vector<48x8xbf16>, vector<256x8xf32> -> vector<256x8xf32>
    %c1 = arith.constant 1 : index
    %c0_6 = arith.constant 0 : index
    %c0_7 = arith.constant 0 : index
    %8 = vector.load %arg17[%c1, %c0_6, %c0_7] : memref<10x32x48xbf16, #tpu.memory_space<vmem>>, vector<8x32x48xbf16>
    %9 = vector.shape_cast %8 : vector<8x32x48xbf16> to vector<256x48xbf16>
    %c1_8 = arith.constant 1 : index
    %c0_9 = arith.constant 0 : index
    %c0_10 = arith.constant 0 : index
    %10 = vector.load %arg10[%c1_8, %c0_9, %c0_10] : memref<3x48x8xbf16, #tpu.memory_space<vmem>>, vector<1x48x8xbf16>
    %11 = vector.shape_cast %10 : vector<1x48x8xbf16> to vector<48x8xbf16>
    %cst_11 = arith.constant dense<0.000000e+00> : vector<256x8xf32>
    %12 = tpu.matmul %9, %11, %cst_11 {dimension_numbers = #tpu.dot_dimension_numbers<[1], [0], [0], [1], [0, 0, 1, 1], [], []>} : vector<256x48xbf16>, vector<48x8xbf16>, vector<256x8xf32> -> vector<256x8xf32>
    %13 = arith.addf %7, %12 : vector<256x8xf32>
    %c2 = arith.constant 2 : index
    %c0_12 = arith.constant 0 : index
    %c0_13 = arith.constant 0 : index
    %14 = vector.load %arg17[%c2, %c0_12, %c0_13] : memref<10x32x48xbf16, #tpu.memory_space<vmem>>, vector<8x32x48xbf16>
    %15 = vector.shape_cast %14 : vector<8x32x48xbf16> to vector<256x48xbf16>
    %c2_14 = arith.constant 2 : index
    %c0_15 = arith.constant 0 : index
    %c0_16 = arith.constant 0 : index
    %16 = vector.load %arg10[%c2_14, %c0_15, %c0_16] : memref<3x48x8xbf16, #tpu.memory_space<vmem>>, vector<1x48x8xbf16>
    %17 = vector.shape_cast %16 : vector<1x48x8xbf16> to vector<48x8xbf16>
    %cst_17 = arith.constant dense<0.000000e+00> : vector<256x8xf32>
    %18 = tpu.matmul %15, %17, %cst_17 {dimension_numbers = #tpu.dot_dimension_numbers<[1], [0], [0], [1], [0, 0, 1, 1], [], []>} : vector<256x48xbf16>, vector<48x8xbf16>, vector<256x8xf32> -> vector<256x8xf32>
    %19 = arith.addf %13, %18 : vector<256x8xf32>
    %20 = vector.shape_cast %19 : vector<256x8xf32> to vector<8x32x8xf32>
    %21 = vector.extract_strided_slice %20 {offsets = [0, 0, 0], sizes = [8, 16, 8], strides = [1, 1, 1]} : vector<8x32x8xf32> to vector<8x16x8xf32>
    %c0_18 = arith.constant 0 : index
    %c0_19 = arith.constant 0 : index
    %22 = vector.load %arg15[%c0_18, %c0_19] : memref<1x8xf32, #tpu.memory_space<vmem>>, vector<1x8xf32>
    %23 = vector.shape_cast %22 : vector<1x8xf32> to vector<8xf32>
    %24 = vector.shape_cast %23 : vector<8xf32> to vector<1x1x8xf32>
    %25 = vector.broadcast %24 : vector<1x1x8xf32> to vector<8x16x8xf32>
    %26 = arith.addf %21, %25 : vector<8x16x8xf32>
    %c0_20 = arith.constant 0 : index
    %c0_21 = arith.constant 0 : index
    %c0_22 = arith.constant 0 : index
    %c0_23 = arith.constant 0 : index
    %27 = vector.load %arg9[%c0_20, %c0_21, %c0_22, %c0_23] : memref<1x8x16x8xbf16, #tpu.memory_space<vmem>>, vector<1x8x16x8xbf16>
    %28 = vector.shape_cast %27 : vector<1x8x16x8xbf16> to vector<8x16x8xbf16>
    %29 = arith.extf %28 : vector<8x16x8xbf16> to vector<8x16x8xf32>
    %30 = arith.addf %26, %29 : vector<8x16x8xf32>
    %31 = arith.truncf %30 : vector<8x16x8xf32> to vector<8x16x8xbf16>
    %c0_24 = arith.constant 0 : index
    %c0_25 = arith.constant 0 : index
    %c0_26 = arith.constant 0 : index
    %c0_27 = arith.constant 0 : index
    %32 = vector.load %arg16[%c0_24, %c0_25, %c0_26, %c0_27] : memref<1x8x16x8xbf16, #tpu.memory_space<vmem>>, vector<1x8x16x8xbf16>
    %33 = vector.shape_cast %32 : vector<1x8x16x8xbf16> to vector<8x16x8xbf16>
    %34 = vector.shape_cast %31 : vector<8x16x8xbf16> to vector<1x8x16x8xbf16>
    tpu.vector_store %arg16[%c0_24, %c0_25, %c0_26, %c0_27], %34 {strides = array<i32>} : memref<1x8x16x8xbf16, #tpu.memory_space<vmem>>, vector<1x8x16x8xbf16>,
    return
  }
  func.func @transform_0(%arg0: i32, %arg1: i32, %arg2: i32) -> (i32, i32, i32, i32) {
    %c0_i32 = arith.constant 0 : i32
    %c0_i32_0 = arith.constant 0 : i32
    %c0_i32_1 = arith.constant 0 : i32
    return %arg0, %arg1, %c0_i32, %c0_i32_0 : i32, i32, i32, i32
  }
  func.func @transform_1(%arg0: i32, %arg1: i32, %arg2: i32) -> (i32, i32, i32, i32) {
    %c8_i32 = arith.constant 8 : i32
    %0 = arith.muli %arg1, %c8_i32 : i32
    %c1_i32 = arith.constant 1 : i32
    %1 = arith.subi %0, %c1_i32 : i32
    %c0_i32 = arith.constant 0 : i32
    %2 = arith.maxsi %1, %c0_i32 : i32
    %c0_i32_0 = arith.constant 0 : i32
    %c0_i32_1 = arith.constant 0 : i32
    %c0_i32_2 = arith.constant 0 : i32
    return %arg0, %2, %c0_i32_0, %c0_i32_1 : i32, i32, i32, i32
  }
  func.func @transform_2(%arg0: i32, %arg1: i32, %arg2: i32) -> (i32, i32, i32, i32) {
    %c1_i32 = arith.constant 1 : i32
    %0 = arith.addi %arg1, %c1_i32 : i32
    %c8_i32 = arith.constant 8 : i32
    %1 = arith.muli %0, %c8_i32 : i32
    %c15_i32 = arith.constant 15 : i32
    %2 = arith.minsi %1, %c15_i32 : i32
    %c0_i32 = arith.constant 0 : i32
    %c0_i32_0 = arith.constant 0 : i32
    %c0_i32_1 = arith.constant 0 : i32
    return %arg0, %2, %c0_i32, %c0_i32_0 : i32, i32, i32, i32
  }
  func.func @transform_3(%arg0: i32, %arg1: i32, %arg2: i32) -> (i32, i32, i32, i32) {
    %c0_i32 = arith.constant 0 : i32
    %c0_i32_0 = arith.constant 0 : i32
    %c0_i32_1 = arith.constant 0 : i32
    return %arg0, %arg1, %c0_i32, %c0_i32_0 : i32, i32, i32, i32
  }
  func.func @transform_4(%arg0: i32, %arg1: i32, %arg2: i32) -> (i32, i32, i32, i32) {
    %c8_i32 = arith.constant 8 : i32
    %0 = arith.muli %arg1, %c8_i32 : i32
    %c1_i32 = arith.constant 1 : i32
    %1 = arith.subi %0, %c1_i32 : i32
    %c0_i32 = arith.constant 0 : i32
    %2 = arith.maxsi %1, %c0_i32 : i32
    %c0_i32_0 = arith.constant 0 : i32
    %c0_i32_1 = arith.constant 0 : i32
    %c0_i32_2 = arith.constant 0 : i32
    return %arg0, %2, %c0_i32_0, %c0_i32_1 : i32, i32, i32, i32
  }
  func.func @transform_5(%arg0: i32, %arg1: i32, %arg2: i32) -> (i32, i32, i32, i32) {
    %c1_i32 = arith.constant 1 : i32
    %0 = arith.addi %arg1, %c1_i32 : i32
    %c8_i32 = arith.constant 8 : i32
    %1 = arith.muli %0, %c8_i32 : i32
    %c15_i32 = arith.constant 15 : i32
    %2 = arith.minsi %1, %c15_i32 : i32
    %c0_i32 = arith.constant 0 : i32
    %c0_i32_0 = arith.constant 0 : i32
    %c0_i32_1 = arith.constant 0 : i32
    return %arg0, %2, %c0_i32, %c0_i32_0 : i32, i32, i32, i32
  }
  func.func @transform_6(%arg0: i32, %arg1: i32, %arg2: i32) -> (i32, i32, i32, i32) {
    %c0_i32 = arith.constant 0 : i32
    %c0_i32_0 = arith.constant 0 : i32
    return %arg0, %arg1, %c0_i32, %arg2 : i32, i32, i32, i32
  }
  func.func @transform_7(%arg0: i32, %arg1: i32, %arg2: i32) -> (i32, i32, i32) {
    %c0_i32 = arith.constant 0 : i32
    %c0_i32_0 = arith.constant 0 : i32
    %c0_i32_1 = arith.constant 0 : i32
    return %c0_i32, %c0_i32_0, %arg2 : i32, i32, i32
  }
  func.func @transform_8(%arg0: i32, %arg1: i32, %arg2: i32) -> (i32, i32) {
    %c0_i32 = arith.constant 0 : i32
    %c0_i32_0 = arith.constant 0 : i32
    %c0_i32_1 = arith.constant 0 : i32
    return %c0_i32, %c0_i32_0 : i32, i32
  }
  func.func @transform_9(%arg0: i32, %arg1: i32, %arg2: i32) -> (i32, i32) {
    %c0_i32 = arith.constant 0 : i32
    %c0_i32_0 = arith.constant 0 : i32
    %c0_i32_1 = arith.constant 0 : i32
    return %c0_i32, %c0_i32_0 : i32, i32
  }
  func.func @transform_10(%arg0: i32, %arg1: i32, %arg2: i32) -> (i32, i32) {
    %c0_i32 = arith.constant 0 : i32
    %c0_i32_0 = arith.constant 0 : i32
    %c0_i32_1 = arith.constant 0 : i32
    return %c0_i32, %c0_i32_0 : i32, i32
  }
  func.func @transform_11(%arg0: i32, %arg1: i32, %arg2: i32) -> (i32, i32) {
    %c0_i32 = arith.constant 0 : i32
    %c0_i32_0 = arith.constant 0 : i32
    %c0_i32_1 = arith.constant 0 : i32
    return %c0_i32, %c0_i32_0 : i32, i32
  }
  func.func @transform_12(%arg0: i32, %arg1: i32, %arg2: i32) -> (i32, i32) {
    %c0_i32 = arith.constant 0 : i32
    %c0_i32_0 = arith.constant 0 : i32
    return %c0_i32, %arg2 : i32, i32
  }
  func.func @transform_13(%arg0: i32, %arg1: i32, %arg2: i32) -> (i32, i32, i32, i32) {
    %c0_i32 = arith.constant 0 : i32
    %c0_i32_0 = arith.constant 0 : i32
    return %arg0, %arg1, %c0_i32, %arg2 : i32, i32, i32, i32
  }
}

module attributes {stable_mosaic.version = 11 : i64} {
  func.func @_fused_conv3x3_kernel(%arg0: i32, %arg1: i32, %arg2: i32, %arg3: memref<1x8x16x8xbf16, #tpu.memory_space<vmem>>, %arg4: memref<1x1x16x8xbf16, #tpu.memory_space<vmem>>, %arg5: memref<1x1x16x8xbf16, #tpu.memory_space<vmem>>, %arg6: memref<3x24x8xbf16, #tpu.memory_space<vmem>>, %arg7: memref<1x8xf32, #tpu.memory_space<vmem>>, %arg8: memref<1x8xf32, #tpu.memory_space<vmem>>, %arg9: memref<1x8xf32, #tpu.memory_space<vmem>>, %arg10: memref<1x8x16x8xf32, #tpu.memory_space<vmem>>, %arg11: memref<10x32x24xbf16, #tpu.memory_space<vmem>>) attributes {dimension_semantics = [#tpu.dimension_semantics<parallel>, #tpu.dimension_semantics<parallel>, #tpu.dimension_semantics<arbitrary>], iteration_bounds = array<i64: 2, 2, 1>, scalar_prefetch = 0 : i64, scratch_operands = 1 : i64, tpu.core_type = #tpu.core_type<tc>, window_params = [{transform_indices = @transform_0, window_bounds = array<i64: 1, 8, 16, 8>}, {transform_indices = @transform_1, window_bounds = array<i64: 1, 1, 16, 8>}, {transform_indices = @transform_2, window_bounds = array<i64: 1, 1, 16, 8>}, {transform_indices = @transform_3, window_bounds = array<i64: 3, 24, 8>}, {pipeline_mode = #tpu.pipeline_mode<synchronous>, transform_indices = @transform_4, window_bounds = array<i64: 1, 8>}, {pipeline_mode = #tpu.pipeline_mode<synchronous>, transform_indices = @transform_5, window_bounds = array<i64: 1, 8>}, {transform_indices = @transform_6, window_bounds = array<i64: 1, 8>}, {transform_indices = @transform_7, window_bounds = array<i64: 1, 8, 16, 8>}]} {
    %c0_i32 = arith.constant 0 : i32
    %0 = arith.cmpi eq, %arg2, %c0_i32 : i32
    %1 = arith.extui %0 : i1 to i32
    %c0_i32_0 = arith.constant 0 : i32
    %2 = arith.cmpi ne, %1, %c0_i32_0 : i32
    scf.if %2 {
      %c0_i32_25 = arith.constant 0 : i32
      %32 = arith.cmpi sgt, %arg1, %c0_i32_25 : i32
      %c0_26 = arith.constant 0 : index
      %c0_27 = arith.constant 0 : index
      %c0_28 = arith.constant 0 : index
      %c0_29 = arith.constant 0 : index
      %33 = vector.load %arg4[%c0_26, %c0_27, %c0_28, %c0_29] : memref<1x1x16x8xbf16, #tpu.memory_space<vmem>>, vector<1x1x16x8xbf16>
      %34 = vector.shape_cast %33 : vector<1x1x16x8xbf16> to vector<1x16x8xbf16>
      %35 = arith.extf %34 : vector<1x16x8xbf16> to vector<1x16x8xf32>
      %c0_30 = arith.constant 0 : index
      %c0_31 = arith.constant 0 : index
      %36 = vector.load %arg7[%c0_30, %c0_31] : memref<1x8xf32, #tpu.memory_space<vmem>>, vector<1x8xf32>
      %37 = vector.shape_cast %36 : vector<1x8xf32> to vector<8xf32>
      %38 = vector.shape_cast %37 : vector<8xf32> to vector<1x1x8xf32>
      %39 = vector.broadcast %38 : vector<1x1x8xf32> to vector<1x16x8xf32>
      %40 = arith.mulf %35, %39 : vector<1x16x8xf32>
      %c0_32 = arith.constant 0 : index
      %c0_33 = arith.constant 0 : index
      %41 = vector.load %arg8[%c0_32, %c0_33] : memref<1x8xf32, #tpu.memory_space<vmem>>, vector<1x8xf32>
      %42 = vector.shape_cast %41 : vector<1x8xf32> to vector<8xf32>
      %43 = vector.shape_cast %42 : vector<8xf32> to vector<1x1x8xf32>
      %44 = vector.broadcast %43 : vector<1x1x8xf32> to vector<1x16x8xf32>
      %45 = arith.addf %40, %44 : vector<1x16x8xf32>
      %cst_34 = arith.constant 0.000000e+00 : f32
      %46 = vector.broadcast %cst_34 : f32 to vector<1x16x8xf32>
      %47 = arith.maximumf %45, %46 : vector<1x16x8xf32>
      %cst_35 = arith.constant 0.000000e+00 : f32
      %48 = vector.broadcast %cst_35 : f32 to vector<1x16x8xf32>
      %49 = arith.select %32, %47, %48 : vector<1x16x8xf32>
      %c1_i32 = arith.constant 1 : i32
      %50 = arith.cmpi slt, %arg1, %c1_i32 : i32
      %c0_36 = arith.constant 0 : index
      %c0_37 = arith.constant 0 : index
      %c0_38 = arith.constant 0 : index
      %c0_39 = arith.constant 0 : index
      %51 = vector.load %arg5[%c0_36, %c0_37, %c0_38, %c0_39] : memref<1x1x16x8xbf16, #tpu.memory_space<vmem>>, vector<1x1x16x8xbf16>
      %52 = vector.shape_cast %51 : vector<1x1x16x8xbf16> to vector<1x16x8xbf16>
      %53 = arith.extf %52 : vector<1x16x8xbf16> to vector<1x16x8xf32>
      %c0_40 = arith.constant 0 : index
      %c0_41 = arith.constant 0 : index
      %54 = vector.load %arg7[%c0_40, %c0_41] : memref<1x8xf32, #tpu.memory_space<vmem>>, vector<1x8xf32>
      %55 = vector.shape_cast %54 : vector<1x8xf32> to vector<8xf32>
      %56 = vector.shape_cast %55 : vector<8xf32> to vector<1x1x8xf32>
      %57 = vector.broadcast %56 : vector<1x1x8xf32> to vector<1x16x8xf32>
      %58 = arith.mulf %53, %57 : vector<1x16x8xf32>
      %c0_42 = arith.constant 0 : index
      %c0_43 = arith.constant 0 : index
      %59 = vector.load %arg8[%c0_42, %c0_43] : memref<1x8xf32, #tpu.memory_space<vmem>>, vector<1x8xf32>
      %60 = vector.shape_cast %59 : vector<1x8xf32> to vector<8xf32>
      %61 = vector.shape_cast %60 : vector<8xf32> to vector<1x1x8xf32>
      %62 = vector.broadcast %61 : vector<1x1x8xf32> to vector<1x16x8xf32>
      %63 = arith.addf %58, %62 : vector<1x16x8xf32>
      %cst_44 = arith.constant 0.000000e+00 : f32
      %64 = vector.broadcast %cst_44 : f32 to vector<1x16x8xf32>
      %65 = arith.maximumf %63, %64 : vector<1x16x8xf32>
      %cst_45 = arith.constant 0.000000e+00 : f32
      %66 = vector.broadcast %cst_45 : f32 to vector<1x16x8xf32>
      %67 = arith.select %50, %65, %66 : vector<1x16x8xf32>
      %c0_46 = arith.constant 0 : index
      %c0_47 = arith.constant 0 : index
      %c0_48 = arith.constant 0 : index
      %c0_49 = arith.constant 0 : index
      %68 = vector.load %arg3[%c0_46, %c0_47, %c0_48, %c0_49] : memref<1x8x16x8xbf16, #tpu.memory_space<vmem>>, vector<1x8x16x8xbf16>
      %69 = vector.shape_cast %68 : vector<1x8x16x8xbf16> to vector<8x16x8xbf16>
      %70 = arith.extf %69 : vector<8x16x8xbf16> to vector<8x16x8xf32>
      %c0_50 = arith.constant 0 : index
      %c0_51 = arith.constant 0 : index
      %71 = vector.load %arg7[%c0_50, %c0_51] : memref<1x8xf32, #tpu.memory_space<vmem>>, vector<1x8xf32>
      %72 = vector.shape_cast %71 : vector<1x8xf32> to vector<8xf32>
      %73 = vector.shape_cast %72 : vector<8xf32> to vector<1x1x8xf32>
      %74 = vector.broadcast %73 : vector<1x1x8xf32> to vector<8x16x8xf32>
      %75 = arith.mulf %70, %74 : vector<8x16x8xf32>
      %c0_52 = arith.constant 0 : index
      %c0_53 = arith.constant 0 : index
      %76 = vector.load %arg8[%c0_52, %c0_53] : memref<1x8xf32, #tpu.memory_space<vmem>>, vector<1x8xf32>
      %77 = vector.shape_cast %76 : vector<1x8xf32> to vector<8xf32>
      %78 = vector.shape_cast %77 : vector<8xf32> to vector<1x1x8xf32>
      %79 = vector.broadcast %78 : vector<1x1x8xf32> to vector<8x16x8xf32>
      %80 = arith.addf %75, %79 : vector<8x16x8xf32>
      %cst_54 = arith.constant 0.000000e+00 : f32
      %81 = vector.broadcast %cst_54 : f32 to vector<8x16x8xf32>
      %82 = arith.maximumf %80, %81 : vector<8x16x8xf32>
      %83 = tpu.concatenate %49, %82, %67 in 0 : vector<1x16x8xf32>, vector<8x16x8xf32>, vector<1x16x8xf32> -> vector<10x16x8xf32>
      %84 = arith.truncf %83 : vector<10x16x8xf32> to vector<10x16x8xbf16>
      %cst_55 = arith.constant 0.000000e+00 : bf16
      %85 = vector.broadcast %cst_55 : bf16 to vector<10x1x8xbf16>
      %c0_56 = arith.constant 0 : index
      %c0_57 = arith.constant 0 : index
      %c0_58 = arith.constant 0 : index
      %86 = vector.load %arg11[%c0_56, %c0_57, %c0_58] : memref<10x32x24xbf16, #tpu.memory_space<vmem>>, vector<10x1x8xbf16>
      tpu.vector_store %arg11[%c0_56, %c0_57, %c0_58], %85 {strides = array<i32>} : memref<10x32x24xbf16, #tpu.memory_space<vmem>>, vector<10x1x8xbf16>,
      %c0_59 = arith.constant 0 : index
      %c1_60 = arith.constant 1 : index
      %c0_61 = arith.constant 0 : index
      %87 = vector.load %arg11[%c0_59, %c1_60, %c0_61] : memref<10x32x24xbf16, #tpu.memory_space<vmem>>, vector<10x16x8xbf16>
      tpu.vector_store %arg11[%c0_59, %c1_60, %c0_61], %84 {strides = array<i32>} : memref<10x32x24xbf16, #tpu.memory_space<vmem>>, vector<10x16x8xbf16>,
      %cst_62 = arith.constant 0.000000e+00 : bf16
      %88 = vector.broadcast %cst_62 : bf16 to vector<10x15x8xbf16>
      %c0_63 = arith.constant 0 : index
      %c17 = arith.constant 17 : index
      %c0_64 = arith.constant 0 : index
      %89 = vector.load %arg11[%c0_63, %c17, %c0_64] : memref<10x32x24xbf16, #tpu.memory_space<vmem>>, vector<10x15x8xbf16>
      tpu.vector_store %arg11[%c0_63, %c17, %c0_64], %88 {strides = array<i32>} : memref<10x32x24xbf16, #tpu.memory_space<vmem>>, vector<10x15x8xbf16>,
      %c0_65 = arith.constant 0 : index
      %c0_66 = arith.constant 0 : index
      %c8 = arith.constant 8 : index
      %90 = vector.load %arg11[%c0_65, %c0_66, %c8] : memref<10x32x24xbf16, #tpu.memory_space<vmem>>, vector<10x16x8xbf16>
      tpu.vector_store %arg11[%c0_65, %c0_66, %c8], %84 {strides = array<i32>} : memref<10x32x24xbf16, #tpu.memory_space<vmem>>, vector<10x16x8xbf16>,
      %cst_67 = arith.constant 0.000000e+00 : bf16
      %91 = vector.broadcast %cst_67 : bf16 to vector<10x16x8xbf16>
      %c0_68 = arith.constant 0 : index
      %c16 = arith.constant 16 : index
      %c8_69 = arith.constant 8 : index
      %92 = vector.load %arg11[%c0_68, %c16, %c8_69] : memref<10x32x24xbf16, #tpu.memory_space<vmem>>, vector<10x16x8xbf16>
      tpu.vector_store %arg11[%c0_68, %c16, %c8_69], %91 {strides = array<i32>} : memref<10x32x24xbf16, #tpu.memory_space<vmem>>, vector<10x16x8xbf16>,
      %93 = vector.extract_strided_slice %84 {offsets = [0, 1, 0], sizes = [10, 15, 8], strides = [1, 1, 1]} : vector<10x16x8xbf16> to vector<10x15x8xbf16>
      %c0_70 = arith.constant 0 : index
      %c0_71 = arith.constant 0 : index
      %c16_72 = arith.constant 16 : index
      %94 = vector.load %arg11[%c0_70, %c0_71, %c16_72] : memref<10x32x24xbf16, #tpu.memory_space<vmem>>, vector<10x15x8xbf16>
      tpu.vector_store %arg11[%c0_70, %c0_71, %c16_72], %93 {strides = array<i32>} : memref<10x32x24xbf16, #tpu.memory_space<vmem>>, vector<10x15x8xbf16>,
      %cst_73 = arith.constant 0.000000e+00 : bf16
      %95 = vector.broadcast %cst_73 : bf16 to vector<10x17x8xbf16>
      %c0_74 = arith.constant 0 : index
      %c15 = arith.constant 15 : index
      %c16_75 = arith.constant 16 : index
      %96 = vector.load %arg11[%c0_74, %c15, %c16_75] : memref<10x32x24xbf16, #tpu.memory_space<vmem>>, vector<10x17x8xbf16>
      tpu.vector_store %arg11[%c0_74, %c15, %c16_75], %95 {strides = array<i32>} : memref<10x32x24xbf16, #tpu.memory_space<vmem>>, vector<10x17x8xbf16>,
    } else {
    }
    %c0 = arith.constant 0 : index
    %c0_1 = arith.constant 0 : index
    %c0_2 = arith.constant 0 : index
    %3 = vector.load %arg11[%c0, %c0_1, %c0_2] : memref<10x32x24xbf16, #tpu.memory_space<vmem>>, vector<8x32x24xbf16>
    %4 = vector.shape_cast %3 : vector<8x32x24xbf16> to vector<256x24xbf16>
    %c0_3 = arith.constant 0 : index
    %c0_4 = arith.constant 0 : index
    %c0_5 = arith.constant 0 : index
    %5 = vector.load %arg6[%c0_3, %c0_4, %c0_5] : memref<3x24x8xbf16, #tpu.memory_space<vmem>>, vector<1x24x8xbf16>
    %6 = vector.shape_cast %5 : vector<1x24x8xbf16> to vector<24x8xbf16>
    %cst = arith.constant dense<0.000000e+00> : vector<256x8xf32>
    %7 = tpu.matmul %4, %6, %cst {dimension_numbers = #tpu.dot_dimension_numbers<[1], [0], [0], [1], [0, 0, 1, 1], [], []>} : vector<256x24xbf16>, vector<24x8xbf16>, vector<256x8xf32> -> vector<256x8xf32>
    %c1 = arith.constant 1 : index
    %c0_6 = arith.constant 0 : index
    %c0_7 = arith.constant 0 : index
    %8 = vector.load %arg11[%c1, %c0_6, %c0_7] : memref<10x32x24xbf16, #tpu.memory_space<vmem>>, vector<8x32x24xbf16>
    %9 = vector.shape_cast %8 : vector<8x32x24xbf16> to vector<256x24xbf16>
    %c1_8 = arith.constant 1 : index
    %c0_9 = arith.constant 0 : index
    %c0_10 = arith.constant 0 : index
    %10 = vector.load %arg6[%c1_8, %c0_9, %c0_10] : memref<3x24x8xbf16, #tpu.memory_space<vmem>>, vector<1x24x8xbf16>
    %11 = vector.shape_cast %10 : vector<1x24x8xbf16> to vector<24x8xbf16>
    %cst_11 = arith.constant dense<0.000000e+00> : vector<256x8xf32>
    %12 = tpu.matmul %9, %11, %cst_11 {dimension_numbers = #tpu.dot_dimension_numbers<[1], [0], [0], [1], [0, 0, 1, 1], [], []>} : vector<256x24xbf16>, vector<24x8xbf16>, vector<256x8xf32> -> vector<256x8xf32>
    %13 = arith.addf %7, %12 : vector<256x8xf32>
    %c2 = arith.constant 2 : index
    %c0_12 = arith.constant 0 : index
    %c0_13 = arith.constant 0 : index
    %14 = vector.load %arg11[%c2, %c0_12, %c0_13] : memref<10x32x24xbf16, #tpu.memory_space<vmem>>, vector<8x32x24xbf16>
    %15 = vector.shape_cast %14 : vector<8x32x24xbf16> to vector<256x24xbf16>
    %c2_14 = arith.constant 2 : index
    %c0_15 = arith.constant 0 : index
    %c0_16 = arith.constant 0 : index
    %16 = vector.load %arg6[%c2_14, %c0_15, %c0_16] : memref<3x24x8xbf16, #tpu.memory_space<vmem>>, vector<1x24x8xbf16>
    %17 = vector.shape_cast %16 : vector<1x24x8xbf16> to vector<24x8xbf16>
    %cst_17 = arith.constant dense<0.000000e+00> : vector<256x8xf32>
    %18 = tpu.matmul %15, %17, %cst_17 {dimension_numbers = #tpu.dot_dimension_numbers<[1], [0], [0], [1], [0, 0, 1, 1], [], []>} : vector<256x24xbf16>, vector<24x8xbf16>, vector<256x8xf32> -> vector<256x8xf32>
    %19 = arith.addf %13, %18 : vector<256x8xf32>
    %20 = vector.shape_cast %19 : vector<256x8xf32> to vector<8x32x8xf32>
    %21 = vector.extract_strided_slice %20 {offsets = [0, 0, 0], sizes = [8, 16, 8], strides = [1, 1, 1]} : vector<8x32x8xf32> to vector<8x16x8xf32>
    %c0_18 = arith.constant 0 : index
    %c0_19 = arith.constant 0 : index
    %22 = vector.load %arg9[%c0_18, %c0_19] : memref<1x8xf32, #tpu.memory_space<vmem>>, vector<1x8xf32>
    %23 = vector.shape_cast %22 : vector<1x8xf32> to vector<8xf32>
    %24 = vector.shape_cast %23 : vector<8xf32> to vector<1x1x8xf32>
    %25 = vector.broadcast %24 : vector<1x1x8xf32> to vector<8x16x8xf32>
    %26 = arith.addf %21, %25 : vector<8x16x8xf32>
    %cst_20 = arith.constant 0.000000e+00 : f32
    %27 = vector.broadcast %cst_20 : f32 to vector<8x16x8xf32>
    %28 = arith.maximumf %26, %27 : vector<8x16x8xf32>
    %c0_21 = arith.constant 0 : index
    %c0_22 = arith.constant 0 : index
    %c0_23 = arith.constant 0 : index
    %c0_24 = arith.constant 0 : index
    %29 = vector.load %arg10[%c0_21, %c0_22, %c0_23, %c0_24] : memref<1x8x16x8xf32, #tpu.memory_space<vmem>>, vector<1x8x16x8xf32>
    %30 = vector.shape_cast %29 : vector<1x8x16x8xf32> to vector<8x16x8xf32>
    %31 = vector.shape_cast %28 : vector<8x16x8xf32> to vector<1x8x16x8xf32>
    tpu.vector_store %arg10[%c0_21, %c0_22, %c0_23, %c0_24], %31 {strides = array<i32>} : memref<1x8x16x8xf32, #tpu.memory_space<vmem>>, vector<1x8x16x8xf32>,
    return
  }
  func.func @transform_0(%arg0: i32, %arg1: i32, %arg2: i32) -> (i32, i32, i32, i32) {
    %c0_i32 = arith.constant 0 : i32
    %c0_i32_0 = arith.constant 0 : i32
    %c0_i32_1 = arith.constant 0 : i32
    return %arg0, %arg1, %c0_i32, %c0_i32_0 : i32, i32, i32, i32
  }
  func.func @transform_1(%arg0: i32, %arg1: i32, %arg2: i32) -> (i32, i32, i32, i32) {
    %c8_i32 = arith.constant 8 : i32
    %0 = arith.muli %arg1, %c8_i32 : i32
    %c1_i32 = arith.constant 1 : i32
    %1 = arith.subi %0, %c1_i32 : i32
    %c0_i32 = arith.constant 0 : i32
    %2 = arith.maxsi %1, %c0_i32 : i32
    %c0_i32_0 = arith.constant 0 : i32
    %c0_i32_1 = arith.constant 0 : i32
    %c0_i32_2 = arith.constant 0 : i32
    return %arg0, %2, %c0_i32_0, %c0_i32_1 : i32, i32, i32, i32
  }
  func.func @transform_2(%arg0: i32, %arg1: i32, %arg2: i32) -> (i32, i32, i32, i32) {
    %c1_i32 = arith.constant 1 : i32
    %0 = arith.addi %arg1, %c1_i32 : i32
    %c8_i32 = arith.constant 8 : i32
    %1 = arith.muli %0, %c8_i32 : i32
    %c15_i32 = arith.constant 15 : i32
    %2 = arith.minsi %1, %c15_i32 : i32
    %c0_i32 = arith.constant 0 : i32
    %c0_i32_0 = arith.constant 0 : i32
    %c0_i32_1 = arith.constant 0 : i32
    return %arg0, %2, %c0_i32, %c0_i32_0 : i32, i32, i32, i32
  }
  func.func @transform_3(%arg0: i32, %arg1: i32, %arg2: i32) -> (i32, i32, i32) {
    %c0_i32 = arith.constant 0 : i32
    %c0_i32_0 = arith.constant 0 : i32
    %c0_i32_1 = arith.constant 0 : i32
    return %c0_i32, %c0_i32_0, %arg2 : i32, i32, i32
  }
  func.func @transform_4(%arg0: i32, %arg1: i32, %arg2: i32) -> (i32, i32) {
    %c0_i32 = arith.constant 0 : i32
    %c0_i32_0 = arith.constant 0 : i32
    %c0_i32_1 = arith.constant 0 : i32
    return %c0_i32, %c0_i32_0 : i32, i32
  }
  func.func @transform_5(%arg0: i32, %arg1: i32, %arg2: i32) -> (i32, i32) {
    %c0_i32 = arith.constant 0 : i32
    %c0_i32_0 = arith.constant 0 : i32
    %c0_i32_1 = arith.constant 0 : i32
    return %c0_i32, %c0_i32_0 : i32, i32
  }
  func.func @transform_6(%arg0: i32, %arg1: i32, %arg2: i32) -> (i32, i32) {
    %c0_i32 = arith.constant 0 : i32
    %c0_i32_0 = arith.constant 0 : i32
    return %c0_i32, %arg2 : i32, i32
  }
  func.func @transform_7(%arg0: i32, %arg1: i32, %arg2: i32) -> (i32, i32, i32, i32) {
    %c0_i32 = arith.constant 0 : i32
    %c0_i32_0 = arith.constant 0 : i32
    return %arg0, %arg1, %c0_i32, %arg2 : i32, i32, i32, i32
  }
}

</mosaic_0001>

<bundles_post_ra>
// kernel: decoder_forward.5
= control target key start
LH: loop header
LB: loop body
LE: loop exit
PB: predicated region body
PF: predicated region fallthrough
CT: control target
= control target key end

     0   :  { %s2898_s24 = smov 0   ;;  %s2900_s25 = smov 0   ;;  %s3915_s0 = inlined_call_operand.vmem [shape: bf16[2,16,16,8], index: 0, kind: input, shape index: {}, may-alias: {0,1,2}]   ;;  %s3916_s1 = inlined_call_operand.vmem [shape: bf16[2,16,16,8], index: 1, kind: input, shape index: {}, may-alias: {0,1,2}]   ;;  %s3917_s2 = inlined_call_operand.vmem [shape: bf16[2,16,16,8], index: 2, kind: input, shape index: {}, may-alias: {0,1,2}]   ;;  %s3918_s3 = inlined_call_operand.vmem [shape: bf16[3,24,8], index: 3, kind: input, shape index: {}]   ;;  %s3919_s4 = inlined_call_operand.vmem [shape: f32[1,8], index: 4, kind: input, shape index: {}]   ;;  %s3920_s5 = inlined_call_operand.vmem [shape: f32[1,8], index: 5, kind: input, shape index: {}]   ;;  %s3921_s6 = inlined_call_operand.vmem [shape: f32[1,8], index: 6, kind: input, shape index: {}]   ;;  %s3922_s7 = inlined_call_operand.vmem [shape: f32[2,16,16,8], index: 7, kind: output, shape index: {}]  }
   0x1   :  { %s2902_s26 = smov 0   ;;  %s2904_s27 = smov 0  }
   0x2   :  { %s2906_s28 = smov 0  }
   0x3 LB: > { %s32_s29 = sadd.s32 1, %s2845_s26  ;;  %s36_s30 = sadd.s32 1, %s2849_s27  ;;  %s2853_s28 = sphi %s2906_s28, %s17_s28   ;;  %s2849_s27 = sphi %s2904_s27, %s3967_s27   ;;  %s2845_s26 = sphi %s2902_s26, %s3966_s26   ;;  %s2841_s25 = sphi %s2900_s25, %s3965_s25   ;;  %s2837_s24 = sphi %s2898_s24, %s3964_s24  }
   0x4   : > { %p34_p0 = scmp.ge.s32.totalorder %s32_s29, 2  ;;  %p2369_p1 = scmp.ge.s32.totalorder %s2853_s28, 1 }
   0x5   : > { %p349_p2 = scmp.lt.s32.totalorder %s2853_s28, 5 }
   0x6   : > { %s3969_s29 = smov (%p34_p0, %s32_s29), 0  ;;  %s3971_s30 = smov (!%p34_p0, %s36_s30), %s2849_s27 }
   0x7   : > { %p350_p3 = pnand %p2369_p1, %p349_p2  ;;  %p38_p4 = scmp.ge.s32.totalorder %s3971_s30, 2 }
   0x8   : > { %s2931_s8 = sshll.u32 (!%p350_p3), %s2837_s24, 3  ;;  %p428_p5 = scmp.lt.s32.totalorder (!%p350_p3), %s2841_s25, 1 }
   0x9   : > { %s3973_s30 = smov (%p38_p4, %s3971_s30), 0  ;;  %353 = sbr.rel (%p350_p3) target bundleno = 505 (0x1f9), region = 48 }
   0xa   : > { %p430_p6 = scmp.lt.s32.totalorder (!%p350_p3), %s2931_s8, 15  ;;  %s2375_s11 = sadd.s32 (!%p350_p3), 4294967295, %s2931_s8 }
   0xb   : > { %p440_p7 = scmp.gt.s32.totalorder (!%p350_p3), %s2375_s11, 0  ;;  %p2376_p8 = scmp.lt.s32.totalorder (!%p350_p3), %s2375_s11, 15 }
   0xc   : > { %p498_p9 = scmp.gt.s32.totalorder (!%p350_p3), %s2837_s24, 0  ;;  %s2856_s16 = smov (!%p350_p3), 8  }
   0xd   : > { %s2857_s18 = smov (!%p350_p3), 16   ;;  %s2662_s19 = sadd.s32 (!%p350_p3), 8, %s2931_s8 }
   0xe   : > { %s3975_s25 = smov (!%p428_p5, %s2841_s25), 1  ;;  %vm873_vm0 = vcmask 60416   ;;  %v2855_v0 = vmov 0   ;;  %v2952_v1 = vld [vmem:[%s3919_s4] ss:$0 sm:$0xff]  ;;  %vm1067_vm1 = vcmask 126016  }
   0xf   : > { %s431_s9 = scalar_select %p430_p6, %s2931_s8, 15  ;;  %950 = vst.msk [vmem:[#allocation2 + $0xc] sm:$0xf] %vm873_vm0, %v2855_v0  ;;  %v2964_v5 = vld [vmem:[%s3920_s5] ss:$0 sm:$0xff]  ;;  %vm638_vm2 = vcmask 57344  }
  0x10   : > { %s2935_s10 = sshll.u32 %s3975_s25, 5  ;;  %954 = vst.msk [vmem:[#allocation2 + $0x1c] sm:$0xf] %vm873_vm0, %v2855_v0  ;;  %vm639_vm3 = vsmask.f32 256  ;;  %vm1261_vm7 = vcmask 191616  }
  0x11   : > { %s2371_s12 = sshll.u32 %s431_s9, 1  ;;  %958 = vst.msk [vmem:[#allocation2 + $0x2c] sm:$0xf] %vm873_vm0, %v2855_v0  ;;  %v888_v40 = vld [vmem:[#allocation2 + $0x18] sm:$0x1]  ;;  %vm3047_vm5 = vmand %vm638_vm2, %vm639_vm3  ;;  %p3181_p10 = scmp.lt.s32.totalorder %s2662_s19, 15 }
  0x12   : > { %s2939_s13 = sadd.s32 %s2935_s10, %s2371_s12  ;;  %962 = vst.msk [vmem:[#allocation2 + $0x3c] sm:$0xf] %vm873_vm0, %v2855_v0  ;;  %vm874_vm6 = vsmask.f32 7938  ;;  %vm1108_vm8 = vsmask.f32 3328 }
  0x13   : > { %s2373_s14 = sshll.u32 %s2939_s13, 2  ;;  %966 = vst.msk [vmem:[#allocation2 + $0x4c] sm:$0xf] %vm873_vm0, %v2855_v0  ;;  %vm1109_vm9 = vsmask.f32 7440  ;;  %vm3120_vm10 = vmand %vm873_vm0, %vm874_vm6  ;;  %s3979_s19 = smov (!%p3181_p10, %s2662_s19), 15 }
  0x14   : > { %s2947_s17 = scalar_lea.vmem %s3915_s0, %s2373_s14  ;;  %970 = vst.msk [vmem:[#allocation2 + $0x5c] sm:$0xf] %vm873_vm0, %v2855_v0  ;;  %vm3167_vm11 = vmor %vm1108_vm8, %vm1109_vm9  ;;  %s3981_s19 = smov (!%p3181_p10, %s3979_s19), 15  ;;  %vm671_vm12 = vsmask.f32 4368  ;;  %vm1567_vm14 = vcmask 1043456  }
  0x15   : > { %v2754_v2 = vld [vmem:[%s2947_s17 + $0x8] sm:$0xff]   ;;  %v2723_v3 = vld [vmem:[%s2947_s17] sm:$0xff]   ;;  %v2759_v4 = vld [vmem:[%s2947_s17 + $0x30] sm:$0xff]   ;;  %s441_s20 = scalar_select %p440_p7, %s2375_s11, 0  ;;  %974 = vst.msk [vmem:[#allocation2 + $0x6c] sm:$0xf] %vm873_vm0, %v2855_v0 }
  0x16   : > { %v2729_v6 = vunpack.c.h.bf16 %v2754_v2  ;;  %v2725_v7 = vunpack.c.h.bf16 %v2723_v3  ;;  %v2749_v8 = vunpack.c.h.bf16 %v2759_v4  ;;  %v2748_v9 = vunpack.c.l.bf16 %v2759_v4  ;;  %s2975_s23 = scalar_select %p498_p9, 1, 0  ;;  %978 = vst.msk [vmem:[#allocation2 + $0x7c] sm:$0xf] %vm873_vm0, %v2855_v0  ;;  %vm3437_vm13 = vmor %vm639_vm3, %vm671_vm12 }
  0x17   : > { %s3977_s20 = smov (!%p2376_p8, %s441_s20), 15  ;;  %v2728_v10 = vunpack.c.l.bf16 %v2754_v2  ;;  %v2724_v11 = vunpack.c.l.bf16 %v2723_v3  ;;  %982 = vst.msk [vmem:[#allocation2 + $0x8c] sm:$0xf] %vm873_vm0, %v2855_v0  ;;  %s3215_s8 = sshll.u32 %s3981_s19, 1  ;;  %vm3555_vm15 = vmand %vm1261_vm7, %vm1108_vm8  ;;  %vm1304_vm2 = vcmask 191619   ;;  %vm1518_vm8 = vcmask 195584  }
  0x18   : > { %v573_v12 = vmul.f32 %v2952_v1, %v2729_v6  ;;  %v571_v13 = vmul.f32 %v2952_v1, %v2725_v7  ;;  %v583_v14 = vmul.f32 %v2952_v1, %v2749_v8  ;;  %s2381_s25 = sshll.u32 %s3977_s20, 1  ;;  %v582_v18 = vmul.f32 %v2952_v1, %v2748_v9  ;;  %986 = vst.msk [vmem:[#allocation2 + $0x9c] sm:$0xf] %vm873_vm0, %v2855_v0  ;;  %s465_s21 = sadd.s32 %s3215_s8, %s2935_s10 }
  0x19   : > { %v572_v15 = vmul.f32 %v2952_v1, %v2728_v10  ;;  %s448_s9 = sadd.s32 %s2381_s25, %s2935_s10  ;;  %v570_v20 = vmul.f32 %v2952_v1, %v2724_v11  ;;  %1089 = vst.msk [vmem:[#allocation2 + $0xc] sm:$0xf] %vm1067_vm1, %v2855_v0  ;;  %v518_v34 = vstv %s2975_s23  ;;  %v3095_v10 = vld [vmem:[%s2947_s17 + $0x10] sm:$0xff]   ;;  %s2390_s20 = sshll.u32 %s465_s21, 2  ;;  %vm1305_vm3 = vsmask.f32 7950 }
  0x1a   : > { %v589_v16 = vadd.f32 %v2964_v5, %v573_v12  ;;  %v587_v17 = vadd.f32 %v2964_v5, %v571_v13  ;;  %s2383_s11 = sshll.u32 %s448_s9, 2  ;;  %v599_v23 = vadd.f32 %v2964_v5, %v583_v14  ;;  %1091 = vst.msk [vmem:[#allocation2 + $0x1c] sm:$0xf] %vm1067_vm1, %v2855_v0  ;;  %v598_v29 = vadd.f32 %v2964_v5, %v582_v18  ;;  %v881_v13 = vld [vmem:[#allocation2 + $0x8] sm:$0x1]  ;;  %s467_s21 = scalar_lea.vmem %s3917_s2, %s2390_s20 }
  0x1b   : > { %v588_v19 = vadd.f32 %v2964_v5, %v572_v15  ;;  %s450_s15 = scalar_lea.vmem %s3916_s1, %s2383_s11  ;;  %1093 = vst.msk [vmem:[#allocation2 + $0x2c] sm:$0xf] %vm1067_vm1, %v2855_v0  ;;  %v586_v31 = vadd.f32 %v2964_v5, %v570_v20  ;;  %vm3033_vm4 = vcmp.eq.s32.totalorder %v518_v34, 1  ;;  %p522_p11 = scmp.lt.s32.totalorder %s2837_s24, 1 }
  0x1c   : > { %v605_v21 = vmax.f32 %v589_v16, 0.0  ;;  %v603_v22 = vmax.f32 %v587_v17, 0.0  ;;  %v2715_v24 = vld [vmem:[%s450_s15] sm:$0xff]   ;;  %v615_v32 = vmax.f32 %v599_v23, 0.0  ;;  %1095 = vst.msk [vmem:[#allocation2 + $0x3c] sm:$0xf] %vm1067_vm1, %v2855_v0 }
  0x1d   : > { %v604_v25 = vmax.f32 %v588_v19, 0.0  ;;  %v2717_v28 = vunpack.c.h.bf16 %v2715_v24  ;;  %1097 = vst.msk [vmem:[#allocation2 + $0x4c] sm:$0xf] %vm1067_vm1, %v2855_v0  ;;  %v2716_v38 = vunpack.c.l.bf16 %v2715_v24  ;;  %v614_v44 = vmax.f32 %v598_v29, 0.0  ;;  %v895_v29 = vld [vmem:[#allocation2 + $0x28] sm:$0x1] }
  0x1e   : > { %v3000_v26 = vpack.c.bf16 %v605_v21, %v605_v21  ;;  %v3002_v27 = vpack.c.bf16 %v603_v22, %v603_v22  ;;  %1099 = vst.msk [vmem:[#allocation2 + $0x5c] sm:$0xf] %vm1067_vm1, %v2855_v0  ;;  %v602_v45 = vmax.f32 %v586_v31, 0.0  ;;  %v3039_v46 = vpack.c.bf16 %v615_v32, %v615_v32  ;;  %s533_s9 = scalar_select %p522_p11, 1, 0 }
  0x1f   : > { %v3009_v30 = vpack.c.bf16 %v604_v25, %v604_v25  ;;  %v508_v33 = vmul.f32 %v2952_v1, %v2717_v28  ;;  %1101 = vst.msk [vmem:[#allocation2 + $0x6c] sm:$0xf] %vm1067_vm1, %v2855_v0  ;;  %v507_v54 = vmul.f32 %v2952_v1, %v2716_v38  ;;  %v3074_v61 = vpack.c.bf16 %v614_v44, %v614_v44 }
  0x20   : > { %1017 = vrot.lane.b32.xlu0 %v3000_v26, %s2856_s16  ;;  %1013 = vrot.lane.b32.xlu1 %v3002_v27, %s2856_s16  ;;  %v699_v35 = vshrl.u32 %v3002_v27, 16  ;;  %v702_v36 = vshll.u32 %v3002_v27, 16  ;;  %1103 = vst.msk [vmem:[#allocation2 + $0x7c] sm:$0xf] %vm1067_vm1, %v2855_v0  ;;  %v719_v49 = vshll.u32 %v3000_v26, 16  ;;  %v716_v58 = vshrl.u32 %v3000_v26, 16 }
  0x21   : > { %1015 = vrot.lane.b32.xlu2 %v3009_v30, %s2856_s16  ;;  %v708_v37 = vshrl.u32 %v3009_v30, 16  ;;  %v514_v39 = vadd.f32 %v2964_v5, %v508_v33  ;;  %v711_v42 = vshll.u32 %v3009_v30, 16  ;;  %1105 = vst.msk [vmem:[#allocation2 + $0x8c] sm:$0xf] %vm1067_vm1, %v2855_v0  ;;  %v513_v60 = vadd.f32 %v2964_v5, %v507_v54 }
  0x22   : > { %v3028_v41 = vrot.slane %v699_v35, 7  ;;  %v3053_v51 = vrot.slane %v702_v36, 5  ;;  %v1126_v52 = vrot.slane %v699_v35, 4  ;;  %1107 = vst.msk [vmem:[#allocation2 + $0x9c] sm:$0xf] %vm1067_vm1, %v2855_v0  ;;  %v3080_v62 = vrot.slane %v719_v49, 5 }
  0x23   : > { %v516_v47 = vmax.f32 %v514_v39, 0.0  ;;  %v1129_v53 = vrot.slane %v708_v37, 4  ;;  %v1130_v57 = vrot.slane %v711_v42, 5  ;;  %1311 = vst.msk [vmem:[#allocation2 + $0xc] sm:$0xf] %vm1261_vm7, %v2855_v0  ;;  %v1135_v63 = vrot.slane %v716_v58, 4 }
  0x24   : > { %v706_v48 = vrot.slane %v3028_v41, 4  ;;  %v1127_v2 = vor.u32 %v1126_v52, %v3053_v51  ;;  %1316 = vst.msk [vmem:[#allocation2 + $0x1c] sm:$0xf] %vm1261_vm7, %v2855_v0  ;;  %v515_v6 = vmax.f32 %v513_v60, 0.0  ;;  %v3092_v9 = vpack.c.bf16 %v602_v45, %v602_v45  ;;  %v930_v39 = vld [vmem:[#allocation2 + $0x78] sm:$0x1] }
  0x25   : > { %v521_v55 = vsel %vm3033_vm4, %v516_v47, 0.0  ;;  %1321 = vst.msk [vmem:[#allocation2 + $0x2c] sm:$0xf] %vm1261_vm7, %v2855_v0  ;;  %v1131_v7 = vor.u32 %v1130_v57, %v1129_v53  ;;  %v1136_v8 = vor.u32 %v1135_v63, %v3080_v62  ;;  %v793_v11 = vshrl.u32 %v3074_v61, 16  ;;  %v3148_v47 = vld [vmem:[%s2947_s17 + $0x38] sm:$0xff]  }
  0x26   : > { %v889_v56 = vsel %vm3047_vm5, %v706_v48, %v888_v40  ;;  %v3069_v59 = vpack.c.bf16 %v521_v55, %v521_v55  ;;  %1326 = vst.msk [vmem:[#allocation2 + $0x3c] sm:$0xf] %vm1261_vm7, %v2855_v0  ;;  %v796_v16 = vshll.u32 %v3074_v61, 16  ;;  %v520_v17 = vsel %vm3033_vm4, %v515_v6, 0.0  ;;  %vm3592_vm4 = vmand %vm1304_vm2, %vm1305_vm3 }
  0x27   : > { %890 = vst [vmem:[#allocation2 + $0x18] sm:$0x1] %v889_v56  ;;  %v1137_v18 = vrot.slane %v1136_v8, 4  ;;  %v801_v19 = vshrl.u32 %v3039_v46, 16  ;;  %v1128_v20 = vrot.slane %v1127_v2, 4  ;;  %v3115_v22 = vrot.slane %v716_v58, 7 }
  0x28   : > { %1037 = vrot.lane.b32.xlu0 %v3039_v46, %s2856_s16  ;;  %1009 = vrot.lane.b32.xlu1 %v3069_v59, %s2856_s16  ;;  %v682_v3 = vshrl.u32 %v3069_v59, 16  ;;  %v685_v4 = vshll.u32 %v3069_v59, 16  ;;  %1331 = vst.msk [vmem:[#allocation2 + $0x4c] sm:$0xf] %vm1261_vm7, %v2855_v0  ;;  %v804_v23 = vshll.u32 %v3039_v46, 16  ;;  %v1132_v28 = vrot.slane %v1131_v7, 4 }
  0x29   : > { %1336 = vst.msk [vmem:[#allocation2 + $0x5c] sm:$0xf] %vm1261_vm7, %v2855_v0  ;;  %1211 = vrot.lane.b32.xlu2 %v1137_v18, %s2857_s18  ;;  %v3127_v31 = vrot.slane %v801_v19, 7  ;;  %v2733_v32 = vunpack.c.h.bf16 %v3095_v10  ;;  %v3135_v35 = vpack.c.bf16 %v520_v17, %v520_v17  ;;  %v723_v38 = vrot.slane %v3115_v22, 4 }
  0x2a   : > { %v3098_v12 = vrot.slane %v682_v3, 7  ;;  %v3102_v14 = vrot.slane %v685_v4, 5  ;;  %v1117_v15 = vrot.slane %v682_v3, 4  ;;  %1341 = vst.msk [vmem:[#allocation2 + $0x6c] sm:$0xf] %vm1261_vm7, %v2855_v0  ;;  %v3145_v44 = vrot.slane %v804_v23, 5 }
  0x2b   : > { %1346 = vst.msk [vmem:[#allocation2 + $0x7c] sm:$0xf] %vm1261_vm7, %v2855_v0  ;;  %v808_v43 = vrot.slane %v3127_v31, 4  ;;  %v1180_v45 = vrot.slane %v801_v19, 4  ;;  %v674_v48 = vshrl.u32 %v3135_v35, 16  ;;  %v691_v52 = vshrl.u32 %v3092_v9, 16 }
  0x2c   : > { %v689_v21 = vrot.slane %v3098_v12, 4  ;;  %v1118_v34 = vor.u32 %v1117_v15, %v3102_v14  ;;  %v575_v53 = vmul.f32 %v2952_v1, %v2733_v32  ;;  %v1174_v54 = vrot.slane %v793_v11, 4  ;;  %1351 = vst.msk [vmem:[#allocation2 + $0x8c] sm:$0xf] %vm1261_vm7, %v2855_v0 }
  0x2d   : > { %v3932_v55 = vshll.u32 %v3135_v35, 16  ;;  %v1181_v56 = vor.u32 %v1180_v45, %v3145_v44  ;;  %v2732_v57 = vunpack.c.l.bf16 %v3095_v10  ;;  %v1175_v58 = vrot.slane %v796_v16, 5  ;;  %1356 = vst.msk [vmem:[#allocation2 + $0x9c] sm:$0xf] %vm1261_vm7, %v2855_v0 }
  0x2e   : > { %v951_v25 = vld [vmem:[#allocation2 + $0x18] sm:$0xf]  ;;  %v882_v40 = vsel %vm3047_vm5, %v689_v21, %v881_v13  ;;  %v896_v63 = vsel %vm3047_vm5, %v723_v38, %v895_v29  ;;  %v3925_v2 = vshll.u32 %v3092_v9, 16  ;;  %v591_v3 = vadd.f32 %v2964_v5, %v575_v53 }
  0x2f   : > { %v952_v33 = vsel %vm3120_vm10, 0, %v951_v25  ;;  %883 = vst [vmem:[#allocation2 + $0x8] sm:$0x1] %v882_v40  ;;  %v2753_v6 = vunpack.c.h.bf16 %v3148_v47  ;;  %v1119_v7 = vrot.slane %v1118_v34, 4  ;;  %v931_v8 = vsel %vm3047_vm5, %v808_v43, %v930_v39  ;;  %v3213_v43 = vld [vmem:[%s2947_s17 + $0x28] sm:$0xff]  }
  0x30   : > { %1035 = vrot.lane.b32.xlu0 %v3074_v61, %s2856_s16  ;;  %953 = vst [vmem:[#allocation2 + $0x18] sm:$0xf] %v952_v33  ;;  %1207 = vrot.lane.b32.xlu1 %v1128_v20, %s2857_s18  ;;  %v1182_v10 = vrot.slane %v1181_v56, 4  ;;  %v1176_v13 = vor.u32 %v1175_v58, %v1174_v54  ;;  %v607_v15 = vmax.f32 %v591_v3, 0.0  ;;  %v1134_v18 = vsel %vm3167_vm11, %v1132_v28, %v3080_v62  ;;  %v2568_v61 = vld [vmem:[%s3918_s3 + $0x20] sm:$0xf] }
  0x31   : > { %1090 = vst.msk [vmem:[#allocation2 + $0x18] sm:$0xf] %vm1067_vm1, %v2855_v0  ;;  %v585_v17 = vmul.f32 %v2952_v1, %v2753_v6  ;;  %v574_v19 = vmul.f32 %v2952_v1, %v2732_v57  ;;  %v1111_v20 = vrot.slane %v674_v48, 4  ;;  %v1112_v21 = vrot.slane %v3932_v55, 5 }
  0x32   : > { %1315 = vst.msk [vmem:[#allocation2 + $0x18] sm:$0xf] %vm1261_vm7, %v2855_v0  ;;  %1231 = vrot.lane.b32.xlu2 %v1182_v10, %s2857_s18  ;;  %v3199_v25 = vpack.c.bf16 %v607_v15, %v607_v15  ;;  %v1177_v29 = vrot.slane %v1176_v13, 4  ;;  %v1120_v28 = vrot.slane %v691_v52, 4  ;;  %v1121_v32 = vrot.slane %v3925_v2, 5 }
  0x33   : > { %897 = vst [vmem:[#allocation2 + $0x28] sm:$0x1] %v896_v63  ;;  %v601_v62 = vadd.f32 %v2964_v5, %v585_v17  ;;  %v2752_v34 = vunpack.c.l.bf16 %v3148_v47  ;;  %v590_v39 = vadd.f32 %v2964_v5, %v574_v19  ;;  %v1113_v40 = vor.u32 %v1112_v21, %v1111_v20  ;;  %v937_v10 = vld [vmem:[#allocation2 + $0x88] sm:$0x1]  ;;  %v902_v13 = vld [vmem:[#allocation2 + $0x38] sm:$0x1] }
  0x34   : > { %932 = vst [vmem:[#allocation2 + $0x78] sm:$0x1] %v931_v8  ;;  %v1179_v53 = vsel %vm3167_vm11, %v1177_v29, %v3145_v44  ;;  %v733_v47 = vshrl.u32 %v3199_v25, 16  ;;  %v1122_v56 = vor.u32 %v1121_v32, %v1120_v28  ;;  %v2745_v6 = vunpack.c.h.bf16 %v3213_v43  ;;  %v2756_v29 = vld [vmem:[%s2947_s17 + $0x18] sm:$0xff]  }
  0x35   : > { %v617_v33 = vmax.f32 %v601_v62, 0.0  ;;  %v584_v3 = vmul.f32 %v2952_v1, %v2752_v34  ;;  %v606_v8 = vmax.f32 %v590_v39, 0.0  ;;  %v1114_v19 = vrot.slane %v1113_v40, 4 }
  0x36   : > { %v947_v38 = vld [vmem:[#allocation2 + $0x8] sm:$0xf]  ;;  %v3230_v63 = vrot.slane %v733_v47, 7  ;;  %v1123_v20 = vrot.slane %v1122_v56, 4  ;;  %v3926_v21 = vshll.u32 %v3199_v25, 16  ;;  %v704_v26 = vor.u32 %v702_v36, %v3028_v41 }
  0x37   : > { %v948_v45 = vsel %vm3120_vm10, 0, %v947_v38  ;;  %v3222_v54 = vpack.c.bf16 %v617_v33, %v617_v33  ;;  %v600_v32 = vadd.f32 %v2964_v5, %v584_v3  ;;  %v581_v33 = vmul.f32 %v2952_v1, %v2745_v6  ;;  %v662_v36 = vld [vmem:[#allocation2 + $0x70] sm:$0x1] }
  0x38   : > { %1203 = vrot.lane.b32.xlu0 %v1119_v7, %s2857_s18  ;;  %1209 = vrot.lane.b32.xlu1 %v1134_v18, %s2857_s18  ;;  %949 = vst [vmem:[#allocation2 + $0x8] sm:$0xf] %v948_v45  ;;  %v740_v18 = vrot.slane %v3230_v63, 4  ;;  %v3258_v34 = vpack.c.bf16 %v606_v8, %v606_v8  ;;  %v2737_v38 = vunpack.c.h.bf16 %v2756_v29  ;;  %v1116_v45 = vsel %vm3167_vm11, %v1114_v19, %v3102_v14 }
  0x39   : > { %1088 = vst.msk [vmem:[#allocation2 + $0x8] sm:$0xf] %vm1067_vm1, %v2855_v0  ;;  %v818_v58 = vshrl.u32 %v3222_v54, 16  ;;  %v3928_v62 = vshll.u32 %v3222_v54, 16  ;;  %v1125_v56 = vsel %vm3167_vm11, %v1123_v20, %v3053_v51  ;;  %v1144_v3 = vrot.slane %v733_v47, 4 }
  0x3a   : > { %v955_v57 = vld [vmem:[#allocation2 + $0x28] sm:$0xf]  ;;  %1310 = vst.msk [vmem:[#allocation2 + $0x8] sm:$0xf] %vm1261_vm7, %v2855_v0  ;;  %1229 = vrot.lane.b32.xlu2 %v1179_v53, %s2857_s18  ;;  %v903_v40 = vsel %vm3047_vm5, %v740_v18, %v902_v13  ;;  %v597_v53 = vadd.f32 %v2964_v5, %v581_v33  ;;  %v577_v6 = vmul.f32 %v2952_v1, %v2737_v38  ;;  %v3927_v51 = vshrl.u32 %v3258_v34, 16 }
  0x3b   : > { %v956_v44 = vsel %vm3120_vm10, 0, %v955_v57  ;;  %v975_v7 = vld [vmem:[#allocation2 + $0x78] sm:$0xf]  ;;  %v3241_v17 = vrot.slane %v818_v58, 7  ;;  %v3277_v57 = vrot.slane %v3926_v21, 5  ;;  %v3282_v14 = vrot.slane %v3928_v62, 5 }
  0x3c   : > { %957 = vst [vmem:[#allocation2 + $0x28] sm:$0xf] %v956_v44  ;;  %v976_v15 = vsel %vm3120_vm10, 0, %v975_v7  ;;  %v1189_v44 = vrot.slane %v818_v58, 4  ;;  %v616_v7 = vmax.f32 %v600_v32, 0.0  ;;  %v613_v8 = vmax.f32 %v597_v53, 0.0 }
  0x3d   : > { %1092 = vst.msk [vmem:[#allocation2 + $0x28] sm:$0xf] %vm1067_vm1, %v2855_v0  ;;  %v825_v28 = vrot.slane %v3241_v17, 4  ;;  %v2736_v47 = vunpack.c.l.bf16 %v2756_v29  ;;  %v593_v18 = vadd.f32 %v2964_v5, %v577_v6  ;;  %v1138_v29 = vrot.slane %v3927_v51, 4 }
  0x3e   : > { %1320 = vst.msk [vmem:[#allocation2 + $0x28] sm:$0xf] %vm1261_vm7, %v2855_v0  ;;  %v3287_v13 = vpack.c.bf16 %v613_v8, %v613_v8  ;;  %v1190_v58 = vor.u32 %v1189_v44, %v3282_v14  ;;  %v3295_v19 = vpack.c.bf16 %v616_v7, %v616_v7  ;;  %v2744_v33 = vunpack.c.l.bf16 %v3213_v43 }
  0x3f   : > { %977 = vst [vmem:[#allocation2 + $0x78] sm:$0xf] %v976_v15  ;;  %v938_v39 = vsel %vm3047_vm5, %v825_v28, %v937_v10  ;;  %v3923_v10 = vshll.u32 %v3258_v34, 16  ;;  %v1145_v15 = vor.u32 %v1144_v3, %v3277_v57  ;;  %v576_v28 = vmul.f32 %v2952_v1, %v2736_v47 }
  0x40   : > { %1007 = vrot.lane.b32.xlu0 %v3135_v35, %s2856_s16  ;;  %1011 = vrot.lane.b32.xlu1 %v3092_v9, %s2856_s16  ;;  %1102 = vst.msk [vmem:[#allocation2 + $0x78] sm:$0xf] %vm1067_vm1, %v2855_v0  ;;  %v784_v20 = vshrl.u32 %v3287_v13, 16  ;;  %v3929_v38 = vshrl.u32 %v3295_v19, 16  ;;  %v609_v3 = vmax.f32 %v593_v18, 0.0  ;;  %v1191_v44 = vrot.slane %v1190_v58, 4 }
  0x41   : > { %1345 = vst.msk [vmem:[#allocation2 + $0x78] sm:$0xf] %vm1261_vm7, %v2855_v0  ;;  %v1139_v32 = vrot.slane %v3923_v10, 5  ;;  %v663_v30 = vsel %vm3047_vm5, 0, %v662_v36 }
  0x42   : > { %939 = vst [vmem:[#allocation2 + $0x88] sm:$0x1] %v938_v39  ;;  %1201 = vrot.lane.b32.xlu2 %v1116_v45, %s2857_s18  ;;  %v3924_v39 = vshll.u32 %v3295_v19, 16  ;;  %v592_v45 = vadd.f32 %v2964_v5, %v576_v28  ;;  %v580_v28 = vmul.f32 %v2952_v1, %v2744_v33  ;;  %v1183_v58 = vrot.slane %v3929_v38, 4 }
  0x43   : > { %904 = vst [vmem:[#allocation2 + $0x38] sm:$0x1] %v903_v40  ;;  %v3308_v40 = vrot.slane %v784_v20, 7  ;;  %v1140_v10 = vor.u32 %v1139_v32, %v1138_v29  ;;  %v3330_v29 = vpack.c.bf16 %v609_v3, %v609_v3 }
  0x44   : > { %v608_v8 = vmax.f32 %v592_v45, 0.0  ;;  %v1184_v45 = vrot.slane %v3924_v39, 5  ;;  %664 = vst [vmem:[#allocation2 + $0x70] sm:$0x1] %v663_v30 }
  0x45   : > { %v791_v43 = vrot.slane %v3308_v40, 4  ;;  %v3930_v21 = vshll.u32 %v3330_v29, 16 }
  0x46   : > { %v3321_v18 = vpack.c.bf16 %v608_v8, %v608_v8  ;;  %v3341_v8 = vld [vmem:[%s2947_s17 + $0x20] sm:$0xff]  }
  0x48   : > { %1205 = vrot.lane.b32.xlu0 %v1125_v56, %s2857_s18  ;;  %1021 = vrot.lane.b32.xlu1 %v3199_v25, %s2856_s16  ;;  %v1146_v56 = vrot.slane %v1145_v15, 4  ;;  %v923_v15 = vld [vmem:[#allocation2 + $0x68] sm:$0x1]  ;;  %v742_v33 = vshrl.u32 %v3321_v18, 16  ;;  %v745_v3 = vshll.u32 %v3321_v18, 16 }
  0x49   : > { %v979_v53 = vld [vmem:[#allocation2 + $0x88] sm:$0xf]  ;;  %v924_v32 = vsel %vm3047_vm5, %v791_v43, %v923_v15 }
  0x4a   : > { %v980_v6 = vsel %vm3120_vm10, 0, %v979_v53  ;;  %v959_v7 = vld [vmem:[#allocation2 + $0x38] sm:$0xf]  ;;  %1041 = vrot.lane.b32.xlu2 %v3222_v54, %s2856_s16  ;;  %v1141_v53 = vrot.slane %v1140_v10, 4  ;;  %925 = vst [vmem:[#allocation2 + $0x68] sm:$0x1] %v924_v32 }
  0x4b   : > { %981 = vst [vmem:[#allocation2 + $0x88] sm:$0xf] %v980_v6  ;;  %v960_v47 = vsel %vm3120_vm10, 0, %v959_v7  ;;  %v596_v6 = vadd.f32 %v2964_v5, %v580_v28  ;;  %v750_v7 = vshrl.u32 %v3330_v29, 16  ;;  %v909_v28 = vld [vmem:[#allocation2 + $0x48] sm:$0x1] }
  0x4c   : > { %1104 = vst.msk [vmem:[#allocation2 + $0x88] sm:$0xf] %vm1067_vm1, %v2855_v0  ;;  %v1143_v15 = vsel %vm3167_vm11, %v1141_v53, %v3277_v57 }
  0x4d   : > { %1350 = vst.msk [vmem:[#allocation2 + $0x88] sm:$0xf] %vm1261_vm7, %v2855_v0  ;;  %v3348_v43 = vrot.slane %v750_v7, 7  ;;  %v612_v39 = vmax.f32 %v596_v6, 0.0  ;;  %v1153_v6 = vrot.slane %v750_v7, 4 }
  0x4e   : > { %961 = vst [vmem:[#allocation2 + $0x38] sm:$0xf] %v960_v47  ;;  %v2741_v47 = vunpack.c.h.bf16 %v3341_v8 }
  0x4f   : > { %1094 = vst.msk [vmem:[#allocation2 + $0x38] sm:$0xf] %vm1067_vm1, %v2855_v0  ;;  %v757_v2 = vrot.slane %v3348_v43, 4  ;;  %v3369_v53 = vpack.c.bf16 %v612_v39, %v612_v39 }
  0x50   : > { %1215 = vrot.lane.b32.xlu0 %v1146_v56, %s2857_s18  ;;  %1235 = vrot.lane.b32.xlu1 %v1191_v44, %s2857_s18  ;;  %1325 = vst.msk [vmem:[#allocation2 + $0x38] sm:$0xf] %vm1261_vm7, %v2855_v0  ;;  %v3345_v56 = vrot.slane %v742_v33, 7  ;;  %v1185_v44 = vor.u32 %v1184_v45, %v1183_v58  ;;  %v579_v58 = vmul.f32 %v2952_v1, %v2741_v47  ;;  %v3931_v45 = vshll.u32 %v3287_v13, 16 }
  0x51   : > { %v910_v51 = vsel %vm3047_vm5, %v757_v2, %v909_v28  ;;  %v971_v62 = vld [vmem:[#allocation2 + $0x68] sm:$0xf]  ;;  %v1171_v28 = vrot.slane %v784_v20, 4  ;;  %v3934_v7 = vshrl.u32 %v3369_v53, 16 }
  0x52   : > { %v3352_v10 = vor.u32 %v745_v3, %v3345_v56  ;;  %1019 = vrot.lane.b32.xlu2 %v3258_v34, %s2856_s16  ;;  %v1186_v32 = vrot.slane %v1185_v44, 4  ;;  %v595_v57 = vadd.f32 %v2964_v5, %v579_v58  ;;  %911 = vst [vmem:[#allocation2 + $0x48] sm:$0x1] %v910_v51  ;;  %v1169_v44 = vrot.slane %v3931_v45, 5 }
  0x53   : > { %v972_v2 = vsel %vm3120_vm10, 0, %v971_v62  ;;  %v1151_v51 = vrot.slane %v3930_v21, 5 }
  0x54   : > { %v611_v47 = vmax.f32 %v595_v57, 0.0  ;;  %v1188_v38 = vsel %vm3167_vm11, %v1186_v32, %v3282_v14  ;;  %973 = vst [vmem:[#allocation2 + $0x68] sm:$0xf] %v972_v2  ;;  %v3933_v14 = vshll.u32 %v3369_v53, 16  ;;  %v1172_v20 = vor.u32 %v1171_v28, %v1169_v44 }
  0x55   : > { %1100 = vst.msk [vmem:[#allocation2 + $0x68] sm:$0xf] %vm1067_vm1, %v2855_v0  ;;  %v1148_v57 = vrot.slane %v745_v3, 5  ;;  %v1165_v2 = vrot.slane %v3934_v7, 4 }
  0x56   : > { %v3382_v39 = vpack.c.bf16 %v611_v47, %v611_v47  ;;  %1340 = vst.msk [vmem:[#allocation2 + $0x68] sm:$0xf] %vm1261_vm7, %v2855_v0  ;;  %v916_v47 = vld [vmem:[#allocation2 + $0x58] sm:$0x1]  ;;  %v1166_v21 = vrot.slane %v3933_v14, 5  ;;  %v1173_v55 = vrot.slane %v1172_v20, 4 }
  0x57   : > { %v710_v14 = vrot.slane %v708_v37, 7  ;;  %v3432_v37 = vrot.slane %v691_v52, 7 }
  0x58   : > { %1039 = vrot.lane.b32.xlu0 %v3295_v19, %s2856_s16  ;;  %1213 = vrot.lane.b32.xlu1 %v1143_v15, %s2857_s18  ;;  %v1154_v15 = vor.u32 %v1153_v6, %v1151_v51  ;;  %v767_v62 = vshrl.u32 %v3382_v39, 16 }
  0x59   : > { %v963_v58 = vld [vmem:[#allocation2 + $0x48] sm:$0xf]  ;;  %v714_v52 = vrot.slane %v710_v14, 4 }
  0x5a   : > { %1233 = vrot.lane.b32.xlu2 %v1188_v38, %s2857_s18  ;;  %v3394_v32 = vrot.slane %v767_v62, 7  ;;  %v1147_v38 = vrot.slane %v742_v33, 4  ;;  %v964_v6 = vsel %vm3120_vm10, 0, %v963_v58  ;;  %v1155_v28 = vrot.slane %v1154_v15, 4 }
  0x5b   : > { %965 = vst [vmem:[#allocation2 + $0x48] sm:$0xf] %v964_v6  ;;  %v1167_v58 = vor.u32 %v1166_v21, %v1165_v2  ;;  %v770_v15 = vshll.u32 %v3382_v39, 16  ;;  %v1162_v21 = vrot.slane %v767_v62, 4 }
  0x5c   : > { %v774_v45 = vrot.slane %v3394_v32, 4  ;;  %1096 = vst.msk [vmem:[#allocation2 + $0x48] sm:$0xf] %vm1067_vm1, %v2855_v0  ;;  %v1149_v3 = vor.u32 %v1148_v57, %v1147_v38  ;;  %v721_v57 = vor.u32 %v719_v49, %v3115_v22 }
  0x5d   : > { %1330 = vst.msk [vmem:[#allocation2 + $0x48] sm:$0xf] %vm1261_vm7, %v2855_v0  ;;  %v1168_v20 = vrot.slane %v1167_v58, 4 }
  0x5e   : > { %v917_v33 = vsel %vm3047_vm5, %v774_v45, %v916_v47  ;;  %v1150_v6 = vrot.slane %v1149_v3, 4  ;;  %v3420_v45 = vrot.slane %v770_v15, 5  ;;  %v647_v47 = vld [vmem:[#allocation2 + $0x20] sm:$0x1]  ;;  %v722_v2 = vsel %vm3437_vm13, %v714_v52, %v721_v57 }
  0x5f   : > { %918 = vst [vmem:[#allocation2 + $0x58] sm:$0x1] %v917_v33 }
  0x60   : > { %1025 = vrot.lane.b32.xlu0 %v3330_v29, %s2856_s16  ;;  %1033 = vrot.lane.b32.xlu1 %v3287_v13, %s2856_s16  ;;  %v1163_v62 = vor.u32 %v1162_v21, %v3420_v45  ;;  %894 = vst.msk [vmem:[#allocation2 + $0x24] sm:$0xf] %vm873_vm0, %v722_v2 }
  0x62   : > { %1219 = vrot.lane.b32.xlu2 %v1155_v28, %s2857_s18  ;;  %v697_v28 = vrot.slane %v3432_v37, 4  ;;  %v1164_v22 = vrot.slane %v1163_v62, 4 }
  0x64   : > { %v705_v3 = vsel %vm3437_vm13, %v697_v28, %v704_v26  ;;  %v3946_v26 = vshll.u32 %v3135_v35, 16  ;;  %v3947_v35 = vshrl.u32 %v3295_v19, 16 }
  0x65   : > { %887 = vst.msk [vmem:[#allocation2 + $0x14] sm:$0xf] %vm873_vm0, %v705_v3  ;;  %v644_v3 = vld [vmem:[#allocation2 + $0x10] sm:$0x1] }
  0x66   : > { %v967_v7 = vld [vmem:[#allocation2 + $0x58] sm:$0xf] }
  0x67   : > { %v968_v38 = vsel %vm3120_vm10, 0, %v967_v7  ;;  %v2740_v7 = vunpack.c.l.bf16 %v3341_v8  ;;  %v648_v8 = vsel %vm3047_vm5, 0, %v647_v47 }
  0x68   : > { %1227 = vrot.lane.b32.xlu0 %v1173_v55, %s2857_s18  ;;  %1023 = vrot.lane.b32.xlu1 %v3321_v18, %s2856_s16  ;;  %v1152_v55 = vsel %vm3167_vm11, %v1150_v6, %v1151_v51  ;;  %v1170_v18 = vsel %vm3167_vm11, %v1168_v20, %v1169_v44  ;;  %969 = vst [vmem:[#allocation2 + $0x58] sm:$0xf] %v968_v38  ;;  %v795_v44 = vrot.slane %v793_v11, 7 }
  0x69   : > { %1098 = vst.msk [vmem:[#allocation2 + $0x58] sm:$0xf] %vm1067_vm1, %v2855_v0  ;;  %v578_v11 = vmul.f32 %v2952_v1, %v2740_v7  ;;  %v806_v1 = vor.u32 %v804_v23, %v3127_v31  ;;  %v713_v6 = vor.u32 %v711_v42, %v710_v14  ;;  %v676_v23 = vrot.slane %v674_v48, 7  ;;  %v926_v7 = vld [vmem:[#allocation2 + $0x70] sm:$0xf] }
  0x6a   : > { %1031 = vrot.lane.b32.xlu2 %v3369_v53, %s2856_s16  ;;  %1335 = vst.msk [vmem:[#allocation2 + $0x58] sm:$0xf] %vm1261_vm7, %v2855_v0  ;;  %v799_v33 = vrot.slane %v795_v44, 4 }
  0x6b   : > { %649 = vst [vmem:[#allocation2 + $0x20] sm:$0x1] %v648_v8  ;;  %v594_v49 = vadd.f32 %v2964_v5, %v578_v11  ;;  %v680_v38 = vrot.slane %v676_v23, 4 }
  0x6c   : > { %v807_v27 = vsel %vm3437_vm13, %v799_v33, %v806_v1 }
  0x6d   : > { %v610_v58 = vmax.f32 %v594_v49, 0.0  ;;  %929 = vst.msk [vmem:[#allocation2 + $0x74] sm:$0xf] %vm873_vm0, %v807_v27  ;;  %v679_v49 = vor.u32 %v3946_v26, %v676_v23  ;;  %v3522_v27 = vld [vmem:[%s3918_s3 + $0x18] sm:$0xff] }
  0x6f   : > { %v628_v5 = vpack.c.bf16 %v610_v58, %v610_v58 }
  0x70   : > { %1217 = vrot.lane.b32.xlu0 %v1152_v55, %s2857_s18  ;;  %1225 = vrot.lane.b32.xlu1 %v1170_v18, %s2857_s18  ;;  %v798_v55 = vor.u32 %v796_v16, %v795_v44  ;;  %v687_v18 = vor.u32 %v685_v4, %v3098_v12  ;;  %v641_v16 = vld [vmem:[#allocation2] sm:$0x1]  ;;  %v1979_v44 = vunpack.c.l.b16 %v2568_v61  ;;  %v2397_v4 = vld [vmem:[%s3918_s3 + $0x14] sm:$0xf]  ;;  %v3952_v61 = vshll.u32 %v3199_v25, 16 }
  0x71   : > { %v759_v46 = vshrl.u32 %v628_v5, 16  ;;  %v762_v20 = vshll.u32 %v628_v5, 16  ;;  %v642_v59 = vsel %vm3047_vm5, 0, %v641_v16  ;;  %v1514_v57 = vunpack.c.l.b16 %v2397_v4 }
  0x72   : > { %1029 = vrot.lane.b32.xlu2 %v3382_v39, %s2856_s16  ;;  %v891_v41 = vld [vmem:[#allocation2 + $0x20] sm:$0xf]  ;;  %v688_v48 = vsel %vm3437_vm13, %v680_v38, %v687_v18  ;;  %v927_v62 = vsel %vm3120_vm10, %v798_v55, %v926_v7  ;;  %643 = vst [vmem:[#allocation2] sm:$0x1] %v642_v59  ;;  %v1981_v12 = vpack.c.b16 %v1979_v44, %v1979_v44  ;;  %v3948_v55 = vshll.u32 %v3222_v54, 16 }
  0x73   : > { %v892_v42 = vsel %vm3120_vm10, %v713_v6, %v891_v41  ;;  %v3484_v14 = vrot.slane %v759_v46, 7  ;;  %880 = vst.msk [vmem:[#allocation2 + $0x4] sm:$0xf] %vm873_vm0, %v688_v48  ;;  %v1156_v47 = vrot.slane %v759_v46, 4  ;;  %v1157_v8 = vrot.slane %v762_v20, 5 }
  0x74   : > { %893 = vst [vmem:[#allocation2 + $0x20] sm:$0xf] %v892_v42  ;;  %v3511_v11 = vsel %vm1567_vm14, %v1981_v12, 0  ;;  %v1516_v2 = vpack.c.b16 %v1514_v57, %v1514_v57  ;;  %v645_v46 = vsel %vm3047_vm5, 0, %v644_v3  ;;  %v2696_v42 = vld [vmem:[%s3918_s3 + $0xc] sm:$0xff]  ;;  %v823_v38 = vor.u32 %v3948_v55, %v3241_v17 }
  0x75   : > { %v3488_v21 = vor.u32 %v762_v20, %v3484_v14  ;;  %928 = vst [vmem:[#allocation2 + $0x70] sm:$0xf] %v927_v62  ;;  %v1158_v28 = vor.u32 %v1157_v8, %v1156_v47  ;;  %2040 = vmatpush.bf16.msra.mxu2 %v3511_v11  ;;  %v3949_v18 = vshrl.u32 %v3258_v34, 16  ;;  %v738_v16 = vor.u32 %v3952_v61, %v3230_v63  ;;  %v2719_v8 = vld [vmem:[%s467_s21] sm:$0xff]  }
  0x76   : > { %v1569_v33 = vsel %vm1567_vm14, %v1516_v2, 0  ;;  %646 = vst [vmem:[#allocation2 + $0x10] sm:$0x1] %v645_v46  ;;  %v3953_v59 = vshll.u32 %v3092_v9, 16  ;;  %v2679_v9 = vld [vmem:[%s3918_s3] sm:$0xff]  ;;  %v2721_v2 = vunpack.c.h.bf16 %v2719_v8 }
  0x77   : > { %v1159_v1 = vrot.slane %v1158_v28, 4  ;;  %2761 = vmatpush.bf16.msra.mxu3 %v1569_v33  ;;  %1577 = vmatpush.bf16.msra.mxu0 %v1569_v33  ;;  %v3551_v48 = vrot.slane %v3949_v18, 7  ;;  %v2813_v33 = vld [vmem:[%s3919_s4] ss:$0 sm:$0xff] }
  0x78   : > { %1223 = vrot.lane.b32.xlu0 %v1164_v22, %s2857_s18  ;;  %1027 = vrot.lane.b32.xlu1 %v628_v5, %s2856_s16  ;;  %v3526_v5 = vrot.slane %v3947_v35, 7  ;;  %v696_v4 = vor.u32 %v3953_v59, %v3432_v37  ;;  %v2814_v46 = vld [vmem:[%s3920_s5] ss:$0 sm:$0xff] }
  0x79   : > { %v1161_v36 = vsel %vm3167_vm11, %v1159_v1, %v3420_v45  ;;  %v876_v41 = vld [vmem:[#allocation2] sm:$0xf]  ;;  %2041 = vmatpush.bf16.msra.mxu2 %v3522_v27  ;;  %v1391_v45 = vld [vmem:[%s3918_s3 + $0x8] sm:$0xf]  ;;  %v731_v44 = vrot.slane %v3551_v48, 4  ;;  %v528_v1 = vmul.f32 %v2813_v33, %v2721_v2 }
  0x7a   : > { %1221 = vrot.lane.b32.xlu2 %v1161_v36, %s2857_s18  ;;  %v877_v30 = vsel %vm3120_vm10, %v679_v49, %v876_v41  ;;  %v1729_v23 = vunpack.c.l.b16 %v1391_v45  ;;  %v816_v20 = vrot.slane %v3526_v5, 4  ;;  %v650_v41 = vld [vmem:[#allocation2 + $0x30] sm:$0x1] }
  0x7b   : > { %v1016_v31 = vpop.permute.xlu2 %1015  ;;  %878 = vst [vmem:[#allocation2] sm:$0xf] %v877_v30  ;;  %2762 = vmatpush.bf16.msra.mxu3 %v2696_v42  ;;  %1578 = vmatpush.bf16.msra.mxu0 %v2696_v42  ;;  %v739_v47 = vsel %vm3437_vm13, %v731_v44, %v738_v16  ;;  %v530_v30 = vadd.f32 %v2814_v46, %v528_v1 }
  0x7c   : > { %1072 = vst.msk [vmem:[#allocation2 + $0x20] sm:$0xf] %vm1067_vm1, %v1016_v31  ;;  %v1731_v31 = vpack.c.b16 %v1729_v23, %v1729_v23  ;;  %v824_v17 = vsel %vm3437_vm13, %v816_v20, %v823_v38  ;;  %v651_v23 = vsel %vm3047_vm5, 0, %v650_v41  ;;  %v665_v20 = vld [vmem:[#allocation2 + $0x80] sm:$0x1] }
  0x7d   : > { %936 = vst.msk [vmem:[#allocation2 + $0x84] sm:$0xf] %vm873_vm0, %v824_v17  ;;  %v884_v37 = vld [vmem:[#allocation2 + $0x10] sm:$0xf]  ;;  %v666_v18 = vsel %vm3047_vm5, 0, %v665_v20 }
  0x7e   : > { %v1782_v54 = vsel %vm1567_vm14, %v1731_v31, 0  ;;  %901 = vst.msk [vmem:[#allocation2 + $0x34] sm:$0xf] %vm873_vm0, %v739_v47  ;;  %v532_v31 = vmax.f32 %v530_v30, 0.0 }
  0x7f   : > { %1790 = vmatpush.bf16.msra.mxu1 %v1782_v54  ;;  %2763 = vmatpush.bf16.msrb.mxu3 %v1782_v54  ;;  %652 = vst [vmem:[#allocation2 + $0x30] sm:$0x1] %v651_v23  ;;  %v2720_v54 = vunpack.c.l.bf16 %v2719_v8  ;;  %v944_v23 = vld [vmem:[#allocation2 + $0x98] sm:$0x1] }
  0x80   : > { %667 = vst [vmem:[#allocation2 + $0x80] sm:$0x1] %v666_v18 }
  0x81   : > { %v527_v59 = vmul.f32 %v2813_v33, %v2720_v54 }
  0x83   : > { %v3500_v52 = vpop.permute.xlu2 %1211  ;;  %1791 = vmatpush.bf16.msra.mxu1 %v2679_v9  ;;  %2764 = vmatpush.bf16.msrb.mxu3 %v2679_v9 }
  0x87   : > { %v933_v30 = vld [vmem:[#allocation2 + $0x80] sm:$0xf] }
  0x8c   : > { %v3515_v22 = vpop.permute.xlu2 %1231 }
  0x92   : > { %v1018_v58 = vpop.permute.xlu0 %1017  ;;  %v1014_v6 = vpop.permute.xlu1 %1013 }
  0x93   : > { %1073 = vst.msk [vmem:[#allocation2 + $0x24] sm:$0xf] %vm1067_vm1, %v1018_v58 }
  0x94   : > { %1071 = vst.msk [vmem:[#allocation2 + $0x14] sm:$0xf] %vm1067_vm1, %v1014_v6  ;;  %v1230_v62 = vpop.permute.xlu2 %1229 }
  0x9a   : > { %v1038_v12 = vpop.permute.xlu0 %1037  ;;  %v1273_v57 = vld [vmem:[#allocation2 + $0x24] sm:$0xf]  ;;  %v1010_v63 = vpop.permute.xlu1 %1009 }
  0x9b   : > { %1083 = vst.msk [vmem:[#allocation2 + $0x74] sm:$0xf] %vm1067_vm1, %v1038_v12  ;;  %v1274_v25 = vsel %vm3555_vm15, %v3500_v52, %v1273_v57  ;;  %v885_v52 = vsel %vm3120_vm10, %v696_v4, %v884_v37  ;;  %v1269_v49 = vld [vmem:[#allocation2 + $0x14] sm:$0xf]  ;;  %v529_v37 = vadd.f32 %v2814_v46, %v527_v59 }
  0x9c   : > { %1275 = vst [vmem:[#allocation2 + $0x24] sm:$0xf] %v1274_v25  ;;  %v3590_v28 = vpop.permute.xlu2 %1201 }
  0x9d   : > { %1069 = vst.msk [vmem:[#allocation2 + $0x4] sm:$0xf] %vm1067_vm1, %v1010_v63  ;;  %v3958_v63 = vshll.u32 %v3258_v34, 16  ;;  %v531_v33 = vmax.f32 %v529_v37, 0.0  ;;  %v898_v34 = vld [vmem:[#allocation2 + $0x30] sm:$0xf] }
  0x9e   : > { %886 = vst [vmem:[#allocation2 + $0x10] sm:$0xf] %v885_v52 }
  0x9f   : > { %v730_v47 = vor.u32 %v3958_v63, %v3551_v48 }
  0xa2   : > { %v1036_v3 = vpop.permute.xlu0 %1035  ;;  %v1293_v58 = vld [vmem:[#allocation2 + $0x74] sm:$0xf]  ;;  %v1208_v36 = vpop.permute.xlu1 %1207 }
  0xa3   : > { %v1317_v6 = vld [vmem:[#allocation2 + $0x24] sm:$0x8]  ;;  %1082 = vst.msk [vmem:[#allocation2 + $0x70] sm:$0xf] %vm1067_vm1, %v1036_v3  ;;  %v1294_v35 = vsel %vm3555_vm15, %v3515_v22, %v1293_v58  ;;  %v1270_v45 = vsel %vm3555_vm15, %v1208_v36, %v1269_v49  ;;  %v534_v22 = vstv %s533_s9  ;;  %v3959_v3 = vshll.u32 %v3295_v19, 16 }
  0xa4   : > { %v1318_v42 = vsel %vm3592_vm4, 0, %v1317_v6  ;;  %1295 = vst [vmem:[#allocation2 + $0x74] sm:$0xf] %v1294_v35  ;;  %vm3614_vm6 = vcmp.eq.s32.totalorder %v534_v22, 1  ;;  %v1265_v61 = vld [vmem:[#allocation2 + $0x4] sm:$0xf]  ;;  %v1042_v16 = vpop.permute.xlu2 %1041  ;;  %v899_v6 = vsel %vm3120_vm10, %v730_v47, %v898_v34 }
  0xa5   : > { %1319 = vst [vmem:[#allocation2 + $0x24] sm:$0x8] %v1318_v42  ;;  %v537_v38 = vsel %vm3614_vm6, %v532_v31, 0.0  ;;  %v815_v58 = vor.u32 %v3959_v3, %v3526_v5  ;;  %v536_v35 = vsel %vm3614_vm6, %v531_v33, 0.0  ;;  %v653_v33 = vld [vmem:[#allocation2 + $0x40] sm:$0x1] }
  0xa6   : > { %1271 = vst [vmem:[#allocation2 + $0x14] sm:$0xf] %v1270_v45  ;;  %v3623_v17 = vpack.c.bf16 %v537_v38, %v537_v38  ;;  %v3651_v46 = vpack.c.bf16 %v536_v35, %v536_v35  ;;  %v2698_v3 = vld [vmem:[#allocation2 + $0x28] sm:$0xff] }
  0xa7   : > { %1292 = vst.msk [vmem:[#allocation2 + $0x70] sm:$0xf] %vm1261_vm7, %v1230_v62  ;;  %v934_v38 = vsel %vm3120_vm10, %v815_v58, %v933_v30  ;;  %v654_v58 = vsel %vm3047_vm5, 0, %v653_v33  ;;  %v2666_v33 = vld [vmem:[#allocation2 + $0x18] sm:$0xff] }
  0xa8   : > { %1085 = vst.msk [vmem:[#allocation2 + $0x84] sm:$0xf] %vm1067_vm1, %v1042_v16  ;;  %1045 = vrot.lane.b32.xlu0 %v3623_v17, %s2856_s16  ;;  %v835_v62 = vshrl.u32 %v3623_v17, 16  ;;  %v838_v4 = vshll.u32 %v3623_v17, 16  ;;  %v827_v31 = vshrl.u32 %v3651_v46, 16  ;;  %v830_v22 = vshll.u32 %v3651_v46, 16  ;;  %1043 = vrot.lane.b32.xlu2 %v3651_v46, %s2856_s16 }
  0xa9   : > { %900 = vst [vmem:[#allocation2 + $0x30] sm:$0xf] %v899_v6 }
  0xaa   : > { %v1204_v44 = vpop.permute.xlu0 %1203  ;;  %v1210_v25 = vpop.permute.xlu1 %1209  ;;  %v1196_v52 = vrot.slane %v838_v4, 5  ;;  %v1198_v8 = vrot.slane %v835_v62, 4  ;;  %v3642_v48 = vrot.slane %v835_v62, 7  ;;  %v1192_v16 = vrot.slane %v827_v31, 4  ;;  %935 = vst [vmem:[#allocation2 + $0x80] sm:$0xf] %v934_v38 }
  0xab   : > { %v1342_v12 = vld [vmem:[#allocation2 + $0x74] sm:$0x8]  ;;  %v1266_v57 = vsel %vm3555_vm15, %v1204_v44, %v1265_v61  ;;  %1272 = vst.msk [vmem:[#allocation2 + $0x20] sm:$0xf] %vm1261_vm7, %v1210_v25  ;;  %v1193_v54 = vrot.slane %v830_v22, 5  ;;  %v3961_v62 = vshll.u32 %v3287_v13, 16 }
  0xac   : > { %v1343_v9 = vsel %vm3592_vm4, 0, %v1342_v12  ;;  %1267 = vst [vmem:[#allocation2 + $0x4] sm:$0xf] %v1266_v57  ;;  %v1199_v1 = vor.u32 %v1198_v8, %v1196_v52  ;;  %v1020_v41 = vpop.permute.xlu2 %1019  ;;  %v842_v42 = vrot.slane %v3642_v48, 4  ;;  %v748_v57 = vrot.slane %v3345_v56, 4 }
  0xad   : > { %1344 = vst [vmem:[#allocation2 + $0x74] sm:$0x8] %v1343_v9  ;;  %v1312_v2 = vld [vmem:[#allocation2 + $0x14] sm:$0x8]  ;;  %v1194_v59 = vor.u32 %v1193_v54, %v1192_v16  ;;  %v789_v12 = vor.u32 %v3961_v62, %v3308_v40  ;;  %v3962_v25 = vshll.u32 %v3330_v29, 16 }
  0xae   : > { %v1313_v49 = vsel %vm3592_vm4, 0, %v1312_v2  ;;  %v1200_v36 = vrot.slane %v1199_v1, 4  ;;  %1074 = vst.msk [vmem:[#allocation2 + $0x30] sm:$0xf] %vm1067_vm1, %v1020_v41  ;;  %v945_v61 = vsel %vm3047_vm5, %v842_v42, %v944_v23  ;;  %v2664_v42 = vld [vmem:[#allocation2 + $0x8] sm:$0xff]  ;;  %v3963_v23 = vshll.u32 %v3369_v53, 16 }
  0xaf   : > { %1314 = vst [vmem:[#allocation2 + $0x14] sm:$0x8] %v1313_v49  ;;  %v755_v63 = vor.u32 %v3962_v25, %v3348_v43  ;;  %v1195_v9 = vrot.slane %v1194_v59, 4  ;;  %v1297_v43 = vld [vmem:[#allocation2 + $0x84] sm:$0xf]  ;;  %v2693_v49 = vld [vmem:[#allocation2 + $0x78] sm:$0xff] }
  0xb0   : > { %1239 = vrot.lane.b32.xlu1 %v1200_v36, %s2857_s18  ;;  %946 = vst [vmem:[#allocation2 + $0x98] sm:$0x1] %v945_v61  ;;  %v659_v36 = vld [vmem:[#allocation2 + $0x60] sm:$0x1] }
  0xb1   : > { %v1197_v2 = vsel %vm3167_vm11, %v1195_v9, %v1196_v52  ;;  %v756_v13 = vsel %vm3437_vm13, %v748_v57, %v755_v63  ;;  %655 = vst [vmem:[#allocation2 + $0x40] sm:$0x1] %v654_v58  ;;  %v660_v30 = vsel %vm3047_vm5, 0, %v659_v36  ;;  %v772_v57 = vor.u32 %v770_v15, %v3394_v32  ;;  %v2695_v32 = vld [vmem:[#allocation2 + $0x88] sm:$0xff] }
  0xb2   : > { %v1008_v45 = vpop.permute.xlu0 %1007  ;;  %v1012_v5 = vpop.permute.xlu1 %1011  ;;  %v2697_v18 = vld [vmem:[#allocation2 + $0x20] sm:$0xff]  ;;  %1237 = vrot.lane.b32.xlu0 %v1197_v2, %s2857_s18  ;;  %908 = vst.msk [vmem:[#allocation2 + $0x44] sm:$0xf] %vm873_vm0, %v756_v13  ;;  %v2683_v36 = vld [vmem:[#allocation2 + $0x28] sm:$0xff]  ;;  %s2394_s18 = sshll.u32 %s2939_s13, 3 }
  0xb3   : > { %v1307_v19 = vld [vmem:[#allocation2 + $0x4] sm:$0x8]  ;;  %1068 = vst.msk [vmem:[#allocation2] sm:$0xf] %vm1067_vm1, %v1008_v45  ;;  %2637 = vmatmul.msk.bf16.vlgmr.msra.gmra.mxu2 %vm1518_vm8, %v2697_v18  ;;  %s3828_s19 = scalar_lea.vmem %s3922_s7, %s2394_s18 }
  0xb4   : > { %v1308_v20 = vsel %vm3592_vm4, 0, %v1307_v19  ;;  %1262 = vst.msk [vmem:[#allocation2] sm:$0xf] %vm1261_vm7, %v3590_v28  ;;  %v2692_v55 = vld [vmem:[#allocation2 + $0x70] sm:$0xff]  ;;  %v3960_v28 = vshrl.u32 %v3369_v53, 16  ;;  %v1234_v29 = vpop.permute.xlu2 %1233  ;;  %v2682_v39 = vld [vmem:[#allocation2 + $0x20] sm:$0xff] }
  0xb5   : > { %1309 = vst [vmem:[#allocation2 + $0x4] sm:$0x8] %v1308_v20  ;;  %2478 = vmatmul.msk.bf16.vlgmr.msra.gmra.mxu3 %vm1518_vm8, %v2692_v55 }
  0xb6   : > { %1070 = vst.msk [vmem:[#allocation2 + $0x10] sm:$0xf] %vm1067_vm1, %v1012_v5  ;;  %v778_v44 = vrot.slane %v3960_v28, 7  ;;  %2765 = vmatpush.bf16.msra.mxu3 %v3511_v11  ;;  %v2681_v28 = vld [vmem:[#allocation2 + $0x18] sm:$0xff] }
  0xb7   : > { %v983_v56 = vld [vmem:[#allocation2 + $0x98] sm:$0xf]  ;;  %661 = vst [vmem:[#allocation2 + $0x60] sm:$0x1] %v660_v30 }
  0xb8   : > { %v782_v47 = vrot.slane %v778_v44, 4  ;;  %v984_v60 = vsel %vm3120_vm10, 0, %v983_v56  ;;  %v781_v19 = vor.u32 %v3963_v23, %v778_v44  ;;  %v905_v5 = vld [vmem:[#allocation2 + $0x40] sm:$0xf]  ;;  %v2676_v23 = vld [vmem:[#allocation2 + $0x68] sm:$0xff] }
  0xb9   : > { %985 = vst [vmem:[#allocation2 + $0x98] sm:$0xf] %v984_v60  ;;  %v906_v18 = vsel %vm3120_vm10, %v3352_v10, %v905_v5  ;;  %v2668_v5 = vld [vmem:[#allocation2 + $0x28] sm:$0xff] }
  0xba   : > { %v1206_v37 = vpop.permute.xlu0 %1205  ;;  %v1022_v8 = vpop.permute.xlu1 %1021  ;;  %v790_v11 = vsel %vm3437_vm13, %v782_v47, %v789_v12  ;;  %2766 = vmatpush.bf16.msra.mxu3 %v3522_v27  ;;  %1106 = vst.msk [vmem:[#allocation2 + $0x98] sm:$0xf] %vm1067_vm1, %v2855_v0  ;;  %v765_v12 = vrot.slane %v3484_v14, 4 }
  0xbb   : > { %1268 = vst.msk [vmem:[#allocation2 + $0x10] sm:$0xf] %vm1261_vm7, %v1206_v37 }
  0xbc   : > { %1075 = vst.msk [vmem:[#allocation2 + $0x34] sm:$0xf] %vm1067_vm1, %v1022_v8  ;;  %v2663_v40 = vld [vmem:[#allocation2] sm:$0xff]  ;;  %v1220_v41 = vpop.permute.xlu2 %1219  ;;  %v773_v47 = vsel %vm3437_vm13, %v765_v12, %v772_v57  ;;  %v2670_v12 = vld [vmem:[#allocation2 + $0x38] sm:$0xff] }
  0xbd   : > { %922 = vst.msk [vmem:[#allocation2 + $0x64] sm:$0xf] %vm873_vm0, %v790_v11  ;;  %2550 = vmatmul.msk.bf16.vlgmr.msra.gmra.mxu1 %vm1518_vm8, %v2663_v40 }
  0xbe   : > { %1355 = vst.msk [vmem:[#allocation2 + $0x98] sm:$0xf] %vm1261_vm7, %v2855_v0  ;;  %v919_v53 = vld [vmem:[#allocation2 + $0x60] sm:$0xf] }
  0xbf   : > { %v920_v16 = vsel %vm3120_vm10, %v781_v19, %v919_v53  ;;  %907 = vst [vmem:[#allocation2 + $0x40] sm:$0xf] %v906_v18  ;;  %v2702_v19 = vld [vmem:[#allocation2 + $0x48] sm:$0xff]  ;;  %v829_v18 = vrot.slane %v827_v31, 7  ;;  %v840_v53 = vor.u32 %v838_v4, %v3642_v48  ;;  %v2704_v31 = vld [vmem:[#allocation2 + $0x58] sm:$0xff] }
  0xc0   : > { %921 = vst [vmem:[#allocation2 + $0x60] sm:$0xf] %v920_v16 }
  0xc1   : > { %915 = vst.msk [vmem:[#allocation2 + $0x54] sm:$0xf] %vm873_vm0, %v773_v47  ;;  %v832_v48 = vor.u32 %v830_v22, %v829_v18 }
  0xc2   : > { %v1216_v52 = vpop.permute.xlu0 %1215  ;;  %v2680_v27 = vld [vmem:[#allocation2 + $0x10] sm:$0xff]  ;;  %v1236_v1 = vpop.permute.xlu1 %1235 }
  0xc3   : > { %v1277_v34 = vld [vmem:[#allocation2 + $0x34] sm:$0xf]  ;;  %v1298_v6 = vsel %vm3555_vm15, %v1236_v1, %v1297_v43  ;;  %2466 = vmatmul.msk.bf16.vlgmr.msra.gmra.mxu0 %vm1518_vm8, %v2680_v27  ;;  %2638 = vmatmul.msk.bf16.gmra.mxu2 %vm1518_vm8, %v2698_v3  ;;  %v2700_v43 = vld [vmem:[#allocation2 + $0x38] sm:$0xff] }
  0xc4   : > { %v1278_v35 = vsel %vm3555_vm15, %v1216_v52, %v1277_v34  ;;  %1299 = vst [vmem:[#allocation2 + $0x84] sm:$0xf] %v1298_v6  ;;  %v1032_v54 = vpop.permute.xlu2 %1031  ;;  %v2665_v11 = vld [vmem:[#allocation2 + $0x10] sm:$0xff] }
  0xc5   : > { %1279 = vst [vmem:[#allocation2 + $0x34] sm:$0xf] %v1278_v35  ;;  %2479 = vmatmul.msk.bf16.gmra.mxu3 %vm1518_vm8, %v2693_v49 }
  0xc6   : > { %1080 = vst.msk [vmem:[#allocation2 + $0x60] sm:$0xf] %vm1067_vm1, %v1032_v54 }
  0xca   : > { %v1040_v0 = vpop.permute.xlu0 %1039  ;;  %v1214_v45 = vpop.permute.xlu1 %1213 }
  0xcb   : > { %1084 = vst.msk [vmem:[#allocation2 + $0x80] sm:$0xf] %vm1067_vm1, %v1040_v0  ;;  %v1347_v20 = vld [vmem:[#allocation2 + $0x84] sm:$0x8] }
  0xcc   : > { %1296 = vst.msk [vmem:[#allocation2 + $0x80] sm:$0xf] %vm1261_vm7, %v1234_v29  ;;  %v1348_v55 = vsel %vm3592_vm4, 0, %v1347_v20  ;;  %v1322_v38 = vld [vmem:[#allocation2 + $0x34] sm:$0x8]  ;;  %v1030_v2 = vpop.permute.xlu2 %1029  ;;  %v2685_v20 = vld [vmem:[#allocation2 + $0x38] sm:$0xff] }
  0xcd   : > { %1276 = vst.msk [vmem:[#allocation2 + $0x30] sm:$0xf] %vm1261_vm7, %v1214_v45  ;;  %v1323_v61 = vsel %vm3592_vm4, 0, %v1322_v38  ;;  %2551 = vmatmul.msk.bf16.gmra.mxu1 %vm1518_vm8, %v2664_v42  ;;  %v656_v29 = vld [vmem:[#allocation2 + $0x50] sm:$0x1] }
  0xce   : > { %1349 = vst [vmem:[#allocation2 + $0x84] sm:$0x8] %v1348_v55  ;;  %v657_v27 = vsel %vm3047_vm5, 0, %v656_v29  ;;  %v2677_v38 = vld [vmem:[#allocation2 + $0x70] sm:$0xff] }
  0xcf   : > { %1324 = vst [vmem:[#allocation2 + $0x34] sm:$0x8] %v1323_v61  ;;  %v833_v61 = vrot.slane %v829_v18, 4 }
  0xd0   : > { %1079 = vst.msk [vmem:[#allocation2 + $0x54] sm:$0xf] %vm1067_vm1, %v1030_v2 }
  0xd1   : > { %658 = vst [vmem:[#allocation2 + $0x50] sm:$0x1] %v657_v27  ;;  %v841_v54 = vsel %vm3437_vm13, %v833_v61, %v840_v53 }
  0xd2   : > { %v1026_v44 = vpop.permute.xlu0 %1025  ;;  %v1034_v59 = vpop.permute.xlu1 %1033  ;;  %943 = vst.msk [vmem:[#allocation2 + $0x94] sm:$0xf] %vm873_vm0, %v841_v54  ;;  %vm2159_vm0 = vcmask 64512   ;;  %v2712_v54 = vld [vmem:[#allocation2 + $0x98] sm:$0xff] }
  0xd3   : > { %1077 = vst.msk [vmem:[#allocation2 + $0x44] sm:$0xf] %vm1067_vm1, %v1026_v44  ;;  %2467 = vmatmul.msk.bf16.gmra.mxu0 %vm1518_vm8, %v2681_v28 }
  0xd4   : > { %1081 = vst.msk [vmem:[#allocation2 + $0x64] sm:$0xf] %vm1067_vm1, %v1034_v59  ;;  %v1222_v35 = vpop.permute.xlu2 %1221  ;;  %v2678_v59 = vld [vmem:[#allocation2 + $0x78] sm:$0xff] }
  0xd5   : > { %v2694_v10 = vld [vmem:[#allocation2 + $0x80] sm:$0xff] }
  0xd6   : > { %v2699_v62 = vld [vmem:[#allocation2 + $0x30] sm:$0xff]  ;;  %2480 = vmatmul.msk.bf16.gmra.mxu3 %vm1518_vm8, %v2694_v10  ;;  %v2709_v46 = vld [vmem:[#allocation2 + $0x80] sm:$0xff] }
  0xd7   : > { %2639 = vmatmul.msk.bf16.gmra.mxu2 %vm1518_vm8, %v2699_v62  ;;  %v1285_v49 = vld [vmem:[#allocation2 + $0x54] sm:$0xf]  ;;  %v668_v10 = vld [vmem:[#allocation2 + $0x90] sm:$0x1] }
  0xd8   : > { %v912_v3 = vld [vmem:[#allocation2 + $0x50] sm:$0xf]  ;;  %v669_v17 = vsel %vm3047_vm5, 0, %v668_v10 }
  0xd9   : > { %v913_v6 = vsel %vm3120_vm10, %v3488_v21, %v912_v3  ;;  %v2667_v21 = vld [vmem:[#allocation2 + $0x20] sm:$0xff]  ;;  %v2684_v45 = vld [vmem:[#allocation2 + $0x30] sm:$0xff]  ;;  %670 = vst [vmem:[#allocation2 + $0x90] sm:$0x1] %v669_v17 }
  0xda   : > { %v1281_v25 = vld [vmem:[#allocation2 + $0x44] sm:$0xf]  ;;  %v1228_v63 = vpop.permute.xlu0 %1227  ;;  %v1024_v8 = vpop.permute.xlu1 %1023  ;;  %914 = vst [vmem:[#allocation2 + $0x50] sm:$0xf] %v913_v6  ;;  %v2669_v16 = vld [vmem:[#allocation2 + $0x30] sm:$0xff] }
  0xdb   : > { %v1282_v9 = vsel %vm3555_vm15, %v1220_v41, %v1281_v25  ;;  %v1289_v37 = vld [vmem:[#allocation2 + $0x64] sm:$0xf]  ;;  %1076 = vst.msk [vmem:[#allocation2 + $0x40] sm:$0xf] %vm1067_vm1, %v1024_v8 }
  0xdc   : > { %1283 = vst [vmem:[#allocation2 + $0x44] sm:$0xf] %v1282_v9  ;;  %v1290_v14 = vsel %vm3555_vm15, %v1228_v63, %v1289_v37  ;;  %v2687_v9 = vld [vmem:[#allocation2 + $0x48] sm:$0xff] }
  0xdd   : > { %1291 = vst [vmem:[#allocation2 + $0x64] sm:$0xf] %v1290_v14  ;;  %2552 = vmatmul.msk.bf16.gmra.mxu1 %vm1518_vm8, %v2665_v11 }
  0xe0   : > { %v940_v57 = vld [vmem:[#allocation2 + $0x90] sm:$0xf] }
  0xe1   : > { %v941_v50 = vsel %vm3120_vm10, %v832_v48, %v940_v57 }
  0xe2   : > { %v1218_v15 = vpop.permute.xlu0 %1217  ;;  %v1226_v40 = vpop.permute.xlu1 %1225  ;;  %942 = vst [vmem:[#allocation2 + $0x90] sm:$0xf] %v941_v50  ;;  %v2691_v50 = vld [vmem:[#allocation2 + $0x68] sm:$0xff] }
  0xe3   : > { %v1327_v13 = vld [vmem:[#allocation2 + $0x44] sm:$0x8]  ;;  %1280 = vst.msk [vmem:[#allocation2 + $0x40] sm:$0xf] %vm1261_vm7, %v1218_v15  ;;  %2468 = vmatmul.msk.bf16.gmra.mxu0 %vm1518_vm8, %v2682_v39 }
  0xe4   : > { %v1328_v56 = vsel %vm3592_vm4, 0, %v1327_v13  ;;  %v1337_v60 = vld [vmem:[#allocation2 + $0x64] sm:$0x8]  ;;  %1288 = vst.msk [vmem:[#allocation2 + $0x60] sm:$0xf] %vm1261_vm7, %v1226_v40  ;;  %v2710_v40 = vld [vmem:[#allocation2 + $0x88] sm:$0xff] }
  0xe5   : > { %1329 = vst [vmem:[#allocation2 + $0x44] sm:$0x8] %v1328_v56  ;;  %v1338_v52 = vsel %vm3592_vm4, 0, %v1337_v60  ;;  %v2706_v56 = vld [vmem:[#allocation2 + $0x68] sm:$0xff] }
  0xe6   : > { %1339 = vst [vmem:[#allocation2 + $0x64] sm:$0x8] %v1338_v52  ;;  %2481 = vmatmul.msk.bf16.gmra.mxu3 %vm1518_vm8, %v2695_v32  ;;  %v3820_v32 = vld [vmem:[%s3921_s6] ss:$0 sm:$0xff] }
  0xe7   : > { %2640 = vmatmul.msk.bf16.gmra.mxu2 %vm1518_vm8, %v2700_v43 }
  0xea   : > { %v1224_v1 = vpop.permute.xlu0 %1223  ;;  %v1028_v58 = vpop.permute.xlu1 %1027 }
  0xeb   : > { %v1286_v34 = vsel %vm3555_vm15, %v1224_v1, %v1285_v49  ;;  %1078 = vst.msk [vmem:[#allocation2 + $0x50] sm:$0xf] %vm1067_vm1, %v1028_v58  ;;  %v2672_v1 = vld [vmem:[#allocation2 + $0x48] sm:$0xff] }
  0xec   : > { %1287 = vst [vmem:[#allocation2 + $0x54] sm:$0xf] %v1286_v34  ;;  %v2701_v0 = vld [vmem:[#allocation2 + $0x40] sm:$0xff] }
  0xed   : > { %2553 = vmatmul.msk.bf16.gmra.mxu1 %vm1518_vm8, %v2666_v33  ;;  %1284 = vst.msk [vmem:[#allocation2 + $0x50] sm:$0xf] %vm1261_vm7, %v1222_v35  ;;  %v2675_v41 = vld [vmem:[#allocation2 + $0x60] sm:$0xff]  ;;  %v2689_v35 = vld [vmem:[#allocation2 + $0x58] sm:$0xff] }
  0xee   : > { %v2686_v44 = vld [vmem:[#allocation2 + $0x40] sm:$0xff] }
  0xef   : > { %v2705_v22 = vld [vmem:[#allocation2 + $0x60] sm:$0xff] }
  0xf0   : > { %v2671_v8 = vld [vmem:[#allocation2 + $0x40] sm:$0xff] }
  0xf1   : > { %v2690_v61 = vld [vmem:[#allocation2 + $0x60] sm:$0xff] }
  0xf3   : > { %v1332_v30 = vld [vmem:[#allocation2 + $0x54] sm:$0x8]  ;;  %2469 = vmatmul.msk.bf16.gmra.mxu0 %vm1518_vm8, %v2683_v36 }
  0xf4   : > { %v1333_v42 = vsel %vm3592_vm4, 0, %v1332_v30 }
  0xf5   : > { %1334 = vst [vmem:[#allocation2 + $0x54] sm:$0x8] %v1333_v42 }
  0xf6   : > { %2562 = vmatmul.msk.bf16.vlgmr.msrb.gmra.mxu3 %vm1518_vm8, %v2675_v41 }
  0xf7   : > { %2641 = vmatmul.msk.bf16.gmra.mxu2 %vm1518_vm8, %v2701_v0 }
  0xfc   : > { %v2703_v55 = vld [vmem:[#allocation2 + $0x50] sm:$0xff] }
  0xfd   : > { %2554 = vmatmul.msk.bf16.gmra.mxu1 %vm1518_vm8, %v2667_v21  ;;  %v2688_v15 = vld [vmem:[#allocation2 + $0x50] sm:$0xff] }
  0xfe   : > { %v2707_v21 = vld [vmem:[#allocation2 + $0x70] sm:$0xff] }
 0x102   : > { %v1044_v25 = vpop.permute.xlu2 %1043 }
 0x103   : > { %2470 = vmatmul.msk.bf16.gmra.mxu0 %vm1518_vm8, %v2684_v45  ;;  %1086 = vst.msk [vmem:[#allocation2 + $0x90] sm:$0xf] %vm1067_vm1, %v1044_v25 }
 0x106   : > { %2563 = vmatmul.msk.bf16.gmra.mxu3 %vm1518_vm8, %v2676_v23 }
 0x107   : > { %2642 = vmatmul.msk.bf16.gmra.mxu2 %vm1518_vm8, %v2702_v19 }
 0x10d   : > { %2555 = vmatmul.msk.bf16.gmra.mxu1 %vm1518_vm8, %v2668_v5 }
 0x113   : > { %2471 = vmatmul.msk.bf16.gmra.mxu0 %vm1518_vm8, %v2685_v20  ;;  %v2673_v20 = vld [vmem:[#allocation2 + $0x50] sm:$0xff] }
 0x116   : > { %2564 = vmatmul.msk.bf16.gmra.mxu3 %vm1518_vm8, %v2677_v38 }
 0x117   : > { %2643 = vmatmul.msk.bf16.gmra.mxu2 %vm1518_vm8, %v2703_v55 }
 0x11a   : > { %v1046_v28 = vpop.permute.xlu0 %1045 }
 0x11b   : > { %1087 = vst.msk [vmem:[#allocation2 + $0x94] sm:$0xf] %vm1067_vm1, %v1046_v28 }
 0x11d   : > { %2556 = vmatmul.msk.bf16.gmra.mxu1 %vm1518_vm8, %v2669_v16 }
 0x122   : > { %v1240_v62 = vpop.permute.xlu1 %1239  ;;  %v1301_v4 = vld [vmem:[#allocation2 + $0x94] sm:$0xf] }
 0x123   : > { %2472 = vmatmul.msk.bf16.gmra.mxu0 %vm1518_vm8, %v2686_v44  ;;  %v1302_v51 = vsel %vm3555_vm15, %v1240_v62, %v1301_v4  ;;  %v2708_v44 = vld [vmem:[#allocation2 + $0x78] sm:$0xff] }
 0x124   : > { %1303 = vst [vmem:[#allocation2 + $0x94] sm:$0xf] %v1302_v51  ;;  %v1238_v47 = vpop.permute.xlu0 %1237  ;;  %v2674_v4 = vld [vmem:[#allocation2 + $0x58] sm:$0xff] }
 0x125   : > { %1300 = vst.msk [vmem:[#allocation2 + $0x90] sm:$0xf] %vm1261_vm7, %v1238_v47 }
 0x126   : > { %2565 = vmatmul.msk.bf16.gmra.mxu3 %vm1518_vm8, %v2678_v59 }
 0x127   : > { %2644 = vmatmul.msk.bf16.gmra.mxu2 %vm1518_vm8, %v2704_v31 }
 0x12b   : > { %v1352_v63 = vld [vmem:[#allocation2 + $0x94] sm:$0x8] }
 0x12c   : > { %v1353_v7 = vsel %vm3592_vm4, 0, %v1352_v63 }
 0x12d   : > { %2557 = vmatmul.msk.bf16.gmra.mxu1 %vm1518_vm8, %v2670_v12  ;;  %1354 = vst [vmem:[#allocation2 + $0x94] sm:$0x8] %v1353_v7 }
 0x133   : > { %2473 = vmatmul.msk.bf16.gmra.mxu0 %vm1518_vm8, %v2687_v9 }
 0x134   : > { %v2711_v42 = vld [vmem:[#allocation2 + $0x90] sm:$0xff] }
 0x136   : > { %2649 = vmatmul.msk.bf16.vlgmr.msra.gmra.mxu3 %vm1518_vm8, %v2709_v46  ;;  %v2043_v26 = vpop.f32.mrf.mxu2 }
 0x137   : > { %2645 = vmatmul.msk.bf16.gmra.mxu2 %vm1518_vm8, %v2705_v22 }
 0x138   : > { %v3812_v24 = vpop.f32.mrf.mxu3 }
 0x13a   : > { %v1793_v37 = vpop.f32.mrf.mxu1 }
 0x13d   : > { %2558 = vmatmul.msk.bf16.gmra.mxu1 %vm1518_vm8, %v2671_v8 }
 0x13e   : > { %v2045_v2 = vpop.f32.mrf.mxu2 }
 0x140   : > { %v1580_v11 = vpop.f32.mrf.mxu0  ;;  %v3815_v14 = vpop.f32.mrf.mxu3 }
 0x141   : > { %v1794_v39 = vadd.f32 %v1793_v37, %v1580_v11 }
 0x142   : > { %v1795_v13 = vpop.f32.mrf.mxu1 }
 0x143   : > { %v2107_v29 = vadd.f32 %v2043_v26, %v1794_v39  ;;  %2474 = vmatmul.msk.bf16.gmra.mxu0 %vm1518_vm8, %v2688_v15 }
 0x145   : > { %v2127_v60 = vadd.f32 %v3820_v32, %v2107_v29 }
 0x146   : > { %2650 = vmatmul.msk.bf16.gmra.mxu3 %vm1518_vm8, %v2710_v40  ;;  %v2048_v33 = vpop.f32.mrf.mxu2 }
 0x147   : > { %v2143_v43 = vmax.f32 %v2127_v60, 0.0  ;;  %2646 = vmatmul.msk.bf16.gmra.mxu2 %vm1518_vm8, %v2706_v56 }
 0x148   : > { %v1633_v52 = vpop.f32.mrf.mxu3  ;;  %v1582_v27 = vpop.f32.mrf.mxu0 }
 0x149   : > { %2160 = vst.msk [vmem:[%s3828_s19] sm:$0xff] %vm2159_vm0, %v2143_v43  ;;  %v1796_v49 = vadd.f32 %v1795_v13, %v1582_v27 }
 0x14a   : > { %v1798_v34 = vpop.f32.mrf.mxu1 }
 0x14b   : > { %v2108_v3 = vadd.f32 %v2045_v2, %v1796_v49 }
 0x14d   : > { %v2128_v58 = vadd.f32 %v3820_v32, %v2108_v3  ;;  %2559 = vmatmul.msk.bf16.gmra.mxu1 %vm1518_vm8, %v2672_v1 }
 0x14e   : > { %v2049_v30 = vpop.f32.mrf.mxu2 }
 0x14f   : > { %v2144_v6 = vmax.f32 %v2128_v58, 0.0 }
 0x150   : > { %v1585_v36 = vpop.f32.mrf.mxu0  ;;  %v1634_v41 = vpop.f32.mrf.mxu3 }
 0x151   : > { %2161 = vst.msk [vmem:[%s3828_s19 + $0x8] sm:$0xff] %vm2159_vm0, %v2144_v6 }
 0x152   : > { %v1799_v0 = vpop.f32.mrf.mxu1 }
 0x153   : > { %2475 = vmatmul.msk.bf16.gmra.mxu0 %vm1518_vm8, %v2689_v35 }
 0x156   : > { %2651 = vmatmul.msk.bf16.gmra.mxu3 %vm1518_vm8, %v2711_v42 }
 0x157   : > { %2647 = vmatmul.msk.bf16.gmra.mxu2 %vm1518_vm8, %v2707_v21 }
 0x158   : > { %v1586_v45 = vpop.f32.mrf.mxu0 }
 0x159   : > { %v3841_v23 = vpop.f32.mrf.mxu3 }
 0x15a   : > { %v2051_v19 = vpop.f32.mrf.mxu2  ;;  %v1801_v5 = vpop.f32.mrf.mxu1 }
 0x15d   : > { %2560 = vmatmul.msk.bf16.gmra.mxu1 %vm1518_vm8, %v2673_v20 }
 0x160   : > { %v1588_v55 = vpop.f32.mrf.mxu0 }
 0x161   : > { %v1802_v38 = vadd.f32 %v1801_v5, %v1588_v55  ;;  %v3844_v18 = vpop.f32.mrf.mxu3 }
 0x162   : > { %v2053_v53 = vpop.f32.mrf.mxu2  ;;  %v1803_v16 = vpop.f32.mrf.mxu1 }
 0x163   : > { %v2109_v28 = vadd.f32 %v2051_v19, %v1802_v38  ;;  %2476 = vmatmul.msk.bf16.gmra.mxu0 %vm1518_vm8, %v2690_v61 }
 0x165   : > { %v2129_v59 = vadd.f32 %v3820_v32, %v2109_v28 }
 0x166   : > { %2652 = vmatmul.msk.bf16.gmra.mxu3 %vm1518_vm8, %v2712_v54 }
 0x167   : > { %v2145_v10 = vmax.f32 %v2129_v59, 0.0  ;;  %2648 = vmatmul.msk.bf16.gmra.mxu2 %vm1518_vm8, %v2708_v44 }
 0x168   : > { %v1590_v31 = vpop.f32.mrf.mxu0 }
 0x169   : > { %2162 = vst.msk [vmem:[%s3828_s19 + $0x10] sm:$0xff] %vm2159_vm0, %v2145_v10  ;;  %v1804_v62 = vadd.f32 %v1803_v16, %v1590_v31  ;;  %v1641_v17 = vpop.f32.mrf.mxu3 }
 0x16a   : > { %v2056_v51 = vpop.f32.mrf.mxu2  ;;  %v1806_v48 = vpop.f32.mrf.mxu1 }
 0x16b   : > { %v2110_v12 = vadd.f32 %v2053_v53, %v1804_v62 }
 0x16d   : > { %v2130_v57 = vadd.f32 %v3820_v32, %v2110_v12  ;;  %2561 = vmatmul.msk.bf16.gmra.mxu1 %vm1518_vm8, %v2674_v4 }
 0x16f   : > { %v2146_v25 = vmax.f32 %v2130_v57, 0.0 }
 0x170   : > { %v1593_v63 = vpop.f32.mrf.mxu0 }
 0x171   : > { %2163 = vst.msk [vmem:[%s3828_s19 + $0x18] sm:$0xff] %vm2159_vm0, %v2146_v25  ;;  %v1642_v7 = vpop.f32.mrf.mxu3 }
 0x172   : > { %v2057_v47 = vpop.f32.mrf.mxu2  ;;  %v1807_v9 = vpop.f32.mrf.mxu1 }
 0x173   : > { %2477 = vmatmul.msk.bf16.gmra.mxu0 %vm1518_vm8, %v2691_v50 }
 0x178   : > { %v1594_v46 = vpop.f32.mrf.mxu0 }
 0x179   : > { %v1841_v22 = vpop.f32.mrf.mxu3 }
 0x17a   : > { %v2059_v26 = vpop.f32.mrf.mxu2  ;;  %v1809_v37 = vpop.f32.mrf.mxu1  ;;  %v1842_v4 = vadd.f32 %v1841_v22, %v3812_v24 }
 0x180   : > { %v1596_v8 = vpop.f32.mrf.mxu0 }
 0x181   : > { %v1810_v11 = vadd.f32 %v1809_v37, %v1596_v8  ;;  %v1843_v2 = vpop.f32.mrf.mxu3 }
 0x182   : > { %v2061_v39 = vpop.f32.mrf.mxu2  ;;  %v1811_v15 = vpop.f32.mrf.mxu1  ;;  %v1844_v7 = vadd.f32 %v1843_v2, %v3815_v14 }
 0x183   : > { %v2111_v13 = vadd.f32 %v2059_v26, %v1810_v11 }
 0x185   : > { %v2131_v40 = vadd.f32 %v3820_v32, %v2111_v13 }
 0x187   : > { %v2147_v29 = vmax.f32 %v2131_v40, 0.0 }
 0x188   : > { %v1598_v56 = vpop.f32.mrf.mxu0 }
 0x189   : > { %2164 = vst.msk [vmem:[%s3828_s19 + $0x20] sm:$0xff] %vm2159_vm0, %v2147_v29  ;;  %v1812_v60 = vadd.f32 %v1811_v15, %v1598_v56  ;;  %v1846_v43 = vpop.f32.mrf.mxu3 }
 0x18a   : > { %v2064_v52 = vpop.f32.mrf.mxu2  ;;  %v1814_v27 = vpop.f32.mrf.mxu1 }
 0x18b   : > { %v2112_v49 = vadd.f32 %v2061_v39, %v1812_v60 }
 0x18d   : > { %v2132_v33 = vadd.f32 %v3820_v32, %v2112_v49 }
 0x18f   : > { %v2148_v1 = vmax.f32 %v2132_v33, 0.0 }
 0x190   : > { %v1601_v34 = vpop.f32.mrf.mxu0 }
 0x191   : > { %2165 = vst.msk [vmem:[%s3828_s19 + $0x28] sm:$0xff] %vm2159_vm0, %v2148_v1  ;;  %v1847_v3 = vpop.f32.mrf.mxu3 }
 0x192   : > { %v2065_v58 = vpop.f32.mrf.mxu2  ;;  %v1815_v6 = vpop.f32.mrf.mxu1 }
 0x198   : > { %v1602_v35 = vpop.f32.mrf.mxu0 }
 0x199   : > { %v1849_v36 = vpop.f32.mrf.mxu3 }
 0x19a   : > { %v2067_v41 = vpop.f32.mrf.mxu2  ;;  %v1817_v30 = vpop.f32.mrf.mxu1  ;;  %v1850_v1 = vadd.f32 %v1849_v36, %v3841_v23 }
 0x1a0   : > { %v1604_v0 = vpop.f32.mrf.mxu0 }
 0x1a1   : > { %v1818_v42 = vadd.f32 %v1817_v30, %v1604_v0  ;;  %v3863_v21 = vpop.f32.mrf.mxu3 }
 0x1a2   : > { %v2069_v45 = vpop.f32.mrf.mxu2  ;;  %v1819_v19 = vpop.f32.mrf.mxu1  ;;  %v1852_v0 = vadd.f32 %v3863_v21, %v3844_v18 }
 0x1a3   : > { %v2113_v5 = vadd.f32 %v2067_v41, %v1818_v42 }
 0x1a5   : > { %v2133_v20 = vadd.f32 %v3820_v32, %v2113_v5 }
 0x1a7   : > { %v2149_v55 = vmax.f32 %v2133_v20, 0.0 }
 0x1a8   : > { %v1606_v38 = vpop.f32.mrf.mxu0 }
 0x1a9   : > { %2166 = vst.msk [vmem:[%s3828_s19 + $0x30] sm:$0xff] %vm2159_vm0, %v2149_v55  ;;  %v1820_v61 = vadd.f32 %v1819_v19, %v1606_v38  ;;  %v1854_v53 = vpop.f32.mrf.mxu3 }
 0x1aa   : > { %v2072_v16 = vpop.f32.mrf.mxu2  ;;  %v1822_v54 = vpop.f32.mrf.mxu1 }
 0x1ab   : > { %v2114_v28 = vadd.f32 %v2069_v45, %v1820_v61 }
 0x1ad   : > { %v2134_v44 = vadd.f32 %v3820_v32, %v2114_v28 }
 0x1af   : > { %v2150_v59 = vmax.f32 %v2134_v44, 0.0 }
 0x1b0   : > { %v1609_v10 = vpop.f32.mrf.mxu0 }
 0x1b1   : > { %2167 = vst.msk [vmem:[%s3828_s19 + $0x38] sm:$0xff] %vm2159_vm0, %v2150_v59  ;;  %v1855_v31 = vpop.f32.mrf.mxu3 }
 0x1b2   : > { %v2073_v62 = vpop.f32.mrf.mxu2  ;;  %v1823_v17 = vpop.f32.mrf.mxu1 }
 0x1b8   : > { %v1610_v51 = vpop.f32.mrf.mxu0 }
 0x1b9   : > { %v2091_v48 = vpop.f32.mrf.mxu3 }
 0x1ba   : > { %v2075_v12 = vpop.f32.mrf.mxu2  ;;  %v2119_v57 = vadd.f32 %v2091_v48, %v1842_v4  ;;  %v1825_v25 = vpop.f32.mrf.mxu1 }
 0x1bc   : > { %v2139_v50 = vadd.f32 %v3820_v32, %v2119_v57 }
 0x1be   : > { %v2155_v63 = vmax.f32 %v2139_v50, 0.0 }
 0x1c0   : > { %2172 = vst.msk [vmem:[%s3828_s19 + $0x60] sm:$0xff] %vm2159_vm0, %v2155_v63  ;;  %v1612_v47 = vpop.f32.mrf.mxu0 }
 0x1c1   : > { %v1826_v9 = vadd.f32 %v1825_v25, %v1612_v47  ;;  %v2093_v46 = vpop.f32.mrf.mxu3 }
 0x1c2   : > { %v2077_v26 = vpop.f32.mrf.mxu2  ;;  %v2120_v37 = vadd.f32 %v2093_v46, %v1844_v7  ;;  %v1827_v24 = vpop.f32.mrf.mxu1 }
 0x1c3   : > { %v2115_v22 = vadd.f32 %v2075_v12, %v1826_v9 }
 0x1c4   : > { %v2140_v8 = vadd.f32 %v3820_v32, %v2120_v37 }
 0x1c5   : > { %v2135_v11 = vadd.f32 %v3820_v32, %v2115_v22 }
 0x1c6   : > { %v2156_v39 = vmax.f32 %v2140_v8, 0.0 }
 0x1c7   : > { %v2151_v15 = vmax.f32 %v2135_v11, 0.0 }
 0x1c8   : > { %2173 = vst.msk [vmem:[%s3828_s19 + $0x68] sm:$0xff] %vm2159_vm0, %v2156_v39  ;;  %v1614_v13 = vpop.f32.mrf.mxu0 }
 0x1c9   : > { %2168 = vst.msk [vmem:[%s3828_s19 + $0x40] sm:$0xff] %vm2159_vm0, %v2151_v15  ;;  %v1828_v14 = vadd.f32 %v1827_v24, %v1614_v13  ;;  %v2096_v2 = vpop.f32.mrf.mxu3 }
 0x1ca   : > { %v2080_v40 = vpop.f32.mrf.mxu2  ;;  %v1830_v29 = vpop.f32.mrf.mxu1 }
 0x1cb   : > { %v2116_v56 = vadd.f32 %v2077_v26, %v1828_v14 }
 0x1cd   : > { %v2136_v60 = vadd.f32 %v3820_v32, %v2116_v56 }
 0x1cf   : > { %v2152_v43 = vmax.f32 %v2136_v60, 0.0 }
 0x1d0   : > { %v1617_v52 = vpop.f32.mrf.mxu0 }
 0x1d1   : > { %2169 = vst.msk [vmem:[%s3828_s19 + $0x48] sm:$0xff] %vm2159_vm0, %v2152_v43  ;;  %v2097_v27 = vpop.f32.mrf.mxu3 }
 0x1d2   : > { %v2081_v49 = vpop.f32.mrf.mxu2  ;;  %v1831_v33 = vpop.f32.mrf.mxu1 }
 0x1d8   : > { %v1618_v34 = vpop.f32.mrf.mxu0 }
 0x1d9   : > { %v2099_v3 = vpop.f32.mrf.mxu3 }
 0x1da   : > { %v2083_v58 = vpop.f32.mrf.mxu2  ;;  %v2121_v6 = vadd.f32 %v2099_v3, %v1850_v1  ;;  %v1833_v35 = vpop.f32.mrf.mxu1 }
 0x1dc   : > { %v2141_v41 = vadd.f32 %v3820_v32, %v2121_v6 }
 0x1de   : > { %v2157_v30 = vmax.f32 %v2141_v41, 0.0 }
 0x1e0   : > { %2174 = vst.msk [vmem:[%s3828_s19 + $0x70] sm:$0xff] %vm2159_vm0, %v2157_v30  ;;  %v1620_v42 = vpop.f32.mrf.mxu0 }
 0x1e1   : > { %v1834_v45 = vadd.f32 %v1833_v35, %v1620_v42  ;;  %v2101_v19 = vpop.f32.mrf.mxu3 }
 0x1e2   : > { %v2085_v5 = vpop.f32.mrf.mxu2  ;;  %v2122_v23 = vadd.f32 %v2101_v19, %v1852_v0  ;;  %v1835_v36 = vpop.f32.mrf.mxu1 }
 0x1e3   : > { %v2117_v20 = vadd.f32 %v2083_v58, %v1834_v45 }
 0x1e4   : > { %v2142_v55 = vadd.f32 %v3820_v32, %v2122_v23 }
 0x1e5   : > { %v2137_v38 = vadd.f32 %v3820_v32, %v2117_v20 }
 0x1e6   : > { %v2158_v61 = vmax.f32 %v2142_v55, 0.0 }
 0x1e7   : > { %v2153_v53 = vmax.f32 %v2137_v38, 0.0 }
 0x1e8   : > { %2175 = vst.msk [vmem:[%s3828_s19 + $0x78] sm:$0xff] %vm2159_vm0, %v2158_v61  ;;  %v1622_v16 = vpop.f32.mrf.mxu0 }
 0x1e9   : > { %2170 = vst.msk [vmem:[%s3828_s19 + $0x50] sm:$0xff] %vm2159_vm0, %v2153_v53  ;;  %v1836_v18 = vadd.f32 %v1835_v36, %v1622_v16  ;;  %v2104_v21 = vpop.f32.mrf.mxu3 }
 0x1ea   : > { %v2088_v54 = vpop.f32.mrf.mxu2  ;;  %v1838_v28 = vpop.f32.mrf.mxu1 }
 0x1eb   : > { %v2118_v44 = vadd.f32 %v2085_v5, %v1836_v18 }
 0x1ed   : > { %v2138_v59 = vadd.f32 %v3820_v32, %v2118_v44 }
 0x1ef   : > { %v2154_v10 = vmax.f32 %v2138_v59, 0.0 }
 0x1f0   : > { %v1625_v31 = vpop.f32.mrf.mxu0 }
 0x1f1   : > { %2171 = vst.msk [vmem:[%s3828_s19 + $0x58] sm:$0xff] %vm2159_vm0, %v2154_v10  ;;  %v2105_v62 = vpop.f32.mrf.mxu3 }
 0x1f2   : > { %v2089_v17 = vpop.f32.mrf.mxu2  ;;  %v1839_v4 = vpop.f32.mrf.mxu1 }
 0x1f8   : > { %v1626_v51 = vpop.f32.mrf.mxu0 }
 0x1f9 PF: > { %s17_s28 = sadd.s32 1, %s2853_s28   ;;  %s3964_s24 = smov %s2845_s26 }
 0x1fa   : > { %p14_p12 = scmp.ge.s32.totalorder %s17_s28, 6   ;;  %s3965_s25 = smov %s2849_s27 }
 0x1fb   : > { %s3966_s26 = smov %s3969_s29  ;;  %s3967_s27 = smov %s3973_s30 }
 0x1fc   :  { %16 = sbr.rel (!%p14_p12) target bundleno = 3 (0x3), region = 98 }

// kernel: decoder_forward.3
= control target key start
LH: loop header
LB: loop body
LE: loop exit
PB: predicated region body
PF: predicated region fallthrough
CT: control target
= control target key end

     0   :  { %s4023_s13 = smov 0   ;;  %s4025_s14 = smov 0   ;;  %s5825_s0 = inlined_call_operand.vmem [shape: f32[2,16,16,4], index: 0, kind: input, shape index: {}, may-alias: {0,1,2}]   ;;  %s5826_s1 = inlined_call_operand.vmem [shape: f32[2,16,16,4], index: 1, kind: input, shape index: {}, may-alias: {0,1,2}]   ;;  %s5827_s2 = inlined_call_operand.vmem [shape: f32[2,16,16,4], index: 2, kind: input, shape index: {}, may-alias: {0,1,2}]   ;;  %s5828_s3 = inlined_call_operand.vmem [shape: f32[2,16,16,4], index: 3, kind: input, shape index: {}, may-alias: {3,4,5}]   ;;  %s5829_s4 = inlined_call_operand.vmem [shape: f32[2,16,16,4], index: 4, kind: input, shape index: {}, may-alias: {3,4,5}]   ;;  %s5830_s5 = inlined_call_operand.vmem [shape: f32[2,16,16,4], index: 5, kind: input, shape index: {}, may-alias: {3,4,5}]   ;;  %s5831_s6 = inlined_call_operand.vmem [shape: bf16[3,24,8], index: 6, kind: input, shape index: {}]   ;;  %s5832_s7 = inlined_call_operand.vmem [shape: f32[1,4], index: 7, kind: input, shape index: {}]   ;;  %s5833_s8 = inlined_call_operand.vmem [shape: f32[1,4], index: 8, kind: input, shape index: {}]   ;;  %s5834_s9 = inlined_call_operand.vmem [shape: f32[1,8], index: 9, kind: input, shape index: {}]   ;;  %s5835_s10 = inlined_call_operand.vmem [shape: bf16[2,16,16,8], index: 10, kind: output, shape index: {}]  }
   0x1   :  { %s4027_s15 = smov 0   ;;  %s4029_s16 = smov 0  }
   0x2   :  { %s4031_s17 = smov 0  }
   0x3 LB: > { %s35_s18 = sadd.s32 1, %s3952_s15  ;;  %s39_s19 = sadd.s32 1, %s3956_s16  ;;  %s3960_s17 = sphi %s4031_s17, %s20_s17   ;;  %s3956_s16 = sphi %s4029_s16, %s6045_s16   ;;  %s3952_s15 = sphi %s4027_s15, %s6044_s15   ;;  %s3948_s14 = sphi %s4025_s14, %s6043_s14   ;;  %s3944_s13 = sphi %s4023_s13, %s6042_s13  }
   0x4   : > { %p37_p0 = scmp.ge.s32.totalorder %s35_s18, 2  ;;  %p3477_p1 = scmp.ge.s32.totalorder %s3960_s17, 1 }
   0x5   : > { %p506_p2 = scmp.lt.s32.totalorder %s3960_s17, 5 }
   0x6   : > { %s6047_s18 = smov (%p37_p0, %s35_s18), 0  ;;  %s6049_s19 = smov (!%p37_p0, %s39_s19), %s3956_s16 }
   0x7   : > { %p507_p3 = pnand %p3477_p1, %p506_p2  ;;  %p41_p4 = scmp.ge.s32.totalorder %s6049_s19, 2 }
   0x8   : > { %s4056_s20 = sshll.u32 (!%p507_p3), %s3944_s13, 3  ;;  %p627_p5 = scmp.lt.s32.totalorder (!%p507_p3), %s3948_s14, 1 }
   0x9   : > { %s6051_s19 = smov (%p41_p4, %s6049_s19), 0  ;;  %510 = sbr.rel (%p507_p3) target bundleno = 665 (0x299), region = 60 }
   0xa   : > { %p629_p6 = scmp.lt.s32.totalorder (!%p507_p3), %s4056_s20, 15  ;;  %s3483_s24 = sadd.s32 (!%p507_p3), 4294967295, %s4056_s20 }
   0xb   : > { %p639_p7 = scmp.gt.s32.totalorder (!%p507_p3), %s3483_s24, 0  ;;  %p3484_p8 = scmp.lt.s32.totalorder (!%p507_p3), %s3483_s24, 15 }
   0xc   : > { %p742_p9 = scmp.gt.s32.totalorder (!%p507_p3), %s3944_s13, 0  ;;  %p764_p11 = scmp.lt.s32.totalorder (!%p507_p3), %s3944_s13, 1 }
   0xe   : > { %s6053_s14 = smov (!%p627_p5, %s3948_s14), 1  ;;  %vm862_vm0 = vcmask 24576   ;;  %vm863_vm1 = vsmask.f32 256  ;;  %v871_v0 = vld [vmem:[#allocation2 + $0x20] sm:$0x1] }
   0xf   : > { %s630_s21 = scalar_select %p629_p6, %s4056_s20, 15  ;;  %vm4061_vm2 = vmand %vm862_vm0, %vm863_vm1  ;;  %v886_v3 = vld [vmem:[#allocation2 + $0x70] sm:$0x1]  ;;  %v4078_v5 = vld [vmem:[%s5832_s7] ss:$0 sm:$0xff]  ;;  %vm5836_vm3 = vcmask 27648  }
  0x10   : > { %s4065_s22 = sshll.u32 %s6053_s14, 5  ;;  %v872_v2 = vsel %vm4061_vm2, 0, %v871_v0  ;;  %v887_v4 = vsel %vm4061_vm2, 0, %v886_v3  ;;  %v4091_v6 = vld [vmem:[%s5833_s8] ss:$0 sm:$0xff]  ;;  %s3962_s14 = smov 8  }
  0x11   : > { %s3479_s23 = sshll.u32 %s630_s21, 1  ;;  %873 = vst [vmem:[#allocation2 + $0x20] sm:$0x1] %v872_v2  ;;  %vm1098_vm4 = vsmask.f32 7938  ;;  %vm5841_vm12 = vcmask 93248  }
  0x12   : > { %s4073_s25 = sadd.s32 %s4065_s22, %s3479_s23  ;;  %888 = vst [vmem:[#allocation2 + $0x70] sm:$0x1] %v887_v4  ;;  %v1119_v43 = vld [vmem:[#allocation2 + $0x28] sm:$0x1]  ;;  %vm4160_vm5 = vmand %vm5836_vm3, %vm1098_vm4  ;;  %v1154_v60 = vld [vmem:[#allocation2 + $0x78] sm:$0x1] }
  0x13   : > { %s3481_s28 = sshll.u32 %s4073_s25, 3  ;;  %vm1332_vm7 = vsmask.f32 3328  ;;  %vm1333_vm8 = vsmask.f32 7440  ;;  %vm5837_vm13 = vcmask 158848  }
  0x14   : > { %s4086_s11 = scalar_lea.vmem %s5825_s0, %s3481_s28  ;;  %vm895_vm9 = vsmask.f32 4368  ;;  %vm4260_vm10 = vmor %vm1332_vm7, %vm1333_vm8  ;;  %vm1528_vm15 = vcmask 158851   ;;  %vm1529_vm0 = vsmask.f32 7950  ;;  %vm1625_vm8 = vcmask 57376  }
  0x15   : > { %v781_v7 = vld [vmem:[%s4086_s11 + $0x18] sm:$0xff]  ;;  %v780_v8 = vld [vmem:[%s4086_s11 + $0x10] sm:$0xff]  ;;  %v779_v9 = vld [vmem:[%s4086_s11 + $0x8] sm:$0xff]  ;;  %s640_s21 = scalar_select %p639_p7, %s3483_s24, 0 }
  0x16   : > { %v797_v10 = vmul.f32 %v4078_v5, %v781_v7  ;;  %v796_v11 = vmul.f32 %v4078_v5, %v780_v8  ;;  %v795_v12 = vmul.f32 %v4078_v5, %v779_v9  ;;  %v791_v13 = vld [vmem:[%s4086_s11 + $0x68] sm:$0xff]  ;;  %v790_v14 = vld [vmem:[%s4086_s11 + $0x60] sm:$0xff]  ;;  %s4110_s23 = scalar_select %p742_p9, 1, 0  ;;  %vm4323_vm11 = vmor %vm863_vm1, %vm895_vm9 }
  0x17   : > { %v807_v15 = vmul.f32 %v4078_v5, %v791_v13  ;;  %s6055_s21 = smov (!%p3484_p8, %s640_s21), 15  ;;  %v806_v16 = vmul.f32 %v4078_v5, %v790_v14  ;;  %vm4592_vm14 = vmand %vm5837_vm13, %vm1332_vm7  ;;  %v5695_v49 = vld [vmem:[%s5834_s9] ss:$0 sm:$0xff] }
  0x18   : > { %v813_v17 = vadd.f32 %v4091_v6, %v797_v10  ;;  %v812_v18 = vadd.f32 %v4091_v6, %v796_v11  ;;  %v811_v19 = vadd.f32 %v4091_v6, %v795_v12  ;;  %s3489_s26 = sshll.u32 %s6055_s21, 1  ;;  %v760_v36 = vstv %s4110_s23  ;;  %v1115_v47 = vld [vmem:[#allocation2 + $0x20] sm:$0xf]  ;;  %v1112_v12 = vld [vmem:[#allocation2 + $0x18] sm:$0x1]  ;;  %s3966_s23 = smov 20   ;;  %vm4681_vm9 = vmand %vm1625_vm8, %vm863_vm1 }
  0x19   : > { %v823_v20 = vadd.f32 %v4091_v6, %v807_v15  ;;  %v822_v21 = vadd.f32 %v4091_v6, %v806_v16  ;;  %s4115_s24 = sadd.s32 %s3489_s26, %s4065_s22  ;;  %vm4165_vm6 = vcmp.eq.s32.totalorder %v760_v36, 1  ;;  %v1150_v55 = vld [vmem:[#allocation2 + $0x70] sm:$0xf]  ;;  %s4182_s26 = scalar_lea.vmem %s5828_s3, %s3481_s28  ;;  %vm5840_vm1 = vcmask 60448  }
  0x1a   : > { %v829_v22 = vmax.f32 %v813_v17, 0.0  ;;  %v828_v23 = vmax.f32 %v812_v18, 0.0  ;;  %v827_v24 = vmax.f32 %v811_v19, 0.0  ;;  %s3491_s27 = sshll.u32 %s4115_s24, 3  ;;  %s3963_s28 = smov 16   ;;  %v1591_v14 = vld [vmem:[%s4182_s26 + $0x10] sm:$0xff] }
  0x1b   : > { %v839_v25 = vmax.f32 %v823_v20, 0.0  ;;  %v838_v26 = vmax.f32 %v822_v21, 0.0  ;;  %s4129_s12 = scalar_lea.vmem %s5826_s1, %s3491_s27  ;;  %v1592_v19 = vld [vmem:[%s4182_s26 + $0x18] sm:$0xff]  ;;  %s694_s21 = scalar_lea.vmem %s5829_s4, %s3491_s27  ;;  %vm5839_vm8 = vcmask 191648  }
  0x1c   : > { %v4118_v27 = vpack.c.bf16 %v829_v22, %v829_v22  ;;  %v4120_v28 = vpack.c.bf16 %v828_v23, %v828_v23  ;;  %v4122_v29 = vpack.c.bf16 %v827_v24, %v827_v24  ;;  %v744_v31 = vld [vmem:[%s4129_s12 + $0x8] sm:$0xff]  ;;  %s4269_s29 = scalar_select %p742_p9, 255, 0 }
  0x1d   : > { %v4131_v30 = vpack.c.bf16 %v839_v25, %v839_v25  ;;  %v4134_v32 = vpack.c.bf16 %v838_v26, %v838_v26  ;;  %v750_v38 = vmul.f32 %v4078_v5, %v744_v31  ;;  %s3964_s24 = smov 4   ;;  %s3965_s27 = smov 12  }
  0x1e   : > { %1241 = vrot.lane.b32.xlu0 %v4118_v27, %s3962_s14  ;;  %1239 = vrot.lane.b32.xlu2 %v4120_v28, %s3962_s14  ;;  %v932_v33 = vshrl.u32 %v4120_v28, 16  ;;  %v940_v34 = vshrl.u32 %v4118_v27, 16  ;;  %v943_v35 = vshll.u32 %v4118_v27, 16  ;;  %v935_v37 = vshll.u32 %v4120_v28, 16  ;;  %s5338_s30 = scalar_select %p764_p11, 1, 0 }
  0x1f   : > { %1237 = vrot.lane.b32.xlu1 %v4122_v29, %s3962_s14  ;;  %v1017_v39 = vshrl.u32 %v4134_v32, 16  ;;  %v1025_v40 = vshrl.u32 %v4131_v30, 16  ;;  %v756_v48 = vadd.f32 %v4091_v6, %v750_v38  ;;  %v1020_v51 = vshll.u32 %v4134_v32, 16 }
  0x20   : > { %v4150_v41 = vrot.slane %v932_v33, 7  ;;  %v4152_v42 = vrot.slane %v940_v34, 7  ;;  %v4156_v44 = vrot.slane %v943_v35, 5  ;;  %v1359_v45 = vrot.slane %v940_v34, 4 }
  0x21   : > { %v4169_v50 = vrot.slane %v1017_v39, 7  ;;  %v4175_v56 = vrot.slane %v1025_v40, 7  ;;  %v758_v57 = vmax.f32 %v756_v48, 0.0  ;;  %v1028_v59 = vshll.u32 %v4131_v30, 16 }
  0x22   : > { %v937_v52 = vor.u32 %v935_v37, %v4150_v41  ;;  %v947_v53 = vrot.slane %v4152_v42, 4  ;;  %v1360_v54 = vor.u32 %v1359_v45, %v4156_v44  ;;  %v1404_v61 = vrot.slane %v1025_v40, 4  ;;  %v1105_v40 = vld [vmem:[#allocation2 + $0x8] sm:$0x1] }
  0x23   : > { %v1022_v58 = vor.u32 %v1020_v51, %v4169_v50  ;;  %v1032_v2 = vrot.slane %v4175_v56, 4  ;;  %v763_v3 = vsel %vm4165_vm6, %v758_v57, 0.0  ;;  %v4197_v7 = vrot.slane %v1028_v59, 5  ;;  %v778_v57 = vld [vmem:[%s4086_s11] sm:$0xff] }
  0x24   : > { %v1116_v62 = vsel %vm4160_vm5, %v937_v52, %v1115_v47  ;;  %v1120_v63 = vsel %vm4061_vm2, %v947_v53, %v1119_v43  ;;  %v1361_v0 = vrot.slane %v1360_v54, 4  ;;  %v923_v8 = vshrl.u32 %v4122_v29, 16  ;;  %v743_v52 = vld [vmem:[%s4129_s12] sm:$0xff] }
  0x25   : > { %1117 = vst [vmem:[#allocation2 + $0x20] sm:$0xf] %v1116_v62  ;;  %v1151_v4 = vsel %vm4160_vm5, %v1022_v58, %v1150_v55  ;;  %v4203_v9 = vpack.c.bf16 %v763_v3, %v763_v3  ;;  %v1155_v10 = vsel %vm4061_vm2, %v1032_v2, %v1154_v60  ;;  %v926_v11 = vshll.u32 %v4122_v29, 16  ;;  %v865_v55 = vld [vmem:[#allocation2] sm:$0x1] }
  0x26   : > { %1261 = vrot.lane.b32.xlu0 %v4131_v30, %s3962_s14  ;;  %1121 = vst [vmem:[#allocation2 + $0x28] sm:$0x1] %v1120_v63  ;;  %1435 = vrot.lane.b32.xlu2 %v1361_v0, %s3963_s28  ;;  %v1398_v13 = vrot.slane %v1017_v39, 4  ;;  %v1405_v15 = vor.u32 %v1404_v61, %v4197_v7  ;;  %v1350_v16 = vrot.slane %v923_v8, 4  ;;  %v4210_v17 = vrot.slane %v923_v8, 7  ;;  %v1601_v39 = vld [vmem:[%s4182_s26 + $0x60] sm:$0xff] }
  0x27   : > { %1152 = vst [vmem:[#allocation2 + $0x70] sm:$0xf] %v1151_v4  ;;  %v1399_v18 = vrot.slane %v1020_v51, 5  ;;  %1233 = vrot.lane.b32.xlu1 %v4203_v9, %s3962_s14  ;;  %v4217_v20 = vrot.slane %v926_v11, 5  ;;  %v906_v21 = vshrl.u32 %v4203_v9, 16  ;;  %v909_v22 = vshll.u32 %v4203_v9, 16 }
  0x28   : > { %1156 = vst [vmem:[#allocation2 + $0x78] sm:$0x1] %v1155_v10  ;;  %v1353_v23 = vrot.slane %v932_v33, 4  ;;  %v1406_v24 = vrot.slane %v1405_v15, 4  ;;  %v930_v25 = vrot.slane %v4210_v17, 4  ;;  %v1354_v26 = vrot.slane %v935_v37, 5 }
  0x29   : > { %v4222_v28 = vpack.c.bf16 %v1591_v14, %v1591_v14  ;;  %v1351_v31 = vor.u32 %v1350_v16, %v4217_v20  ;;  %v4225_v34 = vrot.slane %v906_v21, 7  ;;  %v4229_v36 = vrot.slane %v909_v22, 5  ;;  %v1602_v51 = vld [vmem:[%s4182_s26 + $0x68] sm:$0xff]  ;;  %v868_v63 = vld [vmem:[#allocation2 + $0x10] sm:$0x1]  ;;  %v782_v30 = vld [vmem:[%s4086_s11 + $0x20] sm:$0xff] }
  0x2a   : > { %v1341_v38 = vrot.slane %v906_v21, 4  ;;  %v1113_v33 = vsel %vm4061_vm2, %v930_v25, %v1112_v12  ;;  %v1400_v37 = vor.u32 %v1399_v18, %v1398_v13  ;;  %v4234_v43 = vpack.c.bf16 %v1592_v19, %v1592_v19 }
  0x2b   : > { %v1352_v45 = vrot.slane %v1351_v31, 4  ;;  %1114 = vst [vmem:[#allocation2 + $0x18] sm:$0x1] %v1113_v33  ;;  %v913_v47 = vrot.slane %v4225_v34, 4  ;;  %v1355_v48 = vor.u32 %v1354_v26, %v1353_v23  ;;  %v4239_v54 = vpack.c.bf16 %v1601_v39, %v1601_v39 }
  0x2c   : > { %v1342_v61 = vor.u32 %v1341_v38, %v4229_v36  ;;  %v1692_v62 = vshrl.u32 %v4222_v28, 16  ;;  %v1401_v2 = vrot.slane %v1400_v37, 4  ;;  %v1700_v3 = vshrl.u32 %v4234_v43, 16 }
  0x2d   : > { %v1179_v53 = vld [vmem:[#allocation2 + $0x28] sm:$0xf]  ;;  %v1106_v60 = vsel %vm4061_vm2, %v913_v47, %v1105_v40  ;;  %v4252_v4 = vpack.c.bf16 %v1602_v51, %v1602_v51  ;;  %v1356_v12 = vrot.slane %v1355_v48, 4  ;;  %v866_v13 = vsel %vm4061_vm2, 0, %v865_v55  ;;  %v3907_v51 = vld [vmem:[%s694_s21] sm:%s4269_s29] }
  0x2e   : > { %v1180_v58 = vsel %vm4160_vm5, 0, %v1179_v53  ;;  %1259 = vrot.lane.b32.xlu0 %v4134_v32, %s3962_s14  ;;  %1455 = vrot.lane.b32.xlu2 %v1406_v24, %s3963_s28  ;;  %v749_v32 = vmul.f32 %v4078_v5, %v743_v52  ;;  %1107 = vst [vmem:[#allocation2 + $0x8] sm:$0x1] %v1106_v60  ;;  %v794_v14 = vmul.f32 %v4078_v5, %v778_v57  ;;  %v1777_v15 = vshrl.u32 %v4239_v54, 16 }
  0x2f   : > { %1181 = vst [vmem:[#allocation2 + $0x28] sm:$0xf] %v1180_v58  ;;  %v1199_v0 = vld [vmem:[#allocation2 + $0x78] sm:$0xf]  ;;  %1431 = vrot.lane.b32.xlu1 %v1352_v45, %s3963_s28  ;;  %v1785_v16 = vshrl.u32 %v4252_v4, 16  ;;  %v1343_v19 = vrot.slane %v1342_v61, 4  ;;  %v1403_v26 = vsel %vm4260_vm10, %v1401_v2, %v4197_v7  ;;  %v1358_v40 = vsel %vm4260_vm10, %v1356_v12, %v4156_v44 }
  0x30   : > { %v1200_v8 = vsel %vm4160_vm5, 0, %v1199_v0  ;;  %v755_v18 = vadd.f32 %v4091_v6, %v749_v32  ;;  %v1703_v21 = vshll.u32 %v4234_v43, 16  ;;  %867 = vst [vmem:[#allocation2] sm:$0x1] %v866_v13  ;;  %v810_v23 = vadd.f32 %v4091_v6, %v794_v14  ;;  %v3910_v58 = vld [vmem:[%s694_s21 + $0x8] sm:%s4269_s29]  ;;  %s3795_s21 = sadd.s32 8, %s4056_s20 }
  0x31   : > { %1201 = vst [vmem:[#allocation2 + $0x78] sm:$0xf] %v1200_v8  ;;  %v869_v24 = vsel %vm4061_vm2, 0, %v868_v63  ;;  %v4288_v31 = vrot.slane %v1692_v62, 7  ;;  %v4292_v38 = vrot.slane %v1700_v3, 7  ;;  %v4301_v7 = vrot.slane %v1777_v15, 7 }
  0x32   : > { %v1175_v25 = vld [vmem:[#allocation2 + $0x18] sm:$0xf]  ;;  %v757_v39 = vmax.f32 %v755_v18, 0.0  ;;  %v826_v37 = vmax.f32 %v810_v23, 0.0  ;;  %870 = vst [vmem:[#allocation2 + $0x10] sm:$0x1] %v869_v24  ;;  %v4327_v0 = vpack.c.bf16 %v3907_v51, %v3907_v51  ;;  %v4337_v18 = vpack.c.bf16 %v3910_v58, %v3910_v58 }
  0x33   : > { %v1176_v33 = vsel %vm4160_vm5, 0, %v1175_v25  ;;  %v4305_v45 = vrot.slane %v1785_v16, 7  ;;  %v1788_v47 = vshll.u32 %v4252_v4, 16  ;;  %v1698_v55 = vrot.slane %v4288_v31, 4  ;;  %p5243_p10 = scmp.lt.s32.totalorder %s3795_s21, 15 }
  0x34   : > { %1177 = vst [vmem:[#allocation2 + $0x18] sm:$0xf] %v1176_v33  ;;  %v762_v48 = vsel %vm4165_vm6, %v757_v39, 0.0  ;;  %v844_v52 = vpack.c.bf16 %v826_v37, %v826_v37  ;;  %v1705_v57 = vor.u32 %v1703_v21, %v4292_v38  ;;  %v1783_v2 = vrot.slane %v4301_v7, 4  ;;  %vm4642_vm6 = vmand %vm1528_vm15, %vm1529_vm0 }
  0x35   : > { %v842_v44 = vpack.c.bf16 %v762_v48, %v762_v48  ;;  %v1171_v53 = vld [vmem:[#allocation2 + $0x8] sm:$0xf]  ;;  %v1790_v32 = vor.u32 %v1788_v47, %v4305_v45  ;;  %v1658_v37 = vshrl.u32 %v4327_v0, 16  ;;  %v1030_v29 = vor.u32 %v1028_v59, %v4175_v56  ;;  %v792_v56 = vld [vmem:[%s4086_s11 + $0x70] sm:$0xff]  ;;  %s6057_s21 = smov (!%p5243_p10, %s3795_s21), 15 }
  0x36   : > { %1427 = vrot.lane.b32.xlu0 %v1343_v19, %s3963_s28  ;;  %1453 = vrot.lane.b32.xlu2 %v1403_v26, %s3963_s28  ;;  %v1172_v60 = vsel %vm4160_vm5, 0, %v1171_v53  ;;  %v915_v63 = vshrl.u32 %v844_v52, 16  ;;  %v918_v14 = vshll.u32 %v844_v52, 16  ;;  %v1706_v19 = vsel %vm4323_vm11, %v1698_v55, %v1705_v57  ;;  %v1589_v55 = vld [vmem:[%s4182_s26] sm:$0xff]  ;;  %v1590_v57 = vld [vmem:[%s4182_s26 + $0x8] sm:$0xff]  ;;  %s6059_s21 = smov (!%p5243_p10, %s6057_s21), 15 }
  0x37   : > { %1433 = vrot.lane.b32.xlu1 %v1358_v40, %s3963_s28  ;;  %v898_v61 = vshrl.u32 %v842_v44, 16  ;;  %1173 = vst [vmem:[#allocation2 + $0x8] sm:$0xf] %v1172_v60  ;;  %v901_v12 = vshll.u32 %v842_v44, 16  ;;  %v1100_v23 = vld [vmem:[#allocation2] sm:$0xf]  ;;  %v1791_v39 = vsel %vm4323_vm11, %v1783_v2, %v1790_v32 }
  0x38   : > { %v4335_v13 = vrot.slane %v915_v63, 7  ;;  %v1666_v53 = vshrl.u32 %v4337_v18, 16  ;;  %v1344_v58 = vrot.slane %v915_v63, 4  ;;  %v1345_v60 = vrot.slane %v918_v14, 5 }
  0x39   : > { %v4333_v8 = vrot.slane %v898_v61, 7  ;;  %v1108_v24 = vld [vmem:[#allocation2 + $0x10] sm:$0xf]  ;;  %v1335_v48 = vrot.slane %v898_v61, 4  ;;  %v1336_v51 = vrot.slane %v901_v12, 5  ;;  %v4359_v2 = vrot.slane %v1658_v37, 7 }
  0x3a   : > { %v920_v26 = vor.u32 %v918_v14, %v4335_v13  ;;  %v1669_v32 = vshll.u32 %v4337_v18, 16  ;;  %v4364_v61 = vpack.c.bf16 %v1589_v55, %v1589_v55  ;;  %vm5843_vm15 = vcmask 126048  }
  0x3b   : > { %v903_v25 = vor.u32 %v901_v12, %v4333_v8  ;;  %v1608_v12 = vpack.c.bf16 %v1590_v57, %v1590_v57  ;;  %v1664_v63 = vrot.slane %v4359_v2, 4 }
  0x3c   : > { %v1109_v40 = vsel %vm4160_vm5, %v920_v26, %v1108_v24  ;;  %v1346_v24 = vor.u32 %v1345_v60, %v1344_v58  ;;  %v1675_v26 = vshrl.u32 %v4364_v61, 16  ;;  %v793_v60 = vld [vmem:[%s4086_s11 + $0x78] sm:$0xff] }
  0x3d   : > { %v1101_v33 = vsel %vm4160_vm5, %v903_v25, %v1100_v23  ;;  %1110 = vst [vmem:[#allocation2 + $0x10] sm:$0xf] %v1109_v40  ;;  %v4362_v23 = vrot.slane %v1666_v53, 7 }
  0x3e   : > { %1841 = vrot.lane.b32.xlu0 %v1706_v19, %s3964_s24  ;;  %2060 = vrot.lane.b32.xlu2 %v4234_v43, %s3965_s27  ;;  %1102 = vst [vmem:[#allocation2] sm:$0xf] %v1101_v33  ;;  %v1337_v19 = vor.u32 %v1336_v51, %v1335_v48  ;;  %v783_v33 = vld [vmem:[%s4086_s11 + $0x28] sm:$0xff]  ;;  %v1347_v40 = vrot.slane %v1346_v24, 4  ;;  %v1686_v48 = vshll.u32 %v1608_v12, 16  ;;  %v4382_v57 = vrot.slane %v1675_v26, 7 }
  0x3f   : > { %1871 = vrot.lane.b32.xlu1 %v1791_v39, %s3964_s24  ;;  %v1671_v25 = vor.u32 %v1669_v32, %v4362_v23  ;;  %v1683_v39 = vshrl.u32 %v1608_v12, 16  ;;  %v799_v51 = vmul.f32 %v4078_v5, %v783_v33 }
  0x40   : > { %v1338_v14 = vrot.slane %v1337_v19, 4  ;;  %v1681_v19 = vrot.slane %v4382_v57, 4 }
  0x41   : > { %v4384_v58 = vrot.slane %v1683_v39, 7 }
  0x42   : > { %v1340_v55 = vsel %vm4260_vm10, %v1338_v14, %v4229_v36  ;;  %v815_v36 = vadd.f32 %v4091_v6, %v799_v51  ;;  %v4399_v14 = vrot.slane %v1703_v21, 5  ;;  %v4408_v51 = vrot.slane %v1788_v47, 5 }
  0x43   : > { %v1688_v24 = vor.u32 %v1686_v48, %v4384_v58 }
  0x45   : > { %v1689_v33 = vsel %vm4323_vm11, %v1681_v19, %v1688_v24  ;;  %v4427_v24 = vrot.slane %v1669_v32, 5  ;;  %v1161_v32 = vld [vmem:[#allocation2 + $0x88] sm:$0x1] }
  0x46   : > { %2080 = vrot.lane.b32.xlu0 %v4252_v4, %s3965_s27  ;;  %1235 = vrot.lane.b32.xlu2 %v844_v52, %s3962_s14  ;;  %v1672_v52 = vsel %vm4323_vm11, %v1664_v63, %v1671_v25  ;;  %v809_v63 = vmul.f32 %v4078_v5, %v793_v60  ;;  %v831_v25 = vmax.f32 %v815_v36, 0.0  ;;  %v2166_v4 = vrot.slane %v1683_v39, 4 }
  0x47   : > { %1231 = vrot.lane.b32.xlu1 %v842_v44, %s3962_s14  ;;  %v1349_v44 = vsel %vm4260_vm10, %v1347_v40, %v4217_v20  ;;  %v2175_v20 = vrot.slane %v1700_v3, 4 }
  0x48   : > { %v825_v40 = vadd.f32 %v4091_v6, %v809_v63  ;;  %v4415_v3 = vpack.c.bf16 %v831_v25, %v831_v25  ;;  %v2157_v63 = vrot.slane %v1666_v53, 4 }
  0x49   : > { %v2176_v43 = vor.u32 %v2175_v20, %v4399_v14 }
  0x4a   : > { %v841_v21 = vmax.f32 %v825_v40, 0.0  ;;  %v957_v47 = vshrl.u32 %v4415_v3, 16  ;;  %v2158_v53 = vor.u32 %v2157_v63, %v4427_v24 }
  0x4b   : > { %v2177_v60 = vrot.slane %v2176_v43, 4 }
  0x4c   : > { %v4425_v36 = vpack.c.bf16 %v841_v21, %v841_v21  ;;  %v2159_v43 = vrot.slane %v2158_v53, 4  ;;  %v1780_v21 = vshll.u32 %v4239_v54, 16 }
  0x4e   : > { %1425 = vrot.lane.b32.xlu0 %v1340_v55, %s3963_s28  ;;  %1829 = vrot.lane.b32.xlu2 %v1672_v52, %s3964_s24  ;;  %v2220_v55 = vrot.slane %v1785_v16, 4  ;;  %v4423_v16 = vrot.slane %v957_v47, 7 }
  0x4f   : > { %1429 = vrot.lane.b32.xlu1 %v1349_v44, %s3963_s28  ;;  %v4421_v44 = vrot.slane %v1686_v48, 5 }
  0x50   : > { %v2221_v52 = vor.u32 %v2220_v55, %v4408_v51  ;;  %v964_v20 = vrot.slane %v4423_v16, 4 }
  0x51   : > { %v2167_v39 = vor.u32 %v2166_v4, %v4421_v44  ;;  %v2215_v4 = vrot.slane %v1780_v21, 5 }
  0x52   : > { %v2222_v19 = vrot.slane %v2221_v52, 4  ;;  %v1695_v52 = vshll.u32 %v4222_v28, 16 }
  0x53   : > { %v2168_v40 = vrot.slane %v2167_v39, 4 }
  0x54   : > { %v2170_v63 = vrot.slane %v1695_v52, 5  ;;  %v1697_v39 = vor.u32 %v1695_v52, %v4288_v31  ;;  %v945_v31 = vor.u32 %v943_v35, %v4152_v42  ;;  %v1368_v52 = vrot.slane %v957_v47, 4 }
  0x55   : > { %v928_v47 = vor.u32 %v926_v11, %v4210_v17 }
  0x56   : > { %1835 = vrot.lane.b32.xlu0 %v1689_v33, %s3964_s24  ;;  %2056 = vrot.lane.b32.xlu2 %v1608_v12, %s3965_s27  ;;  %v1126_v12 = vld [vmem:[#allocation2 + $0x38] sm:$0x1] }
  0x57   : > { %2052 = vrot.lane.b32.xlu1 %v4337_v18, %s3965_s27  ;;  %v1042_v18 = vshrl.u32 %v4425_v36, 16  ;;  %v1127_v48 = vsel %vm4061_vm2, %v964_v20, %v1126_v12  ;;  %v2214_v12 = vrot.slane %v1777_v15, 4  ;;  %v2169_v20 = vrot.slane %v1692_v62, 4 }
  0x58   : > { %1128 = vst [vmem:[#allocation2 + $0x38] sm:$0x1] %v1127_v48  ;;  %v938_v62 = vrot.slane %v4150_v41, 4 }
  0x59   : > { %v4437_v25 = vrot.slane %v1042_v18, 7  ;;  %v2216_v48 = vor.u32 %v2215_v4, %v2214_v12  ;;  %v2171_v15 = vor.u32 %v2170_v63, %v2169_v20  ;;  %v1413_v41 = vrot.slane %v1042_v18, 4 }
  0x5a   : > { %v1661_v18 = vshll.u32 %v4327_v0, 16  ;;  %v904_v12 = vrot.slane %v4333_v8, 4  ;;  %v798_v63 = vmul.f32 %v4078_v5, %v782_v30  ;;  %v1678_v20 = vshll.u32 %v4364_v61, 16  ;;  %v1594_v30 = vld [vmem:[%s4182_s26 + $0x28] sm:$0xff] }
  0x5b   : > { %v1049_v33 = vrot.slane %v4437_v25, 4  ;;  %v2151_v8 = vrot.slane %v1658_v37, 4 }
  0x5d   : > { %v1162_v55 = vsel %vm4061_vm2, %v1049_v33, %v1161_v32  ;;  %v1782_v32 = vor.u32 %v1780_v21, %v4301_v7  ;;  %v1045_v7 = vshll.u32 %v4425_v36, 16  ;;  %v946_v21 = vsel %vm4323_vm11, %v938_v62, %v945_v31 }
  0x5e   : > { %2251 = vrot.lane.b32.xlu0 %v2177_v60, %s3966_s23  ;;  %1245 = vrot.lane.b32.xlu2 %v4415_v3, %s3962_s14  ;;  %1163 = vst [vmem:[#allocation2 + $0x88] sm:$0x1] %v1162_v55  ;;  %v2217_v55 = vrot.slane %v2216_v48, 4  ;;  %v2161_v62 = vrot.slane %v1678_v20, 5  ;;  %v2160_v31 = vrot.slane %v1675_v26, 4 }
  0x5f   : > { %2271 = vrot.lane.b32.xlu1 %v2222_v19, %s3966_s23  ;;  %v1183_v60 = vld [vmem:[#allocation2 + $0x38] sm:$0xf]  ;;  %1118 = vst.msk [vmem:[#allocation2 + $0x24] sm:$0xf] %vm5836_vm3, %v946_v21  ;;  %v4482_v35 = vrot.slane %v1045_v7, 5 }
  0x60   : > { %v1184_v19 = vsel %vm4160_vm5, 0, %v1183_v60  ;;  %v2219_v27 = vsel %vm4260_vm10, %v2217_v55, %v4408_v51  ;;  %v921_v60 = vrot.slane %v4335_v13, 4  ;;  %v1023_v13 = vrot.slane %v4169_v50, 4  ;;  %v874_v21 = vld [vmem:[#allocation2 + $0x30] sm:$0x1] }
  0x61   : > { %1185 = vst [vmem:[#allocation2 + $0x38] sm:$0xf] %v1184_v19  ;;  %v1414_v17 = vor.u32 %v1413_v41, %v4482_v35  ;;  %v1663_v50 = vor.u32 %v1661_v18, %v4359_v2  ;;  %v911_v19 = vor.u32 %v909_v22, %v4225_v34  ;;  %v808_v2 = vmul.f32 %v4078_v5, %v792_v56  ;;  %v889_v41 = vld [vmem:[#allocation2 + $0x80] sm:$0x1]  ;;  %v1604_v56 = vld [vmem:[%s4182_s26 + $0x78] sm:$0xff] }
  0x62   : > { %v814_v22 = vadd.f32 %v4091_v6, %v798_v63  ;;  %v1680_v34 = vor.u32 %v1678_v20, %v4382_v57 }
  0x63   : > { %v1415_v59 = vrot.slane %v1414_v17, 4  ;;  %v912_v48 = vsel %vm4323_vm11, %v904_v12, %v911_v19  ;;  %v1673_v19 = vrot.slane %v4362_v23, 4 }
  0x64   : > { %1104 = vst.msk [vmem:[#allocation2 + $0x4] sm:$0xf] %vm5836_vm3, %v912_v48  ;;  %v830_v55 = vmax.f32 %v814_v22, 0.0 }
  0x65   : > { %v1203_v53 = vld [vmem:[#allocation2 + $0x88] sm:$0xf] }
  0x66   : > { %1265 = vrot.lane.b32.xlu0 %v4425_v36, %s3962_s14  ;;  %2247 = vrot.lane.b32.xlu2 %v2168_v40, %s3966_s23  ;;  %v1204_v33 = vsel %vm4160_vm5, 0, %v1203_v53  ;;  %v960_v40 = vshll.u32 %v4415_v3, 16  ;;  %v1792_v53 = vrot.slane %v4305_v45, 4  ;;  %v4541_v45 = vpack.c.bf16 %v830_v55, %v830_v55 }
  0x67   : > { %2243 = vrot.lane.b32.xlu1 %v2159_v43, %s3966_s23  ;;  %1205 = vst [vmem:[#allocation2 + $0x88] sm:$0xf] %v1204_v33  ;;  %v2172_v43 = vrot.slane %v2171_v15, 4  ;;  %v1707_v15 = vrot.slane %v4292_v38, 4  ;;  %v2162_v38 = vor.u32 %v2161_v62, %v2160_v31 }
  0x69   : > { %v2174_v42 = vsel %vm4260_vm10, %v2172_v43, %v4399_v14  ;;  %v929_v14 = vsel %vm4323_vm11, %v921_v60, %v928_v47  ;;  %v890_v60 = vsel %vm4061_vm2, 0, %v889_v41 }
  0x6a   : > { %1111 = vst.msk [vmem:[#allocation2 + $0x14] sm:$0xf] %vm5836_vm3, %v929_v14 }
  0x6b   : > { %891 = vst [vmem:[#allocation2 + $0x80] sm:$0x1] %v890_v60 }
  0x6e   : > { %1839 = vrot.lane.b32.xlu0 %v1697_v39, %s3964_s24  ;;  %2058 = vrot.lane.b32.xlu2 %v4222_v28, %s3965_s27  ;;  %v4474_v28 = vrot.slane %v960_v40, 5  ;;  %v2152_v39 = vrot.slane %v1661_v18, 5 }
  0x6f   : > { %1869 = vrot.lane.b32.xlu1 %v1782_v32, %s3964_s24  ;;  %v824_v32 = vadd.f32 %v4091_v6, %v808_v2  ;;  %v1603_v2 = vld [vmem:[%s4182_s26 + $0x70] sm:$0xff] }
  0x70   : > { %v1369_v51 = vor.u32 %v1368_v52, %v4474_v28  ;;  %v2153_v33 = vor.u32 %v2152_v39, %v2151_v8  ;;  %v949_v52 = vshrl.u32 %v4541_v45, 16  ;;  %v4584_v8 = vpack.c.bf16 %v1594_v30, %v1594_v30 }
  0x71   : > { %v840_v37 = vmax.f32 %v824_v32, 0.0  ;;  %v4588_v22 = vpack.c.bf16 %v1603_v2, %v1603_v2  ;;  %v789_v2 = vld [vmem:[%s4086_s11 + $0x58] sm:$0xff] }
  0x72   : > { %v1370_v4 = vrot.slane %v1369_v51, 4  ;;  %v2154_v43 = vrot.slane %v2153_v33, 4  ;;  %v2163_v51 = vrot.slane %v2162_v38, 4  ;;  %v4558_v18 = vrot.slane %v949_v52, 7  ;;  %v1157_v48 = vld [vmem:[#allocation2 + $0x80] sm:$0xf] }
  0x73   : > { %v4543_v6 = vpack.c.bf16 %v840_v37, %v840_v37  ;;  %v1794_v33 = vshrl.u32 %v4588_v22, 16 }
  0x74   : > { %v2156_v26 = vsel %vm4260_vm10, %v2154_v43, %v4427_v24  ;;  %v1362_v24 = vrot.slane %v949_v52, 4  ;;  %v2165_v12 = vsel %vm4260_vm10, %v2163_v51, %v4421_v44  ;;  %v1717_v43 = vshrl.u32 %v4584_v8, 16 }
  0x75   : > { %v1034_v47 = vshrl.u32 %v4543_v6, 16  ;;  %v955_v41 = vrot.slane %v4558_v18, 4 }
  0x76   : > { %2078 = vrot.lane.b32.xlu0 %v4239_v54, %s3965_s27  ;;  %2269 = vrot.lane.b32.xlu2 %v2219_v27, %s3966_s23  ;;  %v1031_v54 = vsel %vm4323_vm11, %v1023_v13, %v1030_v29  ;;  %v952_v27 = vshll.u32 %v4541_v45, 16  ;;  %v4631_v60 = vrot.slane %v1717_v43, 7 }
  0x77   : > { %2249 = vrot.lane.b32.xlu1 %v2174_v42, %s3966_s23  ;;  %1153 = vst.msk [vmem:[#allocation2 + $0x74] sm:$0xf] %vm5836_vm3, %v1031_v54  ;;  %v875_v42 = vsel %vm4061_vm2, 0, %v874_v21 }
  0x78   : > { %v1240_v11 = vpop.permute.xlu2 %1239  ;;  %876 = vst [vmem:[#allocation2 + $0x30] sm:$0x1] %v875_v42  ;;  %v1363_v14 = vrot.slane %v952_v27, 5  ;;  %v954_v54 = vor.u32 %v952_v27, %v4558_v18 }
  0x79   : > { %1296 = vst.msk [vmem:[#allocation2 + $0x20] sm:$0xf] %vm5841_vm12, %v1240_v11  ;;  %v1037_v11 = vshll.u32 %v4543_v6, 16 }
  0x7e   : > { %1439 = vrot.lane.b32.xlu0 %v1370_v4, %s3963_s28  ;;  %1827 = vrot.lane.b32.xlu2 %v1663_v50, %s3964_s24  ;;  %v1593_v4 = vld [vmem:[%s4182_s26 + $0x20] sm:$0xff] }
  0x7f   : > { %1459 = vrot.lane.b32.xlu1 %v1415_v59, %s3963_s28  ;;  %v1364_v59 = vor.u32 %v1363_v14, %v1362_v24  ;;  %v1122_v63 = vld [vmem:[#allocation2 + $0x30] sm:$0xf]  ;;  %v4579_v20 = vpack.c.bf16 %v1593_v4, %v1593_v4 }
  0x80   : > { %v4526_v9 = vpop.permute.xlu2 %1435  ;;  %v1123_v39 = vsel %vm4160_vm5, %v954_v54, %v1122_v63 }
  0x81   : > { %1124 = vst [vmem:[#allocation2 + $0x30] sm:$0xf] %v1123_v39  ;;  %v1365_v32 = vrot.slane %v1364_v59, 4  ;;  %v1709_v62 = vshrl.u32 %v4579_v20, 16 }
  0x83   : > { %v1367_v27 = vsel %vm4260_vm10, %v1365_v32, %v4474_v28  ;;  %v4629_v28 = vrot.slane %v1709_v62, 7 }
  0x86   : > { %1833 = vrot.lane.b32.xlu0 %v1680_v34, %s3964_s24  ;;  %1873 = vrot.lane.b32.xlu2 %v1792_v53, %s3964_s24  ;;  %v1407_v34 = vrot.slane %v1034_v47, 4  ;;  %v1408_v53 = vrot.slane %v1037_v11, 5 }
  0x87   : > { %1843 = vrot.lane.b32.xlu1 %v1707_v15, %s3964_s24 }
  0x88   : > { %v4539_v57 = vpop.permute.xlu2 %1455  ;;  %v1409_v52 = vor.u32 %v1408_v53, %v1407_v34  ;;  %v805_v34 = vmul.f32 %v4078_v5, %v789_v2 }
  0x8a   : > { %v1410_v51 = vrot.slane %v1409_v52, 4 }
  0x8e   : > { %2050 = vrot.lane.b32.xlu0 %v4327_v0, %s3965_s27  ;;  %2241 = vrot.lane.b32.xlu2 %v2156_v26, %s3966_s23  ;;  %v4564_v0 = vrot.slane %v1034_v47, 7  ;;  %v4621_v26 = vrot.slane %v1794_v33, 7  ;;  %v1720_v47 = vshll.u32 %v4584_v8, 16 }
  0x8f   : > { %2054 = vrot.lane.b32.xlu1 %v4364_v61, %s3965_s27  ;;  %v1690_v61 = vrot.slane %v4384_v58, 4  ;;  %v4586_v58 = vpack.c.bf16 %v1604_v56, %v1604_v56  ;;  %v2184_v56 = vrot.slane %v1717_v43, 4 }
  0x90   : > { %v1242_v13 = vpop.permute.xlu0 %1241  ;;  %v4562_v29 = vpop.permute.xlu2 %1453  ;;  %v1039_v50 = vor.u32 %v1037_v11, %v4564_v0  ;;  %v1800_v18 = vrot.slane %v4621_v26, 4  ;;  %v1715_v11 = vrot.slane %v4629_v28, 4 }
  0x91   : > { %1297 = vst.msk [vmem:[#allocation2 + $0x24] sm:$0xf] %vm5841_vm12, %v1242_v13  ;;  %v1238_v17 = vpop.permute.xlu1 %1237  ;;  %v1802_v38 = vshrl.u32 %v4586_v58, 16  ;;  %v1805_v3 = vshll.u32 %v4586_v58, 16 }
  0x92   : > { %1295 = vst.msk [vmem:[#allocation2 + $0x14] sm:$0xf] %vm5841_vm12, %v1238_v17  ;;  %v1158_v23 = vsel %vm4160_vm5, %v1039_v50, %v1157_v48  ;;  %v1722_v50 = vor.u32 %v1720_v47, %v4631_v60 }
  0x93   : > { %1159 = vst [vmem:[#allocation2 + $0x80] sm:$0xf] %v1158_v23  ;;  %v4625_v42 = vrot.slane %v1802_v38, 7  ;;  %v4689_v43 = vrot.slane %v1805_v3, 5 }
  0x94   : > { %v1723_v63 = vsel %vm4323_vm11, %v1715_v11, %v1722_v50 }
  0x95   : > { %v1807_v24 = vor.u32 %v1805_v3, %v4625_v42 }
  0x96   : > { %2245 = vrot.lane.b32.xlu0 %v2165_v12, %s3966_s23  ;;  %1837 = vrot.lane.b32.xlu2 %v1690_v61, %s3964_s24  ;;  %v4658_v61 = vrot.slane %v1720_v47, 5 }
  0x97   : > { %1831 = vrot.lane.b32.xlu1 %v1673_v19, %s3964_s24  ;;  %v1808_v12 = vsel %vm4323_vm11, %v1800_v18, %v1807_v24  ;;  %v785_v19 = vld [vmem:[%s4086_s11 + $0x38] sm:$0xff] }
  0x98   : > { %v1497_v15 = vld [vmem:[#allocation2 + $0x24] sm:$0xf]  ;;  %v1262_v55 = vpop.permute.xlu0 %1261  ;;  %v4602_v37 = vpop.permute.xlu2 %2060  ;;  %v801_v39 = vmul.f32 %v4078_v5, %v785_v19 }
  0x99   : > { %v1498_v31 = vsel %vm4592_vm14, %v4526_v9, %v1497_v15  ;;  %1307 = vst.msk [vmem:[#allocation2 + $0x74] sm:$0xf] %vm5841_vm12, %v1262_v55  ;;  %v1234_v21 = vpop.permute.xlu1 %1233  ;;  %v962_v9 = vor.u32 %v960_v40, %v4423_v16  ;;  %v5858_v40 = vmov 0  ;;  %v1493_v4 = vld [vmem:[#allocation2 + $0x14] sm:$0xf] }
  0x9a   : > { %1499 = vst [vmem:[#allocation2 + $0x24] sm:$0xf] %v1498_v31  ;;  %v5859_v40 = vsel %vm4642_vm6, 4294967295, %v5858_v40 }
  0x9b   : > { %1293 = vst.msk [vmem:[#allocation2 + $0x4] sm:$0xf] %vm5841_vm12, %v1234_v21  ;;  %v963_v16 = vsel %vm4323_vm11, %v955_v41, %v962_v9  ;;  %v2229_v21 = vrot.slane %v1802_v38, 4 }
  0x9c   : > { %1125 = vst.msk [vmem:[#allocation2 + $0x34] sm:$0xf] %vm5836_vm3, %v963_v16 }
  0x9d   : > { %v2230_v16 = vor.u32 %v2229_v21, %v4689_v43 }
  0x9e   : > { %1243 = vrot.lane.b32.xlu0 %v4541_v45, %s3962_s14  ;;  %1437 = vrot.lane.b32.xlu2 %v1367_v27, %s3963_s28  ;;  %v4696_v27 = vld [vmem:[%s5833_s8] ss:$0 sm:$0xff] }
  0x9f   : > { %1263 = vrot.lane.b32.xlu1 %v4543_v6, %s3962_s14  ;;  %v817_v41 = vadd.f32 %v4696_v27, %v801_v39  ;;  %v821_v3 = vadd.f32 %v4696_v27, %v805_v34  ;;  %v2231_v11 = vrot.slane %v2230_v16, 4  ;;  %v2223_v39 = vrot.slane %v1794_v33, 4  ;;  %v877_v16 = vld [vmem:[#allocation2 + $0x40] sm:$0x1] }
  0xa0   : > { %v1517_v14 = vld [vmem:[#allocation2 + $0x74] sm:$0xf]  ;;  %v1260_v13 = vpop.permute.xlu0 %1259  ;;  %v1236_v45 = vpop.permute.xlu2 %1235 }
  0xa1   : > { %v1541_v17 = vld [vmem:[#allocation2 + $0x24] sm:$0x8]  ;;  %v1518_v54 = vsel %vm4592_vm14, %v4539_v57, %v1517_v14  ;;  %1306 = vst.msk [vmem:[#allocation2 + $0x70] sm:$0xf] %vm5841_vm12, %v1260_v13  ;;  %v1432_v6 = vpop.permute.xlu1 %1431  ;;  %v1412_v57 = vsel %vm4260_vm10, %v1410_v51, %v4482_v35  ;;  %v2185_v35 = vor.u32 %v2184_v56, %v4658_v61  ;;  %v833_v51 = vmax.f32 %v817_v41, 0.0 }
  0xa2   : > { %v1542_v30 = vsel %vm4642_vm6, 0, %v1541_v17  ;;  %1519 = vst [vmem:[#allocation2 + $0x74] sm:$0xf] %v1518_v54  ;;  %v1494_v59 = vsel %vm4592_vm14, %v1432_v6, %v1493_v4  ;;  %v1489_v48 = vld [vmem:[#allocation2 + $0x4] sm:$0xf]  ;;  %v837_v14 = vmax.f32 %v821_v3, 0.0 }
  0xa3   : > { %1543 = vst [vmem:[#allocation2 + $0x24] sm:$0x8] %v1542_v30  ;;  %v2186_v5 = vrot.slane %v2185_v35, 4  ;;  %v784_v17 = vld [vmem:[%s4086_s11 + $0x30] sm:$0xff]  ;;  %v1712_v30 = vshll.u32 %v4579_v20, 16  ;;  %v1797_v6 = vshll.u32 %v4588_v22, 16 }
  0xa4   : > { %1516 = vst.msk [vmem:[#allocation2 + $0x70] sm:$0xf] %vm5837_vm13, %v4562_v29  ;;  %v788_v54 = vld [vmem:[%s4086_s11 + $0x50] sm:$0xff]  ;;  %v4727_v56 = vpack.c.bf16 %v837_v14, %v837_v14  ;;  %v1133_v3 = vld [vmem:[#allocation2 + $0x48] sm:$0x1]  ;;  %v878_v14 = vsel %vm4061_vm2, 0, %v877_v16 }
  0xa5   : > { %1495 = vst [vmem:[#allocation2 + $0x14] sm:$0xf] %v1494_v59  ;;  %v2224_v19 = vrot.slane %v1797_v6, 5 }
  0xa6   : > { %1294 = vst.msk [vmem:[#allocation2 + $0x10] sm:$0xf] %vm5841_vm12, %v1236_v45  ;;  %1457 = vrot.lane.b32.xlu0 %v1412_v57, %s3963_s28  ;;  %1877 = vrot.lane.b32.xlu2 %v1808_v12, %s3964_s24  ;;  %v2179_v12 = vrot.slane %v1712_v30, 5  ;;  %v1011_v34 = vshll.u32 %v4727_v56, 16 }
  0xa7   : > { %1847 = vrot.lane.b32.xlu1 %v1723_v63, %s3964_s24  ;;  %v2178_v63 = vrot.slane %v1709_v62, 4  ;;  %v1047_v62 = vor.u32 %v1045_v7, %v4437_v25  ;;  %v2225_v25 = vor.u32 %v2224_v19, %v2223_v39  ;;  %879 = vst [vmem:[#allocation2 + $0x40] sm:$0x1] %v878_v14 }
  0xa8   : > { %v1428_v29 = vpop.permute.xlu0 %1427  ;;  %v1830_v23 = vpop.permute.xlu2 %1829 }
  0xa9   : > { %v1566_v32 = vld [vmem:[#allocation2 + $0x74] sm:$0x8]  ;;  %v1490_v15 = vsel %vm4592_vm14, %v1428_v29, %v1489_v48  ;;  %v1434_v31 = vpop.permute.xlu1 %1433  ;;  %v2180_v36 = vor.u32 %v2179_v12, %v2178_v63 }
  0xaa   : > { %v1567_v55 = vsel %vm4642_vm6, 0, %v1566_v32  ;;  %1491 = vst [vmem:[#allocation2 + $0x4] sm:$0xf] %v1490_v15  ;;  %v1040_v32 = vrot.slane %v4564_v0, 4  ;;  %v1799_v0 = vor.u32 %v1797_v6, %v4621_v26 }
  0xab   : > { %1568 = vst [vmem:[#allocation2 + $0x74] sm:$0x8] %v1567_v55  ;;  %v1648_v52 = vld [vmem:[#allocation2 + $0x70] sm:$0x1] }
  0xac   : > { %v1649_v9 = vsel %vm4681_vm9, 0, %v1648_v52  ;;  %v1536_v47 = vld [vmem:[#allocation2 + $0x14] sm:$0x8]  ;;  %1496 = vst.msk [vmem:[#allocation2 + $0x20] sm:$0xf] %vm5837_vm13, %v1434_v31  ;;  %v1714_v31 = vor.u32 %v1712_v30, %v4629_v28  ;;  %v1048_v21 = vsel %vm4323_vm11, %v1040_v32, %v1047_v62  ;;  %v4769_v52 = vrot.slane %v1011_v34, 5 }
  0xad   : > { %1650 = vst [vmem:[#allocation2 + $0x70] sm:$0x1] %v1649_v9  ;;  %v1537_v38 = vsel %vm4642_vm6, 0, %v1536_v47 }
  0xae   : > { %1538 = vst [vmem:[#allocation2 + $0x14] sm:$0x8] %v1537_v38  ;;  %2064 = vrot.lane.b32.xlu0 %v4584_v8, %s3965_s27  ;;  %2255 = vrot.lane.b32.xlu2 %v2186_v5, %s3966_s23  ;;  %v1147_v38 = vld [vmem:[#allocation2 + $0x68] sm:$0x1] }
  0xaf   : > { %2084 = vrot.lane.b32.xlu1 %v4586_v58, %s3965_s27  ;;  %v4720_v58 = vpack.c.bf16 %v833_v51, %v833_v51  ;;  %1160 = vst.msk [vmem:[#allocation2 + $0x84] sm:$0xf] %vm5836_vm3, %v1048_v21  ;;  %vm5838_vm3 = vcmask 1043456  }
  0xb0   : > { %v1842_v18 = vpop.permute.xlu0 %1841  ;;  %v4711_v24 = vpop.permute.xlu2 %2056 }
  0xb1   : > { %v1531_v13 = vld [vmem:[#allocation2 + $0x4] sm:$0x8]  ;;  %1937 = vst.msk [vmem:[#allocation2 + $0x24] sm:$0xf] %vm5840_vm1, %v1842_v18  ;;  %v1872_v45 = vpop.permute.xlu1 %1871  ;;  %v974_v2 = vshrl.u32 %v4720_v58, 16  ;;  %v977_v35 = vshll.u32 %v4720_v58, 16 }
  0xb2   : > { %v1532_v8 = vsel %vm4642_vm6, 0, %v1531_v13  ;;  %2116 = vst.msk [vmem:[#allocation2 + $0x24] sm:$0xf] %vm5843_vm15, %v4602_v37  ;;  %v4732_v37 = vld [vmem:[%s5832_s7] ss:$0 sm:$0xff]  ;;  %v2226_v13 = vrot.slane %v2225_v25, 4 }
  0xb3   : > { %1533 = vst [vmem:[#allocation2 + $0x4] sm:$0x8] %v1532_v8  ;;  %v1633_v4 = vld [vmem:[#allocation2 + $0x20] sm:$0x1]  ;;  %v800_v59 = vmul.f32 %v4732_v37, %v784_v17  ;;  %v804_v57 = vmul.f32 %v4732_v37, %v788_v54  ;;  %v4765_v7 = vrot.slane %v977_v35, 5  ;;  %v1377_v5 = vrot.slane %v974_v2, 4 }
  0xb4   : > { %v1634_v50 = vsel %vm4681_vm9, 0, %v1633_v4  ;;  %1923 = vst.msk [vmem:[#allocation2 + $0x4] sm:$0xf] %vm5840_vm1, %v1830_v23  ;;  %v1008_v23 = vshrl.u32 %v4727_v56, 16  ;;  %v4772_v28 = vrot.slane %v974_v2, 7  ;;  %v2228_v6 = vsel %vm4260_vm10, %v2226_v13, %v4689_v43 }
  0xb5   : > { %1635 = vst [vmem:[#allocation2 + $0x20] sm:$0x1] %v1634_v50  ;;  %v816_v15 = vadd.f32 %v4696_v27, %v800_v59  ;;  %v820_v33 = vadd.f32 %v4696_v27, %v804_v57  ;;  %v1378_v50 = vor.u32 %v1377_v5, %v4765_v7 }
  0xb6   : > { %1972 = vst.msk [vmem:[#allocation2 + $0x74] sm:$0xf] %vm5840_vm1, %v1872_v45  ;;  %2275 = vrot.lane.b32.xlu0 %v2231_v11, %s3966_s23  ;;  %1257 = vrot.lane.b32.xlu2 %v4727_v56, %s3962_s14  ;;  %v1395_v41 = vrot.slane %v1008_v23, 4  ;;  %v4774_v9 = vrot.slane %v1008_v23, 7  ;;  %v981_v51 = vrot.slane %v4772_v28, 4  ;;  %v2181_v11 = vrot.slane %v2180_v36, 4 }
  0xb7   : > { %1249 = vrot.lane.b32.xlu1 %v4720_v58, %s3962_s14  ;;  %v832_v47 = vmax.f32 %v816_v15, 0.0  ;;  %v836_v26 = vmax.f32 %v820_v33, 0.0  ;;  %v1379_v19 = vrot.slane %v1378_v50, 4  ;;  %v1129_v23 = vld [vmem:[#allocation2 + $0x40] sm:$0xf]  ;;  %v1724_v33 = vrot.slane %v4631_v60, 4 }
  0xb8   : > { %v2081_v29 = vpop.permute.xlu0 %2080  ;;  %v1246_v48 = vpop.permute.xlu2 %1245  ;;  %v1015_v18 = vrot.slane %v4774_v9, 4  ;;  %v1396_v30 = vor.u32 %v1395_v41, %v4769_v52  ;;  %v2183_v57 = vsel %vm4260_vm10, %v2181_v11, %v4658_v61  ;;  %v1596_v36 = vld [vmem:[%s4182_s26 + $0x38] sm:$0xff] }
  0xb9   : > { %2126 = vst.msk [vmem:[#allocation2 + $0x74] sm:$0xf] %vm5843_vm15, %v2081_v29  ;;  %v1232_v55 = vpop.permute.xlu1 %1231  ;;  %v4791_v54 = vpack.c.bf16 %v832_v47, %v832_v47  ;;  %v4799_v59 = vpack.c.bf16 %v836_v26, %v836_v26  ;;  %v3526_v26 = vld [vmem:[%s5831_s6 + $0x14] sm:$0xf]  ;;  %v2313_v11 = vld [vmem:[#allocation2 + $0x24] sm:$0xf] }
  0xba   : > { %1299 = vst.msk [vmem:[#allocation2 + $0x34] sm:$0xf] %vm5841_vm12, %v1246_v48  ;;  %v1148_v17 = vsel %vm4061_vm2, %v1015_v18, %v1147_v38  ;;  %v1397_v63 = vrot.slane %v1396_v30, 4  ;;  %v2553_v16 = vunpack.c.l.b16 %v3526_v26 }
  0xbb   : > { %1292 = vst.msk [vmem:[#allocation2] sm:$0xf] %vm5841_vm12, %v1232_v55  ;;  %v966_v12 = vshrl.u32 %v4791_v54, 16  ;;  %v969_v43 = vshll.u32 %v4791_v54, 16  ;;  %v1000_v39 = vshrl.u32 %v4799_v59, 16  ;;  %v1003_v47 = vshll.u32 %v4799_v59, 16 }
  0xbc   : > { %1149 = vst [vmem:[#allocation2 + $0x68] sm:$0x1] %v1148_v17  ;;  %v1600_v17 = vld [vmem:[%s4182_s26 + $0x58] sm:$0xff] }
  0xbd   : > { %v4808_v2 = vrot.slane %v966_v12, 7  ;;  %v1371_v14 = vrot.slane %v966_v12, 4  ;;  %v1372_v13 = vrot.slane %v969_v43, 5  ;;  %v4867_v12 = vld [vmem:[%s5831_s6 + $0x18] sm:$0xff] }
  0xbe   : > { %1845 = vrot.lane.b32.xlu0 %v1714_v31, %s3964_s24  ;;  %2062 = vrot.lane.b32.xlu2 %v4579_v20, %s3965_s27  ;;  %v1134_v20 = vsel %vm4061_vm2, %v981_v51, %v1133_v3  ;;  %v4839_v3 = vpack.c.bf16 %v1596_v36, %v1596_v36  ;;  %v1595_v51 = vld [vmem:[%s4182_s26 + $0x30] sm:$0xff] }
  0xbf   : > { %1875 = vrot.lane.b32.xlu1 %v1799_v0, %s3964_s24  ;;  %1135 = vst [vmem:[#allocation2 + $0x48] sm:$0x1] %v1134_v20  ;;  %v971_v15 = vor.u32 %v969_v43, %v4808_v2  ;;  %v1599_v20 = vld [vmem:[%s4182_s26 + $0x50] sm:$0xff] }
  0xc0   : > { %v1426_v8 = vpop.permute.xlu0 %1425  ;;  %v4784_v45 = vpop.permute.xlu2 %2247  ;;  %v1737_v36 = vshll.u32 %v4839_v3, 16 }
  0xc1   : > { %1486 = vst.msk [vmem:[#allocation2] sm:$0xf] %vm5837_vm13, %v1426_v8  ;;  %v1430_v4 = vpop.permute.xlu1 %1429  ;;  %v4853_v8 = vpack.c.bf16 %v1595_v51, %v1595_v51 }
  0xc2   : > { %1492 = vst.msk [vmem:[#allocation2 + $0x10] sm:$0xf] %vm5837_vm13, %v1430_v4  ;;  %vm4847_vm13 = vmand %vm5839_vm8, %vm1332_vm7  ;;  %v2555_v4 = vpack.c.b16 %v2553_v16, %v2553_v16  ;;  %vm2344_vm7 = vcmask 191651  }
  0xc3   : > { %v1195_v5 = vld [vmem:[#allocation2 + $0x68] sm:$0xf]  ;;  %vm4909_vm8 = vmand %vm2344_vm7, %vm1529_vm0  ;;  %vm5869_vm0 = vcmask 27648  }
  0xc4   : > { %v1196_v60 = vsel %vm4160_vm5, 0, %v1195_v5  ;;  %vm5870_vm7 = vmmov %vm5869_vm0 }
  0xc5   : > { %1197 = vst [vmem:[#allocation2 + $0x68] sm:$0xf] %v1196_v60 }
  0xc6   : > { %2082 = vrot.lane.b32.xlu0 %v4588_v22, %s3965_s27  ;;  %2273 = vrot.lane.b32.xlu2 %v2228_v6, %s3966_s23  ;;  %v3697_v22 = vld [vmem:[%s5831_s6 + $0x20] sm:$0xf]  ;;  %v1187_v62 = vld [vmem:[#allocation2 + $0x48] sm:$0xf]  ;;  %v1809_v6 = vrot.slane %v4625_v42, 4  ;;  %v1734_v42 = vshrl.u32 %v4839_v3, 16 }
  0xc7   : > { %2253 = vrot.lane.b32.xlu1 %v2183_v57, %s3966_s23  ;;  %v3018_v55 = vunpack.c.l.b16 %v3697_v22  ;;  %v1188_v0 = vsel %vm4160_vm5, 0, %v1187_v62  ;;  %v1389_v57 = vrot.slane %v1000_v39, 4  ;;  %v4876_v62 = vpack.c.bf16 %v1599_v20, %v1599_v20 }
  0xc8   : > { %v1627_v29 = vld [vmem:[#allocation2] sm:$0x1]  ;;  %v1836_v61 = vpop.permute.xlu0 %1835  ;;  %v4813_v48 = vpop.permute.xlu2 %2058  ;;  %1189 = vst [vmem:[#allocation2 + $0x48] sm:$0xf] %v1188_v0  ;;  %v4895_v0 = vrot.slane %v1734_v42, 7 }
  0xc9   : > { %v1628_v32 = vsel %vm4681_vm9, 0, %v1627_v29  ;;  %1930 = vst.msk [vmem:[#allocation2 + $0x14] sm:$0xf] %vm5840_vm1, %v1836_v61  ;;  %v1630_v31 = vld [vmem:[#allocation2 + $0x10] sm:$0x1]  ;;  %v2053_v21 = vpop.permute.xlu1 %2052  ;;  %v3020_v41 = vpack.c.b16 %v3018_v55, %v3018_v55  ;;  %v2608_v29 = vsel %vm5838_vm3, %v2555_v4, 0 }
  0xca   : > { %1629 = vst [vmem:[#allocation2] sm:$0x1] %v1628_v32  ;;  %v1631_v25 = vsel %vm4681_vm9, 0, %v1630_v31  ;;  %v1373_v32 = vor.u32 %v1372_v13, %v1371_v14  ;;  %3851 = vmatpush.bf16.msra.mxu3 %v2608_v29  ;;  %2616 = vmatpush.bf16.msra.mxu0 %v2608_v29  ;;  %v3833_v31 = vld [vmem:[%s5831_s6 + $0xc] sm:$0xff]  ;;  %v1739_v16 = vor.u32 %v1737_v36, %v4895_v0 }
  0xcb   : > { %2114 = vst.msk [vmem:[#allocation2 + $0x14] sm:$0xf] %vm5843_vm15, %v4711_v24  ;;  %v1130_v24 = vsel %vm4160_vm5, %v971_v15, %v1129_v23  ;;  %v4842_v38 = vsel %vm5838_vm3, %v3020_v41, 0  ;;  %v2333_v23 = vld [vmem:[#allocation2 + $0x74] sm:$0xf]  ;;  %v4878_v15 = vpack.c.bf16 %v1600_v17, %v1600_v17  ;;  %vm4901_vm3 = vmand %vm5840_vm1, %vm1098_vm4  ;;  %v1760_v41 = vshrl.u32 %v4876_v62, 16 }
  0xcc   : > { %1632 = vst [vmem:[#allocation2 + $0x10] sm:$0x1] %v1631_v25  ;;  %3079 = vmatpush.bf16.msra.mxu2 %v4842_v38  ;;  %v1374_v5 = vrot.slane %v1373_v32, 4  ;;  %vm5868_vm4 = vcmask 158848   ;;  %vm5874_vm1 = vmmov %vm5869_vm0 }
  0xcd   : > { %2112 = vst.msk [vmem:[#allocation2 + $0x4] sm:$0xf] %vm5843_vm15, %v2053_v21  ;;  %v1768_v26 = vshrl.u32 %v4878_v15, 16 }
  0xce   : > { %1443 = vrot.lane.b32.xlu0 %v1379_v19, %s3963_s28  ;;  %1849 = vrot.lane.b32.xlu2 %v1724_v33, %s3964_s24  ;;  %1131 = vst [vmem:[#allocation2 + $0x40] sm:$0xf] %v1130_v24  ;;  %v1726_v19 = vshrl.u32 %v4853_v8, 16 }
  0xcf   : > { %1451 = vrot.lane.b32.xlu1 %v1397_v63, %s3963_s28  ;;  %v1390_v63 = vrot.slane %v1003_v47, 5  ;;  %3852 = vmatpush.bf16.msra.mxu3 %v3833_v31  ;;  %v4932_v29 = vrot.slane %v1768_v26, 7 }
  0xd0   : > { %v2252_v50 = vpop.permute.xlu0 %2251  ;;  %v4859_v30 = vpop.permute.xlu2 %2269  ;;  %3080 = vmatpush.bf16.msra.mxu2 %v4867_v12  ;;  %v4891_v21 = vrot.slane %v1726_v19, 7  ;;  %2617 = vmatpush.bf16.msra.mxu0 %v3833_v31 }
  0xd1   : > { %v2314_v43 = vsel %vm4847_vm13, %v2252_v50, %v2313_v11  ;;  %v2272_v22 = vpop.permute.xlu1 %2271  ;;  %v1919_v14 = vld [vmem:[#allocation2] sm:$0xf] }
  0xd2   : > { %v2309_v61 = vld [vmem:[#allocation2 + $0x14] sm:$0xf]  ;;  %2315 = vst [vmem:[#allocation2 + $0x24] sm:$0xf] %v2314_v43  ;;  %v2334_v55 = vsel %vm4847_vm13, %v2272_v22, %v2333_v23  ;;  %v1732_v24 = vrot.slane %v4891_v21, 4 }
  0xd3   : > { %v2310_v33 = vsel %vm4847_vm13, %v4784_v45, %v2309_v61  ;;  %2335 = vst [vmem:[#allocation2 + $0x74] sm:$0xf] %v2334_v55  ;;  %v1391_v45 = vor.u32 %v1390_v63, %v1389_v57  ;;  %v4928_v57 = vrot.slane %v1760_v41, 7  ;;  %v1771_v61 = vshll.u32 %v4878_v15, 16 }
  0xd4   : > { %2311 = vst [vmem:[#allocation2 + $0x14] sm:$0xf] %v2310_v33  ;;  %v2305_v50 = vld [vmem:[#allocation2 + $0x4] sm:$0xf]  ;;  %v1740_v23 = vsel %vm4323_vm11, %v1732_v24, %v1739_v16  ;;  %v1934_v24 = vld [vmem:[#allocation2 + $0x20] sm:$0xf] }
  0xd5   : > { %v1392_v17 = vrot.slane %v1391_v45, 4  ;;  %v1766_v55 = vrot.slane %v4928_v57, 4  ;;  %v1773_v31 = vor.u32 %v1771_v61, %v4932_v29  ;;  %v3967_v45 = vmov 0   ;;  %v1969_v16 = vld [vmem:[#allocation2 + $0x70] sm:$0xf] }
  0xd6   : > { %1879 = vrot.lane.b32.xlu0 %v1809_v6, %s3964_s24  ;;  %1255 = vrot.lane.b32.xlu2 %v4799_v59, %s3962_s14  ;;  %1326 = vst.msk [vmem:[#allocation2 + $0x78] sm:$0xf] %vm5841_vm12, %v3967_v45 }
  0xd7   : > { %1247 = vrot.lane.b32.xlu1 %v4791_v54, %s3962_s14  ;;  %v1376_v54 = vsel %vm4260_vm10, %v1374_v5, %v4765_v7  ;;  %v1394_v33 = vsel %vm4260_vm10, %v1392_v17, %v4769_v52  ;;  %1569 = vst.msk [vmem:[#allocation2 + $0x78] sm:$0xf] %vm5868_vm4, %v3967_v45  ;;  %v1774_v17 = vsel %vm4323_vm11, %v1766_v55, %v1773_v31  ;;  %vm5871_vm4 = vmmov %vm5869_vm0 }
  0xd8   : > { %v1266_v51 = vpop.permute.xlu0 %1265  ;;  %v1828_v13 = vpop.permute.xlu2 %1827  ;;  %1174 = vst.msk [vmem:[#allocation2 + $0xc] sm:$0xf] %vm5869_vm0, %v3967_v45 }
  0xd9   : > { %v2356_v11 = vld [vmem:[#allocation2 + $0x24] sm:$0x8]  ;;  %1309 = vst.msk [vmem:[#allocation2 + $0x84] sm:$0xf] %vm5841_vm12, %v1266_v51  ;;  %v1920_v20 = vsel %vm4901_vm3, %v1828_v13, %v1919_v14  ;;  %v2244_v6 = vpop.permute.xlu1 %2243  ;;  %v4957_v14 = vrot.slane %v1737_v36, 5  ;;  %v2193_v13 = vrot.slane %v1734_v42, 4  ;;  %vm5875_vm12 = vmmov %vm5869_vm0 }
  0xda   : > { %v2357_v4 = vsel %vm4909_vm8, 0, %v2356_v11  ;;  %1921 = vst [vmem:[#allocation2] sm:$0xf] %v1920_v20  ;;  %v2306_v63 = vsel %vm4847_vm13, %v2244_v6, %v2305_v50  ;;  %v2381_v7 = vld [vmem:[#allocation2 + $0x74] sm:$0x8]  ;;  %v4969_v50 = vrot.slane %v1771_v61, 5 }
  0xdb   : > { %v2351_v43 = vld [vmem:[#allocation2 + $0x14] sm:$0x8]  ;;  %2358 = vst [vmem:[#allocation2 + $0x24] sm:$0x8] %v2357_v4  ;;  %v2382_v32 = vsel %vm4909_vm8, 0, %v2381_v7  ;;  %v2211_v36 = vrot.slane %v1768_v26, 4  ;;  %v2194_v42 = vor.u32 %v2193_v13, %v4957_v14 }
  0xdc   : > { %v2352_v22 = vsel %vm4909_vm8, 0, %v2351_v43  ;;  %2307 = vst [vmem:[#allocation2 + $0x4] sm:$0xf] %v2306_v63  ;;  %v1729_v61 = vshll.u32 %v4853_v8, 16 }
  0xdd   : > { %2353 = vst [vmem:[#allocation2 + $0x14] sm:$0x8] %v2352_v22  ;;  %v2212_v26 = vor.u32 %v2211_v36, %v4969_v50  ;;  %v2195_v63 = vrot.slane %v2194_v42, 4  ;;  %v1763_v22 = vshll.u32 %v4876_v62, 16  ;;  %v787_v42 = vld [vmem:[%s4086_s11 + $0x48] sm:$0xff] }
  0xde   : > { %2383 = vst [vmem:[#allocation2 + $0x74] sm:$0x8] %v2382_v32  ;;  %1441 = vrot.lane.b32.xlu0 %v1376_v54, %s3963_s28  ;;  %1853 = vrot.lane.b32.xlu2 %v1740_v23, %s3964_s24  ;;  %v1501_v23 = vld [vmem:[#allocation2 + $0x34] sm:$0xf] }
  0xdf   : > { %1449 = vrot.lane.b32.xlu1 %v1394_v33, %s3963_s28  ;;  %1178 = vst.msk [vmem:[#allocation2 + $0x1c] sm:$0xf] %vm5870_vm7, %v3967_v45  ;;  %vm5872_vm7 = vcmask 191648  }
  0xe0   : > { %v1840_v5 = vpop.permute.xlu0 %1839  ;;  %1182 = vst.msk [vmem:[#allocation2 + $0x2c] sm:$0xf] %vm5871_vm4, %v3967_v45  ;;  %v1874_v54 = vpop.permute.xlu2 %1873  ;;  %vm5873_vm4 = vmmov %vm5872_vm7  ;;  %v1521_v33 = vld [vmem:[#allocation2 + $0x84] sm:$0xf] }
  0xe1   : > { %v1935_v52 = vsel %vm4901_vm3, %v1840_v5, %v1934_v24  ;;  %v1870_v51 = vpop.permute.xlu1 %1869  ;;  %1186 = vst.msk [vmem:[#allocation2 + $0x3c] sm:$0xf] %vm5869_vm0, %v3967_v45  ;;  %v1731_v5 = vor.u32 %v1729_v61, %v4891_v21 }
  0xe2   : > { %1936 = vst [vmem:[#allocation2 + $0x20] sm:$0xf] %v1935_v52  ;;  %v1970_v20 = vsel %vm4901_vm3, %v1870_v51, %v1969_v16  ;;  %v1765_v51 = vor.u32 %v1763_v22, %v4928_v57 }
  0xe3   : > { %v2346_v11 = vld [vmem:[#allocation2 + $0x4] sm:$0x8]  ;;  %2115 = vst.msk [vmem:[#allocation2 + $0x20] sm:$0xf] %vm5843_vm15, %v4813_v48  ;;  %v1973_v48 = vld [vmem:[#allocation2 + $0x78] sm:$0x1] }
  0xe4   : > { %v2347_v4 = vsel %vm4909_vm8, 0, %v2346_v11  ;;  %1971 = vst [vmem:[#allocation2 + $0x70] sm:$0xf] %v1970_v20  ;;  %v1974_v43 = vsel %vm4681_vm9, %v1874_v54, %v1973_v48  ;;  %v2188_v20 = vrot.slane %v1729_v61, 5  ;;  %v786_v61 = vld [vmem:[%s4086_s11 + $0x40] sm:$0xff] }
  0xe5   : > { %2348 = vst [vmem:[#allocation2 + $0x4] sm:$0x8] %v2347_v4 }
  0xe6   : > { %1865 = vrot.lane.b32.xlu0 %v1774_v17, %s3964_s24  ;;  %2076 = vrot.lane.b32.xlu2 %v4878_v15, %s3965_s27  ;;  %1975 = vst [vmem:[#allocation2 + $0x78] sm:$0x1] %v1974_v43  ;;  %v2187_v17 = vrot.slane %v1726_v19, 4  ;;  %v1927_v43 = vld [vmem:[#allocation2 + $0x10] sm:$0xf] }
  0xe7   : > { %2068 = vrot.lane.b32.xlu1 %v4839_v3, %s3965_s27  ;;  %v2213_v3 = vrot.slane %v2212_v26, 4  ;;  %1190 = vst.msk [vmem:[#allocation2 + $0x4c] sm:$0xf] %vm5874_vm1, %v3967_v45  ;;  %vm5877_vm1 = vmmov %vm5869_vm0 }
  0xe8   : > { %v2079_v6 = vpop.permute.xlu0 %2078  ;;  %1194 = vst.msk [vmem:[#allocation2 + $0x5c] sm:$0xf] %vm5869_vm0, %v3967_v45  ;;  %v2189_v4 = vor.u32 %v2188_v20, %v2187_v17  ;;  %v5099_v54 = vpop.permute.xlu2 %2241  ;;  %v1741_v20 = vrot.slane %v4895_v0, 4  ;;  %v3816_v0 = vld [vmem:[%s5831_s6] sm:$0xff] }
  0xe9   : > { %2125 = vst.msk [vmem:[#allocation2 + $0x70] sm:$0xf] %vm5843_vm15, %v2079_v6  ;;  %v2250_v15 = vpop.permute.xlu1 %2249  ;;  %v803_v6 = vmul.f32 %v4732_v37, %v787_v42 }
  0xea   : > { %2332 = vst.msk [vmem:[#allocation2 + $0x70] sm:$0xf] %vm5872_vm7, %v4859_v30  ;;  %vm5842_vm7 = vcmask 195584   ;;  %v2190_v36 = vrot.slane %v2189_v4, 4 }
  0xeb   : > { %2312 = vst.msk [vmem:[#allocation2 + $0x20] sm:$0xf] %vm5873_vm4, %v2250_v15  ;;  %vm5876_vm4 = vmmov %vm5869_vm0  ;;  %v819_v26 = vadd.f32 %v4696_v27, %v803_v6 }
  0xec   : > { %1198 = vst.msk [vmem:[#allocation2 + $0x6c] sm:$0xf] %vm5875_vm12, %v3967_v45  ;;  %vm5878_vm12 = vmmov %vm5869_vm0  ;;  %vm5879_vm0 = vcmask 191648   ;;  %v2192_v19 = vsel %vm4260_vm10, %v2190_v36, %v4957_v14 }
  0xed   : > { %1202 = vst.msk [vmem:[#allocation2 + $0x7c] sm:$0xf] %vm5876_vm4, %v3967_v45  ;;  %v2018_v52 = vld [vmem:[#allocation2 + $0x78] sm:$0xf]  ;;  %vm5880_vm4 = vcmask 93248   ;;  %v835_v15 = vmax.f32 %v819_v26, 0.0 }
  0xee   : > { %2259 = vrot.lane.b32.xlu0 %v2195_v63, %s3966_s23  ;;  %1206 = vst.msk [vmem:[#allocation2 + $0x8c] sm:$0xf] %vm5877_vm1, %v3967_v45  ;;  %v2019_v16 = vsel %vm4901_vm3, 0, %v2018_v52  ;;  %vm5881_vm1 = vmmov %vm5880_vm4 }
  0xef   : > { %2267 = vrot.lane.b32.xlu1 %v2213_v3, %s3966_s23  ;;  %1210 = vst.msk [vmem:[#allocation2 + $0x9c] sm:$0xf] %vm5878_vm12, %v3967_v45  ;;  %vm5882_vm12 = vmmov %vm5881_vm1  ;;  %v5109_v3 = vpack.c.bf16 %v835_v15, %v835_v15  ;;  %v2205_v15 = vrot.slane %v1760_v41, 4 }
  0xf0   : > { %v1440_v30 = vpop.permute.xlu0 %1439  ;;  %2020 = vst [vmem:[#allocation2 + $0x78] sm:$0xf] %v2019_v16 }
  0xf1   : > { %v1502_v7 = vsel %vm4592_vm14, %v1440_v30, %v1501_v23  ;;  %v3829_v32 = vld [vmem:[#allocation2 + $0x70] sm:$0xff]  ;;  %v1460_v55 = vpop.permute.xlu1 %1459  ;;  %2145 = vst.msk [vmem:[#allocation2 + $0x78] sm:$0xf] %vm5843_vm15, %v3967_v45  ;;  %1253 = vrot.lane.b32.xlu2 %v5109_v3, %s3962_s14  ;;  %v2430_v23 = vld [vmem:[%s5831_s6 + $0x8] sm:$0xf] }
  0xf2   : > { %1503 = vst [vmem:[#allocation2 + $0x34] sm:$0xf] %v1502_v7  ;;  %v3834_v31 = vld [vmem:[#allocation2 + $0x20] sm:$0xff]  ;;  %v1522_v24 = vsel %vm4592_vm14, %v1460_v55, %v1521_v33  ;;  %3607 = vmatmul.msk.bf16.vlgmr.msra.gmra.mxu3 %vm5842_vm7, %v3829_v32  ;;  %v991_v7 = vshrl.u32 %v5109_v3, 16  ;;  %v994_v32 = vshll.u32 %v5109_v3, 16  ;;  %v802_v33 = vmul.f32 %v4732_v37, %v786_v61 }
  0xf3   : > { %1523 = vst [vmem:[#allocation2 + $0x84] sm:$0xf] %v1522_v24  ;;  %3766 = vmatmul.msk.bf16.vlgmr.msra.gmra.mxu2 %vm5842_vm7, %v3834_v31  ;;  %v2768_v55 = vunpack.c.l.b16 %v2430_v23 }
  0xf4   : > { %2384 = vst.msk [vmem:[#allocation2 + $0x78] sm:$0xf] %vm5879_vm0, %v3967_v45  ;;  %vm5883_vm0 = vmmov %vm5881_vm1  ;;  %v1386_v24 = vrot.slane %v991_v7, 4  ;;  %v818_v52 = vadd.f32 %v4696_v27, %v802_v33 }
  0xf5   : > { %1312 = vst.msk [vmem:[#allocation2 + $0x8] sm:$0xf] %vm5880_vm4, %v3967_v45  ;;  %vm5884_vm4 = vmmov %vm5883_vm0  ;;  %v2770_v16 = vpack.c.b16 %v2768_v55, %v2768_v55  ;;  %v1598_v55 = vld [vmem:[%s4182_s26 + $0x48] sm:$0xff] }
  0xf6   : > { %1851 = vrot.lane.b32.xlu0 %v1731_v5, %s3964_s24  ;;  %1314 = vst.msk [vmem:[#allocation2 + $0x18] sm:$0xf] %vm5881_vm1, %v3967_v45  ;;  %vm5885_vm1 = vmmov %vm5883_vm0  ;;  %v1384_v5 = vrot.slane %v994_v32, 5 }
  0xf7   : > { %1863 = vrot.lane.b32.xlu1 %v1765_v51, %s3964_s24  ;;  %1316 = vst.msk [vmem:[#allocation2 + $0x28] sm:$0xf] %vm5882_vm12, %v3967_v45  ;;  %vm5886_vm12 = vmmov %vm5883_vm0 }
  0xf8   : > { %1318 = vst.msk [vmem:[#allocation2 + $0x38] sm:$0xf] %vm5883_vm0, %v3967_v45  ;;  %vm5887_vm7 = vmmov %vm5883_vm0  ;;  %v1834_v14 = vpop.permute.xlu0 %1833  ;;  %v1387_v51 = vor.u32 %v1386_v24, %v1384_v5 }
  0xf9   : > { %v1546_v21 = vld [vmem:[#allocation2 + $0x34] sm:$0x8]  ;;  %1320 = vst.msk [vmem:[#allocation2 + $0x48] sm:$0xf] %vm5884_vm4, %v3967_v45  ;;  %vm5888_vm4 = vmmov %vm5883_vm0  ;;  %v1844_v48 = vpop.permute.xlu1 %1843  ;;  %v1928_v63 = vsel %vm4901_vm3, %v1834_v14, %v1927_v43  ;;  %2066 = vrot.lane.b32.xlu2 %v4853_v8, %s3965_s27  ;;  %v2206_v8 = vrot.slane %v1763_v22, 5 }
  0xfa   : > { %v1547_v57 = vsel %vm4642_vm6, 0, %v1546_v21  ;;  %v1571_v13 = vld [vmem:[#allocation2 + $0x84] sm:$0x8]  ;;  %1324 = vst.msk [vmem:[#allocation2 + $0x68] sm:$0xf] %vm5885_vm1, %v3967_v45  ;;  %vm5889_vm15 = vmmov %vm5883_vm0  ;;  %v834_v21 = vmax.f32 %v818_v52, 0.0 }
  0xfb   : > { %1548 = vst [vmem:[#allocation2 + $0x34] sm:$0x8] %v1547_v57  ;;  %v1572_v11 = vsel %vm4642_vm6, 0, %v1571_v13  ;;  %vm5890_vm1 = vmmov %vm5883_vm0  ;;  %v1388_v27 = vrot.slane %v1387_v51, 4 }
  0xfc   : > { %1573 = vst [vmem:[#allocation2 + $0x84] sm:$0x8] %v1572_v11  ;;  %v5142_v11 = vpop.permute.xlu2 %1837  ;;  %v5147_v17 = vpack.c.bf16 %v834_v21, %v834_v21 }
  0xfd   : > { %1328 = vst.msk [vmem:[#allocation2 + $0x88] sm:$0xf] %vm5886_vm12, %v3967_v45  ;;  %vm5891_vm12 = vmmov %vm5883_vm0 }
  0xfe   : > { %2074 = vrot.lane.b32.xlu0 %v4876_v62, %s3965_s27  ;;  %1313 = vst.msk [vmem:[#allocation2 + $0xc] sm:$0xf] %vm5883_vm0, %v3967_v45  ;;  %v983_v36 = vshrl.u32 %v5147_v17, 16 }
  0xff   : > { %1315 = vst.msk [vmem:[#allocation2 + $0x1c] sm:$0xf] %vm5887_vm7, %v3967_v45  ;;  %2257 = vrot.lane.b32.xlu1 %v2192_v19, %s3966_s23  ;;  %vm5892_vm7 = vmmov %vm5883_vm0  ;;  %v986_v19 = vshll.u32 %v5147_v17, 16 }
 0x100   : > { %1317 = vst.msk [vmem:[#allocation2 + $0x2c] sm:$0xf] %vm5888_vm4, %v3967_v45  ;;  %vm5894_vm4 = vmmov %vm5883_vm0  ;;  %v5114_v30 = vpop.permute.xlu0 %2050 }
 0x101   : > { %1319 = vst.msk [vmem:[#allocation2 + $0x3c] sm:$0xf] %vm5889_vm15, %v3967_v45  ;;  %vm5893_vm15 = vmmov %vm5883_vm0  ;;  %v5128_v31 = vpop.permute.xlu1 %2054  ;;  %v1381_v6 = vrot.slane %v986_v19, 5 }
 0x102   : > { %1321 = vst.msk [vmem:[#allocation2 + $0x4c] sm:$0xf] %vm5890_vm1, %v3967_v45  ;;  %vm5895_vm1 = vcmask 158848  }
 0x103   : > { %1323 = vst.msk [vmem:[#allocation2 + $0x5c] sm:$0xf] %vm5891_vm12, %v3967_v45  ;;  %vm5896_vm6 = vmmov %vm5895_vm1 }
 0x104   : > { %1325 = vst.msk [vmem:[#allocation2 + $0x6c] sm:$0xf] %vm5892_vm7, %v3967_v45  ;;  %vm5897_vm12 = vmmov %vm5895_vm1 }
 0x105   : > { %1327 = vst.msk [vmem:[#allocation2 + $0x7c] sm:$0xf] %vm5883_vm0, %v3967_v45  ;;  %vm5898_vm7 = vmmov %vm5895_vm1 }
 0x106   : > { %1329 = vst.msk [vmem:[#allocation2 + $0x8c] sm:$0xf] %vm5893_vm15, %v3967_v45  ;;  %vm5899_vm0 = vmmov %vm5895_vm1  ;;  %1447 = vrot.lane.b32.xlu0 %v1388_v27, %s3963_s28 }
 0x107   : > { %1331 = vst.msk [vmem:[#allocation2 + $0x9c] sm:$0xf] %vm5894_vm4, %v3967_v45  ;;  %vm5900_vm15 = vmmov %vm5899_vm0  ;;  %1855 = vrot.lane.b32.xlu1 %v1741_v20, %s3964_s24  ;;  %v5259_v20 = vrot.slane %v991_v7, 7 }
 0x108   : > { %1534 = vst.msk [vmem:[#allocation2 + $0x8] sm:$0xf] %vm5895_vm1, %v3967_v45  ;;  %vm5901_vm4 = vmmov %vm5899_vm0  ;;  %v5168_v14 = vpop.permute.xlu0 %2245 }
 0x109   : > { %1539 = vst.msk [vmem:[#allocation2 + $0x18] sm:$0xf] %vm5896_vm6, %v3967_v45  ;;  %vm5902_vm1 = vmmov %vm5899_vm0  ;;  %v5170_v42 = vpop.permute.xlu1 %1831  ;;  %v998_v7 = vrot.slane %v5259_v20, 4 }
 0x10a   : > { %1544 = vst.msk [vmem:[#allocation2 + $0x28] sm:$0xf] %vm5897_vm12, %v3967_v45  ;;  %vm5903_vm6 = vmmov %vm5899_vm0 }
 0x10b   : > { %1549 = vst.msk [vmem:[#allocation2 + $0x38] sm:$0xf] %vm5898_vm7, %v3967_v45  ;;  %vm5904_vm12 = vmmov %vm5899_vm0 }
 0x10c   : > { %1554 = vst.msk [vmem:[#allocation2 + $0x48] sm:$0xf] %vm5899_vm0, %v3967_v45  ;;  %vm5905_vm7 = vmmov %vm5899_vm0 }
 0x10d   : > { %1564 = vst.msk [vmem:[#allocation2 + $0x68] sm:$0xf] %vm5900_vm15, %v3967_v45  ;;  %vm5906_vm15 = vmmov %vm5899_vm0 }
 0x10e   : > { %1574 = vst.msk [vmem:[#allocation2 + $0x88] sm:$0xf] %vm5901_vm4, %v3967_v45  ;;  %vm5907_vm4 = vmmov %vm5899_vm0  ;;  %1251 = vrot.lane.b32.xlu0 %v5147_v17, %s3962_s14 }
 0x10f   : > { %1535 = vst.msk [vmem:[#allocation2 + $0xc] sm:$0xf] %vm5902_vm1, %v3967_v45  ;;  %vm5908_vm1 = vmmov %vm5899_vm0 }
 0x110   : > { %1540 = vst.msk [vmem:[#allocation2 + $0x1c] sm:$0xf] %vm5903_vm6, %v3967_v45  ;;  %vm5909_vm6 = vmmov %vm5899_vm0 }
 0x111   : > { %1545 = vst.msk [vmem:[#allocation2 + $0x2c] sm:$0xf] %vm5904_vm12, %v3967_v45  ;;  %vm5910_vm12 = vmmov %vm5899_vm0  ;;  %v1938_v57 = vld [vmem:[#allocation2 + $0x28] sm:$0x1]  ;;  %v5205_v41 = vpop.permute.xlu1 %1263 }
 0x112   : > { %1550 = vst.msk [vmem:[#allocation2 + $0x3c] sm:$0xf] %vm5905_vm7, %v3967_v45  ;;  %vm5911_vm7 = vcmask 60448   ;;  %v1939_v4 = vsel %vm4681_vm9, %v1844_v48, %v1938_v57  ;;  %v1380_v48 = vrot.slane %v983_v36, 4 }
 0x113   : > { %1555 = vst.msk [vmem:[#allocation2 + $0x4c] sm:$0xf] %vm5899_vm0, %v3967_v45  ;;  %vm5912_vm0 = vmmov %vm5911_vm7 }
 0x114   : > { %1560 = vst.msk [vmem:[#allocation2 + $0x5c] sm:$0xf] %vm5906_vm15, %v3967_v45  ;;  %vm5913_vm15 = vmmov %vm5912_vm0  ;;  %v1382_v26 = vor.u32 %v1381_v6, %v1380_v48  ;;  %v1931_v6 = vld [vmem:[#allocation2 + $0x18] sm:$0x1] }
 0x115   : > { %1565 = vst.msk [vmem:[#allocation2 + $0x6c] sm:$0xf] %vm5907_vm4, %v3967_v45  ;;  %vm5914_vm4 = vmmov %vm5912_vm0 }
 0x116   : > { %1570 = vst.msk [vmem:[#allocation2 + $0x7c] sm:$0xf] %vm5908_vm1, %v3967_v45  ;;  %vm5915_vm1 = vmmov %vm5912_vm0  ;;  %v1383_v43 = vrot.slane %v1382_v26, 4 }
 0x117   : > { %1575 = vst.msk [vmem:[#allocation2 + $0x8c] sm:$0xf] %vm5909_vm6, %v3967_v45  ;;  %vm5916_vm6 = vcmask 1043456  }
 0x118   : > { %1580 = vst.msk [vmem:[#allocation2 + $0x9c] sm:$0xf] %vm5910_vm12, %v3967_v45  ;;  %v2821_v13 = vsel %vm5916_vm6, %v2770_v16, 0  ;;  %vm5917_vm12 = vmmov %vm5912_vm0  ;;  %v1385_v22 = vsel %vm4260_vm10, %v1383_v43, %v1384_v5  ;;  %v5220_v5 = vpack.c.bf16 %v1598_v55, %v1598_v55  ;;  %v880_v55 = vld [vmem:[#allocation2 + $0x50] sm:$0x1] }
 0x119   : > { %1929 = vst [vmem:[#allocation2 + $0x10] sm:$0xf] %v1928_v63  ;;  %2829 = vmatpush.bf16.msra.mxu1 %v2821_v13  ;;  %3853 = vmatpush.bf16.msrb.mxu3 %v2821_v13  ;;  %v2207_v63 = vor.u32 %v2206_v8, %v2205_v15  ;;  %v5239_v51 = vpop.permute.xlu1 %1847  ;;  %v1775_v13 = vrot.slane %v4932_v29, 4  ;;  %v1140_v8 = vld [vmem:[#allocation2 + $0x58] sm:$0x1] }
 0x11a   : > { %1993 = vst.msk [vmem:[#allocation2 + $0xc] sm:$0xf] %vm5911_vm7, %v3967_v45  ;;  %vm5918_vm7 = vmmov %vm5912_vm0  ;;  %1445 = vrot.lane.b32.xlu1 %v1385_v22, %s3963_s28  ;;  %2072 = vrot.lane.b32.xlu0 %v5220_v5, %s3965_s27  ;;  %v1754_v52 = vshll.u32 %v5220_v5, 16 }
 0x11b   : > { %1997 = vst.msk [vmem:[#allocation2 + $0x1c] sm:$0xf] %vm5912_vm0, %v3967_v45  ;;  %v2208_v61 = vrot.slane %v2207_v63, 4  ;;  %v1932_v63 = vsel %vm4681_vm9, %v5142_v11, %v1931_v6 }
 0x11c   : > { %2001 = vst.msk [vmem:[#allocation2 + $0x2c] sm:$0xf] %vm5913_vm15, %v3967_v45  ;;  %vm5919_vm15 = vmmov %vm5912_vm0  ;;  %v2200_v21 = vrot.slane %v1754_v52, 5 }
 0x11d   : > { %2005 = vst.msk [vmem:[#allocation2 + $0x3c] sm:$0xf] %vm5914_vm4, %v3967_v45  ;;  %vm5920_vm4 = vmmov %vm5912_vm0  ;;  %2830 = vmatpush.bf16.msra.mxu1 %v3816_v0  ;;  %3854 = vmatpush.bf16.msrb.mxu3 %v3816_v0  ;;  %v2210_v33 = vsel %vm4260_vm10, %v2208_v61, %v4969_v50  ;;  %v1751_v50 = vshrl.u32 %v5220_v5, 16  ;;  %v1597_v0 = vld [vmem:[%s4182_s26 + $0x40] sm:$0xff]  ;;  %s3496_s26 = sshll.u32 %s6059_s21, 1 }
 0x11e   : > { %2009 = vst.msk [vmem:[#allocation2 + $0x4c] sm:$0xf] %vm5915_vm1, %v3967_v45  ;;  %vm5921_vm1 = vcmask 126048   ;;  %2265 = vrot.lane.b32.xlu2 %v2210_v33, %s3966_s23  ;;  %v5270_v48 = vpack.c.bf16 %v1597_v0, %v1597_v0  ;;  %v1141_v33 = vsel %vm4061_vm2, %v998_v7, %v1140_v8  ;;  %s664_s29 = sadd.s32 %s3496_s26, %s4065_s22 }
 0x11f   : > { %2013 = vst.msk [vmem:[#allocation2 + $0x5c] sm:$0xf] %vm5917_vm12, %v3967_v45  ;;  %vm5922_vm6 = vmmov %vm5921_vm1  ;;  %v2202_v57 = vrot.slane %v1751_v50, 4  ;;  %v5322_v0 = vrot.slane %v1751_v50, 7  ;;  %s5331_s22 = sshll.u32 %s664_s29, 3 }
 0x120   : > { %2017 = vst.msk [vmem:[#allocation2 + $0x6c] sm:$0xf] %vm5918_vm7, %v3967_v45  ;;  %vm5923_vm12 = vmmov %vm5921_vm1  ;;  %v1743_v26 = vshrl.u32 %v5270_v48, 16  ;;  %v1746_v43 = vshll.u32 %v5270_v48, 16  ;;  %s666_s21 = scalar_lea.vmem %s5827_s2, %s5331_s22  ;;  %s711_s20 = scalar_lea.vmem %s5830_s5, %s5331_s22 }
 0x121   : > { %2021 = vst.msk [vmem:[#allocation2 + $0x7c] sm:$0xf] %vm5912_vm0, %v3967_v45  ;;  %3855 = vmatpush.bf16.msra.mxu3 %v4842_v38  ;;  %vm5924_vm7 = vmmov %vm5921_vm1  ;;  %v5189_v38 = vpop.permute.xlu2 %1437  ;;  %v2203_v27 = vor.u32 %v2202_v57, %v2200_v21  ;;  %v5286_v22 = vpop.permute.xlu1 %2084  ;;  %v881_v57 = vsel %vm4061_vm2, 0, %v880_v55  ;;  %v765_v17 = vld [vmem:[%s666_s21] sm:$0xff] }
 0x122   : > { %2025 = vst.msk [vmem:[#allocation2 + $0x8c] sm:$0xf] %vm5919_vm15, %v3967_v45  ;;  %vm5925_vm0 = vmmov %vm5921_vm1  ;;  %2070 = vrot.lane.b32.xlu0 %v5270_v48, %s3965_s27  ;;  %v2196_v61 = vrot.slane %v1743_v26, 4  ;;  %v3921_v48 = vld [vmem:[%s5833_s8] ss:$0 sm:$0xff] }
 0x123   : > { %2029 = vst.msk [vmem:[#allocation2 + $0x9c] sm:$0xf] %vm5920_vm4, %v3967_v45  ;;  %vm5926_vm15 = vmmov %vm5925_vm0 }
 0x124   : > { %1940 = vst [vmem:[#allocation2 + $0x28] sm:$0x1] %v1939_v4  ;;  %vm5927_vm4 = vmmov %vm5925_vm0  ;;  %v2204_v4 = vrot.slane %v2203_v27, 4 }
 0x125   : > { %2132 = vst.msk [vmem:[#allocation2 + $0xc] sm:$0xf] %vm5921_vm1, %v3967_v45  ;;  %3856 = vmatpush.bf16.msra.mxu3 %v4867_v12  ;;  %v5203_v12 = vpop.permute.xlu0 %1243  ;;  %vm5928_vm1 = vmmov %vm5925_vm0 }
 0x126   : > { %2134 = vst.msk [vmem:[#allocation2 + $0x1c] sm:$0xf] %vm5922_vm6, %v3967_v45  ;;  %vm5929_vm6 = vmmov %vm5925_vm0  ;;  %1867 = vrot.lane.b32.xlu2 %v1775_v13, %s3964_s24  ;;  %2263 = vrot.lane.b32.xlu1 %v2204_v4, %s3966_s23  ;;  %v1745_v4 = vrot.slane %v1743_v26, 7 }
 0x127   : > { %2136 = vst.msk [vmem:[#allocation2 + $0x2c] sm:$0xf] %vm5923_vm12, %v3967_v45  ;;  %vm5930_vm12 = vcmask 191648  }
 0x128   : > { %2138 = vst.msk [vmem:[#allocation2 + $0x3c] sm:$0xf] %vm5924_vm7, %v3967_v45  ;;  %vm5931_vm7 = vmmov %vm5925_vm0 }
 0x129   : > { %2140 = vst.msk [vmem:[#allocation2 + $0x4c] sm:$0xf] %vm5925_vm0, %v3967_v45  ;;  %v5224_v24 = vpop.permute.xlu2 %1877  ;;  %v5320_v27 = vpop.permute.xlu1 %1249 }
 0x12a   : > { %2142 = vst.msk [vmem:[#allocation2 + $0x5c] sm:$0xf] %vm5926_vm15, %v3967_v45  ;;  %vm5932_vm15 = vmmov %vm5930_vm12 }
 0x12b   : > { %v1998_v62 = vld [vmem:[#allocation2 + $0x28] sm:$0xf]  ;;  %2144 = vst.msk [vmem:[#allocation2 + $0x6c] sm:$0xf] %vm5927_vm4, %v3967_v45  ;;  %vm5933_vm4 = vmmov %vm5930_vm12 }
 0x12c   : > { %v1999_v23 = vsel %vm4901_vm3, 0, %v1998_v62  ;;  %2146 = vst.msk [vmem:[#allocation2 + $0x7c] sm:$0xf] %vm5928_vm1, %v3967_v45  ;;  %vm5935_vm1 = vmmov %vm5933_vm4  ;;  %v1924_v62 = vld [vmem:[#allocation2 + $0x8] sm:$0x1] }
 0x12d   : > { %2000 = vst [vmem:[#allocation2 + $0x28] sm:$0xf] %v1999_v23  ;;  %v5237_v16 = vpop.permute.xlu0 %1457  ;;  %v2197_v23 = vrot.slane %v1746_v43, 5  ;;  %v1925_v11 = vsel %vm4681_vm9, %v5170_v42, %v1924_v62 }
 0x12e   : > { %2135 = vst.msk [vmem:[#allocation2 + $0x28] sm:$0xf] %vm5929_vm6, %v3967_v45  ;;  %vm5936_vm6 = vmmov %vm5935_vm1 }
 0x12f   : > { %2359 = vst.msk [vmem:[#allocation2 + $0x28] sm:$0xf] %vm5930_vm12, %v3967_v45  ;;  %vm5937_vm12 = vmmov %vm5935_vm1 }
 0x130   : > { %2148 = vst.msk [vmem:[#allocation2 + $0x8c] sm:$0xf] %vm5931_vm7, %v3967_v45  ;;  %vm5938_vm7 = vmmov %vm5935_vm1 }
 0x131   : > { %2150 = vst.msk [vmem:[#allocation2 + $0x9c] sm:$0xf] %vm5925_vm0, %v3967_v45  ;;  %vm5939_vm0 = vmmov %vm5935_vm1  ;;  %v5268_v29 = vpop.permute.xlu2 %2255 }
 0x132   : > { %2350 = vst.msk [vmem:[#allocation2 + $0xc] sm:$0xf] %vm5932_vm15, %v3967_v45  ;;  %vm5940_vm15 = vmmov %vm5939_vm0 }
 0x133   : > { %2355 = vst.msk [vmem:[#allocation2 + $0x1c] sm:$0xf] %vm5933_vm4, %v3967_v45  ;;  %vm5941_vm4 = vmmov %vm5939_vm0 }
 0x134   : > { %2360 = vst.msk [vmem:[#allocation2 + $0x2c] sm:$0xf] %vm5935_vm1, %v3967_v45  ;;  %vm5942_vm1 = vmmov %vm5939_vm0 }
 0x135   : > { %2365 = vst.msk [vmem:[#allocation2 + $0x3c] sm:$0xf] %vm5936_vm6, %v3967_v45  ;;  %v5284_v15 = vpop.permute.xlu0 %2064  ;;  %vm5943_vm6 = vcmask 126048  }
 0x136   : > { %2370 = vst.msk [vmem:[#allocation2 + $0x4c] sm:$0xf] %vm5937_vm12, %v3967_v45  ;;  %vm5944_vm12 = vmmov %vm5939_vm0 }
 0x137   : > { %2375 = vst.msk [vmem:[#allocation2 + $0x5c] sm:$0xf] %vm5938_vm7, %v3967_v45  ;;  %vm5945_vm7 = vmmov %vm5943_vm6 }
 0x138   : > { %2380 = vst.msk [vmem:[#allocation2 + $0x6c] sm:$0xf] %vm5939_vm0, %v3967_v45 }
 0x139   : > { %2385 = vst.msk [vmem:[#allocation2 + $0x7c] sm:$0xf] %vm5940_vm15, %v3967_v45  ;;  %vm5946_vm15 = vcmask 93248  }
 0x13a   : > { %2390 = vst.msk [vmem:[#allocation2 + $0x8c] sm:$0xf] %vm5941_vm4, %v3967_v45  ;;  %vm5947_vm4 = vcmask 158848  }
 0x13b   : > { %2395 = vst.msk [vmem:[#allocation2 + $0x9c] sm:$0xf] %vm5942_vm1, %v3967_v45  ;;  %vm5948_vm1 = vcmask 195584   ;;  %v3835_v62 = vld [vmem:[#allocation2 + $0x28] sm:$0xff] }
 0x13c   : > { %2111 = vst.msk [vmem:[#allocation2] sm:$0xf] %vm5943_vm6, %v5114_v30  ;;  %v2198_v30 = vor.u32 %v2197_v23, %v2196_v61  ;;  %vm5949_vm6 = vmmov %vm5946_vm15  ;;  %3767 = vmatmul.msk.bf16.gmra.mxu2 %vm5948_vm1, %v3835_v62 }
 0x13d   : > { %2302 = vst.msk [vmem:[#allocation2] sm:$0xf] %vm5944_vm12, %v5099_v54  ;;  %v5309_v54 = vpop.permute.xlu2 %1257  ;;  %v5317_v42 = vpop.permute.xlu0 %2275  ;;  %vm5950_vm12 = vcmask 60448  }
 0x13e   : > { %2113 = vst.msk [vmem:[#allocation2 + $0x10] sm:$0xf] %vm5945_vm7, %v5128_v31  ;;  %v2199_v13 = vrot.slane %v2198_v30, 4 }
 0x13f   : > { %1933 = vst [vmem:[#allocation2 + $0x18] sm:$0x1] %v1932_v63  ;;  %v5369_v63 = vrot.slane %v1000_v39, 7  ;;  %v1748_v39 = vor.u32 %v1746_v43, %v1745_v4 }
 0x140   : > { %1142 = vst [vmem:[#allocation2 + $0x58] sm:$0x1] %v1141_v33  ;;  %v2201_v31 = vsel %vm4260_vm10, %v2199_v13, %v2200_v21  ;;  %v1756_v21 = vor.u32 %v1754_v52, %v5322_v0  ;;  %v5375_v33 = vpop.permute.xlu1 %1875  ;;  %v3830_v55 = vld [vmem:[#allocation2 + $0x78] sm:$0xff] }
 0x141   : > { %2308 = vst.msk [vmem:[#allocation2 + $0x10] sm:$0xf] %vm5939_vm0, %v5168_v14  ;;  %2261 = vrot.lane.b32.xlu1 %v2201_v31, %s3966_s23  ;;  %v1749_v14 = vrot.slane %v1745_v4, 4  ;;  %v774_v31 = vstv %s5338_s30  ;;  %s3912_s30 = scalar_select %p764_p11, 255, 0 }
 0x142   : > { %1926 = vst [vmem:[#allocation2 + $0x8] sm:$0x1] %v1925_v11  ;;  %v767_v11 = vmul.f32 %v4732_v37, %v765_v17 }
 0x143   : > { %882 = vst [vmem:[#allocation2 + $0x50] sm:$0x1] %v881_v57  ;;  %v1757_v5 = vsel %vm4323_vm11, %v1749_v14, %v1756_v21  ;;  %v3920_v57 = vld [vmem:[%s5832_s7] ss:$0 sm:$0xff]  ;;  %v1006_v21 = vrot.slane %v5369_v63, 4  ;;  %v3916_v17 = vld [vmem:[%s711_s20 + $0x8] sm:%s3912_s30] }
 0x144   : > { %v3800_v6 = vld [vmem:[#allocation2] sm:$0xff]  ;;  %1298 = vst.msk [vmem:[#allocation2 + $0x30] sm:$0xf] %vm5946_vm15, %v5203_v12  ;;  %1859 = vrot.lane.b32.xlu2 %v1757_v5, %s3964_s24  ;;  %vm5951_vm15 = vmmov %vm5948_vm1  ;;  %v769_v37 = vadd.f32 %v3921_v48, %v767_v11  ;;  %v972_v5 = vrot.slane %v4808_v2, 4  ;;  %v1945_v11 = vld [vmem:[#allocation2 + $0x38] sm:$0x1] }
 0x145   : > { %1500 = vst.msk [vmem:[#allocation2 + $0x30] sm:$0xf] %vm5947_vm4, %v5189_v38  ;;  %3679 = vmatmul.msk.bf16.vlgmr.msra.gmra.mxu1 %vm5948_vm1, %v3800_v6  ;;  %v5353_v8 = vpop.permute.xlu2 %2062  ;;  %v5373_v23 = vpop.permute.xlu0 %1845  ;;  %vm5952_vm4 = vmmov %vm5949_vm6 }
 0x146   : > { %v1994_v7 = vld [vmem:[#allocation2 + $0x18] sm:$0xf]  ;;  %1308 = vst.msk [vmem:[#allocation2 + $0x80] sm:$0xf] %vm5949_vm6, %v5205_v41  ;;  %v5350_v41 = vrot.slane %v983_v36, 7  ;;  %vm5953_vm6 = vcmask 158848  }
 0x147   : > { %v1995_v38 = vsel %vm4901_vm3, 0, %v1994_v7  ;;  %v1191_v12 = vld [vmem:[#allocation2 + $0x58] sm:$0xf]  ;;  %1979 = vst.msk [vmem:[#allocation2 + $0x84] sm:$0xf] %vm5950_vm12, %v5224_v24  ;;  %vm5954_vm12 = vmmov %vm5948_vm1  ;;  %v1013_v7 = vor.u32 %v1011_v34, %v4774_v9  ;;  %vm5959_vm1 = vcmask 60448  }
 0x148   : > { %1996 = vst [vmem:[#allocation2 + $0x18] sm:$0xf] %v1995_v38  ;;  %v1192_v50 = vsel %vm4160_vm5, 0, %v1191_v12  ;;  %v3817_v52 = vld [vmem:[#allocation2 + $0x10] sm:$0xff]  ;;  %v988_v36 = vor.u32 %v986_v19, %v5350_v41  ;;  %v766_v19 = vld [vmem:[%s666_s21 + $0x8] sm:$0xff]  ;;  %3608 = vmatmul.msk.bf16.gmra.mxu3 %vm5954_vm12, %v3830_v55  ;;  %v2254_v34 = vpop.permute.xlu1 %2253 }
 0x149   : > { %2133 = vst.msk [vmem:[#allocation2 + $0x18] sm:$0xf] %vm5945_vm7, %v3967_v45  ;;  %v1990_v24 = vld [vmem:[#allocation2 + $0x8] sm:$0xf]  ;;  %3595 = vmatmul.msk.bf16.vlgmr.msra.gmra.mxu0 %vm5951_vm15, %v3817_v52  ;;  %v768_v13 = vmul.f32 %v3920_v57, %v766_v19  ;;  %vm5957_vm15 = vcmask 191648   ;;  %v771_v52 = vmax.f32 %v769_v37, 0.0  ;;  %v1014_v58 = vsel %vm4323_vm11, %v1006_v21, %v1013_v7 }
 0x14a   : > { %2354 = vst.msk [vmem:[#allocation2 + $0x18] sm:$0xf] %vm5939_vm0, %v3967_v45  ;;  %v1136_v26 = vld [vmem:[#allocation2 + $0x50] sm:$0xf]  ;;  %v1991_v61 = vsel %vm4901_vm3, 0, %v1990_v24  ;;  %vm5399_vm0 = vcmp.eq.s32.totalorder %v774_v31, 1 }
 0x14b   : > { %1193 = vst [vmem:[#allocation2 + $0x58] sm:$0xf] %v1192_v50  ;;  %v1137_v6 = vsel %vm4160_vm5, %v988_v36, %v1136_v26  ;;  %v770_v43 = vadd.f32 %v3921_v48, %v768_v13  ;;  %v979_v50 = vor.u32 %v977_v35, %v4772_v28  ;;  %v1758_v37 = vrot.slane %v5322_v0, 4  ;;  %v1168_v7 = vld [vmem:[#allocation2 + $0x98] sm:$0x1] }
 0x14c   : > { %1322 = vst.msk [vmem:[#allocation2 + $0x58] sm:$0xf] %vm5952_vm4, %v3967_v45  ;;  %v1636_v30 = vld [vmem:[#allocation2 + $0x30] sm:$0x1]  ;;  %1857 = vrot.lane.b32.xlu2 %v1748_v39, %s3964_s24  ;;  %vm5958_vm4 = vmmov %vm5953_vm6 }
 0x14d   : > { %1559 = vst.msk [vmem:[#allocation2 + $0x58] sm:$0xf] %vm5953_vm6, %v3967_v45  ;;  %v1637_v4 = vsel %vm4681_vm9, 0, %v1636_v30  ;;  %v5409_v38 = vpop.permute.xlu2 %2273  ;;  %v772_v12 = vmax.f32 %v770_v43, 0.0  ;;  %v5420_v56 = vpop.permute.xlu0 %2082  ;;  %vm5960_vm6 = vmmov %vm5945_vm7  ;;  %v5471_v43 = vpack.c.bf16 %v3916_v17, %v3916_v17 }
 0x14e   : > { %1992 = vst [vmem:[#allocation2 + $0x8] sm:$0xf] %v1991_v61  ;;  %vm5961_vm12 = vmmov %vm5960_vm6 }
 0x14f   : > { %2131 = vst.msk [vmem:[#allocation2 + $0x8] sm:$0xf] %vm5945_vm7, %v3967_v45  ;;  %v777_v24 = vsel %vm5399_vm0, %v772_v12, 0.0  ;;  %vm5962_vm7 = vcmask 27648  }
 0x150   : > { %2349 = vst.msk [vmem:[#allocation2 + $0x8] sm:$0xf] %vm5957_vm15, %v3967_v45  ;;  %v5422_v9 = vpack.c.bf16 %v777_v24, %v777_v24  ;;  %vm5963_vm15 = vcmask 93248   ;;  %v1452_v31 = vpop.permute.xlu1 %1451 }
 0x151   : > { %1138 = vst [vmem:[#allocation2 + $0x50] sm:$0xf] %v1137_v6  ;;  %v3818_v2 = vld [vmem:[#allocation2 + $0x18] sm:$0xff] }
 0x152   : > { %1638 = vst [vmem:[#allocation2 + $0x30] sm:$0x1] %v1637_v4  ;;  %1269 = vrot.lane.b32.xlu0 %v5422_v9, %s3962_s14  ;;  %v1059_v35 = vshrl.u32 %v5422_v9, 16  ;;  %v1062_v28 = vshll.u32 %v5422_v9, 16 }
 0x153   : > { %1520 = vst.msk [vmem:[#allocation2 + $0x80] sm:$0xf] %vm5958_vm4, %v5237_v16  ;;  %v980_v16 = vsel %vm4323_vm11, %v972_v5, %v979_v50  ;;  %vm5964_vm4 = vcmask 195584  }
 0x154   : > { %1944 = vst.msk [vmem:[#allocation2 + $0x34] sm:$0xf] %vm5959_vm1, %v5239_v51  ;;  %v776_v51 = vsel %vm5399_vm0, %v771_v52, 0.0  ;;  %v5449_v26 = vrot.slane %v1062_v28, 5  ;;  %v1422_v62 = vrot.slane %v1059_v35, 4  ;;  %vm5965_vm1 = vmmov %vm5962_vm7  ;;  %v5468_v6 = vrot.slane %v1059_v35, 7  ;;  %1861 = vrot.lane.b32.xlu2 %v1758_v37, %s3964_s24 }
 0x155   : > { %2118 = vst.msk [vmem:[#allocation2 + $0x34] sm:$0xf] %vm5960_vm6, %v5284_v15  ;;  %v3913_v15 = vld [vmem:[%s711_s20] sm:%s3912_s30]  ;;  %v5455_v55 = vpack.c.bf16 %v776_v51, %v776_v51  ;;  %vm5966_vm0 = vmmov %vm5964_vm4  ;;  %v1444_v13 = vpop.permute.xlu0 %1443  ;;  %v1822_v35 = vshll.u32 %v5471_v43, 16  ;;  %v3802_v37 = vld [vmem:[#allocation2 + $0x10] sm:$0xff] }
 0x156   : > { %2128 = vst.msk [vmem:[#allocation2 + $0x84] sm:$0xf] %vm5961_vm12, %v5286_v22  ;;  %v1850_v22 = vpop.permute.xlu2 %1849  ;;  %v1423_v19 = vor.u32 %v1422_v62, %v5449_v26  ;;  %vm5967_vm6 = vmmov %vm5963_vm15  ;;  %v5464_v39 = vpack.c.bf16 %v3913_v15, %v3913_v15  ;;  %v1066_v14 = vrot.slane %v5468_v6, 4 }
 0x157   : > { %v3801_v36 = vld [vmem:[#allocation2 + $0x8] sm:$0xff]  ;;  %1146 = vst.msk [vmem:[#allocation2 + $0x64] sm:$0xf] %vm5962_vm7, %v1014_v58  ;;  %v1051_v0 = vshrl.u32 %v5455_v55, 16  ;;  %v1054_v12 = vshll.u32 %v5455_v55, 16  ;;  %vm5968_vm7 = vcmask 191648  }
 0x158   : > { %1305 = vst.msk [vmem:[#allocation2 + $0x64] sm:$0xf] %vm5963_vm15, %v5309_v54  ;;  %3680 = vmatmul.msk.bf16.gmra.mxu1 %vm5964_vm4, %v3801_v36  ;;  %v1424_v48 = vrot.slane %v1423_v19, 4  ;;  %v1811_v50 = vshrl.u32 %v5464_v39, 16  ;;  %v1819_v58 = vshrl.u32 %v5471_v43, 16  ;;  %vm5969_vm15 = vmmov %vm5961_vm12 }
 0x159   : > { %1132 = vst.msk [vmem:[#allocation2 + $0x44] sm:$0xf] %vm5965_vm1, %v980_v16  ;;  %v1941_v61 = vld [vmem:[#allocation2 + $0x30] sm:$0xf]  ;;  %3596 = vmatmul.msk.bf16.gmra.mxu0 %vm5966_vm0, %v3818_v2  ;;  %v1416_v5 = vrot.slane %v1051_v0, 4  ;;  %v1169_v16 = vsel %vm4061_vm2, %v1066_v14, %v1168_v7  ;;  %vm5970_vm4 = vmmov %vm5966_vm0  ;;  %v2236_v7 = vrot.slane %v1822_v35, 5 }
 0x15a   : > { %v1651_v30 = vld [vmem:[#allocation2 + $0x80] sm:$0x1]  ;;  %1301 = vst.msk [vmem:[#allocation2 + $0x44] sm:$0xf] %vm5967_vm6, %v5320_v27  ;;  %v1942_v54 = vsel %vm4901_vm3, %v5373_v23, %v1941_v61  ;;  %1463 = vrot.lane.b32.xlu1 %v1424_v48, %s3963_s28  ;;  %v1813_v51 = vrot.slane %v1811_v50, 7  ;;  %v5504_v15 = vrot.slane %v1819_v58, 7  ;;  %v5508_v61 = vpop.permute.xlu1 %1247  ;;  %vm5971_vm1 = vmmov %vm5968_vm7  ;;  %vm5972_vm6 = vnez %v5859_v40 }
 0x15b   : > { %v1652_v57 = vsel %vm4681_vm9, 0, %v1651_v30  ;;  %1943 = vst [vmem:[#allocation2 + $0x30] sm:$0xf] %v1942_v54 }
 0x15c   : > { %1653 = vst [vmem:[#allocation2 + $0x80] sm:$0x1] %v1652_v57  ;;  %v2317_v27 = vld [vmem:[#allocation2 + $0x34] sm:$0xf]  ;;  %v1817_v17 = vrot.slane %v1813_v51, 4  ;;  %v1824_v54 = vor.u32 %v1822_v35, %v5504_v15  ;;  %1267 = vrot.lane.b32.xlu2 %v5455_v55, %s3962_s14  ;;  %v2232_v35 = vrot.slane %v1811_v50, 4 }
 0x15d   : > { %v2318_v23 = vsel %vm4847_vm13, %v5268_v29, %v2317_v27  ;;  %v2337_v4 = vld [vmem:[#allocation2 + $0x84] sm:$0xf]  ;;  %2117 = vst.msk [vmem:[#allocation2 + $0x30] sm:$0xf] %vm5961_vm12, %v5353_v8  ;;  %v1946_v29 = vsel %vm4681_vm9, %v1850_v22, %v1945_v11  ;;  %v5506_v22 = vpop.permute.xlu0 %1879  ;;  %v1826_v59 = vrot.slane %v5504_v15, 4 }
 0x15e   : > { %2319 = vst [vmem:[#allocation2 + $0x34] sm:$0xf] %v2318_v23  ;;  %v2338_v21 = vsel %vm4847_vm13, %v5317_v42, %v2337_v4  ;;  %v5494_v24 = vpop.permute.xlu2 %1255  ;;  %v1417_v42 = vrot.slane %v1054_v12, 5  ;;  %v3819_v27 = vld [vmem:[#allocation2 + $0x20] sm:$0xff] }
 0x15f   : > { %2339 = vst [vmem:[#allocation2 + $0x84] sm:$0xf] %v2338_v21  ;;  %v1513_v8 = vld [vmem:[#allocation2 + $0x64] sm:$0xf] }
 0x160   : > { %2316 = vst.msk [vmem:[#allocation2 + $0x30] sm:$0xf] %vm5968_vm7, %v2254_v34  ;;  %v1514_v52 = vsel %vm4592_vm14, %v1452_v31, %v1513_v8  ;;  %v1418_v36 = vor.u32 %v1417_v42, %v1416_v5  ;;  %v1825_v31 = vsel %vm4323_vm11, %v1817_v17, %v1824_v54  ;;  %v2238_v42 = vrot.slane %v1819_v58, 4  ;;  %vm5973_vm7 = vmmov %vm5971_vm1 }
 0x161   : > { %1947 = vst [vmem:[#allocation2 + $0x38] sm:$0x1] %v1946_v29  ;;  %v1505_v2 = vld [vmem:[#allocation2 + $0x44] sm:$0xf]  ;;  %v883_v29 = vld [vmem:[#allocation2 + $0x60] sm:$0x1] }
 0x162   : > { %v1506_v34 = vsel %vm4592_vm14, %v1444_v13, %v1505_v2  ;;  %1515 = vst [vmem:[#allocation2 + $0x64] sm:$0xf] %v1514_v52  ;;  %v1419_v30 = vrot.slane %v1418_v36, 4  ;;  %1883 = vrot.lane.b32.xlu1 %v1825_v31, %s3964_s24  ;;  %v5541_v52 = vpop.permute.xlu1 %1449  ;;  %v2239_v36 = vor.u32 %v2238_v42, %v2236_v7  ;;  %v884_v58 = vsel %vm4061_vm2, 0, %v883_v29  ;;  %v3803_v31 = vld [vmem:[#allocation2 + $0x18] sm:$0xff] }
 0x163   : > { %v1976_v62 = vld [vmem:[#allocation2 + $0x80] sm:$0xf]  ;;  %1507 = vst [vmem:[#allocation2 + $0x44] sm:$0xf] %v1506_v34  ;;  %v1980_v34 = vld [vmem:[#allocation2 + $0x88] sm:$0x1] }
 0x164   : > { %v1977_v19 = vsel %vm4901_vm3, %v5375_v33, %v1976_v62  ;;  %1170 = vst [vmem:[#allocation2 + $0x98] sm:$0x1] %v1169_v16  ;;  %v1421_v33 = vsel %vm4260_vm10, %v1419_v30, %v5449_v26  ;;  %v1814_v16 = vshll.u32 %v5464_v39, 16  ;;  %2088 = vrot.lane.b32.xlu2 %v5471_v43, %s3965_s27  ;;  %v2240_v30 = vrot.slane %v2239_v36, 4 }
 0x165   : > { %v2361_v11 = vld [vmem:[#allocation2 + $0x34] sm:$0x8]  ;;  %1978 = vst [vmem:[#allocation2 + $0x80] sm:$0xf] %v1977_v19  ;;  %1461 = vrot.lane.b32.xlu0 %v1421_v33, %s3963_s28  ;;  %v1442_v5 = vpop.permute.xlu0 %1441  ;;  %v1981_v54 = vsel %vm4681_vm9, %v5506_v22, %v1980_v34  ;;  %v989_v33 = vrot.slane %v5350_v41, 4  ;;  %v996_v22 = vor.u32 %v994_v32, %v5259_v20  ;;  %s3523_s28 = sshll.u32 %s4073_s25, 2 }
 0x166   : > { %v2362_v57 = vsel %vm4909_vm8, 0, %v2361_v11  ;;  %v2386_v13 = vld [vmem:[#allocation2 + $0x84] sm:$0x8]  ;;  %2127 = vst.msk [vmem:[#allocation2 + $0x80] sm:$0xf] %vm5969_vm15, %v5420_v56  ;;  %v1854_v56 = vpop.permute.xlu2 %1853  ;;  %v1816_v17 = vor.u32 %v1814_v16, %v1813_v51  ;;  %v2233_v19 = vrot.slane %v1814_v16, 5 }
 0x167   : > { %2363 = vst [vmem:[#allocation2 + $0x34] sm:$0x8] %v2362_v57  ;;  %v2387_v48 = vsel %vm4909_vm8, 0, %v2386_v13  ;;  %vm5974_vm15 = vcmask 93248   ;;  %v997_v32 = vsel %vm4323_vm11, %v989_v33, %v996_v22 }
 0x168   : > { %2388 = vst [vmem:[#allocation2 + $0x84] sm:$0x8] %v2387_v48  ;;  %v2002_v23 = vld [vmem:[#allocation2 + $0x38] sm:$0xf]  ;;  %3681 = vmatmul.msk.bf16.gmra.mxu1 %vm5970_vm4, %v3802_v37  ;;  %vm5975_vm4 = vmmov %vm5966_vm0  ;;  %v2234_v51 = vor.u32 %v2233_v19, %v2232_v35  ;;  %v1005_v48 = vor.u32 %v1003_v47, %v5369_v63  ;;  %v3820_v37 = vld [vmem:[#allocation2 + $0x28] sm:$0xff] }
 0x169   : > { %2336 = vst.msk [vmem:[#allocation2 + $0x80] sm:$0xf] %vm5971_vm1, %v5409_v38  ;;  %v2003_v26 = vsel %vm4901_vm3, 0, %v2002_v23  ;;  %v1561_v4 = vld [vmem:[#allocation2 + $0x64] sm:$0x8]  ;;  %3597 = vmatmul.msk.bf16.gmra.mxu0 %vm5966_vm0, %v3819_v27  ;;  %vm5976_vm1 = vcmask 158848  }
 0x16a   : > { %2004 = vst [vmem:[#allocation2 + $0x38] sm:$0xf] %v2003_v26  ;;  %v1551_v14 = vld [vmem:[#allocation2 + $0x44] sm:$0x8]  ;;  %v1562_v21 = vsel %vm5972_vm6, 0, %v1561_v4  ;;  %1881 = vrot.lane.b32.xlu1 %v1816_v17, %s3964_s24  ;;  %v2235_v11 = vrot.slane %v2234_v51, 4  ;;  %v2069_v13 = vpop.permute.xlu1 %2068 }
 0x16b   : > { %2137 = vst.msk [vmem:[#allocation2 + $0x38] sm:$0xf] %vm5961_vm12, %v3967_v45  ;;  %v1552_v8 = vsel %vm5972_vm6, 0, %v1551_v14  ;;  %v1207_v38 = vld [vmem:[#allocation2 + $0x98] sm:$0xf]  ;;  %vm5977_vm12 = vmmov %vm5974_vm15 }
 0x16c   : > { %2364 = vst.msk [vmem:[#allocation2 + $0x38] sm:$0xf] %vm5973_vm7, %v3967_v45  ;;  %v1208_v2 = vsel %vm4160_vm5, 0, %v1207_v38  ;;  %vm5978_vm7 = vcmask 60448   ;;  %2086 = vrot.lane.b32.xlu2 %v5464_v39, %s3965_s27  ;;  %v2237_v3 = vsel %vm4260_vm10, %v2235_v11, %v2236_v7  ;;  %vm5984_vm10 = vcmask 27648  }
 0x16d   : > { %1553 = vst [vmem:[#allocation2 + $0x44] sm:$0x8] %v1552_v8  ;;  %2279 = vrot.lane.b32.xlu0 %v2240_v30, %s3966_s23  ;;  %v1866_v57 = vpop.permute.xlu0 %1865  ;;  %v3804_v8 = vld [vmem:[#allocation2 + $0x20] sm:$0xff] }
 0x16e   : > { %1563 = vst [vmem:[#allocation2 + $0x64] sm:$0x8] %v1562_v21  ;;  %v3836_v62 = vld [vmem:[#allocation2 + $0x30] sm:$0xff]  ;;  %v2077_v43 = vpop.permute.xlu2 %2076 }
 0x16f   : > { %1209 = vst [vmem:[#allocation2 + $0x98] sm:$0xf] %v1208_v2  ;;  %3768 = vmatmul.msk.bf16.gmra.mxu2 %vm5975_vm4, %v3836_v62  ;;  %vm5980_vm4 = vmmov %vm5978_vm7  ;;  %v3821_v42 = vld [vmem:[#allocation2 + $0x30] sm:$0xff] }
 0x170   : > { %1330 = vst.msk [vmem:[#allocation2 + $0x98] sm:$0xf] %vm5974_vm15, %v3967_v45  ;;  %v3831_v50 = vld [vmem:[#allocation2 + $0x80] sm:$0xff]  ;;  %vm5979_vm15 = vmmov %vm5976_vm1 }
 0x171   : > { %1579 = vst.msk [vmem:[#allocation2 + $0x98] sm:$0xf] %vm5976_vm1, %v3967_v45  ;;  %3609 = vmatmul.msk.bf16.gmra.mxu3 %vm5966_vm0, %v3831_v50  ;;  %vm5981_vm1 = vcmask 126048  }
 0x172   : > { %885 = vst [vmem:[#allocation2 + $0x60] sm:$0x1] %v884_v58  ;;  %1885 = vrot.lane.b32.xlu1 %v1826_v59, %s3964_s24  ;;  %v1966_v58 = vld [vmem:[#allocation2 + $0x68] sm:$0x1] }
 0x173   : > { %1982 = vst [vmem:[#allocation2 + $0x88] sm:$0x1] %v1981_v54  ;;  %v3837_v15 = vld [vmem:[#allocation2 + $0x38] sm:$0xff] }
 0x174   : > { %1300 = vst.msk [vmem:[#allocation2 + $0x40] sm:$0xf] %vm5977_vm12, %v5508_v61  ;;  %vm5982_vm12 = vmmov %vm5981_vm1  ;;  %v2268_v61 = vpop.permute.xlu1 %2267 }
 0x175   : > { %1951 = vst.msk [vmem:[#allocation2 + $0x44] sm:$0xf] %vm5978_vm7, %v1854_v56  ;;  %2277 = vrot.lane.b32.xlu0 %v2237_v3, %s3966_s23  ;;  %vm5983_vm7 = vmmov %vm5966_vm0  ;;  %v2260_v39 = vpop.permute.xlu0 %2259  ;;  %s5705_s23 = scalar_lea.vmem %s5835_s10, %s3523_s28 }
 0x176   : > { %1504 = vst.msk [vmem:[#allocation2 + $0x40] sm:$0xf] %vm5979_vm15, %v1442_v5  ;;  %v1254_v20 = vpop.permute.xlu2 %1253  ;;  %vm5985_vm15 = vcmask 93248  }
 0x177   : > { %1965 = vst.msk [vmem:[#allocation2 + $0x64] sm:$0xf] %vm5980_vm4, %v1866_v57  ;;  %vm5986_vm4 = vmmov %vm5981_vm1 }
 0x178   : > { %2124 = vst.msk [vmem:[#allocation2 + $0x64] sm:$0xf] %vm5981_vm1, %v2077_v43  ;;  %3682 = vmatmul.msk.bf16.gmra.mxu1 %vm5966_vm0, %v3803_v31  ;;  %vm5987_vm1 = vcmask 191648   ;;  %v1952_v43 = vld [vmem:[#allocation2 + $0x48] sm:$0x1] }
 0x179   : > { %v1143_v41 = vld [vmem:[#allocation2 + $0x60] sm:$0xf]  ;;  %2120 = vst.msk [vmem:[#allocation2 + $0x44] sm:$0xf] %vm5982_vm12, %v2069_v13  ;;  %3598 = vmatmul.msk.bf16.gmra.mxu0 %vm5983_vm7, %v3820_v37  ;;  %vm5988_vm12 = vcmask 158848   ;;  %vm5989_vm7 = vmmov %vm5985_vm15  ;;  %v3805_v31 = vld [vmem:[#allocation2 + $0x28] sm:$0xff] }
 0x17a   : > { %v1144_v10 = vsel %vm4160_vm5, %v1005_v48, %v1143_v41  ;;  %v2022_v47 = vld [vmem:[#allocation2 + $0x88] sm:$0xf]  ;;  %1139 = vst.msk [vmem:[#allocation2 + $0x54] sm:$0xf] %vm5984_vm10, %v997_v32  ;;  %vm5990_vm10 = vmmov %vm5966_vm0  ;;  %v3822_v37 = vld [vmem:[#allocation2 + $0x38] sm:$0xff] }
 0x17b   : > { %1145 = vst [vmem:[#allocation2 + $0x60] sm:$0xf] %v1144_v10  ;;  %v2023_v63 = vsel %vm4901_vm3, 0, %v2022_v47 }
 0x17c   : > { %1304 = vst.msk [vmem:[#allocation2 + $0x60] sm:$0xf] %vm5985_vm15, %v5494_v24  ;;  %v1864_v29 = vpop.permute.xlu1 %1863  ;;  %vm5991_vm15 = vmmov %vm5966_vm0 }
 0x17d   : > { %2024 = vst [vmem:[#allocation2 + $0x88] sm:$0xf] %v2023_v63  ;;  %v1639_v27 = vld [vmem:[#allocation2 + $0x40] sm:$0x1]  ;;  %v1852_v21 = vpop.permute.xlu0 %1851 }
 0x17e   : > { %2147 = vst.msk [vmem:[#allocation2 + $0x88] sm:$0xf] %vm5986_vm4, %v3967_v45  ;;  %v1640_v23 = vsel %vm4681_vm9, 0, %v1639_v27  ;;  %v2067_v4 = vpop.permute.xlu2 %2066  ;;  %vm5992_vm4 = vmmov %vm5966_vm0 }
 0x17f   : > { %2389 = vst.msk [vmem:[#allocation2 + $0x88] sm:$0xf] %vm5987_vm1, %v3967_v45  ;;  %v2329_v56 = vld [vmem:[#allocation2 + $0x64] sm:$0xf]  ;;  %3769 = vmatmul.msk.bf16.gmra.mxu2 %vm5966_vm0, %v3837_v15  ;;  %vm5993_vm1 = vcmask 126048   ;;  %vm5994_vm0 = vcmask 191648  }
 0x180   : > { %1641 = vst [vmem:[#allocation2 + $0x40] sm:$0x1] %v1640_v23  ;;  %v2321_v26 = vld [vmem:[#allocation2 + $0x44] sm:$0xf]  ;;  %v2330_v14 = vsel %vm4847_vm13, %v2268_v61, %v2329_v56  ;;  %v3806_v23 = vld [vmem:[#allocation2 + $0x30] sm:$0xff] }
 0x181   : > { %1512 = vst.msk [vmem:[#allocation2 + $0x60] sm:$0xf] %vm5988_vm12, %v5541_v52  ;;  %v2322_v24 = vsel %vm4847_vm13, %v2260_v39, %v2321_v26  ;;  %vm5995_vm12 = vmmov %vm5993_vm1 }
 0x182   : > { %1303 = vst.msk [vmem:[#allocation2 + $0x54] sm:$0xf] %vm5989_vm7, %v1254_v20  ;;  %vm5996_vm7 = vmmov %vm5994_vm0 }
 0x183   : > { %2323 = vst [vmem:[#allocation2 + $0x44] sm:$0xf] %v2322_v24 }
 0x184   : > { %2331 = vst [vmem:[#allocation2 + $0x64] sm:$0xf] %v2330_v14  ;;  %v2258_v17 = vpop.permute.xlu1 %2257 }
 0x185   : > { %v2075_v62 = vpop.permute.xlu0 %2074 }
 0x186   : > { %v3832_v7 = vld [vmem:[#allocation2 + $0x88] sm:$0xff]  ;;  %v2266_v2 = vpop.permute.xlu2 %2265 }
 0x187   : > { %v1948_v38 = vld [vmem:[#allocation2 + $0x40] sm:$0xf]  ;;  %3610 = vmatmul.msk.bf16.gmra.mxu3 %vm5990_vm10, %v3832_v7  ;;  %vm5997_vm10 = vmmov %vm5992_vm4 }
 0x188   : > { %v1645_v5 = vld [vmem:[#allocation2 + $0x60] sm:$0x1]  ;;  %v1949_v52 = vsel %vm4901_vm3, %v1852_v21, %v1948_v38  ;;  %3683 = vmatmul.msk.bf16.gmra.mxu1 %vm5991_vm15, %v3804_v8  ;;  %vm5998_vm15 = vmmov %vm5992_vm4 }
 0x189   : > { %v1646_v16 = vsel %vm4681_vm9, 0, %v1645_v5  ;;  %1950 = vst [vmem:[#allocation2 + $0x40] sm:$0xf] %v1949_v52  ;;  %3599 = vmatmul.msk.bf16.gmra.mxu0 %vm5992_vm4, %v3821_v42  ;;  %v1509_v57 = vld [vmem:[#allocation2 + $0x54] sm:$0xf]  ;;  %v3807_v42 = vld [vmem:[#allocation2 + $0x38] sm:$0xff] }
 0x18a   : > { %1647 = vst [vmem:[#allocation2 + $0x60] sm:$0x1] %v1646_v16  ;;  %v2366_v35 = vld [vmem:[#allocation2 + $0x44] sm:$0x8] }
 0x18b   : > { %v2367_v34 = vsel %vm4909_vm8, 0, %v2366_v35  ;;  %v2376_v36 = vld [vmem:[#allocation2 + $0x64] sm:$0x8]  ;;  %2119 = vst.msk [vmem:[#allocation2 + $0x40] sm:$0xf] %vm5993_vm1, %v2067_v4 }
 0x18c   : > { %2368 = vst [vmem:[#allocation2 + $0x44] sm:$0x8] %v2367_v34  ;;  %v2377_v19 = vsel %vm4909_vm8, 0, %v2376_v36  ;;  %v1856_v13 = vpop.permute.xlu1 %1855  ;;  %v1959_v34 = vld [vmem:[#allocation2 + $0x58] sm:$0x1] }
 0x18d   : > { %2378 = vst [vmem:[#allocation2 + $0x64] sm:$0x8] %v2377_v19  ;;  %v1448_v11 = vpop.permute.xlu0 %1447  ;;  %v1953_v22 = vsel %vm4681_vm9, %v1856_v13, %v1952_v43  ;;  %v3082_v19 = vpop.f32.mrf.mxu2 }
 0x18e   : > { %2320 = vst.msk [vmem:[#allocation2 + $0x40] sm:$0xf] %vm5994_vm0, %v2258_v17  ;;  %v1868_v30 = vpop.permute.xlu2 %1867  ;;  %v1510_v33 = vsel %vm4592_vm14, %v1448_v11, %v1509_v57  ;;  %v3814_v17 = vld [vmem:[#allocation2 + $0x70] sm:$0xff] }
 0x18f   : > { %v1967_v54 = vsel %vm4681_vm9, %v1868_v30, %v1966_v58  ;;  %1511 = vst [vmem:[#allocation2 + $0x54] sm:$0xf] %v1510_v33  ;;  %v5672_v58 = vpop.f32.mrf.mxu3 }
 0x190   : > { %1968 = vst [vmem:[#allocation2 + $0x68] sm:$0x1] %v1967_v54  ;;  %v1064_v54 = vor.u32 %v1062_v28, %v5468_v6 }
 0x191   : > { %v1962_v50 = vld [vmem:[#allocation2 + $0x60] sm:$0xf]  ;;  %1954 = vst [vmem:[#allocation2 + $0x48] sm:$0x1] %v1953_v22 }
 0x192   : > { %v1963_v51 = vsel %vm4901_vm3, %v1864_v29, %v1962_v50  ;;  %v1053_v50 = vrot.slane %v1051_v0, 7 }
 0x193   : > { %1964 = vst [vmem:[#allocation2 + $0x60] sm:$0xf] %v1963_v51 }
 0x194   : > { %2123 = vst.msk [vmem:[#allocation2 + $0x60] sm:$0xf] %vm5995_vm12, %v2075_v62  ;;  %vm5999_vm12 = vmmov %vm5992_vm4  ;;  %v1446_v39 = vpop.permute.xlu1 %1445  ;;  %v1057_v51 = vrot.slane %v1053_v50, 4 }
 0x195   : > { %2328 = vst.msk [vmem:[#allocation2 + $0x60] sm:$0xf] %vm5996_vm7, %v2266_v2  ;;  %v3838_v48 = vld [vmem:[#allocation2 + $0x40] sm:$0xff]  ;;  %v1252_v20 = vpop.permute.xlu0 %1251  ;;  %vm6000_vm7 = vcmask 93248   ;;  %v3084_v33 = vpop.f32.mrf.mxu2 }
 0x196   : > { %3770 = vmatmul.msk.bf16.gmra.mxu2 %vm5997_vm10, %v3838_v48  ;;  %v1556_v59 = vld [vmem:[#allocation2 + $0x54] sm:$0x8]  ;;  %1302 = vst.msk [vmem:[#allocation2 + $0x50] sm:$0xf] %vm6000_vm7, %v1252_v20  ;;  %vm6001_vm10 = vmmov %vm5993_vm1  ;;  %v3823_v27 = vld [vmem:[#allocation2 + $0x40] sm:$0xff]  ;;  %v1065_v57 = vsel %vm4323_vm11, %v1057_v51, %v1064_v54  ;;  %vm6018_vm11 = vcmask 93248  }
 0x197   : > { %v2014_v3 = vld [vmem:[#allocation2 + $0x68] sm:$0xf]  ;;  %v1557_v10 = vsel %vm5972_vm6, 0, %v1556_v59  ;;  %vm6006_vm7 = vmmov %vm5999_vm12  ;;  %v3808_v28 = vld [vmem:[#allocation2 + $0x40] sm:$0xff]  ;;  %v5690_v22 = vpop.f32.mrf.mxu3 }
 0x198   : > { %3684 = vmatmul.msk.bf16.gmra.mxu1 %vm5998_vm15, %v3805_v31  ;;  %v2015_v32 = vsel %vm4901_vm3, 0, %v2014_v3  ;;  %v2006_v47 = vld [vmem:[#allocation2 + $0x48] sm:$0xf]  ;;  %1558 = vst [vmem:[#allocation2 + $0x54] sm:$0x8] %v1557_v10  ;;  %vm6002_vm15 = vmmov %vm5994_vm0 }
 0x199   : > { %3600 = vmatmul.msk.bf16.gmra.mxu0 %vm5992_vm4, %v3822_v37  ;;  %2016 = vst [vmem:[#allocation2 + $0x68] sm:$0xf] %v2015_v32  ;;  %v2007_v63 = vsel %vm4901_vm3, 0, %v2006_v47  ;;  %vm6003_vm4 = vcmask 158848   ;;  %v3815_v37 = vld [vmem:[#allocation2 + $0x78] sm:$0xff] }
 0x19a   : > { %2143 = vst.msk [vmem:[#allocation2 + $0x68] sm:$0xf] %vm5993_vm1, %v3967_v45  ;;  %vm6004_vm1 = vcmask 60448   ;;  %v892_v32 = vld [vmem:[#allocation2 + $0x90] sm:$0x1] }
 0x19b   : > { %2379 = vst.msk [vmem:[#allocation2 + $0x68] sm:$0xf] %vm5994_vm0, %v3967_v45  ;;  %vm6005_vm0 = vmmov %vm6001_vm10 }
 0x19c   : > { %v3812_v41 = vld [vmem:[#allocation2 + $0x60] sm:$0xff]  ;;  %2008 = vst [vmem:[#allocation2 + $0x48] sm:$0xf] %v2007_v63  ;;  %v2264_v14 = vpop.permute.xlu1 %2263 }
 0x19d   : > { %3691 = vmatmul.msk.bf16.vlgmr.msrb.gmra.mxu3 %vm5999_vm12, %v3812_v41  ;;  %2139 = vst.msk [vmem:[#allocation2 + $0x48] sm:$0xf] %vm6001_vm10, %v3967_v45  ;;  %v2073_v15 = vpop.permute.xlu0 %2072  ;;  %vm6007_vm10 = vmmov %vm6006_vm7  ;;  %v893_v41 = vsel %vm4061_vm2, 0, %v892_v32  ;;  %v3827_v51 = vld [vmem:[#allocation2 + $0x60] sm:$0xff] }
 0x19e   : > { %2369 = vst.msk [vmem:[#allocation2 + $0x48] sm:$0xf] %vm6002_vm15, %v3967_v45  ;;  %v1860_v61 = vpop.permute.xlu2 %1859  ;;  %vm6008_vm15 = vmmov %vm6006_vm7 }
 0x19f   : > { %1508 = vst.msk [vmem:[#allocation2 + $0x50] sm:$0xf] %vm6003_vm4, %v1446_v39  ;;  %vm6009_vm4 = vmmov %vm6005_vm0 }
 0x1a0   : > { %1958 = vst.msk [vmem:[#allocation2 + $0x54] sm:$0xf] %vm6004_vm1, %v1860_v61  ;;  %vm6010_vm1 = vcmask 191648  }
 0x1a1   : > { %2122 = vst.msk [vmem:[#allocation2 + $0x54] sm:$0xf] %vm6005_vm0, %v2073_v15  ;;  %vm6011_vm0 = vmmov %vm6006_vm7 }
 0x1a2   : > { %v3813_v4 = vld [vmem:[#allocation2 + $0x68] sm:$0xff]  ;;  %894 = vst [vmem:[#allocation2 + $0x90] sm:$0x1] %v893_v41  ;;  %vm6021_vm2 = vmmov %vm6011_vm0 }
 0x1a5   : > { %v3839_v56 = vld [vmem:[#allocation2 + $0x48] sm:$0xff]  ;;  %v2071_v5 = vpop.permute.xlu0 %2070 }
 0x1a6   : > { %v1642_v26 = vld [vmem:[#allocation2 + $0x50] sm:$0x1]  ;;  %3771 = vmatmul.msk.bf16.gmra.mxu2 %vm6007_vm10, %v3839_v56  ;;  %v1858_v7 = vpop.permute.xlu2 %1857  ;;  %v3824_v35 = vld [vmem:[#allocation2 + $0x48] sm:$0xff]  ;;  %vm6014_vm10 = vmmov %vm6011_vm0 }
 0x1a7   : > { %v1643_v24 = vsel %vm4681_vm9, 0, %v1642_v26  ;;  %v1056_v26 = vor.u32 %v1054_v12, %v1053_v50 }
 0x1a8   : > { %3685 = vmatmul.msk.bf16.gmra.mxu1 %vm5999_vm12, %v3806_v23  ;;  %1644 = vst [vmem:[#allocation2 + $0x50] sm:$0x1] %v1643_v24  ;;  %v2325_v21 = vld [vmem:[#allocation2 + $0x54] sm:$0xf]  ;;  %vm6012_vm12 = vmmov %vm6011_vm0  ;;  %v3809_v24 = vld [vmem:[#allocation2 + $0x48] sm:$0xff] }
 0x1a9   : > { %3601 = vmatmul.msk.bf16.gmra.mxu0 %vm6006_vm7, %v3823_v27  ;;  %v2326_v29 = vsel %vm4847_vm13, %v2264_v14, %v2325_v21  ;;  %vm6013_vm7 = vmmov %vm6011_vm0  ;;  %v1164_v14 = vld [vmem:[#allocation2 + $0x90] sm:$0xf] }
 0x1aa   : > { %2327 = vst [vmem:[#allocation2 + $0x54] sm:$0xf] %v2326_v29  ;;  %v1165_v44 = vsel %vm4160_vm5, %v1056_v26, %v1164_v14  ;;  %vm6025_vm5 = vcmask 158848   ;;  %v3844_v26 = vld [vmem:[#allocation2 + $0x70] sm:$0xff] }
 0x1ab   : > { %1166 = vst [vmem:[#allocation2 + $0x90] sm:$0xf] %v1165_v44 }
 0x1ad   : > { %3692 = vmatmul.msk.bf16.gmra.mxu3 %vm6008_vm15, %v3813_v4  ;;  %vm6015_vm15 = vmmov %vm6009_vm4 }
 0x1ae   : > { %v1862_v36 = vpop.permute.xlu2 %1861 }
 0x1af   : > { %v1955_v8 = vld [vmem:[#allocation2 + $0x50] sm:$0xf]  ;;  %v1960_v62 = vsel %vm4681_vm9, %v1862_v36, %v1959_v34 }
 0x1b0   : > { %v1956_v38 = vsel %vm4901_vm3, %v1858_v7, %v1955_v8  ;;  %1961 = vst [vmem:[#allocation2 + $0x58] sm:$0x1] %v1960_v62 }
 0x1b1   : > { %v2371_v52 = vld [vmem:[#allocation2 + $0x54] sm:$0x8]  ;;  %1957 = vst [vmem:[#allocation2 + $0x50] sm:$0xf] %v1956_v38 }
 0x1b2   : > { %v2372_v16 = vsel %vm4909_vm8, 0, %v2371_v52  ;;  %2121 = vst.msk [vmem:[#allocation2 + $0x50] sm:$0xf] %vm6009_vm4, %v2071_v5  ;;  %vm6016_vm4 = vmmov %vm6010_vm1 }
 0x1b3   : > { %v2262_v2 = vpop.permute.xlu1 %2261  ;;  %2373 = vst [vmem:[#allocation2 + $0x54] sm:$0x8] %v2372_v16 }
 0x1b4   : > { %2324 = vst.msk [vmem:[#allocation2 + $0x50] sm:$0xf] %vm6010_vm1, %v2262_v2  ;;  %vm6017_vm1 = vcmask 27648   ;;  %v3846_v2 = vld [vmem:[#allocation2 + $0x80] sm:$0xff] }
 0x1b5   : > { %1167 = vst.msk [vmem:[#allocation2 + $0x94] sm:$0xf] %vm6017_vm1, %v1065_v57  ;;  %vm6026_vm1 = vcmask 60448  }
 0x1b6   : > { %v1268_v47 = vpop.permute.xlu2 %1267 }
 0x1b7   : > { %v2010_v43 = vld [vmem:[#allocation2 + $0x58] sm:$0xf] }
 0x1b8   : > { %3686 = vmatmul.msk.bf16.gmra.mxu1 %vm6011_vm0, %v3807_v42  ;;  %v2011_v11 = vsel %vm4901_vm3, 0, %v2010_v43 }
 0x1b9   : > { %3602 = vmatmul.msk.bf16.gmra.mxu0 %vm6012_vm12, %v3824_v35  ;;  %2012 = vst [vmem:[#allocation2 + $0x58] sm:$0xf] %v2011_v11  ;;  %vm6019_vm12 = vmmov %vm6011_vm0  ;;  %v3842_v35 = vld [vmem:[#allocation2 + $0x60] sm:$0xff]  ;;  %v3847_v11 = vld [vmem:[#allocation2 + $0x88] sm:$0xff] }
 0x1ba   : > { %2141 = vst.msk [vmem:[#allocation2 + $0x58] sm:$0xf] %vm6015_vm15, %v3967_v45  ;;  %vm6023_vm15 = vmmov %vm6018_vm11 }
 0x1bb   : > { %v3840_v30 = vld [vmem:[#allocation2 + $0x50] sm:$0xff]  ;;  %2374 = vst.msk [vmem:[#allocation2 + $0x58] sm:$0xf] %vm6016_vm4, %v3967_v45  ;;  %vm6024_vm4 = vmmov %vm6011_vm0 }
 0x1bc   : > { %3772 = vmatmul.msk.bf16.gmra.mxu2 %vm6014_vm10, %v3840_v30  ;;  %v3825_v9 = vld [vmem:[#allocation2 + $0x50] sm:$0xff]  ;;  %vm6020_vm10 = vmmov %vm6011_vm0  ;;  %1310 = vst.msk [vmem:[#allocation2 + $0x90] sm:$0xf] %vm6023_vm15, %v1268_v47 }
 0x1bd   : > { %3693 = vmatmul.msk.bf16.gmra.mxu3 %vm6013_vm7, %v3814_v17  ;;  %vm3198_vm7 = vcmask 60416   ;;  %v3810_v54 = vld [vmem:[#allocation2 + $0x50] sm:$0xff]  ;;  %vm6034_vm15 = vmmov %vm6011_vm0 }
 0x1be   : > { %v2089_v46 = vpop.permute.xlu2 %2088 }
 0x1bf   : > { %v3087_v23 = vpop.f32.mrf.mxu2 }
 0x1c2   : > { %v2832_v13 = vpop.f32.mrf.mxu1  ;;  %v3841_v20 = vld [vmem:[#allocation2 + $0x58] sm:$0xff] }
 0x1c3   : > { %v3826_v7 = vld [vmem:[#allocation2 + $0x58] sm:$0xff] }
 0x1c4   : > { %v1270_v0 = vpop.permute.xlu0 %1269 }
 0x1c5   : > { %1311 = vst.msk [vmem:[#allocation2 + $0x94] sm:$0xf] %vm6018_vm11, %v1270_v0  ;;  %vm6027_vm11 = vcmask 126048  }
 0x1c6   : > { %v2619_v6 = vpop.f32.mrf.mxu0 }
 0x1c7   : > { %v2833_v31 = vadd.f32 %v2832_v13, %v2619_v6  ;;  %v3088_v5 = vpop.f32.mrf.mxu2  ;;  %v2087_v13 = vpop.permute.xlu2 %2086  ;;  %v3843_v6 = vld [vmem:[#allocation2 + $0x68] sm:$0xff] }
 0x1c8   : > { %3687 = vmatmul.msk.bf16.gmra.mxu1 %vm6011_vm0, %v3808_v28  ;;  %v3845_v5 = vld [vmem:[#allocation2 + $0x78] sm:$0xff] }
 0x1c9   : > { %v3146_v48 = vadd.f32 %v3082_v19, %v2833_v31  ;;  %3603 = vmatmul.msk.bf16.gmra.mxu0 %vm6019_vm12, %v3825_v9  ;;  %vm6029_vm12 = vmmov %vm6011_vm0  ;;  %v1987_v31 = vld [vmem:[#allocation2 + $0x98] sm:$0x1] }
 0x1ca   : > { %v2834_v10 = vpop.f32.mrf.mxu1 }
 0x1cb   : > { %v3166_v3 = vadd.f32 %v5695_v49, %v3146_v48  ;;  %v2672_v56 = vpop.f32.mrf.mxu3 }
 0x1cc   : > { %v1525_v39 = vld [vmem:[#allocation2 + $0x94] sm:$0xf]  ;;  %v1464_v61 = vpop.permute.xlu1 %1463  ;;  %3773 = vmatmul.msk.bf16.gmra.mxu2 %vm6021_vm2, %v3841_v20  ;;  %vm6032_vm2 = vmmov %vm6027_vm11 }
 0x1cd   : > { %v3182_v59 = vpack.c.bf16 %v3166_v3, %v3166_v3  ;;  %3694 = vmatmul.msk.bf16.gmra.mxu3 %vm6020_vm10, %v3815_v37  ;;  %v1526_v27 = vsel %vm4592_vm14, %v1464_v61, %v1525_v39  ;;  %vm6022_vm14 = vmmov %vm6011_vm0 }
 0x1ce   : > { %v2621_v63 = vpop.f32.mrf.mxu0  ;;  %1527 = vst [vmem:[#allocation2 + $0x94] sm:$0xf] %v1526_v27  ;;  %vm6030_vm10 = vmmov %vm6011_vm0 }
 0x1cf   : > { %3199 = vst.msk [vmem:[%s5705_s23] sm:$0xf] %vm3198_vm7, %v3182_v59  ;;  %v2835_v15 = vadd.f32 %v2834_v10, %v2621_v63 }
 0x1d1   : > { %v3147_v1 = vadd.f32 %v3084_v33, %v2835_v15 }
 0x1d3   : > { %v3167_v4 = vadd.f32 %v5695_v49, %v3147_v1  ;;  %v2673_v42 = vpop.f32.mrf.mxu3 }
 0x1d4   : > { %v1884_v52 = vpop.permute.xlu1 %1883 }
 0x1d5   : > { %v3183_v21 = vpack.c.bf16 %v3167_v4, %v3167_v4  ;;  %v2837_v29 = vpop.f32.mrf.mxu1  ;;  %v1576_v38 = vld [vmem:[#allocation2 + $0x94] sm:$0x8] }
 0x1d6   : > { %v2624_v8 = vpop.f32.mrf.mxu0  ;;  %v1577_v55 = vsel %vm5972_vm6, 0, %v1576_v38  ;;  %vm6028_vm6 = vmmov %vm6011_vm0  ;;  %v3828_v29 = vld [vmem:[#allocation2 + $0x68] sm:$0xff] }
 0x1d7   : > { %3200 = vst.msk [vmem:[%s5705_s23 + $0x4] sm:$0xf] %vm3198_vm7, %v3183_v21  ;;  %v1462_v12 = vpop.permute.xlu0 %1461 }
 0x1d8   : > { %3688 = vmatmul.msk.bf16.gmra.mxu1 %vm6022_vm14, %v3809_v24  ;;  %1578 = vst [vmem:[#allocation2 + $0x94] sm:$0x8] %v1577_v55  ;;  %vm6033_vm14 = vcmask 191648  }
 0x1d9   : > { %3604 = vmatmul.msk.bf16.gmra.mxu0 %vm6024_vm4, %v3826_v7  ;;  %1524 = vst.msk [vmem:[#allocation2 + $0x90] sm:$0xf] %vm6025_vm5, %v1462_v12  ;;  %vm6037_vm4 = vmmov %vm6011_vm0  ;;  %v3811_v7 = vld [vmem:[#allocation2 + $0x58] sm:$0xff] }
 0x1da   : > { %1986 = vst.msk [vmem:[#allocation2 + $0x94] sm:$0xf] %vm6026_vm1, %v1884_v52  ;;  %vm6039_vm5 = vmmov %vm6011_vm0 }
 0x1db   : > { %2130 = vst.msk [vmem:[#allocation2 + $0x94] sm:$0xf] %vm6027_vm11, %v2089_v46  ;;  %vm6040_vm1 = vmmov %vm6011_vm0 }
 0x1dc   : > { %3774 = vmatmul.msk.bf16.gmra.mxu2 %vm6028_vm6, %v3842_v35  ;;  %v1882_v50 = vpop.permute.xlu1 %1881  ;;  %vm6041_vm11 = vmmov %vm6011_vm0 }
 0x1dd   : > { %v2838_v16 = vpop.f32.mrf.mxu1  ;;  %3778 = vmatmul.msk.bf16.vlgmr.msra.gmra.mxu3 %vm6011_vm0, %v3846_v2 }
 0x1de   : > { %v2625_v40 = vpop.f32.mrf.mxu0 }
 0x1df   : > { %v2280_v62 = vpop.permute.xlu0 %2279 }
 0x1e0   : > { %v1654_v34 = vld [vmem:[#allocation2 + $0x90] sm:$0x1] }
 0x1e1   : > { %v1655_v36 = vsel %vm4681_vm9, 0, %v1654_v34 }
 0x1e2   : > { %1656 = vst [vmem:[#allocation2 + $0x90] sm:$0x1] %v1655_v36  ;;  %v2341_v17 = vld [vmem:[#allocation2 + $0x94] sm:$0xf] }
 0x1e3   : > { %v2342_v19 = vsel %vm4847_vm13, %v2280_v62, %v2341_v17  ;;  %vm6031_vm13 = vmmov %vm6011_vm0 }
 0x1e4   : > { %2343 = vst [vmem:[#allocation2 + $0x94] sm:$0xf] %v2342_v19  ;;  %v1886_v48 = vpop.permute.xlu1 %1885 }
 0x1e5   : > { %v2840_v30 = vpop.f32.mrf.mxu1  ;;  %v1988_v3 = vsel %vm4681_vm9, %v1886_v48, %v1987_v31  ;;  %vm6035_vm9 = vmmov %vm6032_vm2 }
 0x1e6   : > { %v2627_v43 = vpop.f32.mrf.mxu0  ;;  %1989 = vst [vmem:[#allocation2 + $0x98] sm:$0x1] %v1988_v3 }
 0x1e7   : > { %v2278_v18 = vpop.permute.xlu0 %2277  ;;  %v2841_v32 = vadd.f32 %v2840_v30, %v2627_v43 }
 0x1e8   : > { %3689 = vmatmul.msk.bf16.gmra.mxu1 %vm6029_vm12, %v3810_v54 }
 0x1e9   : > { %3605 = vmatmul.msk.bf16.gmra.mxu0 %vm6030_vm10, %v3827_v51  ;;  %v1983_v57 = vld [vmem:[#allocation2 + $0x90] sm:$0xf] }
 0x1ea   : > { %v1984_v9 = vsel %vm4901_vm3, %v1882_v50, %v1983_v57 }
 0x1eb   : > { %v2391_v28 = vld [vmem:[#allocation2 + $0x94] sm:$0x8]  ;;  %1985 = vst [vmem:[#allocation2 + $0x90] sm:$0xf] %v1984_v9 }
 0x1ec   : > { %v2392_v33 = vsel %vm4909_vm8, 0, %v2391_v28  ;;  %2129 = vst.msk [vmem:[#allocation2 + $0x90] sm:$0xf] %vm6032_vm2, %v2087_v13  ;;  %3775 = vmatmul.msk.bf16.gmra.mxu2 %vm6034_vm15, %v3843_v6  ;;  %vm6036_vm8 = vmmov %vm6033_vm14 }
 0x1ed   : > { %v2842_v0 = vpop.f32.mrf.mxu1  ;;  %3779 = vmatmul.msk.bf16.gmra.mxu3 %vm6031_vm13, %v3847_v11  ;;  %2393 = vst [vmem:[#allocation2 + $0x94] sm:$0x8] %v2392_v33  ;;  %v2026_v63 = vld [vmem:[#allocation2 + $0x98] sm:$0xf] }
 0x1ee   : > { %v2629_v37 = vpop.f32.mrf.mxu0  ;;  %2340 = vst.msk [vmem:[#allocation2 + $0x90] sm:$0xf] %vm6033_vm14, %v2278_v18  ;;  %v2027_v53 = vsel %vm4901_vm3, 0, %v2026_v63  ;;  %vm6038_vm3 = vmmov %vm6011_vm0 }
 0x1ef   : > { %v2843_v61 = vadd.f32 %v2842_v0, %v2629_v37  ;;  %2028 = vst [vmem:[#allocation2 + $0x98] sm:$0xf] %v2027_v53 }
 0x1f0   : > { %2149 = vst.msk [vmem:[#allocation2 + $0x98] sm:$0xf] %vm6035_vm9, %v3967_v45 }
 0x1f1   : > { %2394 = vst.msk [vmem:[#allocation2 + $0x98] sm:$0xf] %vm6036_vm8, %v3967_v45 }
 0x1f2   : > { %v3090_v60 = vpop.f32.mrf.mxu2 }
 0x1f3   : > { %v3148_v20 = vadd.f32 %v3090_v60, %v2841_v32 }
 0x1f4   : > { %v5749_v39 = vpop.f32.mrf.mxu3 }
 0x1f5   : > { %v2845_v41 = vpop.f32.mrf.mxu1  ;;  %v3168_v59 = vadd.f32 %v5695_v49, %v3148_v20  ;;  %v3848_v15 = vld [vmem:[#allocation2 + $0x90] sm:$0xff] }
 0x1f6   : > { %v2632_v10 = vpop.f32.mrf.mxu0 }
 0x1f7   : > { %v3184_v47 = vpack.c.bf16 %v3168_v59, %v3168_v59 }
 0x1f8   : > { %3690 = vmatmul.msk.bf16.gmra.mxu1 %vm6040_vm1, %v3811_v7  ;;  %v3849_v45 = vld [vmem:[#allocation2 + $0x98] sm:$0xff] }
 0x1f9   : > { %3201 = vst.msk [vmem:[%s5705_s23 + $0x8] sm:$0xf] %vm3198_vm7, %v3184_v47  ;;  %3606 = vmatmul.msk.bf16.gmra.mxu0 %vm6039_vm5, %v3828_v29 }
 0x1fa   : > { %v3092_v27 = vpop.f32.mrf.mxu2 }
 0x1fb   : > { %v3149_v23 = vadd.f32 %v3092_v27, %v2843_v61 }
 0x1fc   : > { %3776 = vmatmul.msk.bf16.gmra.mxu2 %vm6038_vm3, %v3844_v26  ;;  %v5764_v24 = vpop.f32.mrf.mxu3 }
 0x1fd   : > { %v2846_v56 = vpop.f32.mrf.mxu1  ;;  %v3169_v1 = vadd.f32 %v5695_v49, %v3149_v23  ;;  %3780 = vmatmul.msk.bf16.gmra.mxu3 %vm6037_vm4, %v3848_v15 }
 0x1fe   : > { %v2633_v25 = vpop.f32.mrf.mxu0 }
 0x1ff   : > { %v3185_v4 = vpack.c.bf16 %v3169_v1, %v3169_v1 }
 0x201   : > { %3202 = vst.msk [vmem:[%s5705_s23 + $0xc] sm:$0xf] %vm3198_vm7, %v3185_v4 }
 0x202   : > { %v3095_v14 = vpop.f32.mrf.mxu2 }
 0x205   : > { %v2848_v21 = vpop.f32.mrf.mxu1 }
 0x206   : > { %v2635_v44 = vpop.f32.mrf.mxu0 }
 0x207   : > { %v2849_v2 = vadd.f32 %v2848_v21, %v2635_v44 }
 0x20a   : > { %v2680_v8 = vpop.f32.mrf.mxu3  ;;  %v3096_v38 = vpop.f32.mrf.mxu2 }
 0x20c   : > { %3777 = vmatmul.msk.bf16.gmra.mxu2 %vm6011_vm0, %v3845_v5 }
 0x20d   : > { %v2850_v42 = vpop.f32.mrf.mxu1  ;;  %3781 = vmatmul.msk.bf16.gmra.mxu3 %vm6041_vm11, %v3849_v45 }
 0x20e   : > { %v2637_v55 = vpop.f32.mrf.mxu0 }
 0x20f   : > { %v2851_v17 = vadd.f32 %v2850_v42, %v2637_v55 }
 0x212   : > { %v2681_v12 = vpop.f32.mrf.mxu3 }
 0x215   : > { %v2853_v52 = vpop.f32.mrf.mxu1 }
 0x216   : > { %v2640_v46 = vpop.f32.mrf.mxu0 }
 0x219   : > { %v3098_v16 = vpop.f32.mrf.mxu2 }
 0x21a   : > { %v3150_v40 = vadd.f32 %v3098_v16, %v2849_v2 }
 0x21c   : > { %v3170_v35 = vadd.f32 %v5695_v49, %v3150_v40 }
 0x21d   : > { %v2854_v34 = vpop.f32.mrf.mxu1 }
 0x21e   : > { %v2641_v36 = vpop.f32.mrf.mxu0  ;;  %v3186_v62 = vpack.c.bf16 %v3170_v35, %v3170_v35 }
 0x220   : > { %3203 = vst.msk [vmem:[%s5705_s23 + $0x10] sm:$0xf] %vm3198_vm7, %v3186_v62  ;;  %v2880_v19 = vpop.f32.mrf.mxu3 }
 0x221   : > { %v3100_v30 = vpop.f32.mrf.mxu2  ;;  %v2881_v45 = vadd.f32 %v2880_v19, %v5672_v58 }
 0x222   : > { %v3151_v50 = vadd.f32 %v3100_v30, %v2851_v17 }
 0x224   : > { %v3171_v54 = vadd.f32 %v5695_v49, %v3151_v50 }
 0x225   : > { %v2856_v43 = vpop.f32.mrf.mxu1 }
 0x226   : > { %v2643_v51 = vpop.f32.mrf.mxu0  ;;  %v3187_v11 = vpack.c.bf16 %v3171_v54, %v3171_v54 }
 0x227   : > { %v2857_v32 = vadd.f32 %v2856_v43, %v2643_v51 }
 0x228   : > { %3204 = vst.msk [vmem:[%s5705_s23 + $0x14] sm:$0xf] %vm3198_vm7, %v3187_v11  ;;  %v2882_v57 = vpop.f32.mrf.mxu3 }
 0x229   : > { %v3103_v9 = vpop.f32.mrf.mxu2  ;;  %v2883_v2 = vadd.f32 %v2882_v57, %v5690_v22 }
 0x22d   : > { %v2858_v13 = vpop.f32.mrf.mxu1 }
 0x22e   : > { %v2645_v28 = vpop.f32.mrf.mxu0 }
 0x22f   : > { %v2859_v53 = vadd.f32 %v2858_v13, %v2645_v28 }
 0x230   : > { %v2885_v18 = vpop.f32.mrf.mxu3 }
 0x231   : > { %v3104_v0 = vpop.f32.mrf.mxu2 }
 0x235   : > { %v2861_v6 = vpop.f32.mrf.mxu1 }
 0x236   : > { %v2648_v33 = vpop.f32.mrf.mxu0 }
 0x238   : > { %v2886_v31 = vpop.f32.mrf.mxu3 }
 0x23d   : > { %v2862_v48 = vpop.f32.mrf.mxu1 }
 0x23e   : > { %v2649_v37 = vpop.f32.mrf.mxu0 }
 0x23f   : > { %v3106_v60 = vpop.f32.mrf.mxu2 }
 0x240   : > { %v2888_v3 = vpop.f32.mrf.mxu3  ;;  %v3152_v20 = vadd.f32 %v3106_v60, %v2857_v32 }
 0x241   : > { %v2889_v9 = vadd.f32 %v2888_v3, %v5749_v39 }
 0x242   : > { %v3172_v10 = vadd.f32 %v5695_v49, %v3152_v20 }
 0x244   : > { %v3188_v63 = vpack.c.bf16 %v3172_v10, %v3172_v10 }
 0x245   : > { %v2864_v41 = vpop.f32.mrf.mxu1 }
 0x246   : > { %v2651_v59 = vpop.f32.mrf.mxu0  ;;  %3205 = vst.msk [vmem:[%s5705_s23 + $0x18] sm:$0xf] %vm3198_vm7, %v3188_v63 }
 0x247   : > { %v3108_v61 = vpop.f32.mrf.mxu2  ;;  %v2865_v5 = vadd.f32 %v2864_v41, %v2651_v59 }
 0x248   : > { %v2890_v47 = vpop.f32.mrf.mxu3  ;;  %v3153_v15 = vadd.f32 %v3108_v61, %v2859_v53 }
 0x249   : > { %v2891_v20 = vadd.f32 %v2890_v47, %v5764_v24 }
 0x24a   : > { %v3173_v56 = vadd.f32 %v5695_v49, %v3153_v15 }
 0x24c   : > { %v3189_v25 = vpack.c.bf16 %v3173_v56, %v3173_v56 }
 0x24d   : > { %v2866_v27 = vpop.f32.mrf.mxu1 }
 0x24e   : > { %v2653_v23 = vpop.f32.mrf.mxu0  ;;  %3206 = vst.msk [vmem:[%s5705_s23 + $0x1c] sm:$0xf] %vm3198_vm7, %v3189_v25 }
 0x24f   : > { %v3111_v26 = vpop.f32.mrf.mxu2  ;;  %v2867_v58 = vadd.f32 %v2866_v27, %v2653_v23 }
 0x250   : > { %v2893_v1 = vpop.f32.mrf.mxu3 }
 0x255   : > { %v2869_v4 = vpop.f32.mrf.mxu1 }
 0x256   : > { %v2656_v14 = vpop.f32.mrf.mxu0 }
 0x257   : > { %v3112_v29 = vpop.f32.mrf.mxu2 }
 0x258   : > { %v2894_v21 = vpop.f32.mrf.mxu3 }
 0x25d   : > { %v2870_v7 = vpop.f32.mrf.mxu1 }
 0x25e   : > { %v2657_v44 = vpop.f32.mrf.mxu0 }
 0x25f   : > { %v3114_v55 = vpop.f32.mrf.mxu2 }
 0x260   : > { %v3130_v8 = vpop.f32.mrf.mxu3  ;;  %v3154_v12 = vadd.f32 %v3114_v55, %v2865_v5 }
 0x261   : > { %v3158_v38 = vadd.f32 %v3130_v8, %v2881_v45 }
 0x262   : > { %v3174_v46 = vadd.f32 %v5695_v49, %v3154_v12 }
 0x263   : > { %v3178_v42 = vadd.f32 %v5695_v49, %v3158_v38 }
 0x264   : > { %v3190_v40 = vpack.c.bf16 %v3174_v46, %v3174_v46 }
 0x265   : > { %v3194_v52 = vpack.c.bf16 %v3178_v42, %v3178_v42  ;;  %v2872_v50 = vpop.f32.mrf.mxu1 }
 0x266   : > { %3207 = vst.msk [vmem:[%s5705_s23 + $0x20] sm:$0xf] %vm3198_vm7, %v3190_v40  ;;  %v2659_v54 = vpop.f32.mrf.mxu0 }
 0x267   : > { %3211 = vst.msk [vmem:[%s5705_s23 + $0x30] sm:$0xf] %vm3198_vm7, %v3194_v52  ;;  %v3116_v36 = vpop.f32.mrf.mxu2  ;;  %v2873_v6 = vadd.f32 %v2872_v50, %v2659_v54 }
 0x268   : > { %v3132_v16 = vpop.f32.mrf.mxu3  ;;  %v3155_v62 = vadd.f32 %v3116_v36, %v2867_v58 }
 0x269   : > { %v3159_v35 = vadd.f32 %v3132_v16, %v2883_v2 }
 0x26a   : > { %v3175_v19 = vadd.f32 %v5695_v49, %v3155_v62 }
 0x26b   : > { %v3179_v34 = vadd.f32 %v5695_v49, %v3159_v35 }
 0x26c   : > { %v3191_v22 = vpack.c.bf16 %v3175_v19, %v3175_v19 }
 0x26d   : > { %v3195_v17 = vpack.c.bf16 %v3179_v34, %v3179_v34  ;;  %v2874_v57 = vpop.f32.mrf.mxu1 }
 0x26e   : > { %3208 = vst.msk [vmem:[%s5705_s23 + $0x24] sm:$0xf] %vm3198_vm7, %v3191_v22  ;;  %v2661_v13 = vpop.f32.mrf.mxu0 }
 0x26f   : > { %3212 = vst.msk [vmem:[%s5705_s23 + $0x34] sm:$0xf] %vm3198_vm7, %v3195_v17  ;;  %v3119_v43 = vpop.f32.mrf.mxu2  ;;  %v2875_v59 = vadd.f32 %v2874_v57, %v2661_v13 }
 0x270   : > { %v3135_v30 = vpop.f32.mrf.mxu3 }
 0x275   : > { %v2877_v37 = vpop.f32.mrf.mxu1 }
 0x276   : > { %v2664_v48 = vpop.f32.mrf.mxu0 }
 0x277   : > { %v3120_v11 = vpop.f32.mrf.mxu2 }
 0x278   : > { %v3136_v51 = vpop.f32.mrf.mxu3 }
 0x27d   : > { %v2878_v15 = vpop.f32.mrf.mxu1 }
 0x27e   : > { %v2665_v61 = vpop.f32.mrf.mxu0 }
 0x27f   : > { %v3122_v33 = vpop.f32.mrf.mxu2 }
 0x280   : > { %v3138_v28 = vpop.f32.mrf.mxu3  ;;  %v3156_v31 = vadd.f32 %v3122_v33, %v2873_v6 }
 0x281   : > { %v3160_v18 = vadd.f32 %v3138_v28, %v2889_v9 }
 0x282   : > { %v3176_v60 = vadd.f32 %v5695_v49, %v3156_v31 }
 0x283   : > { %v3180_v0 = vadd.f32 %v5695_v49, %v3160_v18 }
 0x284   : > { %v3192_v3 = vpack.c.bf16 %v3176_v60, %v3176_v60 }
 0x285   : > { %v3196_v32 = vpack.c.bf16 %v3180_v0, %v3180_v0 }
 0x286   : > { %3209 = vst.msk [vmem:[%s5705_s23 + $0x28] sm:$0xf] %vm3198_vm7, %v3192_v3 }
 0x287   : > { %3213 = vst.msk [vmem:[%s5705_s23 + $0x38] sm:$0xf] %vm3198_vm7, %v3196_v32  ;;  %v3124_v63 = vpop.f32.mrf.mxu2 }
 0x288   : > { %v3140_v39 = vpop.f32.mrf.mxu3  ;;  %v3157_v53 = vadd.f32 %v3124_v63, %v2875_v59 }
 0x289   : > { %v3161_v41 = vadd.f32 %v3140_v39, %v2891_v20 }
 0x28a   : > { %v3177_v23 = vadd.f32 %v5695_v49, %v3157_v53 }
 0x28b   : > { %v3181_v10 = vadd.f32 %v5695_v49, %v3161_v41 }
 0x28c   : > { %v3193_v24 = vpack.c.bf16 %v3177_v23, %v3177_v23 }
 0x28d   : > { %v3197_v27 = vpack.c.bf16 %v3181_v10, %v3181_v10 }
 0x28e   : > { %3210 = vst.msk [vmem:[%s5705_s23 + $0x2c] sm:$0xf] %vm3198_vm7, %v3193_v24 }
 0x28f   : > { %3214 = vst.msk [vmem:[%s5705_s23 + $0x3c] sm:$0xf] %vm3198_vm7, %v3197_v27  ;;  %v3127_v56 = vpop.f32.mrf.mxu2 }
 0x290   : > { %v3143_v47 = vpop.f32.mrf.mxu3 }
 0x297   : > { %v3128_v25 = vpop.f32.mrf.mxu2 }
 0x298   : > { %v3144_v1 = vpop.f32.mrf.mxu3 }
 0x299 PF: > { %s20_s17 = sadd.s32 1, %s3960_s17   ;;  %s6042_s13 = smov %s3952_s15 }
 0x29a   : > { %p17_p12 = scmp.ge.s32.totalorder %s20_s17, 6   ;;  %s6043_s14 = smov %s3956_s16 }
 0x29b   : > { %s6044_s15 = smov %s6047_s18  ;;  %s6045_s16 = smov %s6051_s19 }
 0x29c   :  { %19 = sbr.rel (!%p17_p12) target bundleno = 3 (0x3), region = 119 }

// kernel: decoder_forward.4
= control target key start
LH: loop header
LB: loop body
LE: loop exit
PB: predicated region body
PF: predicated region fallthrough
CT: control target
= control target key end

     0   :  { %s4476_s25 = smov 0   ;;  %s4478_s26 = smov 0   ;;  %s6395_s0 = inlined_call_operand.vmem [shape: bf16[2,16,16,8], index: 0, kind: input, shape index: {}, may-alias: {0,1,2,6}]   ;;  %s6396_s1 = inlined_call_operand.vmem [shape: bf16[2,16,16,8], index: 1, kind: input, shape index: {}, may-alias: {0,1,2,6}]   ;;  %s6397_s2 = inlined_call_operand.vmem [shape: bf16[2,16,16,8], index: 2, kind: input, shape index: {}, may-alias: {0,1,2,6}]   ;;  %s6398_s3 = inlined_call_operand.vmem [shape: f32[2,16,16,8], index: 3, kind: input, shape index: {}, may-alias: {3,4,5}]   ;;  %s6399_s4 = inlined_call_operand.vmem [shape: f32[2,16,16,8], index: 4, kind: input, shape index: {}, may-alias: {3,4,5}]   ;;  %s6400_s5 = inlined_call_operand.vmem [shape: f32[2,16,16,8], index: 5, kind: input, shape index: {}, may-alias: {3,4,5}]   ;;  %s6401_s6 = inlined_call_operand.vmem [shape: bf16[2,16,16,8], index: 6, kind: input, shape index: {}, may-alias: {0,1,2,6}]   ;;  %s6402_s7 = inlined_call_operand.vmem [shape: bf16[3,48,8], index: 7, kind: input, shape index: {}]   ;;  %s6403_s8 = inlined_call_operand.vmem [shape: f32[1,8], index: 8, kind: input, shape index: {}]   ;;  %s6404_s9 = inlined_call_operand.vmem [shape: f32[1,8], index: 9, kind: input, shape index: {}]   ;;  %s6405_s10 = inlined_call_operand.vmem [shape: f32[1,8], index: 10, kind: input, shape index: {}]   ;;  %s6406_s11 = inlined_call_operand.vmem [shape: f32[1,8], index: 11, kind: input, shape index: {}]   ;;  %s6407_s12 = inlined_call_operand.vmem [shape: f32[1,8], index: 12, kind: input, shape index: {}]   ;;  %s6408_s13 = inlined_call_operand.vmem [shape: bf16[2,16,16,8], index: 13, kind: output, shape index: {}]  }
   0x1   :  { %6422 = sst [smem:[#allocation6_spill]] %s6395_s0  ;;  %s4480_s27 = smov 0  }
   0x2   :  { %6423 = sst [smem:[#allocation7_spill]] %s6398_s3  ;;  %s4482_s28 = smov 0  }
   0x3   :  { %s4484_s29 = smov 0  }
   0x4 LB: > { %6424 = sst [smem:[#allocation3_spill]] %s4394_s28  ;;  %s38_s30 = sadd.s32 1, %s4390_s27  ;;  %s4398_s29 = sphi %s4484_s29, %s23_s29   ;;  %s4394_s28 = sphi %s4482_s28, %s6638_s28   ;;  %s4390_s27 = sphi %s4480_s27, %s6640_s27   ;;  %s4386_s26 = sphi %s4478_s26, %s6636_s26   ;;  %s4382_s25 = sphi %s4476_s25, %s6639_s25  }
   0x5   : > { %s42_s14 = sadd.s32 1, %s4394_s28  ;;  %p40_p0 = scmp.ge.s32.totalorder %s38_s30, 2 }
   0x6   : > { %p3794_p1 = scmp.ge.s32.totalorder %s4398_s29, 1  ;;  %p604_p2 = scmp.lt.s32.totalorder %s4398_s29, 5 }
   0x7   : > { %s6642_s30 = smov (%p40_p0, %s38_s30), 0  ;;  %s6644_s14 = smov (!%p40_p0, %s42_s14), %s4394_s28 }
   0x8   : > { %6425 = sst [smem:[#allocation4_spill]] %s6642_s30  ;;  %p605_p3 = pnand %p3794_p1, %p604_p2 }
   0x9   : > { %p44_p4 = scmp.ge.s32.totalorder %s6644_s14, 2  ;;  %s4509_s15 = sshll.u32 (!%p605_p3), %s4382_s25, 3 }
   0xa   : > { %608 = sbr.rel (%p605_p3) target bundleno = 671 (0x29f), region = 72  ;;  %p744_p5 = scmp.lt.s32.totalorder (!%p605_p3), %s4386_s26, 1 }
   0xb   : > { %s6646_s14 = smov (%p44_p4, %s6644_s14), 0  ;;  %p746_p6 = scmp.lt.s32.totalorder (!%p605_p3), %s4509_s15, 15 }
   0xc   : > { %6426 = sst [smem:[#allocation5_spill]] %s6646_s14  ;;  %s4523_s19 = sadd.s32 (!%p605_p3), 4294967295, %s4509_s15 }
   0xd   : > { %p756_p7 = scmp.gt.s32.totalorder (!%p605_p3), %s4523_s19, 0  ;;  %s6429_s0 = sld [smem:[#allocation6_spill]] (!%p605_p3) }
   0xe   : > { %s6430_s3 = sld [smem:[#allocation7_spill]] (!%p605_p3)  ;;  %p3801_p8 = scmp.lt.s32.totalorder (!%p605_p3), %s4523_s19, 15 }
   0xf   : > { %s6648_s26 = smov (!%p744_p5, %s4386_s26), 1  ;;  %vm1013_vm0 = vcmask 57344   ;;  %vm1014_vm1 = vsmask.f32 256  ;;  %v1022_v0 = vld [vmem:[#allocation2 + $0x20] sm:$0x1] }
  0x10   : > { %s747_s16 = scalar_select %p746_p6, %s4509_s15, 15  ;;  %vm4514_vm2 = vmand %vm1013_vm0, %vm1014_vm1  ;;  %v4529_v3 = vld [vmem:[%s6403_s8] ss:$0 sm:$0xff]  ;;  %v1037_v5 = vld [vmem:[#allocation2 + $0x70] sm:$0x1]  ;;  %vm6415_vm3 = vcmask 60416  }
  0x11   : > { %s4518_s17 = sshll.u32 %s6648_s26, 5  ;;  %v1023_v2 = vsel %vm4514_vm2, 0, %v1022_v0  ;;  %v4537_v4 = vld [vmem:[%s6405_s10] ss:$0 sm:$0xff]  ;;  %v1038_v7 = vsel %vm4514_vm2, 0, %v1037_v5  ;;  %p873_p9 = scmp.gt.s32.totalorder %s4382_s25, 0 }
  0x12   : > { %s3796_s18 = sshll.u32 %s747_s16, 1  ;;  %1024 = vst [vmem:[#allocation2 + $0x20] sm:$0x1] %v1023_v2  ;;  %v4553_v6 = vld [vmem:[%s6406_s11] ss:$0 sm:$0xff]  ;;  %vm6421_vm12 = vcmask 191616  }
  0x13   : > { %s750_s20 = sadd.s32 %s4518_s17, %s3796_s18  ;;  %1039 = vst [vmem:[#allocation2 + $0x70] sm:$0x1] %v1038_v7  ;;  %v4566_v11 = vld [vmem:[%s6404_s9] ss:$0 sm:$0xff]  ;;  %vm1249_vm4 = vsmask.f32 7938 }
  0x14   : > { %s4532_s23 = sshll.u32 %s750_s20, 2  ;;  %s3819_s24 = sshll.u32 %s750_s20, 3  ;;  %vm4642_vm6 = vmand %vm6415_vm3, %vm1249_vm4  ;;  %v1270_v5 = vld [vmem:[#allocation2 + $0x28] sm:$0x1]  ;;  %vm1046_vm7 = vsmask.f32 4368 }
  0x15   : > { %s4543_s30 = scalar_lea.vmem %s6429_s0, %s4532_s23  ;;  %s4548_s20 = scalar_lea.vmem %s6430_s3, %s3819_s24  ;;  %vm1483_vm8 = vsmask.f32 3328  ;;  %vm1484_vm9 = vsmask.f32 7440  ;;  %vm4738_vm10 = vmor %vm1014_vm1, %vm1046_vm7  ;;  %vm6417_vm13 = vcmask 322816   ;;  %vm1679_vm15 = vcmask 322819  }
  0x16   : > { %v4280_v8 = vld [vmem:[%s4543_s30 + $0x8] sm:$0xff]   ;;  %v4559_v9 = vld [vmem:[%s4543_s30] sm:$0xff]   ;;  %v4285_v10 = vld [vmem:[%s4543_s30 + $0x30] sm:$0xff]   ;;  %s757_s28 = scalar_select %p756_p7, %s4523_s19, 0  ;;  %vm6412_vm0 = vsmask.f32 7950 }
  0x17   : > { %v4223_v12 = vunpack.c.h.bf16 %v4280_v8  ;;  %v4222_v13 = vunpack.c.l.bf16 %v4280_v8  ;;  %v4219_v14 = vunpack.c.h.bf16 %v4559_v9  ;;  %v4243_v15 = vunpack.c.h.bf16 %v4285_v10  ;;  %v1762_v16 = vld [vmem:[%s4548_s20 + $0x10] sm:$0xff]  ;;  %v1763_v17 = vld [vmem:[%s4548_s20 + $0x18] sm:$0xff]  ;;  %s892_s16 = scalar_select %p873_p9, 1, 0  ;;  %vm4749_vm11 = vmor %vm1483_vm8, %vm1484_vm9 }
  0x18   : > { %v4242_v18 = vunpack.c.l.bf16 %v4285_v10  ;;  %v1778_v19 = vmul.f32 %v4537_v4, %v1762_v16  ;;  %v1779_v20 = vmul.f32 %v4537_v4, %v1763_v17  ;;  %s6650_s28 = smov (!%p3801_p8, %s757_s28), 15  ;;  %s4400_s0 = smov 16   ;;  %vm5094_vm14 = vmand %vm6417_vm13, %vm1483_vm8  ;;  %vm1844_vm7 = vcmask 122944  }
  0x19   : > { %v948_v21 = vmul.f32 %v4529_v3, %v4223_v12  ;;  %v947_v22 = vmul.f32 %v4529_v3, %v4222_v13  ;;  %v946_v23 = vmul.f32 %v4529_v3, %v4219_v14  ;;  %v958_v24 = vmul.f32 %v4529_v3, %v4243_v15  ;;  %s3806_s18 = sshll.u32 %s6650_s28, 1  ;;  %v1266_v2 = vld [vmem:[#allocation2 + $0x20] sm:$0xf]  ;;  %s4401_s3 = smov 32  }
  0x1a   : > { %v957_v25 = vmul.f32 %v4529_v3, %v4242_v18  ;;  %v1794_v26 = vadd.f32 %v4553_v6, %v1778_v19  ;;  %v1795_v27 = vadd.f32 %v4553_v6, %v1779_v20  ;;  %s764_s21 = sadd.s32 %s3806_s18, %s4518_s17  ;;  %v893_v32 = vstv %s892_s16  ;;  %s4402_s16 = smov 8  }
  0x1b   : > { %v964_v28 = vadd.f32 %v4566_v11, %v948_v21  ;;  %v963_v29 = vadd.f32 %v4566_v11, %v947_v22  ;;  %v962_v30 = vadd.f32 %v4566_v11, %v946_v23  ;;  %v974_v31 = vadd.f32 %v4566_v11, %v958_v24  ;;  %s3808_s19 = sshll.u32 %s764_s21, 2  ;;  %s3829_s22 = sshll.u32 %s764_s21, 3 }
  0x1c   : > { %v973_v33 = vadd.f32 %v4566_v11, %v957_v25  ;;  %s766_s24 = scalar_lea.vmem %s6396_s1, %s3808_s19  ;;  %s811_s28 = scalar_lea.vmem %s6399_s4, %s3829_s22  ;;  %v1810_v39 = vmax.f32 %v1794_v26, 0.0  ;;  %v1811_v40 = vmax.f32 %v1795_v27, 0.0  ;;  %vm4606_vm5 = vcmp.eq.s32.totalorder %v893_v32, 1  ;;  %v1301_v25 = vld [vmem:[#allocation2 + $0x70] sm:$0xf] }
  0x1d   : > { %v980_v34 = vmax.f32 %v964_v28, 0.0  ;;  %v979_v35 = vmax.f32 %v963_v29, 0.0  ;;  %v978_v36 = vmax.f32 %v962_v30, 0.0  ;;  %v990_v37 = vmax.f32 %v974_v31, 0.0  ;;  %v4604_v44 = vld [vmem:[%s766_s24] sm:$0xff]   ;;  %v1733_v47 = vld [vmem:[%s811_s28 + $0x8] sm:$0xff] }
  0x1e   : > { %v989_v38 = vmax.f32 %v973_v33, 0.0  ;;  %v1732_v46 = vld [vmem:[%s811_s28] sm:$0xff]  ;;  %v4211_v48 = vunpack.c.h.bf16 %v4604_v44  ;;  %v1739_v50 = vmul.f32 %v4537_v4, %v1733_v47  ;;  %v4648_v12 = vpack.c.bf16 %v1810_v39, %v1810_v39  ;;  %v1305_v26 = vld [vmem:[#allocation2 + $0x78] sm:$0x1]  ;;  %s4403_s18 = smov 24   ;;  %s4404_s21 = smov 40  }
  0x1f   : > { %v4598_v41 = vpack.c.bf16 %v980_v34, %v980_v34  ;;  %v4600_v42 = vpack.c.bf16 %v979_v35, %v979_v35  ;;  %v4602_v43 = vpack.c.bf16 %v978_v36, %v978_v36  ;;  %v1738_v49 = vmul.f32 %v4537_v4, %v1732_v46  ;;  %s4146_s22 = sadd.s32 8, %s4509_s15  ;;  %p897_p11 = scmp.lt.s32.totalorder %s4382_s25, 1 }
  0x20   : > { %v4613_v51 = vpack.c.bf16 %v989_v38, %v989_v38  ;;  %v4620_v53 = vpack.c.bf16 %v990_v37, %v990_v37  ;;  %v883_v57 = vmul.f32 %v4529_v3, %v4211_v48  ;;  %v1745_v59 = vadd.f32 %v4553_v6, %v1739_v50  ;;  %v1263_v50 = vld [vmem:[#allocation2 + $0x18] sm:$0x1]  ;;  %p5765_p10 = scmp.lt.s32.totalorder %s4146_s22, 15 }
  0x21   : > { %1392 = vrot.lane.b32.xlu0 %v4598_v41, %s4400_s0  ;;  %1390 = vrot.lane.b32.xlu2 %v4600_v42, %s4400_s0  ;;  %v1083_v52 = vshrl.u32 %v4600_v42, 16  ;;  %v1091_v54 = vshrl.u32 %v4598_v41, 16  ;;  %v1094_v55 = vshll.u32 %v4598_v41, 16  ;;  %v1086_v56 = vshll.u32 %v4600_v42, 16  ;;  %s5888_s19 = scalar_select %p897_p11, 1, 0 }
  0x22   : > { %1388 = vrot.lane.b32.xlu1 %v4602_v43, %s4400_s0  ;;  %v1744_v58 = vadd.f32 %v4553_v6, %v1738_v49  ;;  %v889_v7 = vadd.f32 %v4566_v11, %v883_v57  ;;  %v1168_v10 = vshrl.u32 %v4613_v51, 16  ;;  %v4655_v16 = vpack.c.bf16 %v1811_v40, %v1811_v40  ;;  %s6652_s22 = smov (!%p5765_p10, %s4146_s22), 15 }
  0x23   : > { %v4632_v60 = vrot.slane %v1083_v52, 7  ;;  %v4634_v61 = vrot.slane %v1091_v54, 7  ;;  %v4638_v62 = vrot.slane %v1094_v55, 5  ;;  %v1510_v63 = vrot.slane %v1091_v54, 4  ;;  %s6654_s22 = smov (!%p5765_p10, %s6652_s22), 15 }
  0x24   : > { %v1746_v8 = vmax.f32 %v1744_v58, 0.0  ;;  %v891_v17 = vmax.f32 %v889_v7, 0.0  ;;  %v4657_v18 = vrot.slane %v1168_v10, 7  ;;  %v1171_v19 = vshll.u32 %v4613_v51, 16  ;;  %v1772_v58 = vld [vmem:[%s4548_s20 + $0x60] sm:$0xff]  ;;  %v1773_v7 = vld [vmem:[%s4548_s20 + $0x68] sm:$0xff] }
  0x25   : > { %v1088_v13 = vor.u32 %v1086_v56, %v4632_v60  ;;  %v1098_v14 = vrot.slane %v4634_v61, 4  ;;  %v1511_v15 = vor.u32 %v1510_v63, %v4638_v62  ;;  %v1176_v20 = vshrl.u32 %v4620_v53, 16 }
  0x26   : > { %v1747_v24 = vmax.f32 %v1745_v59, 0.0  ;;  %v896_v27 = vsel %vm4606_vm5, %v891_v17, 0.0  ;;  %v4669_v28 = vsel %vm4606_vm5, %v1746_v8, 0.0  ;;  %v1173_v29 = vor.u32 %v1171_v19, %v4657_v18 }
  0x27   : > { %v1267_v21 = vsel %vm4642_vm6, %v1088_v13, %v1266_v2  ;;  %v1271_v22 = vsel %vm4514_vm2, %v1098_v14, %v1270_v5  ;;  %v1512_v23 = vrot.slane %v1511_v15, 4  ;;  %v4672_v30 = vrot.slane %v1176_v20, 7 }
  0x28   : > { %1268 = vst [vmem:[#allocation2 + $0x20] sm:$0xf] %v1267_v21  ;;  %v4677_v31 = vpack.c.bf16 %v896_v27, %v896_v27  ;;  %v1179_v32 = vshll.u32 %v4620_v53, 16  ;;  %v1555_v33 = vrot.slane %v1176_v20, 4  ;;  %v1074_v34 = vshrl.u32 %v4602_v43, 16 }
  0x29   : > { %1412 = vrot.lane.b32.xlu0 %v4620_v53, %s4400_s0  ;;  %1272 = vst [vmem:[#allocation2 + $0x28] sm:$0x1] %v1271_v22  ;;  %1586 = vrot.lane.b32.xlu2 %v1512_v23, %s4401_s3  ;;  %v1302_v35 = vsel %vm4642_vm6, %v1173_v29, %v1301_v25  ;;  %v1183_v36 = vrot.slane %v4672_v30, 4  ;;  %v1077_v37 = vshll.u32 %v4602_v43, 16  ;;  %v1911_v38 = vshrl.u32 %v4648_v12, 16 }
  0x2a   : > { %1384 = vrot.lane.b32.xlu1 %v4677_v31, %s4400_s0  ;;  %1303 = vst [vmem:[#allocation2 + $0x70] sm:$0xf] %v1302_v35  ;;  %v4690_v39 = vrot.slane %v1179_v32, 5  ;;  %v1501_v40 = vrot.slane %v1074_v34, 4  ;;  %v4692_v46 = vrot.slane %v1074_v34, 7  ;;  %v1919_v47 = vshrl.u32 %v4655_v16, 16 }
  0x2b   : > { %v4697_v48 = vsel %vm4606_vm5, %v1747_v24, 0.0  ;;  %v1306_v49 = vsel %vm4514_vm2, %v1183_v36, %v1305_v26  ;;  %v4703_v54 = vrot.slane %v1077_v37, 5  ;;  %v4707_v57 = vrot.slane %v1911_v38, 7  ;;  %v1016_v21 = vld [vmem:[#allocation2] sm:$0x1] }
  0x2c   : > { %1307 = vst [vmem:[#allocation2 + $0x78] sm:$0x1] %v1306_v49  ;;  %v1556_v59 = vor.u32 %v1555_v33, %v4690_v39  ;;  %v1081_v63 = vrot.slane %v4692_v46, 4  ;;  %v4714_v2 = vrot.slane %v1919_v47, 7  ;;  %v1922_v5 = vshll.u32 %v4655_v16, 16 }
  0x2d   : > { %v1502_v8 = vor.u32 %v1501_v40, %v4703_v54  ;;  %v1917_v13 = vrot.slane %v4707_v57, 4  ;;  %v1549_v14 = vrot.slane %v1168_v10, 4  ;;  %v1550_v20 = vrot.slane %v1171_v19, 5  ;;  %v1256_v40 = vld [vmem:[#allocation2 + $0x8] sm:$0x1] }
  0x2e   : > { %v1557_v15 = vrot.slane %v1556_v59, 4  ;;  %v1264_v17 = vsel %vm4514_vm2, %v1081_v63, %v1263_v50  ;;  %v1504_v24 = vrot.slane %v1083_v52, 4  ;;  %v1788_v25 = vmul.f32 %v4537_v4, %v1772_v58  ;;  %v1019_v58 = vld [vmem:[#allocation2 + $0x10] sm:$0x1]  ;;  %v6252_v29 = vld [vmem:[%s6407_s12] ss:$0 sm:$0xff] }
  0x2f   : > { %v1503_v23 = vrot.slane %v1502_v8, 4  ;;  %1265 = vst [vmem:[#allocation2 + $0x18] sm:$0x1] %v1264_v17  ;;  %v1789_v26 = vmul.f32 %v4537_v4, %v1773_v7  ;;  %v1924_v19 = vor.u32 %v1922_v5, %v4714_v2  ;;  %v1551_v27 = vor.u32 %v1550_v20, %v1549_v14 }
  0x30   : > { %v1330_v22 = vld [vmem:[#allocation2 + $0x28] sm:$0xf]  ;;  %v1505_v52 = vrot.slane %v1086_v56, 5  ;;  %v1057_v33 = vshrl.u32 %v4677_v31, 16  ;;  %v1804_v34 = vadd.f32 %v4553_v6, %v1788_v25  ;;  %v4210_v49 = vunpack.c.l.bf16 %v4604_v44 }
  0x31   : > { %v1331_v10 = vsel %vm4642_vm6, 0, %v1330_v22  ;;  %1410 = vrot.lane.b32.xlu0 %v4613_v51, %s4400_s0  ;;  %1606 = vrot.lane.b32.xlu2 %v1557_v15, %s4401_s3  ;;  %v6410_v51 = vshll.u32 %v4677_v31, 16  ;;  %v1805_v35 = vadd.f32 %v4553_v6, %v1789_v26  ;;  %v1552_v56 = vrot.slane %v1551_v27, 4 }
  0x32   : > { %1332 = vst [vmem:[#allocation2 + $0x28] sm:$0xf] %v1331_v10  ;;  %1582 = vrot.lane.b32.xlu1 %v1503_v23, %s4401_s3  ;;  %v1506_v36 = vor.u32 %v1505_v52, %v1504_v24  ;;  %v1017_v50 = vsel %vm4514_vm2, 0, %v1016_v21  ;;  %v4756_v63 = vrot.slane %v1057_v33, 7  ;;  %v1492_v8 = vrot.slane %v1057_v33, 4 }
  0x33   : > { %v1350_v59 = vld [vmem:[#allocation2 + $0x78] sm:$0xf]  ;;  %v4760_v7 = vrot.slane %v6410_v51, 5  ;;  %v1820_v14 = vmax.f32 %v1804_v34, 0.0  ;;  %v1925_v17 = vsel %vm4738_vm10, %v1917_v13, %v1924_v19  ;;  %v1821_v20 = vmax.f32 %v1805_v35, 0.0  ;;  %v1760_v34 = vld [vmem:[%s4548_s20] sm:$0xff] }
  0x34   : > { %v1351_v15 = vsel %vm4642_vm6, 0, %v1350_v59  ;;  %v1507_v44 = vrot.slane %v1506_v36, 4  ;;  %1018 = vst [vmem:[#allocation2] sm:$0x1] %v1017_v50  ;;  %v1554_v21 = vsel %vm4749_vm11, %v1552_v56, %v4690_v39  ;;  %v1064_v22 = vrot.slane %v4756_v63, 4  ;;  %v1761_v36 = vld [vmem:[%s4548_s20 + $0x8] sm:$0xff] }
  0x35   : > { %1352 = vst [vmem:[#allocation2 + $0x78] sm:$0xf] %v1351_v15  ;;  %v4770_v23 = vpack.c.bf16 %v1820_v14, %v1820_v14  ;;  %v882_v24 = vmul.f32 %v4529_v3, %v4210_v49  ;;  %v1493_v26 = vor.u32 %v1492_v8, %v4760_v7  ;;  %v4774_v10 = vpack.c.bf16 %v1821_v20, %v1821_v20  ;;  %v4853_v51 = vld [vmem:[%s4543_s30 + $0x10] sm:$0xff]  }
  0x36   : > { %v1326_v25 = vld [vmem:[#allocation2 + $0x18] sm:$0xf]  ;;  %v4218_v13 = vunpack.c.l.bf16 %v4559_v9  ;;  %v1020_v19 = vsel %vm4514_vm2, 0, %v1019_v58  ;;  %v1509_v27 = vsel %vm4749_vm11, %v1507_v44, %v4638_v62  ;;  %v1257_v52 = vsel %vm4514_vm2, %v1064_v22, %v1256_v40 }
  0x37   : > { %v1327_v39 = vsel %vm4642_vm6, 0, %v1326_v25  ;;  %v1996_v33 = vshrl.u32 %v4770_v23, 16  ;;  %1021 = vst [vmem:[#allocation2 + $0x10] sm:$0x1] %v1020_v19  ;;  %v2004_v9 = vshrl.u32 %v4774_v10, 16  ;;  %v2007_v35 = vshll.u32 %v4774_v10, 16 }
  0x38   : > { %1328 = vst [vmem:[#allocation2 + $0x18] sm:$0xf] %v1327_v39  ;;  %v888_v56 = vadd.f32 %v4566_v11, %v882_v24  ;;  %v945_v62 = vmul.f32 %v4529_v3, %v4218_v13  ;;  %v4797_v40 = vpack.c.bf16 %v4669_v28, %v4669_v28  ;;  %v1776_v8 = vmul.f32 %v4537_v4, %v1760_v34 }
  0x39   : > { %2060 = vrot.lane.b32.xlu0 %v1925_v17, %s4402_s16  ;;  %1604 = vrot.lane.b32.xlu2 %v1554_v21, %s4401_s3  ;;  %1258 = vst [vmem:[#allocation2 + $0x8] sm:$0x1] %v1257_v52  ;;  %v4801_v49 = vrot.slane %v1996_v33, 7  ;;  %v4806_v50 = vrot.slane %v2004_v9, 7  ;;  %v4812_v28 = vpack.c.bf16 %v4697_v48, %v4697_v48  ;;  %v1494_v14 = vrot.slane %v1493_v26, 4 }
  0x3a   : > { %1584 = vrot.lane.b32.xlu1 %v1509_v27, %s4401_s3  ;;  %v890_v58 = vmax.f32 %v888_v56, 0.0  ;;  %v961_v59 = vadd.f32 %v4566_v11, %v945_v62  ;;  %v1777_v17 = vmul.f32 %v4537_v4, %v1761_v36  ;;  %v1792_v22 = vadd.f32 %v4553_v6, %v1776_v8 }
  0x3b   : > { %v2002_v15 = vrot.slane %v4801_v49, 4  ;;  %v2009_v44 = vor.u32 %v2007_v35, %v4806_v50  ;;  %v6411_v26 = vshrl.u32 %v4797_v40, 16  ;;  %v1885_v27 = vshrl.u32 %v4812_v28, 16 }
  0x3c   : > { %v895_v20 = vsel %vm4606_vm5, %v890_v58, 0.0  ;;  %v977_v21 = vmax.f32 %v961_v59, 0.0  ;;  %v1793_v25 = vadd.f32 %v4553_v6, %v1777_v17  ;;  %v1808_v56 = vmax.f32 %v1792_v22, 0.0  ;;  %vm5143_vm5 = vmand %vm1679_vm15, %vm6412_vm0 }
  0x3d   : > { %v993_v24 = vpack.c.bf16 %v895_v20, %v895_v20  ;;  %v2010_v13 = vsel %vm4738_vm10, %v2002_v15, %v2009_v44  ;;  %vm6416_vm9 = vcmask 126016   ;;  %vm6414_vm15 = vcmask 257216   ;;  %vm5198_vm0 = vmand %vm1844_vm7, %vm1014_vm1 }
  0x3e   : > { %v995_v48 = vpack.c.bf16 %v977_v21, %v977_v21  ;;  %v1809_v62 = vmax.f32 %v1793_v25, 0.0  ;;  %v1259_v44 = vld [vmem:[#allocation2 + $0x10] sm:$0xf]  ;;  %v4841_v25 = vrot.slane %v6411_v26, 7  ;;  %vm6413_vm1 = vcmask 388416  }
  0x3f   : > { %v1049_v19 = vshrl.u32 %v993_v24, 16  ;;  %v1052_v39 = vshll.u32 %v993_v24, 16  ;;  %vm5388_vm7 = vmand %vm6413_vm1, %vm1483_vm8  ;;  %vm2563_vm8 = vcmask 388419  }
  0x40   : > { %v1322_v52 = vld [vmem:[#allocation2 + $0x8] sm:$0xf]  ;;  %v1066_v45 = vshrl.u32 %v995_v48, 16  ;;  %v1069_v34 = vshll.u32 %v995_v48, 16  ;;  %vm5439_vm1 = vmand %vm6416_vm9, %vm1249_vm4  ;;  %vm6454_vm4 = vcmask 60416  }
  0x41   : > { %1578 = vrot.lane.b32.xlu0 %v1494_v14, %s4401_s3  ;;  %2279 = vrot.lane.b32.xlu2 %v4655_v16, %s4403_s18  ;;  %v1323_v36 = vsel %vm4642_vm6, 0, %v1322_v52  ;;  %v4832_v58 = vrot.slane %v1049_v19, 7  ;;  %v1486_v59 = vrot.slane %v1049_v19, 4  ;;  %v1487_v8 = vrot.slane %v1052_v39, 5  ;;  %v1251_v14 = vld [vmem:[#allocation2] sm:$0xf] }
  0x42   : > { %1324 = vst [vmem:[#allocation2 + $0x8] sm:$0xf] %v1323_v36  ;;  %2090 = vrot.lane.b32.xlu1 %v2010_v13, %s4402_s16  ;;  %v4835_v15 = vrot.slane %v1066_v45, 7  ;;  %v1495_v20 = vrot.slane %v1066_v45, 4  ;;  %v1496_v21 = vrot.slane %v1069_v34, 5  ;;  %v4845_v19 = vrot.slane %v1885_v27, 7 }
  0x43   : > { %v1054_v17 = vor.u32 %v1052_v39, %v4832_v58  ;;  %v1888_v13 = vshll.u32 %v4812_v28, 16  ;;  %v1488_v36 = vor.u32 %v1487_v8, %v1486_v59  ;;  %v4850_v39 = vpack.c.bf16 %v1808_v56, %v1808_v56 }
  0x44   : > { %v1071_v22 = vor.u32 %v1069_v34, %v4835_v15  ;;  %v1827_v45 = vpack.c.bf16 %v1809_v62, %v1809_v62  ;;  %v1497_v26 = vor.u32 %v1496_v21, %v1495_v20  ;;  %v4227_v59 = vunpack.c.h.bf16 %v4853_v51 }
  0x45   : > { %v1252_v52 = vsel %vm4642_vm6, %v1054_v17, %v1251_v14  ;;  %v1883_v14 = vrot.slane %v4841_v25, 4  ;;  %v1890_v56 = vor.u32 %v1888_v13, %v4845_v19  ;;  %v1489_v62 = vrot.slane %v1488_v36, 4 }
  0x46   : > { %1253 = vst [vmem:[#allocation2] sm:$0xf] %v1252_v52  ;;  %v1260_v34 = vsel %vm4642_vm6, %v1071_v22, %v1259_v44  ;;  %v1894_v8 = vshrl.u32 %v4850_v39, 16  ;;  %v1902_v17 = vshrl.u32 %v1827_v45, 16  ;;  %v4866_v44 = vld [vmem:[%s4543_s30 + $0x38] sm:$0xff]   ;;  %v1498_v20 = vrot.slane %v1497_v26, 4 }
  0x47   : > { %1261 = vst [vmem:[#allocation2 + $0x10] sm:$0xf] %v1260_v34  ;;  %v1891_v21 = vsel %vm4738_vm10, %v1883_v14, %v1890_v56  ;;  %v1905_v22 = vshll.u32 %v1827_v45, 16  ;;  %v1491_v52 = vsel %vm4749_vm11, %v1489_v62, %v4760_v7  ;;  %v4893_v62 = vrot.slane %v1922_v5, 5 }
  0x48   : > { %v4876_v36 = vrot.slane %v1894_v8, 7  ;;  %v4878_v34 = vrot.slane %v1902_v17, 7  ;;  %v1500_v26 = vsel %vm4749_vm11, %v1498_v20, %v4703_v54  ;;  %v2394_v54 = vrot.slane %v1919_v47, 4 }
  0x49   : > { %2299 = vrot.lane.b32.xlu0 %v4774_v10, %s4403_s18  ;;  %1386 = vrot.lane.b32.xlu2 %v995_v48, %s4400_s0  ;;  %v950_v48 = vmul.f32 %v4529_v3, %v4227_v59  ;;  %v2385_v10 = vrot.slane %v1902_v17, 4  ;;  %v4246_v53 = vunpack.c.l.bf16 %v4866_v44 }
  0x4a   : > { %1382 = vrot.lane.b32.xlu1 %v993_v24, %s4400_s0  ;;  %v4247_v24 = vunpack.c.h.bf16 %v4866_v44  ;;  %v1900_v7 = vrot.slane %v4876_v36, 4  ;;  %v1907_v56 = vor.u32 %v1905_v22, %v4878_v34  ;;  %v2395_v16 = vor.u32 %v2394_v54, %v4893_v62 }
  0x4b   : > { %v966_v14 = vadd.f32 %v4566_v11, %v950_v48  ;;  %v4921_v54 = vrot.slane %v1888_v13, 5 }
  0x4c   : > { %v960_v59 = vmul.f32 %v4529_v3, %v4247_v24  ;;  %v2439_v24 = vrot.slane %v2004_v9, 4 }
  0x4d   : > { %v982_v20 = vmax.f32 %v966_v14, 0.0  ;;  %v2396_v14 = vrot.slane %v2395_v16, 4 }
  0x4e   : > { %v976_v48 = vadd.f32 %v4566_v11, %v960_v59 }
  0x4f   : > { %v4909_v47 = vpack.c.bf16 %v982_v20, %v982_v20  ;;  %v2376_v20 = vrot.slane %v1885_v27, 4  ;;  %v1312_v27 = vld [vmem:[#allocation2 + $0x88] sm:$0x1] }
  0x50   : > { %v992_v5 = vmax.f32 %v976_v48, 0.0 }
  0x51   : > { %1576 = vrot.lane.b32.xlu0 %v1491_v52, %s4401_s3  ;;  %2048 = vrot.lane.b32.xlu2 %v1891_v21, %s4402_s16  ;;  %v1908_v21 = vsel %vm4738_vm10, %v1900_v7, %v1907_v56  ;;  %v4902_v52 = vrot.slane %v2007_v35, 5  ;;  %v1108_v35 = vshrl.u32 %v4909_v47, 16  ;;  %v4915_v7 = vrot.slane %v1905_v22, 5 }
  0x52   : > { %1580 = vrot.lane.b32.xlu1 %v1500_v26, %s4401_s3  ;;  %v4919_v56 = vpack.c.bf16 %v992_v5, %v992_v5 }
  0x53   : > { %v2440_v26 = vor.u32 %v2439_v24, %v4902_v52  ;;  %v4917_v9 = vrot.slane %v1108_v35, 7  ;;  %v2386_v17 = vor.u32 %v2385_v10, %v4915_v7  ;;  %v1914_v10 = vshll.u32 %v4648_v12, 16 }
  0x54   : > { %v1193_v48 = vshrl.u32 %v4919_v56, 16 }
  0x55   : > { %v2441_v59 = vrot.slane %v2440_v26, 4  ;;  %v2387_v16 = vrot.slane %v2386_v17, 4  ;;  %v2389_v17 = vrot.slane %v1914_v10, 5 }
  0x56   : > { %v4933_v13 = vrot.slane %v1193_v48, 7 }
  0x58   : > { %v1200_v24 = vrot.slane %v4933_v13, 4 }
  0x59   : > { %2054 = vrot.lane.b32.xlu0 %v1908_v21, %s4402_s16  ;;  %2275 = vrot.lane.b32.xlu2 %v1827_v45, %s4403_s18  ;;  %v1277_v45 = vld [vmem:[#allocation2 + $0x38] sm:$0x1]  ;;  %v1115_v21 = vrot.slane %v4917_v9, 4 }
  0x5a   : > { %2271 = vrot.lane.b32.xlu1 %v4812_v28, %s4403_s18  ;;  %v2377_v28 = vor.u32 %v2376_v20, %v4921_v54  ;;  %v1313_v5 = vsel %vm4514_vm2, %v1200_v24, %v1312_v27  ;;  %v2433_v20 = vrot.slane %v1996_v33, 4 }
  0x5b   : > { %v1278_v22 = vsel %vm4514_vm2, %v1115_v21, %v1277_v45  ;;  %1314 = vst [vmem:[#allocation2 + $0x88] sm:$0x1] %v1313_v5 }
  0x5c   : > { %1279 = vst [vmem:[#allocation2 + $0x38] sm:$0x1] %v1278_v22  ;;  %v2378_v26 = vrot.slane %v2377_v28, 4  ;;  %v2388_v22 = vrot.slane %v1911_v38, 4  ;;  %v1916_v28 = vor.u32 %v1914_v10, %v4707_v57  ;;  %v1089_v38 = vrot.slane %v4632_v60, 4 }
  0x5d   : > { %v1096_v57 = vor.u32 %v1094_v55, %v4634_v61  ;;  %v1564_v60 = vrot.slane %v1193_v48, 4 }
  0x5e   : > { %v2390_v33 = vor.u32 %v2389_v17, %v2388_v22  ;;  %v6439_v22 = vshll.u32 %v4677_v31, 16 }
  0x5f   : > { %v1097_v10 = vsel %vm4738_vm10, %v1089_v38, %v1096_v57  ;;  %v1926_v38 = vrot.slane %v4714_v2, 4  ;;  %v1764_v57 = vld [vmem:[%s4548_s20 + $0x20] sm:$0xff] }
  0x60   : > { %1269 = vst.msk [vmem:[#allocation2 + $0x24] sm:$0xf] %vm6415_vm3, %v1097_v10  ;;  %v1765_v10 = vld [vmem:[%s4548_s20 + $0x28] sm:$0xff] }
  0x61   : > { %2470 = vrot.lane.b32.xlu0 %v2396_v14, %s4404_s21  ;;  %1396 = vrot.lane.b32.xlu2 %v4909_v47, %s4400_s0  ;;  %v1999_v14 = vshll.u32 %v4770_v23, 16  ;;  %v1781_v2 = vmul.f32 %v4537_v4, %v1765_v10 }
  0x62   : > { %2490 = vrot.lane.b32.xlu1 %v2441_v59, %s4404_s21  ;;  %v1354_v24 = vld [vmem:[#allocation2 + $0x88] sm:$0xf] }
  0x63   : > { %v1334_v45 = vld [vmem:[#allocation2 + $0x38] sm:$0xf]  ;;  %v2434_v59 = vrot.slane %v1999_v14, 5  ;;  %v1355_v5 = vsel %vm4642_vm6, 0, %v1354_v24  ;;  %v6440_v24 = vshrl.u32 %v4797_v40, 16 }
  0x64   : > { %v1335_v21 = vsel %vm4642_vm6, 0, %v1334_v45  ;;  %1356 = vst [vmem:[#allocation2 + $0x88] sm:$0xf] %v1355_v5 }
  0x65   : > { %1336 = vst [vmem:[#allocation2 + $0x38] sm:$0xf] %v1335_v21  ;;  %v2435_v27 = vor.u32 %v2434_v59, %v2433_v20  ;;  %v1519_v59 = vrot.slane %v1108_v35, 4  ;;  %v1072_v20 = vrot.slane %v4835_v15, 4  ;;  %v1079_v35 = vor.u32 %v1077_v37, %v4692_v46 }
  0x66   : > { %v1880_v21 = vshll.u32 %v4797_v40, 16  ;;  %v1181_v15 = vor.u32 %v1179_v32, %v4672_v30  ;;  %v1055_v32 = vrot.slane %v4832_v58, 4  ;;  %v2370_v31 = vrot.slane %v6440_v24, 4 }
  0x67   : > { %v2436_v45 = vrot.slane %v2435_v27, 4  ;;  %v1080_v48 = vsel %vm4738_vm10, %v1072_v20, %v1079_v35 }
  0x68   : > { %1262 = vst.msk [vmem:[#allocation2 + $0x14] sm:$0xf] %vm6415_vm3, %v1080_v48  ;;  %v1882_v17 = vor.u32 %v1880_v21, %v4841_v25  ;;  %v959_v25 = vmul.f32 %v4529_v3, %v4246_v53  ;;  %v2371_v44 = vrot.slane %v1880_v21, 5 }
  0x69   : > { %1416 = vrot.lane.b32.xlu0 %v4919_v56, %s4400_s0  ;;  %2466 = vrot.lane.b32.xlu2 %v2387_v16, %s4404_s21  ;;  %v2001_v16 = vor.u32 %v1999_v14, %v4801_v49  ;;  %v1196_v49 = vshll.u32 %v4919_v56, 16  ;;  %v2391_v14 = vrot.slane %v2390_v33, 4  ;;  %v2438_v41 = vsel %vm4749_vm11, %v2436_v45, %v4902_v52 }
  0x6a   : > { %2462 = vrot.lane.b32.xlu1 %v2378_v26, %s4404_s21  ;;  %v1111_v26 = vshll.u32 %v4909_v47, 16  ;;  %v2011_v33 = vrot.slane %v4806_v50, 4  ;;  %v2372_v45 = vor.u32 %v2371_v44, %v2370_v31  ;;  %v1780_v50 = vmul.f32 %v4537_v4, %v1764_v57 }
  0x6b   : > { %v4978_v55 = vrot.slane %v1196_v49, 5  ;;  %v2393_v61 = vsel %vm4749_vm11, %v2391_v14, %v4893_v62  ;;  %v1174_v62 = vrot.slane %v4657_v18, 4  ;;  %v1892_v57 = vrot.slane %v4845_v19, 4 }
  0x6d   : > { %v1565_v37 = vor.u32 %v1564_v60, %v4978_v55  ;;  %v1182_v46 = vsel %vm4738_vm10, %v1174_v62, %v1181_v15  ;;  %v2373_v60 = vrot.slane %v2372_v45, 4  ;;  %v1040_v15 = vld [vmem:[#allocation2 + $0x80] sm:$0x1] }
  0x6e   : > { %1304 = vst.msk [vmem:[#allocation2 + $0x74] sm:$0xf] %vm6415_vm3, %v1182_v46 }
  0x6f   : > { %v1566_v30 = vrot.slane %v1565_v37, 4  ;;  %v1796_v37 = vadd.f32 %v4553_v6, %v1780_v50 }
  0x71   : > { %2058 = vrot.lane.b32.xlu0 %v1916_v28, %s4402_s16  ;;  %2277 = vrot.lane.b32.xlu2 %v4648_v12, %s4403_s18  ;;  %v4970_v12 = vrot.slane %v1111_v26, 5  ;;  %v1062_v28 = vor.u32 %v6439_v22, %v4756_v63  ;;  %v1812_v22 = vmax.f32 %v1796_v37, 0.0 }
  0x72   : > { %2088 = vrot.lane.b32.xlu1 %v2001_v16, %s4402_s16 }
  0x73   : > { %v1520_v52 = vor.u32 %v1519_v59, %v4970_v12  ;;  %v1063_v58 = vsel %vm4738_vm10, %v1055_v32, %v1062_v28 }
  0x74   : > { %1255 = vst.msk [vmem:[#allocation2 + $0x4] sm:$0xf] %vm6415_vm3, %v1063_v58 }
  0x75   : > { %v1521_v18 = vrot.slane %v1520_v52, 4 }
  0x79   : > { %2297 = vrot.lane.b32.xlu0 %v4770_v23, %s4403_s18  ;;  %2488 = vrot.lane.b32.xlu2 %v2438_v41, %s4404_s21  ;;  %v4226_v23 = vunpack.c.l.bf16 %v4853_v51  ;;  %v1897_v51 = vshll.u32 %v4850_v39, 16  ;;  %v2379_v41 = vrot.slane %v1894_v8, 4  ;;  %v1025_v8 = vld [vmem:[#allocation2 + $0x30] sm:$0x1] }
  0x7a   : > { %2468 = vrot.lane.b32.xlu1 %v2393_v61, %s4404_s21  ;;  %v1775_v61 = vld [vmem:[%s4548_s20 + $0x78] sm:$0xff]  ;;  %v1026_v46 = vsel %vm4514_vm2, 0, %v1025_v8 }
  0x7b   : > { %v1391_v43 = vpop.permute.xlu2 %1390  ;;  %v949_v27 = vmul.f32 %v4529_v3, %v4226_v23  ;;  %v1899_v5 = vor.u32 %v1897_v51, %v4876_v36  ;;  %v975_v3 = vadd.f32 %v4566_v11, %v959_v25  ;;  %v2380_v59 = vrot.slane %v1897_v51, 5  ;;  %1027 = vst [vmem:[#allocation2 + $0x30] sm:$0x1] %v1026_v46 }
  0x7c   : > { %1447 = vst.msk [vmem:[#allocation2 + $0x20] sm:$0xf] %vm6421_vm12, %v1391_v43  ;;  %v1791_v35 = vmul.f32 %v4537_v4, %v1775_v61  ;;  %v2375_v43 = vsel %vm4749_vm11, %v2373_v60, %v4921_v54  ;;  %v1041_v23 = vsel %vm4514_vm2, 0, %v1040_v15 }
  0x7d   : > { %v965_v16 = vadd.f32 %v4566_v11, %v949_v27  ;;  %v991_v36 = vmax.f32 %v975_v3, 0.0  ;;  %v2381_v52 = vor.u32 %v2380_v59, %v2379_v41  ;;  %1042 = vst [vmem:[#allocation2 + $0x80] sm:$0x1] %v1041_v23 }
  0x7f   : > { %v981_v14 = vmax.f32 %v965_v16, 0.0  ;;  %v5045_v21 = vpack.c.bf16 %v991_v36, %v991_v36  ;;  %v2382_v53 = vrot.slane %v2381_v52, 4 }
  0x81   : > { %1590 = vrot.lane.b32.xlu0 %v1521_v18, %s4401_s3  ;;  %2046 = vrot.lane.b32.xlu2 %v1882_v17, %s4402_s16  ;;  %v5042_v20 = vpack.c.bf16 %v981_v14, %v981_v14  ;;  %v1797_v18 = vadd.f32 %v4553_v6, %v1781_v2  ;;  %v1807_v17 = vadd.f32 %v4553_v6, %v1791_v35  ;;  %v1185_v54 = vshrl.u32 %v5045_v21, 16 }
  0x82   : > { %1610 = vrot.lane.b32.xlu1 %v1566_v30, %s4401_s3  ;;  %v1774_v30 = vld [vmem:[%s4548_s20 + $0x70] sm:$0xff]  ;;  %v2384_v45 = vsel %vm4749_vm11, %v2382_v53, %v4915_v7 }
  0x83   : > { %v5022_v63 = vpop.permute.xlu2 %1586  ;;  %v1100_v48 = vshrl.u32 %v5042_v20, 16  ;;  %v1103_v62 = vshll.u32 %v5042_v20, 16  ;;  %v5070_v44 = vrot.slane %v1185_v54, 7  ;;  %v1813_v58 = vmax.f32 %v1797_v18, 0.0  ;;  %v1273_v14 = vld [vmem:[#allocation2 + $0x30] sm:$0xf] }
  0x84   : > { %v1790_v24 = vmul.f32 %v4537_v4, %v1774_v30  ;;  %v5083_v4 = vpack.c.bf16 %v1812_v22, %v1812_v22  ;;  %v1558_v7 = vrot.slane %v1185_v54, 4 }
  0x85   : > { %v5064_v32 = vrot.slane %v1100_v48, 7  ;;  %v1513_v28 = vrot.slane %v1100_v48, 4  ;;  %v1514_v27 = vrot.slane %v1103_v62, 5  ;;  %v5086_v10 = vpack.c.bf16 %v1813_v58, %v1813_v58 }
  0x86   : > { %v1806_v3 = vadd.f32 %v4553_v6, %v1790_v24  ;;  %v1928_v2 = vshrl.u32 %v5083_v4, 16 }
  0x87   : > { %v1105_v16 = vor.u32 %v1103_v62, %v5064_v32  ;;  %v1936_v48 = vshrl.u32 %v5086_v10, 16  ;;  %v1939_v54 = vshll.u32 %v5086_v10, 16  ;;  %v1106_v22 = vrot.slane %v5064_v32, 4 }
  0x88   : > { %v1822_v59 = vmax.f32 %v1806_v3, 0.0  ;;  %v5118_v23 = vrot.slane %v1928_v2, 7 }
  0x89   : > { %2052 = vrot.lane.b32.xlu0 %v1899_v5, %s4402_s16  ;;  %2092 = vrot.lane.b32.xlu2 %v2011_v33, %s4402_s16  ;;  %v1823_v5 = vmax.f32 %v1807_v17, 0.0  ;;  %v1909_v33 = vrot.slane %v4878_v34, 4  ;;  %v1274_v41 = vsel %vm4642_vm6, %v1105_v16, %v1273_v14  ;;  %v1308_v34 = vld [vmem:[#allocation2 + $0x80] sm:$0xf]  ;;  %v5131_v53 = vrot.slane %v1936_v48, 7 }
  0x8a   : > { %2062 = vrot.lane.b32.xlu1 %v1926_v38, %s4402_s16  ;;  %v1515_v38 = vor.u32 %v1514_v27, %v1513_v28  ;;  %1275 = vst [vmem:[#allocation2 + $0x30] sm:$0xf] %v1274_v41  ;;  %v5102_v50 = vpack.c.bf16 %v1822_v59, %v1822_v59  ;;  %v6443_v27 = vmov 0  ;;  %v5168_v3 = vrot.slane %v1939_v54, 5 }
  0x8b   : > { %v5038_v11 = vpop.permute.xlu2 %1606  ;;  %v5090_v36 = vpack.c.bf16 %v1823_v5, %v1823_v5  ;;  %v6444_v27 = vsel %vm5143_vm5, 4294967295, %v6443_v27  ;;  %v1941_v16 = vor.u32 %v1939_v54, %v5131_v53  ;;  %v5161_v5 = vld [vmem:[%s4543_s30 + $0x18] sm:$0xff]  }
  0x8c   : > { %v1516_v61 = vrot.slane %v1515_v38, 4  ;;  %v2013_v62 = vshrl.u32 %v5102_v50, 16  ;;  %v4231_v14 = vunpack.c.h.bf16 %v5161_v5 }
  0x8d   : > { %v2024_v30 = vshll.u32 %v5090_v36, 16 }
  0x8e   : > { %v1518_v18 = vsel %vm4749_vm11, %v1516_v61, %v4970_v12  ;;  %v1113_v12 = vor.u32 %v1111_v26, %v4917_v9 }
  0x90   : > { %v1114_v32 = vsel %vm4738_vm10, %v1106_v22, %v1113_v12 }
  0x91   : > { %2269 = vrot.lane.b32.xlu0 %v4797_v40, %s4403_s18  ;;  %2460 = vrot.lane.b32.xlu2 %v2375_v43, %s4404_s21  ;;  %v1188_v40 = vshll.u32 %v5045_v21, 16  ;;  %v2021_v43 = vshrl.u32 %v5090_v36, 16  ;;  %1276 = vst.msk [vmem:[#allocation2 + $0x34] sm:$0xf] %vm6415_vm3, %v1114_v32 }
  0x92   : > { %2273 = vrot.lane.b32.xlu1 %v4850_v39, %s4403_s18 }
  0x93   : > { %v1393_v51 = vpop.permute.xlu0 %1392  ;;  %v5068_v25 = vpop.permute.xlu2 %1604  ;;  %v1190_v39 = vor.u32 %v1188_v40, %v5070_v44  ;;  %v1559_v60 = vrot.slane %v1188_v40, 5  ;;  %v5129_v17 = vrot.slane %v2021_v43, 7 }
  0x94   : > { %1448 = vst.msk [vmem:[#allocation2 + $0x24] sm:$0xf] %vm6421_vm12, %v1393_v51  ;;  %v1389_v31 = vpop.permute.xlu1 %1388  ;;  %v1934_v51 = vrot.slane %v5118_v23, 4 }
  0x95   : > { %1446 = vst.msk [vmem:[#allocation2 + $0x14] sm:$0xf] %vm6421_vm12, %v1389_v31  ;;  %v1309_v19 = vsel %vm4642_vm6, %v1190_v39, %v1308_v34  ;;  %v1560_v46 = vor.u32 %v1559_v60, %v1558_v7  ;;  %v2026_v9 = vor.u32 %v2024_v30, %v5129_v17  ;;  %v5164_v39 = vld [vmem:[%s4543_s30 + $0x28] sm:$0xff]  }
  0x96   : > { %1310 = vst [vmem:[#allocation2 + $0x80] sm:$0xf] %v1309_v19  ;;  %v4239_v59 = vunpack.c.h.bf16 %v5164_v39  ;;  %v1942_v41 = vsel %vm4738_vm10, %v1934_v51, %v1941_v16  ;;  %v5193_v19 = vld [vmem:[%s6403_s8] ss:$0 sm:$0xff] }
  0x97   : > { %v1561_v28 = vrot.slane %v1560_v46, 4  ;;  %v952_v7 = vmul.f32 %v5193_v19, %v4231_v14 }
  0x98   : > { %v956_v60 = vmul.f32 %v5193_v19, %v4239_v59 }
  0x99   : > { %2464 = vrot.lane.b32.xlu0 %v2384_v45, %s4404_s21  ;;  %2056 = vrot.lane.b32.xlu2 %v1909_v33, %s4402_s16  ;;  %v2403_v45 = vrot.slane %v1936_v48, 4  ;;  %v1563_v38 = vsel %vm4749_vm11, %v1561_v28, %v4978_v55 }
  0x9a   : > { %2050 = vrot.lane.b32.xlu1 %v1892_v57, %s4402_s16 }
  0x9b   : > { %v1648_v35 = vld [vmem:[#allocation2 + $0x24] sm:$0xf]  ;;  %v1413_v52 = vpop.permute.xlu0 %1412  ;;  %v5106_v8 = vpop.permute.xlu2 %2279  ;;  %v2404_v55 = vor.u32 %v2403_v45, %v5168_v3 }
  0x9c   : > { %v1649_v15 = vsel %vm5094_vm14, %v5022_v63, %v1648_v35  ;;  %1458 = vst.msk [vmem:[#allocation2 + $0x74] sm:$0xf] %vm6421_vm12, %v1413_v52  ;;  %v1385_v37 = vpop.permute.xlu1 %1384  ;;  %v5125_v63 = vrot.slane %v2013_v62, 7  ;;  %v1644_v40 = vld [vmem:[#allocation2 + $0x14] sm:$0xf] }
  0x9d   : > { %1650 = vst [vmem:[#allocation2 + $0x24] sm:$0xf] %v1649_v15  ;;  %v5205_v15 = vrot.slane %v2024_v30, 5  ;;  %v2405_v46 = vrot.slane %v2404_v55, 4  ;;  %v5217_v30 = vld [vmem:[%s6404_s9] ss:$0 sm:$0xff] }
  0x9e   : > { %1444 = vst.msk [vmem:[#allocation2 + $0x4] sm:$0xf] %vm6421_vm12, %v1385_v37  ;;  %v2019_v47 = vrot.slane %v5125_v63, 4  ;;  %v2448_v37 = vrot.slane %v2021_v43, 4  ;;  %v968_v12 = vadd.f32 %v5217_v30, %v952_v7  ;;  %v972_v43 = vadd.f32 %v5217_v30, %v956_v60 }
  0x9f   : > { %v1198_v7 = vor.u32 %v1196_v49, %v4933_v13 }
  0xa0   : > { %v2027_v57 = vsel %vm4738_vm10, %v2019_v47, %v2026_v9  ;;  %v2449_v28 = vor.u32 %v2448_v37, %v5205_v15  ;;  %v984_v9 = vmax.f32 %v968_v12, 0.0  ;;  %v1028_v12 = vld [vmem:[#allocation2 + $0x40] sm:$0x1] }
  0xa1   : > { %1394 = vrot.lane.b32.xlu0 %v5042_v20, %s4400_s0  ;;  %1588 = vrot.lane.b32.xlu2 %v1518_v18, %s4401_s3 }
  0xa2   : > { %1414 = vrot.lane.b32.xlu1 %v5045_v21, %s4400_s0 }
  0xa3   : > { %v1668_v26 = vld [vmem:[#allocation2 + $0x74] sm:$0xf]  ;;  %v1411_v20 = vpop.permute.xlu0 %1410  ;;  %v1387_v58 = vpop.permute.xlu2 %1386 }
  0xa4   : > { %v1692_v24 = vld [vmem:[#allocation2 + $0x24] sm:$0x8]  ;;  %v1669_v31 = vsel %vm5094_vm14, %v5038_v11, %v1668_v26  ;;  %1457 = vst.msk [vmem:[#allocation2 + $0x70] sm:$0xf] %vm6421_vm12, %v1411_v20  ;;  %v1583_v33 = vpop.permute.xlu1 %1582  ;;  %v988_v26 = vmax.f32 %v972_v43, 0.0 }
  0xa5   : > { %v1693_v21 = vsel %vm5143_vm5, 0, %v1692_v24  ;;  %1670 = vst [vmem:[#allocation2 + $0x74] sm:$0xf] %v1669_v31  ;;  %v1645_v11 = vsel %vm5094_vm14, %v1583_v33, %v1644_v40  ;;  %v1640_v32 = vld [vmem:[#allocation2 + $0x4] sm:$0xf]  ;;  %v4230_v40 = vunpack.c.l.bf16 %v5161_v5  ;;  %v5237_v31 = vpack.c.bf16 %v984_v9, %v984_v9 }
  0xa6   : > { %1694 = vst [vmem:[#allocation2 + $0x24] sm:$0x8] %v1693_v21  ;;  %v5239_v16 = vpack.c.bf16 %v988_v26, %v988_v26  ;;  %v1931_v21 = vshll.u32 %v5083_v4, 16  ;;  %v2016_v33 = vshll.u32 %v5102_v50, 16 }
  0xa7   : > { %1667 = vst.msk [vmem:[#allocation2 + $0x70] sm:$0xf] %vm6417_vm13, %v5068_v25  ;;  %v951_v5 = vmul.f32 %v5193_v19, %v4230_v40  ;;  %v1128_v55 = vshll.u32 %v5237_v31, 16 }
  0xa8   : > { %1646 = vst [vmem:[#allocation2 + $0x14] sm:$0xf] %v1645_v11  ;;  %v2398_v45 = vrot.slane %v1931_v21, 5  ;;  %v2443_v11 = vrot.slane %v2016_v33, 5  ;;  %v1159_v56 = vshrl.u32 %v5239_v16, 16 }
  0xa9   : > { %1445 = vst.msk [vmem:[#allocation2 + $0x10] sm:$0xf] %vm6421_vm12, %v1387_v58  ;;  %1608 = vrot.lane.b32.xlu0 %v1563_v38, %s4401_s3  ;;  %2096 = vrot.lane.b32.xlu2 %v2027_v57, %s4402_s16  ;;  %v2450_v58 = vrot.slane %v2449_v28, 4  ;;  %v2397_v38 = vrot.slane %v1928_v2, 4  ;;  %v2442_v57 = vrot.slane %v2013_v62, 4  ;;  %v1125_v2 = vshrl.u32 %v5237_v31, 16 }
  0xaa   : > { %2066 = vrot.lane.b32.xlu1 %v1942_v41, %s4402_s16  ;;  %v4238_v41 = vunpack.c.l.bf16 %v5164_v39  ;;  %v967_v62 = vadd.f32 %v5217_v30, %v951_v5  ;;  %v1933_v39 = vor.u32 %v1931_v21, %v5118_v23  ;;  %v5273_v37 = vrot.slane %v1128_v55, 5  ;;  %v5306_v21 = vld [vmem:[%s6405_s10] ss:$0 sm:$0xff] }
  0xab   : > { %v2061_v25 = vpop.permute.xlu0 %2060  ;;  %v5188_v34 = vpop.permute.xlu2 %2048  ;;  %v2444_v13 = vor.u32 %v2443_v11, %v2442_v57  ;;  %v2399_v49 = vor.u32 %v2398_v45, %v2397_v38  ;;  %v5278_v23 = vrot.slane %v1125_v2, 7  ;;  %v1029_v28 = vsel %vm4514_vm2, 0, %v1028_v12  ;;  %v1770_v11 = vld [vmem:[%s4548_s20 + $0x50] sm:$0xff]  ;;  %v1771_v38 = vld [vmem:[%s4548_s20 + $0x58] sm:$0xff]  ;;  %v4188_v12 = vld [vmem:[%s6402_s7 + $0x28] sm:$0xff] }
  0xac   : > { %v1717_v35 = vld [vmem:[#allocation2 + $0x74] sm:$0x8]  ;;  %2156 = vst.msk [vmem:[#allocation2 + $0x24] sm:$0xf] %vm6416_vm9, %v2061_v25  ;;  %v1585_v48 = vpop.permute.xlu1 %1584  ;;  %v1191_v25 = vrot.slane %v5070_v44, 4  ;;  %v2018_v44 = vor.u32 %v2016_v33, %v5125_v63  ;;  %v1528_v63 = vrot.slane %v1125_v2, 4  ;;  %v1787_v2 = vmul.f32 %v5306_v21, %v1771_v38  ;;  %4294 = vmatpush.bf16.msra.mxu3 %v4188_v12  ;;  %2845 = vmatpush.bf16.msra.mxu0 %v4188_v12 }
  0xad   : > { %v1718_v52 = vsel %vm5143_vm5, 0, %v1717_v35  ;;  %2335 = vst.msk [vmem:[#allocation2 + $0x24] sm:$0xf] %vm6414_vm15, %v5106_v8  ;;  %v1132_v43 = vrot.slane %v5278_v23, 4 }
  0xae   : > { %1719 = vst [vmem:[#allocation2 + $0x74] sm:$0x8] %v1718_v52  ;;  %v1867_v18 = vld [vmem:[#allocation2 + $0x70] sm:$0x1]  ;;  %v1529_v5 = vor.u32 %v1528_v63, %v5273_v37  ;;  %v5349_v63 = vld [vmem:[%s6402_s7 + $0x40] sm:$0xff] }
  0xaf   : > { %v1868_v54 = vsel %vm5198_vm0, 0, %v1867_v18  ;;  %v1687_v22 = vld [vmem:[#allocation2 + $0x14] sm:$0x8]  ;;  %1647 = vst.msk [vmem:[#allocation2 + $0x20] sm:$0xf] %vm6417_vm13, %v1585_v48  ;;  %v955_v48 = vmul.f32 %v5193_v19, %v4238_v41  ;;  %v5280_v18 = vrot.slane %v1159_v56, 7  ;;  %3323 = vmatpush.bf16.msra.mxu2 %v5349_v63 }
  0xb0   : > { %1869 = vst [vmem:[#allocation2 + $0x70] sm:$0x1] %v1868_v54  ;;  %v1688_v8 = vsel %vm5143_vm5, 0, %v1687_v22  ;;  %v983_v54 = vmax.f32 %v967_v62, 0.0  ;;  %v1298_v22 = vld [vmem:[#allocation2 + $0x68] sm:$0x1] }
  0xb1   : > { %1689 = vst [vmem:[#allocation2 + $0x14] sm:$0x8] %v1688_v8  ;;  %2283 = vrot.lane.b32.xlu0 %v5086_v10, %s4403_s18  ;;  %2474 = vrot.lane.b32.xlu2 %v2405_v46, %s4404_s21  ;;  %v1199_v46 = vsel %vm4738_vm10, %v1191_v25, %v1198_v7  ;;  %v1166_v8 = vrot.slane %v5280_v18, 4  ;;  %v971_v26 = vadd.f32 %v5217_v30, %v955_v48  ;;  %v1530_v62 = vrot.slane %v1529_v5, 4  ;;  %v4187_v5 = vld [vmem:[%s6402_s7 + $0x20] sm:$0xff] }
  0xb2   : > { %2303 = vrot.lane.b32.xlu1 %v5090_v36, %s4403_s18  ;;  %1311 = vst.msk [vmem:[#allocation2 + $0x84] sm:$0xf] %vm6415_vm3, %v1199_v46  ;;  %4295 = vmatpush.bf16.msra.mxu3 %v4187_v5 }
  0xb3   : > { %v1579_v51 = vpop.permute.xlu0 %1578  ;;  %v5229_v47 = vpop.permute.xlu2 %2275  ;;  %1030 = vst [vmem:[#allocation2 + $0x40] sm:$0x1] %v1029_v28  ;;  %v987_v57 = vmax.f32 %v971_v26, 0.0  ;;  %2846 = vmatpush.bf16.msra.mxu0 %v4187_v5 }
  0xb4   : > { %v1641_v20 = vsel %vm5094_vm14, %v1579_v51, %v1640_v32  ;;  %v2091_v10 = vpop.permute.xlu1 %2090  ;;  %v2445_v51 = vrot.slane %v2444_v13, 4 }
  0xb5   : > { %1642 = vst [vmem:[#allocation2 + $0x4] sm:$0xf] %v1641_v20  ;;  %v2400_v20 = vrot.slane %v2399_v49, 4  ;;  %v5344_v48 = vpack.c.bf16 %v987_v57, %v987_v57 }
  0xb6   : > { %v1852_v24 = vld [vmem:[#allocation2 + $0x20] sm:$0x1]  ;;  %2191 = vst.msk [vmem:[#allocation2 + $0x74] sm:$0xf] %vm6416_vm9, %v2091_v10  ;;  %v1299_v10 = vsel %vm4514_vm2, %v1166_v8, %v1298_v22  ;;  %v2447_v45 = vsel %vm4749_vm11, %v2445_v51, %v5205_v15 }
  0xb7   : > { %v1853_v36 = vsel %vm5198_vm0, 0, %v1852_v24  ;;  %v1767_v24 = vld [vmem:[%s4548_s20 + $0x38] sm:$0xff]  ;;  %1300 = vst [vmem:[#allocation2 + $0x68] sm:$0x1] %v1299_v10  ;;  %v2402_v41 = vsel %vm4749_vm11, %v2400_v20, %v5168_v3  ;;  %v5327_v15 = vld [vmem:[%s6406_s11] ss:$0 sm:$0xff] }
  0xb8   : > { %1854 = vst [vmem:[#allocation2 + $0x20] sm:$0x1] %v1853_v36  ;;  %v1783_v33 = vmul.f32 %v5306_v21, %v1767_v24  ;;  %v1766_v3 = vld [vmem:[%s4548_s20 + $0x30] sm:$0xff]  ;;  %v1803_v20 = vadd.f32 %v5327_v15, %v1787_v2  ;;  %v5372_v24 = vld [vmem:[%s6402_s7 + $0x38] sm:$0xff]  ;;  %v2532_v2 = vld [vmem:[#allocation2 + $0x24] sm:$0xf] }
  0xb9   : > { %2494 = vrot.lane.b32.xlu0 %v2450_v58, %s4404_s21  ;;  %1408 = vrot.lane.b32.xlu2 %v5239_v16, %s4400_s0  ;;  %v5300_v58 = vpack.c.bf16 %v983_v54, %v983_v54 }
  0xba   : > { %1400 = vrot.lane.b32.xlu1 %v5237_v31, %s4400_s0  ;;  %v1799_v7 = vadd.f32 %v5327_v15, %v1783_v33  ;;  %v1280_v49 = vld [vmem:[#allocation2 + $0x40] sm:$0xf]  ;;  %v1151_v33 = vshrl.u32 %v5344_v48, 16  ;;  %3324 = vmatpush.bf16.msra.mxu2 %v5372_v24 }
  0xbb   : > { %v2300_v14 = vpop.permute.xlu0 %2299  ;;  %v1397_v59 = vpop.permute.xlu2 %1396  ;;  %v1117_v25 = vshrl.u32 %v5300_v58, 16 }
  0xbc   : > { %v1682_v60 = vld [vmem:[#allocation2 + $0x4] sm:$0x8]  ;;  %2345 = vst.msk [vmem:[#allocation2 + $0x74] sm:$0xf] %vm6414_vm15, %v2300_v14  ;;  %v1383_v52 = vpop.permute.xlu1 %1382  ;;  %v1815_v46 = vmax.f32 %v1799_v7, 0.0 }
  0xbd   : > { %v1683_v35 = vsel %vm5143_vm5, 0, %v1682_v60  ;;  %1450 = vst.msk [vmem:[#allocation2 + $0x34] sm:$0xf] %vm6421_vm12, %v1397_v59  ;;  %v1546_v59 = vrot.slane %v1159_v56, 4  ;;  %v1786_v60 = vmul.f32 %v5306_v21, %v1770_v11 }
  0xbe   : > { %1684 = vst [vmem:[#allocation2 + $0x4] sm:$0x8] %v1683_v35  ;;  %v5336_v35 = vrot.slane %v1117_v25, 7  ;;  %v1346_v10 = vld [vmem:[#allocation2 + $0x68] sm:$0xf]  ;;  %v5384_v11 = vpack.c.bf16 %v1815_v46, %v1815_v46 }
  0xbf   : > { %2142 = vst.msk [vmem:[#allocation2 + $0x4] sm:$0xf] %vm6416_vm9, %v5188_v34  ;;  %v1284_v34 = vld [vmem:[#allocation2 + $0x48] sm:$0x1]  ;;  %v1802_v26 = vadd.f32 %v5327_v15, %v1786_v60  ;;  %v1819_v60 = vmax.f32 %v1803_v20, 0.0 }
  0xc0   : > { %1443 = vst.msk [vmem:[#allocation2] sm:$0xf] %vm6421_vm12, %v1383_v52  ;;  %v1285_v40 = vsel %vm4514_vm2, %v1132_v43, %v1284_v34  ;;  %v1120_v52 = vshll.u32 %v5300_v58, 16 }
  0xc1   : > { %2064 = vrot.lane.b32.xlu0 %v1933_v39, %s4402_s16  ;;  %2281 = vrot.lane.b32.xlu2 %v5083_v4, %s4403_s18  ;;  %v1162_v4 = vshll.u32 %v5239_v16, 16  ;;  %1286 = vst [vmem:[#allocation2 + $0x48] sm:$0x1] %v1285_v40  ;;  %v1782_v39 = vmul.f32 %v5306_v21, %v1766_v3  ;;  %v1818_v7 = vmax.f32 %v1802_v26, 0.0 }
  0xc2   : > { %2094 = vrot.lane.b32.xlu1 %v2018_v44, %s4402_s16  ;;  %v1122_v22 = vor.u32 %v1120_v52, %v5336_v35 }
  0xc3   : > { %v1577_v32 = vpop.permute.xlu0 %1576  ;;  %v5291_v9 = vpop.permute.xlu2 %2466  ;;  %v5318_v14 = vrot.slane %v1162_v4, 5  ;;  %v1798_v43 = vadd.f32 %v5327_v15, %v1782_v39 }
  0xc4   : > { %1637 = vst.msk [vmem:[#allocation2] sm:$0xf] %vm6417_vm13, %v1577_v32  ;;  %v1581_v36 = vpop.permute.xlu1 %1580  ;;  %v1943_v32 = vrot.slane %v5131_v53, 4  ;;  %v1347_v53 = vsel %vm4642_vm6, 0, %v1346_v10 }
  0xc5   : > { %1643 = vst.msk [vmem:[#allocation2 + $0x10] sm:$0xf] %vm6417_vm13, %v1581_v36  ;;  %v1547_v13 = vor.u32 %v1546_v59, %v5318_v14  ;;  %v1814_v38 = vmax.f32 %v1798_v43, 0.0  ;;  %v1522_v59 = vrot.slane %v1117_v25, 4  ;;  %v1540_v25 = vrot.slane %v1151_v33, 4 }
  0xc6   : > { %1348 = vst [vmem:[#allocation2 + $0x68] sm:$0xf] %v1347_v53  ;;  %v5417_v43 = vpack.c.bf16 %v1818_v7, %v1818_v7 }
  0xc7   : > { %v1548_v36 = vrot.slane %v1547_v13, 4  ;;  %v5395_v3 = vpack.c.bf16 %v1814_v38, %v1814_v38 }
  0xc8   : > { %v1338_v34 = vld [vmem:[#allocation2 + $0x48] sm:$0xf] }
  0xc9   : > { %2301 = vrot.lane.b32.xlu0 %v5102_v50, %s4403_s18  ;;  %2492 = vrot.lane.b32.xlu2 %v2447_v45, %s4404_s21  ;;  %v1339_v51 = vsel %vm4642_vm6, 0, %v1338_v34  ;;  %v1154_v45 = vshll.u32 %v5344_v48, 16  ;;  %v1945_v46 = vshrl.u32 %v5395_v3, 16  ;;  %v2552_v34 = vld [vmem:[#allocation2 + $0x74] sm:$0xf] }
  0xca   : > { %2472 = vrot.lane.b32.xlu1 %v2402_v41, %s4404_s21  ;;  %1340 = vst [vmem:[#allocation2 + $0x48] sm:$0xf] %v1339_v51  ;;  %v1523_v41 = vrot.slane %v1120_v52, 5  ;;  %v5406_v52 = vld [vmem:[%s6402_s7 + $0x30] sm:$0xff] }
  0xcb   : > { %v1846_v44 = vld [vmem:[#allocation2] sm:$0x1]  ;;  %v2055_v56 = vpop.permute.xlu0 %2054  ;;  %v5341_v50 = vpop.permute.xlu2 %2277  ;;  %v1541_v13 = vrot.slane %v1154_v45, 5  ;;  %3325 = vmatpush.bf16.msra.mxu2 %v5406_v52 }
  0xcc   : > { %v1847_v54 = vsel %vm5198_vm0, 0, %v1846_v44  ;;  %2149 = vst.msk [vmem:[#allocation2 + $0x14] sm:$0xf] %vm6416_vm9, %v2055_v56  ;;  %v1849_v8 = vld [vmem:[#allocation2 + $0x10] sm:$0x1]  ;;  %v2272_v28 = vpop.permute.xlu1 %2271  ;;  %v1524_v12 = vor.u32 %v1523_v41, %v1522_v59  ;;  %vm6458_vm9 = vcmask 257216  }
  0xcd   : > { %1848 = vst [vmem:[#allocation2] sm:$0x1] %v1847_v54  ;;  %v1850_v40 = vsel %vm5198_vm0, 0, %v1849_v8  ;;  %v5419_v8 = vpack.c.bf16 %v1819_v60, %v1819_v60  ;;  %v1542_v20 = vor.u32 %v1541_v13, %v1540_v25 }
  0xce   : > { %2333 = vst.msk [vmem:[#allocation2 + $0x14] sm:$0xf] %vm6414_vm15, %v5229_v47  ;;  %v1281_v47 = vsel %vm4642_vm6, %v1122_v22, %v1280_v49  ;;  %v1953_v49 = vshrl.u32 %v5384_v11, 16  ;;  %v1525_v10 = vrot.slane %v1524_v12, 4 }
  0xcf   : > { %1851 = vst [vmem:[#allocation2 + $0x10] sm:$0x1] %v1850_v40  ;;  %v1987_v5 = vshrl.u32 %v5419_v8, 16  ;;  %v1990_v13 = vshll.u32 %v5419_v8, 16 }
  0xd0   : > { %2331 = vst.msk [vmem:[#allocation2 + $0x4] sm:$0xf] %vm6414_vm15, %v2272_v28  ;;  %v5433_v26 = vrot.slane %v1953_v49, 7  ;;  %vm6451_vm15 = vsmask.f32 7950 }
  0xd1   : > { %1594 = vrot.lane.b32.xlu0 %v1530_v62, %s4401_s3  ;;  %2068 = vrot.lane.b32.xlu2 %v1943_v32, %s4402_s16  ;;  %v2028_v62 = vrot.slane %v5129_v17, 4  ;;  %1282 = vst [vmem:[#allocation2 + $0x40] sm:$0xf] %v1281_v47  ;;  %v4186_v17 = vld [vmem:[%s6402_s7 + $0x18] sm:$0xff]  ;;  %v5429_v32 = vrot.slane %v1945_v46, 7  ;;  %vm5446_vm3 = vmand %vm2563_vm8, %vm6451_vm15  ;;  %vm6455_vm15 = vcmask 257216  }
  0xd2   : > { %1602 = vrot.lane.b32.xlu1 %v1548_v36, %s4401_s3  ;;  %4296 = vmatpush.bf16.msra.mxu3 %v4186_v17  ;;  %v1979_v36 = vshrl.u32 %v5417_v43, 16  ;;  %vm6456_vm8 = vmmov %vm6454_vm4 }
  0xd3   : > { %v2471_v39 = vpop.permute.xlu0 %2470  ;;  %v5398_v44 = vpop.permute.xlu2 %2488  ;;  %2847 = vmatpush.bf16.msra.mxu0 %v4186_v17  ;;  %v1951_v47 = vrot.slane %v5429_v32, 4 }
  0xd4   : > { %v2533_v56 = vsel %vm5388_vm7, %v2471_v39, %v2532_v2  ;;  %v2491_v22 = vpop.permute.xlu1 %2490  ;;  %v2138_v41 = vld [vmem:[#allocation2] sm:$0xf]  ;;  %v1543_v39 = vrot.slane %v1542_v20, 4 }
  0xd5   : > { %v2528_v54 = vld [vmem:[#allocation2 + $0x14] sm:$0xf]  ;;  %2534 = vst [vmem:[#allocation2 + $0x24] sm:$0xf] %v2533_v56  ;;  %v2553_v51 = vsel %vm5388_vm7, %v2491_v22, %v2552_v34  ;;  %v5469_v34 = vrot.slane %v1979_v36, 7  ;;  %v5471_v22 = vrot.slane %v1987_v5, 7 }
  0xd6   : > { %v2529_v28 = vsel %vm5388_vm7, %v5291_v9, %v2528_v54  ;;  %2554 = vst [vmem:[#allocation2 + $0x74] sm:$0xf] %v2553_v51  ;;  %v1956_v9 = vshll.u32 %v5384_v11, 16  ;;  %v1545_v20 = vsel %vm4749_vm11, %v1543_v39, %v5318_v14  ;;  %v2412_v39 = vrot.slane %v1953_v49, 4 }
  0xd7   : > { %2530 = vst [vmem:[#allocation2 + $0x14] sm:$0xf] %v2529_v28  ;;  %v2524_v25 = vld [vmem:[#allocation2 + $0x4] sm:$0xf] }
  0xd8   : > { %v1958_v38 = vor.u32 %v1956_v9, %v5433_v26 }
  0xd9   : > { %2098 = vrot.lane.b32.xlu0 %v2028_v62, %s4402_s16  ;;  %1406 = vrot.lane.b32.xlu2 %v5344_v48, %s4400_s0 }
  0xda   : > { %1398 = vrot.lane.b32.xlu1 %v5300_v58, %s4400_s0  ;;  %v1527_v58 = vsel %vm4749_vm11, %v1525_v10, %v5273_v37  ;;  %v1959_v12 = vsel %vm4738_vm10, %v1951_v47, %v1958_v38  ;;  %v1985_v10 = vrot.slane %v5469_v34, 4  ;;  %v1992_v47 = vor.u32 %v1990_v13, %v5471_v22 }
  0xdb   : > { %v1417_v59 = vpop.permute.xlu0 %1416  ;;  %v2047_v7 = vpop.permute.xlu2 %2046  ;;  %v4405_v38 = vmov 0  }
  0xdc   : > { %v2575_v60 = vld [vmem:[#allocation2 + $0x24] sm:$0x8]  ;;  %1460 = vst.msk [vmem:[#allocation2 + $0x84] sm:$0xf] %vm6421_vm12, %v1417_v59  ;;  %v2139_v2 = vsel %vm5439_vm1, %v2047_v7, %v2138_v41  ;;  %v2463_v56 = vpop.permute.xlu1 %2462  ;;  %v2153_v41 = vld [vmem:[#allocation2 + $0x20] sm:$0xf] }
  0xdd   : > { %v2576_v62 = vsel %vm5446_vm3, 0, %v2575_v60  ;;  %2140 = vst [vmem:[#allocation2] sm:$0xf] %v2139_v2  ;;  %v2525_v54 = vsel %vm5388_vm7, %v2463_v56, %v2524_v25  ;;  %v2600_v37 = vld [vmem:[#allocation2 + $0x74] sm:$0x8]  ;;  %v5495_v2 = vrot.slane %v1956_v9, 5  ;;  %v1993_v56 = vsel %vm4738_vm10, %v1985_v10, %v1992_v47 }
  0xde   : > { %v2570_v17 = vld [vmem:[#allocation2 + $0x14] sm:$0x8]  ;;  %2577 = vst [vmem:[#allocation2 + $0x24] sm:$0x8] %v2576_v62  ;;  %v2601_v51 = vsel %vm5446_vm3, 0, %v2600_v37  ;;  %v2430_v9 = vrot.slane %v1987_v5, 4 }
  0xdf   : > { %v2571_v28 = vsel %vm5446_vm3, 0, %v2570_v17  ;;  %2526 = vst [vmem:[#allocation2 + $0x4] sm:$0xf] %v2525_v54  ;;  %v2188_v7 = vld [vmem:[#allocation2 + $0x70] sm:$0xf]  ;;  %v5507_v17 = vrot.slane %v1990_v13, 5  ;;  %v2413_v49 = vor.u32 %v2412_v39, %v5495_v2 }
  0xe0   : > { %2572 = vst [vmem:[#allocation2 + $0x14] sm:$0x8] %v2571_v28  ;;  %v1948_v37 = vshll.u32 %v5395_v3, 16 }
  0xe1   : > { %2602 = vst [vmem:[#allocation2 + $0x74] sm:$0x8] %v2601_v51  ;;  %1592 = vrot.lane.b32.xlu0 %v1527_v58, %s4401_s3  ;;  %2072 = vrot.lane.b32.xlu2 %v1959_v12, %s4402_s16  ;;  %v2431_v5 = vor.u32 %v2430_v9, %v5507_v17  ;;  %v2414_v28 = vrot.slane %v2413_v49, 4  ;;  %v1652_v51 = vld [vmem:[#allocation2 + $0x34] sm:$0xf]  ;;  %v2406_v49 = vrot.slane %v1945_v46, 4 }
  0xe2   : > { %1477 = vst.msk [vmem:[#allocation2 + $0x78] sm:$0xf] %vm6421_vm12, %v4405_v38  ;;  %1600 = vrot.lane.b32.xlu1 %v1545_v20, %s4401_s3  ;;  %v1982_v20 = vshll.u32 %v5417_v43, 16  ;;  %v2407_v9 = vrot.slane %v1948_v37, 5 }
  0xe3   : > { %v2059_v59 = vpop.permute.xlu0 %2058  ;;  %1720 = vst.msk [vmem:[#allocation2 + $0x78] sm:$0xf] %vm6417_vm13, %v4405_v38  ;;  %v2093_v54 = vpop.permute.xlu2 %2092 }
  0xe4   : > { %v2154_v14 = vsel %vm5439_vm1, %v2059_v59, %v2153_v41  ;;  %1325 = vst.msk [vmem:[#allocation2 + $0xc] sm:$0xf] %vm6454_vm4, %v4405_v38  ;;  %v2089_v60 = vpop.permute.xlu1 %2088  ;;  %v1672_v59 = vld [vmem:[#allocation2 + $0x84] sm:$0xf] }
  0xe5   : > { %2155 = vst [vmem:[#allocation2 + $0x20] sm:$0xf] %v2154_v14  ;;  %v2189_v25 = vsel %vm5439_vm1, %v2089_v60, %v2188_v7  ;;  %v1950_v7 = vor.u32 %v1948_v37, %v5429_v32  ;;  %v2146_v37 = vld [vmem:[#allocation2 + $0x10] sm:$0xf] }
  0xe6   : > { %v2565_v62 = vld [vmem:[#allocation2 + $0x4] sm:$0x8]  ;;  %2334 = vst.msk [vmem:[#allocation2 + $0x20] sm:$0xf] %vm6455_vm15, %v5341_v50  ;;  %vm6457_vm15 = vmmov %vm6454_vm4 }
  0xe7   : > { %v2566_v58 = vsel %vm5446_vm3, 0, %v2565_v62  ;;  %2190 = vst [vmem:[#allocation2 + $0x70] sm:$0xf] %v2189_v25  ;;  %vm6461_vm13 = vmmov %vm6457_vm15  ;;  %v1984_v25 = vor.u32 %v1982_v20, %v5469_v34 }
  0xe8   : > { %2567 = vst [vmem:[#allocation2 + $0x4] sm:$0x8] %v2566_v58 }
  0xe9   : > { %2084 = vrot.lane.b32.xlu0 %v1993_v56, %s4402_s16  ;;  %1329 = vst.msk [vmem:[#allocation2 + $0x1c] sm:$0xf] %vm6456_vm8, %v4405_v38  ;;  %2295 = vrot.lane.b32.xlu2 %v5419_v8, %s4403_s18  ;;  %vm6459_vm8 = vcmask 388416  }
  0xea   : > { %v2192_v50 = vld [vmem:[#allocation2 + $0x78] sm:$0x1]  ;;  %1333 = vst.msk [vmem:[#allocation2 + $0x2c] sm:$0xf] %vm6454_vm4, %v4405_v38  ;;  %2287 = vrot.lane.b32.xlu1 %v5384_v11, %s4403_s18  ;;  %vm6460_vm4 = vmmov %vm6459_vm8  ;;  %v2432_v11 = vrot.slane %v2431_v5, 4 }
  0xeb   : > { %v2298_v13 = vpop.permute.xlu0 %2297  ;;  %1337 = vst.msk [vmem:[#allocation2 + $0x3c] sm:$0xf] %vm6457_vm15, %v4405_v38  ;;  %v2193_v12 = vsel %vm5198_vm0, %v2093_v54, %v2192_v50  ;;  %vm6462_vm15 = vmmov %vm6461_vm13  ;;  %v2408_v50 = vor.u32 %v2407_v9, %v2406_v49  ;;  %v1960_v49 = vrot.slane %v5433_v26, 4  ;;  %v4167_v26 = vld [vmem:[%s6402_s7] sm:$0xff] }
  0xec   : > { %2344 = vst.msk [vmem:[#allocation2 + $0x70] sm:$0xf] %vm6458_vm9, %v2298_v13  ;;  %v2469_v8 = vpop.permute.xlu1 %2468  ;;  %vm6463_vm9 = vmmov %vm6461_vm13 }
  0xed   : > { %2551 = vst.msk [vmem:[#allocation2 + $0x70] sm:$0xf] %vm6459_vm8, %v5398_v44  ;;  %vm6418_vm8 = vcmask 392192   ;;  %v2409_v13 = vrot.slane %v2408_v50, 4 }
  0xee   : > { %2531 = vst.msk [vmem:[#allocation2 + $0x20] sm:$0xf] %vm6460_vm4, %v2469_v8  ;;  %vm6464_vm4 = vmmov %vm6463_vm9 }
  0xef   : > { %2194 = vst [vmem:[#allocation2 + $0x78] sm:$0x1] %v2193_v12  ;;  %v2411_v46 = vsel %vm4749_vm11, %v2409_v13, %v5495_v2  ;;  %v4283_v2 = vld [vmem:[%s4543_s30 + $0x20] sm:$0xff]  }
  0xf0   : > { %1341 = vst.msk [vmem:[#allocation2 + $0x4c] sm:$0xf] %vm6461_vm13, %v4405_v38  ;;  %vm6465_vm13 = vmmov %vm6464_vm4  ;;  %v4235_v54 = vunpack.c.h.bf16 %v4283_v2 }
  0xf1   : > { %2478 = vrot.lane.b32.xlu0 %v2414_v28, %s4404_s21  ;;  %1345 = vst.msk [vmem:[#allocation2 + $0x5c] sm:$0xf] %vm6462_vm15, %v4405_v38  ;;  %vm6466_vm15 = vmmov %vm6464_vm4 }
  0xf2   : > { %1349 = vst.msk [vmem:[#allocation2 + $0x6c] sm:$0xf] %vm6463_vm9, %v4405_v38  ;;  %2486 = vrot.lane.b32.xlu1 %v2432_v11, %s4404_s21  ;;  %vm6467_vm9 = vcmask 257216   ;;  %v954_v8 = vmul.f32 %v5193_v19, %v4235_v54  ;;  %v5637_v11 = vpop.permute.xlu2 %2460 }
  0xf3   : > { %v1591_v44 = vpop.permute.xlu0 %1590  ;;  %1353 = vst.msk [vmem:[#allocation2 + $0x7c] sm:$0xf] %vm6464_vm4, %v4405_v38  ;;  %vm6468_vm4 = vcmask 388416  }
  0xf4   : > { %v1653_v10 = vsel %vm5094_vm14, %v1591_v44, %v1652_v51  ;;  %v4182_v47 = vld [vmem:[#allocation2 + $0x70] sm:$0xff]  ;;  %1357 = vst.msk [vmem:[#allocation2 + $0x8c] sm:$0xf] %vm6465_vm13, %v4405_v38  ;;  %v1611_v41 = vpop.permute.xlu1 %1610  ;;  %vm6469_vm13 = vcmask 322816   ;;  %v970_v28 = vadd.f32 %v5217_v30, %v954_v8 }
  0xf5   : > { %1654 = vst [vmem:[#allocation2 + $0x34] sm:$0xf] %v1653_v10  ;;  %v4189_v14 = vld [vmem:[#allocation2 + $0x20] sm:$0xff]  ;;  %v1673_v60 = vsel %vm5094_vm14, %v1611_v41, %v1672_v59  ;;  %3939 = vmatmul.msk.bf16.vlgmr.msra.gmra.mxu3 %vm6418_vm8, %v4182_v47  ;;  %v4234_v47 = vunpack.c.l.bf16 %v4283_v2  ;;  %v4169_v41 = vld [vmem:[%s6402_s7 + $0x10] sm:$0xff] }
  0xf6   : > { %v2237_v39 = vld [vmem:[#allocation2 + $0x78] sm:$0xf]  ;;  %1361 = vst.msk [vmem:[#allocation2 + $0x9c] sm:$0xf] %vm6466_vm15, %v4405_v38  ;;  %4117 = vmatmul.msk.bf16.vlgmr.msra.gmra.mxu2 %vm6418_vm8, %v4189_v14  ;;  %vm6470_vm15 = vmmov %vm6469_vm13  ;;  %v986_v44 = vmax.f32 %v970_v28, 0.0  ;;  %3064 = vmatpush.bf16.msra.mxu1 %v4169_v41 }
  0xf7   : > { %1674 = vst [vmem:[#allocation2 + $0x84] sm:$0xf] %v1673_v60  ;;  %v2238_v62 = vsel %vm5439_vm1, 0, %v2237_v39  ;;  %v953_v60 = vmul.f32 %v5193_v19, %v4234_v47  ;;  %4297 = vmatpush.bf16.msrb.mxu3 %v4169_v41  ;;  %v4168_v19 = vld [vmem:[%s6402_s7 + $0x8] sm:$0xff] }
  0xf8   : > { %2239 = vst [vmem:[#allocation2 + $0x78] sm:$0xf] %v2238_v62  ;;  %v5647_v10 = vpack.c.bf16 %v986_v44, %v986_v44  ;;  %v2424_v44 = vrot.slane %v1979_v36, 4 }
  0xf9   : > { %2364 = vst.msk [vmem:[#allocation2 + $0x78] sm:$0xf] %vm6467_vm9, %v4405_v38  ;;  %2070 = vrot.lane.b32.xlu0 %v1950_v7, %s4402_s16  ;;  %vm6471_vm9 = vmmov %vm6469_vm13 }
  0xfa   : > { %2603 = vst.msk [vmem:[#allocation2 + $0x78] sm:$0xf] %vm6468_vm4, %v4405_v38  ;;  %2082 = vrot.lane.b32.xlu1 %v1984_v25, %s4402_s16  ;;  %vm6472_vm4 = vmmov %vm6471_vm9  ;;  %1404 = vrot.lane.b32.xlu2 %v5647_v10, %s4400_s0  ;;  %v1142_v14 = vshrl.u32 %v5647_v10, 16  ;;  %v1145_v7 = vshll.u32 %v5647_v10, 16  ;;  %v5681_v9 = vpop.permute.xlu2 %2056 }
  0xfb   : > { %1463 = vst.msk [vmem:[#allocation2 + $0x8] sm:$0xf] %vm6421_vm12, %v4405_v38  ;;  %vm6473_vm8 = vmmov %vm6472_vm4  ;;  %v2053_v5 = vpop.permute.xlu0 %2052  ;;  %3065 = vmatpush.bf16.msra.mxu1 %v4168_v19  ;;  %4298 = vmatpush.bf16.msrb.mxu3 %v4168_v19 }
  0xfc   : > { %v1697_v32 = vld [vmem:[#allocation2 + $0x34] sm:$0x8]  ;;  %1465 = vst.msk [vmem:[#allocation2 + $0x18] sm:$0xf] %vm6421_vm12, %v4405_v38  ;;  %v2063_v12 = vpop.permute.xlu1 %2062  ;;  %v2147_v51 = vsel %vm5439_vm1, %v2053_v5, %v2146_v37  ;;  %v1535_v62 = vrot.slane %v1145_v7, 5  ;;  %v1537_v25 = vrot.slane %v1142_v14, 4 }
  0xfd   : > { %v1698_v34 = vsel %vm5143_vm5, 0, %v1697_v32  ;;  %1467 = vst.msk [vmem:[#allocation2 + $0x28] sm:$0xf] %vm6421_vm12, %v4405_v38  ;;  %v969_v32 = vadd.f32 %v5217_v30, %v953_v60 }
  0xfe   : > { %1699 = vst [vmem:[#allocation2 + $0x34] sm:$0x8] %v1698_v34  ;;  %v1722_v56 = vld [vmem:[#allocation2 + $0x84] sm:$0x8]  ;;  %v1538_v34 = vor.u32 %v1537_v25, %v1535_v62 }
  0xff   : > { %v1723_v58 = vsel %vm5143_vm5, 0, %v1722_v56  ;;  %1469 = vst.msk [vmem:[#allocation2 + $0x38] sm:$0xf] %vm6421_vm12, %v4405_v38  ;;  %vm6474_vm5 = vmmov %vm6472_vm4  ;;  %v985_v56 = vmax.f32 %v969_v32, 0.0  ;;  %3066 = vmatpush.bf16.msra.mxu1 %v4167_v26  ;;  %4299 = vmatpush.bf16.msrb.mxu3 %v4167_v26 }
 0x100   : > { %1724 = vst [vmem:[#allocation2 + $0x84] sm:$0x8] %v1723_v58  ;;  %v1539_v30 = vrot.slane %v1538_v34, 4 }
 0x101   : > { %1471 = vst.msk [vmem:[#allocation2 + $0x48] sm:$0xf] %vm6421_vm12, %v4405_v38  ;;  %2293 = vrot.lane.b32.xlu0 %v5417_v43, %s4403_s18  ;;  %v5686_v50 = vpack.c.bf16 %v985_v56, %v985_v56 }
 0x102   : > { %1475 = vst.msk [vmem:[#allocation2 + $0x68] sm:$0xf] %vm6421_vm12, %v4405_v38  ;;  %2476 = vrot.lane.b32.xlu1 %v2411_v46, %s4404_s21  ;;  %2285 = vrot.lane.b32.xlu2 %v5395_v3, %s4403_s18  ;;  %v2425_v3 = vrot.slane %v1982_v20, 5  ;;  %v1769_v20 = vld [vmem:[%s4548_s20 + $0x48] sm:$0xff] }
 0x103   : > { %1479 = vst.msk [vmem:[#allocation2 + $0x88] sm:$0xf] %vm6421_vm12, %v4405_v38  ;;  %v5651_v59 = vpop.permute.xlu0 %2269  ;;  %v1134_v46 = vshrl.u32 %v5686_v50, 16  ;;  %v1137_v2 = vshll.u32 %v5686_v50, 16  ;;  %4300 = vmatpush.bf16.msra.mxu3 %v5349_v63  ;;  %v5728_v63 = vpop.permute.xlu2 %1588  ;;  %v1785_v36 = vmul.f32 %v5306_v21, %v1769_v20 }
 0x104   : > { %1464 = vst.msk [vmem:[#allocation2 + $0xc] sm:$0xf] %vm6421_vm12, %v4405_v38  ;;  %v5665_v39 = vpop.permute.xlu1 %2273  ;;  %v2426_v43 = vor.u32 %v2425_v3, %v2424_v44  ;;  %v5808_v44 = vrot.slane %v1142_v14, 7  ;;  %v1291_v14 = vld [vmem:[#allocation2 + $0x58] sm:$0x1] }
 0x105   : > { %1466 = vst.msk [vmem:[#allocation2 + $0x1c] sm:$0xf] %vm6421_vm12, %v4405_v38  ;;  %v1532_v8 = vrot.slane %v1137_v2, 5  ;;  %v1801_v25 = vadd.f32 %v5327_v15, %v1785_v36 }
 0x106   : > { %1468 = vst.msk [vmem:[#allocation2 + $0x2c] sm:$0xf] %vm6421_vm12, %v4405_v38  ;;  %v2427_v60 = vrot.slane %v2426_v43, 4  ;;  %v1149_v36 = vrot.slane %v5808_v44, 4 }
 0x107   : > { %1470 = vst.msk [vmem:[#allocation2 + $0x3c] sm:$0xf] %vm6421_vm12, %v4405_v38  ;;  %4301 = vmatpush.bf16.msra.mxu3 %v5372_v24  ;;  %v1817_v19 = vmax.f32 %v1801_v25, 0.0 }
 0x108   : > { %1472 = vst.msk [vmem:[#allocation2 + $0x4c] sm:$0xf] %vm6421_vm12, %v4405_v38  ;;  %v2429_v32 = vsel %vm4749_vm11, %v2427_v60, %v5507_v17 }
 0x109   : > { %1474 = vst.msk [vmem:[#allocation2 + $0x5c] sm:$0xf] %vm6421_vm12, %v4405_v38  ;;  %1598 = vrot.lane.b32.xlu0 %v1539_v30, %s4401_s3  ;;  %v5763_v34 = vpack.c.bf16 %v1817_v19, %v1817_v19 }
 0x10a   : > { %1476 = vst.msk [vmem:[#allocation2 + $0x6c] sm:$0xf] %vm6421_vm12, %v4405_v38  ;;  %2074 = vrot.lane.b32.xlu1 %v1960_v49, %s4402_s16  ;;  %2484 = vrot.lane.b32.xlu2 %v2429_v32, %s4404_s21 }
 0x10b   : > { %1478 = vst.msk [vmem:[#allocation2 + $0x7c] sm:$0xf] %vm6421_vm12, %v4405_v38  ;;  %v5707_v5 = vpop.permute.xlu0 %2464  ;;  %4302 = vmatpush.bf16.msra.mxu3 %v5406_v52  ;;  %v5771_v52 = vpop.permute.xlu2 %2096  ;;  %v1970_v17 = vshrl.u32 %v5763_v34, 16  ;;  %v1973_v56 = vshll.u32 %v5763_v34, 16 }
 0x10c   : > { %1480 = vst.msk [vmem:[#allocation2 + $0x8c] sm:$0xf] %vm6421_vm12, %v4405_v38  ;;  %v5709_v54 = vpop.permute.xlu1 %2050 }
 0x10d   : > { %1482 = vst.msk [vmem:[#allocation2 + $0x9c] sm:$0xf] %vm6421_vm12, %v4405_v38  ;;  %vm6475_vm12 = vmmov %vm6472_vm4  ;;  %v2419_v26 = vrot.slane %v1973_v56, 5 }
 0x10e   : > { %1685 = vst.msk [vmem:[#allocation2 + $0x8] sm:$0xf] %vm6469_vm13, %v4405_v38  ;;  %vm6476_vm13 = vmmov %vm6472_vm4 }
 0x10f   : > { %1690 = vst.msk [vmem:[#allocation2 + $0x18] sm:$0xf] %vm6470_vm15, %v4405_v38  ;;  %vm6477_vm15 = vmmov %vm6472_vm4 }
 0x110   : > { %1695 = vst.msk [vmem:[#allocation2 + $0x28] sm:$0xf] %vm6471_vm9, %v4405_v38  ;;  %vm6478_vm9 = vmmov %vm6472_vm4 }
 0x111   : > { %1700 = vst.msk [vmem:[#allocation2 + $0x38] sm:$0xf] %vm6472_vm4, %v4405_v38  ;;  %1402 = vrot.lane.b32.xlu0 %v5686_v50, %s4400_s0 }
 0x112   : > { %1705 = vst.msk [vmem:[#allocation2 + $0x48] sm:$0xf] %vm6473_vm8, %v4405_v38  ;;  %vm6481_vm8 = vmmov %vm6472_vm4 }
 0x113   : > { %1715 = vst.msk [vmem:[#allocation2 + $0x68] sm:$0xf] %vm6474_vm5, %v4405_v38  ;;  %vm6479_vm5 = vmmov %vm6472_vm4  ;;  %v5744_v24 = vpop.permute.xlu0 %1394  ;;  %v5814_v20 = vpop.permute.xlu2 %2474 }
 0x114   : > { %1725 = vst.msk [vmem:[#allocation2 + $0x88] sm:$0xf] %vm6475_vm12, %v4405_v38  ;;  %vm6480_vm12 = vmmov %vm6472_vm4  ;;  %v5746_v41 = vpop.permute.xlu1 %1414 }
 0x115   : > { %1686 = vst.msk [vmem:[#allocation2 + $0xc] sm:$0xf] %vm6476_vm13, %v4405_v38  ;;  %vm6482_vm13 = vmmov %vm6472_vm4  ;;  %v2143_v19 = vld [vmem:[#allocation2 + $0x8] sm:$0x1] }
 0x116   : > { %1691 = vst.msk [vmem:[#allocation2 + $0x1c] sm:$0xf] %vm6477_vm15, %v4405_v38  ;;  %vm6483_vm15 = vmmov %vm6472_vm4  ;;  %v2150_v43 = vld [vmem:[#allocation2 + $0x18] sm:$0x1] }
 0x117   : > { %1696 = vst.msk [vmem:[#allocation2 + $0x2c] sm:$0xf] %vm6478_vm9, %v4405_v38  ;;  %vm6484_vm9 = vmmov %vm6472_vm4  ;;  %v2157_v58 = vld [vmem:[#allocation2 + $0x28] sm:$0x1]  ;;  %v2151_v32 = vsel %vm5198_vm0, %v5681_v9, %v2150_v43  ;;  %v2144_v9 = vsel %vm5198_vm0, %v5709_v54, %v2143_v19  ;;  %v5870_v43 = vrot.slane %v1970_v17, 7 }
 0x118   : > { %1701 = vst.msk [vmem:[#allocation2 + $0x3c] sm:$0xf] %vm6479_vm5, %v4405_v38  ;;  %vm6485_vm5 = vcmask 126016   ;;  %v2158_v13 = vsel %vm5198_vm0, %v2063_v12, %v2157_v58  ;;  %v1531_v12 = vrot.slane %v1134_v46, 4  ;;  %v1768_v58 = vld [vmem:[%s4548_s20 + $0x40] sm:$0xff]  ;;  %s3813_s20 = sshll.u32 %s6654_s22, 1 }
 0x119   : > { %1706 = vst.msk [vmem:[#allocation2 + $0x4c] sm:$0xf] %vm6480_vm12, %v4405_v38  ;;  %vm6486_vm12 = vmmov %vm6485_vm5  ;;  %2291 = vrot.lane.b32.xlu0 %v5763_v34, %s4403_s18  ;;  %v1784_v30 = vmul.f32 %v5306_v21, %v1768_v58  ;;  %s5851_s30 = sadd.s32 %s3813_s20, %s4518_s17 }
 0x11a   : > { %1711 = vst.msk [vmem:[#allocation2 + $0x5c] sm:$0xf] %vm6481_vm8, %v4405_v38  ;;  %vm6487_vm8 = vmmov %vm6485_vm5  ;;  %v1533_v28 = vor.u32 %v1532_v8, %v1531_v12  ;;  %v2421_v12 = vrot.slane %v1970_v17, 4  ;;  %v1994_v8 = vrot.slane %v5471_v22, 4  ;;  %s3815_s14 = sshll.u32 %s5851_s30, 2  ;;  %s3836_s28 = sshll.u32 %s5851_s30, 3 }
 0x11b   : > { %1716 = vst.msk [vmem:[#allocation2 + $0x6c] sm:$0xf] %vm6472_vm4, %v4405_v38  ;;  %vm6488_vm4 = vmmov %vm6485_vm5  ;;  %v5785_v49 = vpop.permute.xlu0 %1608  ;;  %v1800_v3 = vadd.f32 %v5327_v15, %v1784_v30  ;;  %s783_s24 = scalar_lea.vmem %s6397_s2, %s3815_s14  ;;  %s828_s15 = scalar_lea.vmem %s6400_s5, %s3836_s28 }
 0x11c   : > { %1721 = vst.msk [vmem:[#allocation2 + $0x7c] sm:$0xf] %vm6482_vm13, %v4405_v38  ;;  %vm6489_vm13 = vmmov %vm6488_vm4  ;;  %v1534_v37 = vrot.slane %v1533_v28, 4  ;;  %v2422_v28 = vor.u32 %v2421_v12, %v2419_v26  ;;  %2086 = vrot.lane.b32.xlu2 %v1994_v8, %s4402_s16  ;;  %v1292_v12 = vsel %vm4514_vm2, %v1149_v36, %v1291_v14  ;;  %v1031_v8 = vld [vmem:[#allocation2 + $0x50] sm:$0x1]  ;;  %v1975_v36 = vor.u32 %v1973_v56, %v5870_v43  ;;  %s6265_s28 = scalar_lea.vmem %s6408_s13, %s4532_s23 }
 0x11d   : > { %1726 = vst.msk [vmem:[#allocation2 + $0x8c] sm:$0xf] %vm6483_vm15, %v4405_v38  ;;  %vm6490_vm15 = vmmov %vm6488_vm4 }
 0x11e   : > { %1731 = vst.msk [vmem:[#allocation2 + $0x9c] sm:$0xf] %vm6484_vm9, %v4405_v38  ;;  %vm6491_vm9 = vmmov %vm6488_vm4  ;;  %v2423_v22 = vrot.slane %v2422_v28, 4 }
 0x11f   : > { %2148 = vst [vmem:[#allocation2 + $0x10] sm:$0xf] %v2147_v51  ;;  %v1536_v51 = vsel %vm4749_vm11, %v1534_v37, %v1535_v62  ;;  %v1816_v37 = vmax.f32 %v1800_v3, 0.0  ;;  %v5855_v3 = vpop.permute.xlu2 %1408 }
 0x120   : > { %2212 = vst.msk [vmem:[#allocation2 + $0xc] sm:$0xf] %vm6485_vm5, %v4405_v38  ;;  %vm6492_vm5 = vmmov %vm6488_vm4  ;;  %1596 = vrot.lane.b32.xlu1 %v1536_v51, %s4401_s3 }
 0x121   : > { %2216 = vst.msk [vmem:[#allocation2 + $0x1c] sm:$0xf] %vm6486_vm12, %v4405_v38  ;;  %vm6493_vm12 = vmmov %vm6488_vm4  ;;  %v5816_v51 = vpack.c.bf16 %v1816_v37, %v1816_v37 }
 0x122   : > { %2220 = vst.msk [vmem:[#allocation2 + $0x2c] sm:$0xf] %vm6487_vm8, %v4405_v38  ;;  %vm6494_vm8 = vmmov %vm6488_vm4 }
 0x123   : > { %2224 = vst.msk [vmem:[#allocation2 + $0x3c] sm:$0xf] %vm6488_vm4, %v4405_v38  ;;  %vm6495_vm4 = vcmask 257216   ;;  %v1965_v60 = vshll.u32 %v5816_v51, 16  ;;  %2289 = vrot.lane.b32.xlu0 %v5816_v51, %s4403_s18  ;;  %v5830_v25 = vpop.permute.xlu0 %2283 }
 0x124   : > { %2228 = vst.msk [vmem:[#allocation2 + $0x4c] sm:$0xf] %vm6489_vm13, %v4405_v38  ;;  %vm6496_vm13 = vmmov %vm6495_vm4 }
 0x125   : > { %2232 = vst.msk [vmem:[#allocation2 + $0x5c] sm:$0xf] %vm6490_vm15, %v4405_v38  ;;  %vm6497_vm15 = vmmov %vm6495_vm4  ;;  %v2416_v30 = vrot.slane %v1965_v60, 5 }
 0x126   : > { %2236 = vst.msk [vmem:[#allocation2 + $0x6c] sm:$0xf] %vm6491_vm9, %v4405_v38  ;;  %vm6498_vm9 = vmmov %vm6495_vm4 }
 0x127   : > { %2240 = vst.msk [vmem:[#allocation2 + $0x7c] sm:$0xf] %vm6492_vm5, %v4405_v38  ;;  %vm6499_vm5 = vmmov %vm6495_vm4 }
 0x128   : > { %2244 = vst.msk [vmem:[#allocation2 + $0x8c] sm:$0xf] %vm6493_vm12, %v4405_v38  ;;  %vm6500_vm12 = vmmov %vm6495_vm4  ;;  %2482 = vrot.lane.b32.xlu1 %v2423_v22, %s4404_s21 }
 0x129   : > { %2248 = vst.msk [vmem:[#allocation2 + $0x9c] sm:$0xf] %vm6494_vm8, %v4405_v38  ;;  %vm6501_vm8 = vmmov %vm6495_vm4 }
 0x12a   : > { %2159 = vst [vmem:[#allocation2 + $0x28] sm:$0x1] %v2158_v13  ;;  %v5787_v13 = vpop.permute.xlu1 %2066 }
 0x12b   : > { %2351 = vst.msk [vmem:[#allocation2 + $0xc] sm:$0xf] %vm6495_vm4, %v4405_v38  ;;  %v5863_v54 = vpop.permute.xlu0 %2494 }
 0x12c   : > { %2353 = vst.msk [vmem:[#allocation2 + $0x1c] sm:$0xf] %vm6496_vm13, %v4405_v38  ;;  %vm6502_vm13 = vmmov %vm6495_vm4 }
 0x12d   : > { %2355 = vst.msk [vmem:[#allocation2 + $0x2c] sm:$0xf] %vm6497_vm15, %v4405_v38  ;;  %vm6503_vm15 = vcmask 388416  }
 0x12e   : > { %2357 = vst.msk [vmem:[#allocation2 + $0x3c] sm:$0xf] %vm6498_vm9, %v4405_v38  ;;  %vm6505_vm9 = vmmov %vm6495_vm4 }
 0x12f   : > { %2359 = vst.msk [vmem:[#allocation2 + $0x4c] sm:$0xf] %vm6499_vm5, %v4405_v38  ;;  %vm6506_vm5 = vmmov %vm6495_vm4 }
 0x130   : > { %2361 = vst.msk [vmem:[#allocation2 + $0x5c] sm:$0xf] %vm6500_vm12, %v4405_v38  ;;  %vm6507_vm12 = vmmov %vm6503_vm15 }
 0x131   : > { %v2217_v47 = vld [vmem:[#allocation2 + $0x28] sm:$0xf]  ;;  %2363 = vst.msk [vmem:[#allocation2 + $0x6c] sm:$0xf] %vm6501_vm8, %v4405_v38  ;;  %vm6508_vm8 = vmmov %vm6507_vm12 }
 0x132   : > { %v2218_v62 = vsel %vm5439_vm1, 0, %v2217_v47  ;;  %2365 = vst.msk [vmem:[#allocation2 + $0x7c] sm:$0xf] %vm6495_vm4, %v4405_v38  ;;  %vm6509_vm4 = vmmov %vm6508_vm8  ;;  %v1962_v47 = vshrl.u32 %v5816_v51, 16 }
 0x133   : > { %2219 = vst [vmem:[#allocation2 + $0x28] sm:$0xf] %v2218_v62  ;;  %v5832_v62 = vpop.permute.xlu1 %2303 }
 0x134   : > { %2354 = vst.msk [vmem:[#allocation2 + $0x28] sm:$0xf] %vm6502_vm13, %v4405_v38  ;;  %vm6510_vm13 = vmmov %vm6509_vm4  ;;  %v2415_v58 = vrot.slane %v1962_v47, 4  ;;  %v1964_v22 = vrot.slane %v1962_v47, 7  ;;  %v5903_v47 = vpop.permute.xlu2 %2281 }
 0x135   : > { %2578 = vst.msk [vmem:[#allocation2 + $0x28] sm:$0xf] %vm6503_vm15, %v4405_v38  ;;  %vm6511_vm15 = vmmov %vm6509_vm4 }
 0x136   : > { %2367 = vst.msk [vmem:[#allocation2 + $0x8c] sm:$0xf] %vm6505_vm9, %v4405_v38  ;;  %vm6512_vm9 = vmmov %vm6509_vm4 }
 0x137   : > { %2369 = vst.msk [vmem:[#allocation2 + $0x9c] sm:$0xf] %vm6506_vm5, %v4405_v38  ;;  %vm6513_vm5 = vmmov %vm6509_vm4 }
 0x138   : > { %2569 = vst.msk [vmem:[#allocation2 + $0xc] sm:$0xf] %vm6507_vm12, %v4405_v38  ;;  %vm6514_vm12 = vmmov %vm6509_vm4 }
 0x139   : > { %2574 = vst.msk [vmem:[#allocation2 + $0x1c] sm:$0xf] %vm6508_vm8, %v4405_v38  ;;  %vm6515_vm8 = vmmov %vm6509_vm4 }
 0x13a   : > { %2579 = vst.msk [vmem:[#allocation2 + $0x2c] sm:$0xf] %vm6509_vm4, %v4405_v38 }
 0x13b   : > { %2584 = vst.msk [vmem:[#allocation2 + $0x3c] sm:$0xf] %vm6510_vm13, %v4405_v38  ;;  %vm6516_vm13 = vcmask 257216   ;;  %v5866_v37 = vpop.permute.xlu1 %1400 }
 0x13c   : > { %2589 = vst.msk [vmem:[#allocation2 + $0x4c] sm:$0xf] %vm6511_vm15, %v4405_v38  ;;  %vm6517_vm15 = vmmov %vm6509_vm4 }
 0x13d   : > { %2594 = vst.msk [vmem:[#allocation2 + $0x5c] sm:$0xf] %vm6512_vm9, %v4405_v38  ;;  %vm6518_vm9 = vmmov %vm6516_vm13 }
 0x13e   : > { %2599 = vst.msk [vmem:[#allocation2 + $0x6c] sm:$0xf] %vm6513_vm5, %v4405_v38  ;;  %vm6519_vm5 = vmmov %vm6509_vm4 }
 0x13f   : > { %2604 = vst.msk [vmem:[#allocation2 + $0x7c] sm:$0xf] %vm6514_vm12, %v4405_v38  ;;  %vm6520_vm12 = vcmask 191616  }
 0x140   : > { %2609 = vst.msk [vmem:[#allocation2 + $0x8c] sm:$0xf] %vm6515_vm8, %v4405_v38  ;;  %vm6521_vm8 = vcmask 322816  }
 0x141   : > { %2614 = vst.msk [vmem:[#allocation2 + $0x9c] sm:$0xf] %vm6509_vm4, %v4405_v38  ;;  %vm6522_vm4 = vcmask 392192  }
 0x142   : > { %2330 = vst.msk [vmem:[#allocation2] sm:$0xf] %vm6516_vm13, %v5651_v59  ;;  %v2417_v59 = vor.u32 %v2416_v30, %v2415_v58  ;;  %vm6523_vm13 = vmmov %vm6520_vm12  ;;  %v4190_v30 = vld [vmem:[#allocation2 + $0x28] sm:$0xff] }
 0x143   : > { %2521 = vst.msk [vmem:[#allocation2] sm:$0xf] %vm6517_vm15, %v5637_v11  ;;  %v1032_v11 = vsel %vm4514_vm2, 0, %v1031_v8  ;;  %vm6524_vm15 = vcmask 126016   ;;  %4118 = vmatmul.msk.bf16.gmra.mxu2 %vm6522_vm4, %v4190_v30 }
 0x144   : > { %2332 = vst.msk [vmem:[#allocation2 + $0x10] sm:$0xf] %vm6518_vm9, %v5665_v39  ;;  %v2418_v28 = vrot.slane %v2417_v59, 4  ;;  %v5918_v59 = vpop.permute.xlu0 %2064 }
 0x145   : > { %2152 = vst [vmem:[#allocation2 + $0x18] sm:$0x1] %v2151_v32 }
 0x146   : > { %1293 = vst [vmem:[#allocation2 + $0x58] sm:$0x1] %v1292_v12  ;;  %v2420_v39 = vsel %vm4749_vm11, %v2418_v28, %v2419_v26  ;;  %v1968_v26 = vrot.slane %v1964_v22, 4  ;;  %v4358_v28 = vld [vmem:[%s6403_s8] ss:$0 sm:$0xff] }
 0x147   : > { %2527 = vst.msk [vmem:[#allocation2 + $0x10] sm:$0xf] %vm6519_vm5, %v5707_v5  ;;  %2480 = vrot.lane.b32.xlu1 %v2420_v39, %s4404_s21  ;;  %v1750_v39 = vld [vmem:[%s828_s15] sm:$0xff] }
 0x148   : > { %2145 = vst [vmem:[#allocation2 + $0x8] sm:$0x1] %v2144_v9  ;;  %v1976_v34 = vsel %vm4738_vm10, %v1968_v26, %v1975_v36  ;;  %v5920_v9 = vpop.permute.xlu1 %2094  ;;  %v5930_v36 = vrot.slane %v1151_v33, 7 }
 0x149   : > { %1033 = vst [vmem:[#allocation2 + $0x50] sm:$0x1] %v1032_v11  ;;  %2078 = vrot.lane.b32.xlu2 %v1976_v34, %s4402_s16  ;;  %v4183_v11 = vld [vmem:[#allocation2 + $0x78] sm:$0xff]  ;;  %v4359_v34 = vld [vmem:[%s6404_s9] ss:$0 sm:$0xff] }
 0x14a   : > { %v4151_v5 = vld [vmem:[#allocation2] sm:$0xff]  ;;  %1449 = vst.msk [vmem:[#allocation2 + $0x30] sm:$0xf] %vm6520_vm12, %v5744_v24  ;;  %vm6525_vm12 = vmmov %vm6522_vm4 }
 0x14b   : > { %1651 = vst.msk [vmem:[#allocation2 + $0x30] sm:$0xf] %vm6521_vm8, %v5728_v63  ;;  %4019 = vmatmul.msk.bf16.vlgmr.msra.gmra.mxu1 %vm6522_vm4, %v4151_v5  ;;  %v1751_v5 = vld [vmem:[%s828_s15 + $0x8] sm:$0xff]  ;;  %vm6526_vm8 = vmmov %vm6523_vm13 }
 0x14c   : > { %v2213_v14 = vld [vmem:[#allocation2 + $0x18] sm:$0xf]  ;;  %1459 = vst.msk [vmem:[#allocation2 + $0x80] sm:$0xf] %vm6523_vm13, %v5746_v41  ;;  %v5900_v41 = vrot.slane %v1134_v46, 7  ;;  %vm6527_vm13 = vcmask 322816   ;;  %v1753_v33 = vmul.f32 %v5306_v21, %v1751_v5 }
 0x14d   : > { %v2214_v63 = vsel %vm5439_vm1, 0, %v2213_v14  ;;  %v1342_v24 = vld [vmem:[#allocation2 + $0x58] sm:$0xf]  ;;  %2198 = vst.msk [vmem:[#allocation2 + $0x84] sm:$0xf] %vm6524_vm15, %v5771_v52  ;;  %v4213_v52 = vld [vmem:[%s783_s24] sm:$0xff]   ;;  %v1967_v14 = vor.u32 %v1965_v60, %v1964_v22  ;;  %vm6528_vm15 = vmmov %vm6522_vm4 }
 0x14e   : > { %2215 = vst [vmem:[#allocation2 + $0x18] sm:$0xf] %v2214_v63  ;;  %v1343_v17 = vsel %vm4642_vm6, 0, %v1342_v24  ;;  %v4170_v56 = vld [vmem:[#allocation2 + $0x10] sm:$0xff]  ;;  %v4215_v19 = vunpack.c.h.bf16 %v4213_v52  ;;  %v1139_v46 = vor.u32 %v1137_v2, %v5900_v41  ;;  %v4214_v12 = vunpack.c.l.bf16 %v4213_v52  ;;  %3940 = vmatmul.msk.bf16.gmra.mxu3 %vm6528_vm15, %v4183_v11 }
 0x14f   : > { %2352 = vst.msk [vmem:[#allocation2 + $0x18] sm:$0xf] %vm6518_vm9, %v4405_v38  ;;  %v2209_v32 = vld [vmem:[#allocation2 + $0x8] sm:$0xf]  ;;  %3927 = vmatmul.msk.bf16.vlgmr.msra.gmra.mxu0 %vm6525_vm12, %v4170_v56  ;;  %v909_v2 = vstv %s5888_s19  ;;  %v1752_v24 = vmul.f32 %v5306_v21, %v1750_v39  ;;  %vm6532_vm12 = vcmask 388416   ;;  %v1157_v21 = vrot.slane %v5930_v36, 4 }
 0x150   : > { %2573 = vst.msk [vmem:[#allocation2 + $0x18] sm:$0xf] %vm6519_vm5, %v4405_v38  ;;  %v1287_v58 = vld [vmem:[#allocation2 + $0x50] sm:$0xf]  ;;  %v2210_v8 = vsel %vm5439_vm1, 0, %v2209_v32  ;;  %v903_v50 = vmul.f32 %v4358_v28, %v4215_v19  ;;  %v902_v63 = vmul.f32 %v4358_v28, %v4214_v12  ;;  %vm5945_vm9 = vcmp.eq.s32.totalorder %v909_v2, 1 }
 0x151   : > { %1344 = vst [vmem:[#allocation2 + $0x58] sm:$0xf] %v1343_v17  ;;  %v1288_v51 = vsel %vm4642_vm6, %v1139_v46, %v1287_v58  ;;  %vm6531_vm5 = vcmask 257216   ;;  %v1754_v32 = vadd.f32 %v5327_v15, %v1752_v24  ;;  %v1164_v19 = vor.u32 %v1162_v4, %v5280_v18  ;;  %v5960_v46 = vpop.permute.xlu2 %2492  ;;  %2076 = vrot.lane.b32.xlu2 %v1967_v14, %s4402_s16  ;;  %v5974_v18 = vpop.permute.xlu0 %2301 }
 0x152   : > { %1473 = vst.msk [vmem:[#allocation2 + $0x58] sm:$0xf] %vm6526_vm8, %v4405_v38  ;;  %v1855_v26 = vld [vmem:[#allocation2 + $0x30] sm:$0x1]  ;;  %v905_v17 = vadd.f32 %v4359_v34, %v903_v50  ;;  %v904_v60 = vadd.f32 %v4359_v34, %v902_v63  ;;  %v1755_v30 = vadd.f32 %v5327_v15, %v1753_v33  ;;  %v1123_v12 = vrot.slane %v5336_v35, 4  ;;  %vm6533_vm8 = vmmov %vm6527_vm13  ;;  %v2473_v4 = vpop.permute.xlu1 %2472 }
 0x153   : > { %1710 = vst.msk [vmem:[#allocation2 + $0x58] sm:$0xf] %vm6527_vm13, %v4405_v38  ;;  %v1856_v56 = vsel %vm5198_vm0, 0, %v1855_v26  ;;  %v1756_v28 = vmax.f32 %v1754_v32, 0.0  ;;  %vm6534_vm4 = vcmask 126016   ;;  %v1165_v15 = vsel %vm4738_vm10, %v1157_v21, %v1164_v19  ;;  %vm6535_vm13 = vmmov %vm6531_vm5 }
 0x154   : > { %2211 = vst [vmem:[#allocation2 + $0x8] sm:$0xf] %v2210_v8  ;;  %v907_v52 = vmax.f32 %v905_v17, 0.0  ;;  %v1130_v8 = vor.u32 %v1128_v55, %v5278_v23  ;;  %v906_v11 = vmax.f32 %v904_v60, 0.0  ;;  %v1757_v23 = vmax.f32 %v1755_v30, 0.0  ;;  %vm6536_vm15 = vmmov %vm6531_vm5 }
 0x155   : > { %2350 = vst.msk [vmem:[#allocation2 + $0x8] sm:$0xf] %vm6531_vm5, %v4405_v38  ;;  %vm6537_vm5 = vcmask 60416   ;;  %v2164_v17 = vld [vmem:[#allocation2 + $0x38] sm:$0x1] }
 0x156   : > { %2568 = vst.msk [vmem:[#allocation2 + $0x8] sm:$0xf] %vm6532_vm12, %v4405_v38  ;;  %v912_v58 = vsel %vm5945_vm9, %v907_v52, 0.0  ;;  %vm6538_vm12 = vcmask 191616   ;;  %v1759_v63 = vsel %vm5945_vm9, %v1757_v23, 0.0  ;;  %v1977_v52 = vrot.slane %v5870_v43, 4 }
 0x157   : > { %1289 = vst [vmem:[#allocation2 + $0x50] sm:$0xf] %v1288_v51  ;;  %v5970_v16 = vpack.c.bf16 %v912_v58, %v912_v58  ;;  %v4171_v35 = vld [vmem:[#allocation2 + $0x18] sm:$0xff]  ;;  %v6021_v32 = vpack.c.bf16 %v1759_v63, %v1759_v63 }
 0x158   : > { %1857 = vst [vmem:[#allocation2 + $0x30] sm:$0x1] %v1856_v56  ;;  %v1319_v30 = vld [vmem:[#allocation2 + $0x98] sm:$0x1] }
 0x159   : > { %1671 = vst.msk [vmem:[#allocation2 + $0x80] sm:$0xf] %vm6533_vm8, %v5785_v49  ;;  %1420 = vrot.lane.b32.xlu0 %v5970_v16, %s4400_s0  ;;  %v1210_v31 = vshrl.u32 %v5970_v16, 16  ;;  %v1213_v55 = vshll.u32 %v5970_v16, 16  ;;  %v1131_v49 = vsel %vm4738_vm10, %v1123_v12, %v1130_v8  ;;  %vm6539_vm8 = vcmask 392192   ;;  %v1595_v51 = vpop.permute.xlu0 %1594  ;;  %2080 = vrot.lane.b32.xlu2 %v1977_v52, %s4402_s16  ;;  %v4153_v52 = vld [vmem:[#allocation2 + $0x10] sm:$0xff] }
 0x15a   : > { %2163 = vst.msk [vmem:[#allocation2 + $0x34] sm:$0xf] %vm6534_vm4, %v5787_v13  ;;  %v911_v13 = vsel %vm5945_vm9, %v906_v11, 0.0  ;;  %vm6540_vm4 = vmmov %vm6537_vm5  ;;  %v1603_v60 = vpop.permute.xlu1 %1602  ;;  %v2041_v23 = vshll.u32 %v6021_v32, 16 }
 0x15b   : > { %2337 = vst.msk [vmem:[#allocation2 + $0x34] sm:$0xf] %vm6535_vm13, %v5830_v25  ;;  %v5994_v50 = vrot.slane %v1213_v55, 5  ;;  %v1573_v2 = vrot.slane %v1210_v31, 4  ;;  %v1758_v25 = vsel %vm5945_vm9, %v1756_v28, 0.0  ;;  %v6004_v14 = vpack.c.bf16 %v911_v13, %v911_v13  ;;  %vm6541_vm13 = vmmov %vm6539_vm8 }
 0x15c   : > { %2347 = vst.msk [vmem:[#allocation2 + $0x84] sm:$0xf] %vm6536_vm15, %v5832_v62  ;;  %v2069_v62 = vpop.permute.xlu2 %2068  ;;  %vm6542_vm15 = vmmov %vm6538_vm12  ;;  %v6014_v34 = vpack.c.bf16 %v1758_v25, %v1758_v25  ;;  %v6018_v22 = vrot.slane %v1210_v31, 7  ;;  %vm6543_vm9 = vcmask 257216   ;;  %v2038_v31 = vshrl.u32 %v6021_v32, 16 }
 0x15d   : > { %v4152_v39 = vld [vmem:[#allocation2 + $0x8] sm:$0xff]  ;;  %1297 = vst.msk [vmem:[#allocation2 + $0x64] sm:$0xf] %vm6537_vm5, %v1165_v15  ;;  %v1574_v5 = vor.u32 %v1573_v2, %v5994_v50  ;;  %v1202_v43 = vshrl.u32 %v6004_v14, 16  ;;  %v1205_v12 = vshll.u32 %v6004_v14, 16  ;;  %vm6544_vm5 = vcmask 388416  }
 0x15e   : > { %1456 = vst.msk [vmem:[#allocation2 + $0x64] sm:$0xf] %vm6538_vm12, %v5855_v3  ;;  %4020 = vmatmul.msk.bf16.gmra.mxu1 %vm6539_vm8, %v4152_v39  ;;  %v1217_v19 = vrot.slane %v6018_v22, 4  ;;  %v2030_v11 = vshrl.u32 %v6014_v34, 16  ;;  %v6054_v39 = vrot.slane %v2038_v31, 7  ;;  %vm6545_vm12 = vmmov %vm6543_vm9 }
 0x15f   : > { %1283 = vst.msk [vmem:[#allocation2 + $0x44] sm:$0xf] %vm6540_vm4, %v1131_v49  ;;  %v2160_v26 = vld [vmem:[#allocation2 + $0x30] sm:$0xf]  ;;  %3928 = vmatmul.msk.bf16.gmra.mxu0 %vm6541_vm13, %v4171_v35  ;;  %v1575_v56 = vrot.slane %v1574_v5, 4  ;;  %v1567_v8 = vrot.slane %v1202_v43, 4  ;;  %vm6546_vm4 = vmmov %vm6544_vm5 }
 0x160   : > { %v1870_v24 = vld [vmem:[#allocation2 + $0x80] sm:$0x1]  ;;  %1452 = vst.msk [vmem:[#allocation2 + $0x44] sm:$0xf] %vm6542_vm15, %v5866_v37  ;;  %v2161_v3 = vsel %vm5439_vm1, %v5918_v59, %v2160_v26  ;;  %v1320_v49 = vsel %vm4514_vm2, %v1217_v19, %v1319_v30  ;;  %v2032_v13 = vrot.slane %v2030_v11, 7  ;;  %vm6547_vm13 = vmmov %vm6539_vm8  ;;  %vm6548_vm15 = vnez %v6444_v27 }
 0x161   : > { %v1871_v33 = vsel %vm5198_vm0, 0, %v1870_v24  ;;  %2162 = vst [vmem:[#allocation2 + $0x30] sm:$0xf] %v2161_v3  ;;  %1614 = vrot.lane.b32.xlu1 %v1575_v56, %s4401_s3  ;;  %v2043_v3 = vor.u32 %v2041_v23, %v6054_v39  ;;  %1418 = vrot.lane.b32.xlu2 %v6004_v14, %s4400_s0  ;;  %v2455_v30 = vrot.slane %v2041_v23, 5  ;;  %v2451_v23 = vrot.slane %v2030_v11, 4 }
 0x162   : > { %1872 = vst [vmem:[#allocation2 + $0x80] sm:$0x1] %v1871_v33  ;;  %v2536_v37 = vld [vmem:[#allocation2 + $0x34] sm:$0xf]  ;;  %v6058_v5 = vpop.permute.xlu1 %1398  ;;  %v2036_v26 = vrot.slane %v2032_v13, 4  ;;  %v2045_v48 = vrot.slane %v6054_v39, 4 }
 0x163   : > { %v2537_v59 = vsel %vm5388_vm7, %v5814_v20, %v2536_v37  ;;  %v2556_v21 = vld [vmem:[#allocation2 + $0x84] sm:$0xf]  ;;  %2336 = vst.msk [vmem:[#allocation2 + $0x30] sm:$0xf] %vm6543_vm9, %v5903_v47  ;;  %v2165_v20 = vsel %vm5198_vm0, %v2069_v62, %v2164_v17  ;;  %v6056_v62 = vpop.permute.xlu0 %2098 }
 0x164   : > { %2538 = vst [vmem:[#allocation2 + $0x34] sm:$0xf] %v2537_v59  ;;  %v2557_v58 = vsel %vm5388_vm7, %v5863_v54, %v2556_v21  ;;  %v6044_v15 = vpop.permute.xlu2 %1406  ;;  %v1568_v54 = vrot.slane %v1205_v12, 5  ;;  %v4172_v37 = vld [vmem:[#allocation2 + $0x20] sm:$0xff] }
 0x165   : > { %2558 = vst [vmem:[#allocation2 + $0x84] sm:$0xf] %v2557_v58  ;;  %v1664_v47 = vld [vmem:[#allocation2 + $0x64] sm:$0xf] }
 0x166   : > { %2535 = vst.msk [vmem:[#allocation2 + $0x30] sm:$0xf] %vm6544_vm5, %v2473_v4  ;;  %v1665_v28 = vsel %vm5094_vm14, %v1603_v60, %v1664_v47  ;;  %v1569_v2 = vor.u32 %v1568_v54, %v1567_v8  ;;  %v2044_v60 = vsel %vm4738_vm10, %v2036_v26, %v2043_v3  ;;  %v2457_v54 = vrot.slane %v2038_v31, 4  ;;  %vm6549_vm5 = vmmov %vm6546_vm4 }
 0x167   : > { %2166 = vst [vmem:[#allocation2 + $0x38] sm:$0x1] %v2165_v20  ;;  %v1656_v35 = vld [vmem:[#allocation2 + $0x44] sm:$0xf]  ;;  %v1034_v20 = vld [vmem:[#allocation2 + $0x60] sm:$0x1] }
 0x168   : > { %v1657_v4 = vsel %vm5094_vm14, %v1595_v51, %v1656_v35  ;;  %1666 = vst [vmem:[#allocation2 + $0x64] sm:$0xf] %v1665_v28  ;;  %v1570_v24 = vrot.slane %v1569_v2, 4  ;;  %v2458_v2 = vor.u32 %v2457_v54, %v2455_v30  ;;  %v1035_v31 = vsel %vm4514_vm2, 0, %v1034_v20 }
 0x169   : > { %v2195_v25 = vld [vmem:[#allocation2 + $0x80] sm:$0xf]  ;;  %1658 = vst [vmem:[#allocation2 + $0x44] sm:$0xf] %v1657_v4  ;;  %2102 = vrot.lane.b32.xlu1 %v2044_v60, %s4402_s16  ;;  %v2199_v4 = vld [vmem:[#allocation2 + $0x88] sm:$0x1]  ;;  %2307 = vrot.lane.b32.xlu2 %v6021_v32, %s4403_s18 }
 0x16a   : > { %v2196_v63 = vsel %vm5439_vm1, %v5920_v9, %v2195_v25  ;;  %1321 = vst [vmem:[#allocation2 + $0x98] sm:$0x1] %v1320_v49  ;;  %v1572_v9 = vsel %vm4749_vm11, %v1570_v24, %v5994_v50  ;;  %v6091_v28 = vpop.permute.xlu1 %1600  ;;  %v2033_v49 = vshll.u32 %v6014_v34, 16  ;;  %v2459_v24 = vrot.slane %v2458_v2, 4  ;;  %v4154_v60 = vld [vmem:[#allocation2 + $0x18] sm:$0xff] }
 0x16b   : > { %v2580_v17 = vld [vmem:[#allocation2 + $0x34] sm:$0x8]  ;;  %2197 = vst [vmem:[#allocation2 + $0x80] sm:$0xf] %v2196_v63  ;;  %1612 = vrot.lane.b32.xlu0 %v1572_v9, %s4401_s3  ;;  %v1593_v8 = vpop.permute.xlu0 %1592  ;;  %v2200_v3 = vsel %vm5198_vm0, %v6056_v62, %v2199_v4  ;;  %v1140_v9 = vrot.slane %v5900_v41, 4  ;;  %v1147_v62 = vor.u32 %v1145_v7, %v5808_v44 }
 0x16c   : > { %v2581_v33 = vsel %vm5446_vm3, 0, %v2580_v17  ;;  %v2605_v51 = vld [vmem:[#allocation2 + $0x84] sm:$0x8]  ;;  %2346 = vst.msk [vmem:[#allocation2 + $0x80] sm:$0xf] %vm6545_vm12, %v5974_v18  ;;  %v2073_v18 = vpop.permute.xlu2 %2072  ;;  %v2035_v26 = vor.u32 %v2033_v49, %v2032_v13  ;;  %v2452_v63 = vrot.slane %v2033_v49, 5 }
 0x16d   : > { %2582 = vst [vmem:[#allocation2 + $0x34] sm:$0x8] %v2581_v33  ;;  %v2606_v56 = vsel %vm5446_vm3, 0, %v2605_v51  ;;  %vm6550_vm12 = vcmask 191616   ;;  %v1148_v7 = vsel %vm4738_vm10, %v1140_v9, %v1147_v62 }
 0x16e   : > { %2607 = vst [vmem:[#allocation2 + $0x84] sm:$0x8] %v2606_v56  ;;  %v2221_v59 = vld [vmem:[#allocation2 + $0x38] sm:$0xf]  ;;  %4021 = vmatmul.msk.bf16.gmra.mxu1 %vm6539_vm8, %v4153_v52  ;;  %v2453_v13 = vor.u32 %v2452_v63, %v2451_v23  ;;  %v1156_v56 = vor.u32 %v1154_v45, %v5930_v36  ;;  %v4173_v52 = vld [vmem:[#allocation2 + $0x28] sm:$0xff] }
 0x16f   : > { %2555 = vst.msk [vmem:[#allocation2 + $0x80] sm:$0xf] %vm6546_vm4, %v5960_v46  ;;  %v2222_v50 = vsel %vm5439_vm1, 0, %v2221_v59  ;;  %v1712_v21 = vld [vmem:[#allocation2 + $0x64] sm:$0x8]  ;;  %3929 = vmatmul.msk.bf16.gmra.mxu0 %vm6547_vm13, %v4172_v37  ;;  %vm6551_vm4 = vcmask 322816   ;;  %vm6552_vm13 = vmmov %vm6539_vm8 }
 0x170   : > { %2223 = vst [vmem:[#allocation2 + $0x38] sm:$0xf] %v2222_v50  ;;  %v1702_v19 = vld [vmem:[#allocation2 + $0x44] sm:$0x8]  ;;  %v1713_v58 = vsel %vm6548_vm15, 0, %v1712_v21  ;;  %v2454_v17 = vrot.slane %v2453_v13, 4 }
 0x171   : > { %2356 = vst.msk [vmem:[#allocation2 + $0x38] sm:$0xf] %vm6543_vm9, %v4405_v38  ;;  %v1703_v47 = vsel %vm6548_vm15, 0, %v1702_v19  ;;  %v1358_v46 = vld [vmem:[#allocation2 + $0x98] sm:$0xf]  ;;  %2100 = vrot.lane.b32.xlu1 %v2035_v26, %s4402_s16  ;;  %vm6553_vm9 = vmmov %vm6550_vm12  ;;  %2305 = vrot.lane.b32.xlu2 %v6014_v34, %s4403_s18 }
 0x172   : > { %2583 = vst.msk [vmem:[#allocation2 + $0x38] sm:$0xf] %vm6549_vm5, %v4405_v38  ;;  %v1359_v35 = vsel %vm4642_vm6, 0, %v1358_v46  ;;  %v2288_v51 = vpop.permute.xlu1 %2287  ;;  %vm6554_vm5 = vcmask 126016   ;;  %v2456_v10 = vsel %vm4749_vm11, %v2454_v17, %v2455_v30  ;;  %vm6560_vm11 = vcmask 60416  }
 0x173   : > { %1704 = vst [vmem:[#allocation2 + $0x44] sm:$0x8] %v1703_v47  ;;  %2498 = vrot.lane.b32.xlu0 %v2459_v24, %s4404_s21  ;;  %v2085_v33 = vpop.permute.xlu0 %2084  ;;  %v4155_v47 = vld [vmem:[#allocation2 + $0x20] sm:$0xff] }
 0x174   : > { %1714 = vst [vmem:[#allocation2 + $0x64] sm:$0x8] %v1713_v58  ;;  %v4191_v25 = vld [vmem:[#allocation2 + $0x30] sm:$0xff]  ;;  %v2296_v32 = vpop.permute.xlu2 %2295 }
 0x175   : > { %1360 = vst [vmem:[#allocation2 + $0x98] sm:$0xf] %v1359_v35  ;;  %4119 = vmatmul.msk.bf16.gmra.mxu2 %vm6539_vm8, %v4191_v25  ;;  %vm6556_vm8 = vmmov %vm6554_vm5  ;;  %v4174_v54 = vld [vmem:[#allocation2 + $0x30] sm:$0xff] }
 0x176   : > { %1481 = vst.msk [vmem:[#allocation2 + $0x98] sm:$0xf] %vm6550_vm12, %v4405_v38  ;;  %v4184_v11 = vld [vmem:[#allocation2 + $0x80] sm:$0xff]  ;;  %vm6555_vm12 = vmmov %vm6551_vm4 }
 0x177   : > { %1730 = vst.msk [vmem:[#allocation2 + $0x98] sm:$0xf] %vm6551_vm4, %v4405_v38  ;;  %3941 = vmatmul.msk.bf16.gmra.mxu3 %vm6552_vm13, %v4184_v11  ;;  %vm6557_vm4 = vcmask 257216  }
 0x178   : > { %1036 = vst [vmem:[#allocation2 + $0x60] sm:$0x1] %v1035_v31  ;;  %v2185_v31 = vld [vmem:[#allocation2 + $0x68] sm:$0x1] }
 0x179   : > { %2201 = vst [vmem:[#allocation2 + $0x88] sm:$0x1] %v2200_v3  ;;  %2104 = vrot.lane.b32.xlu1 %v2045_v48, %s4402_s16  ;;  %v4192_v39 = vld [vmem:[#allocation2 + $0x38] sm:$0xff]  ;;  %s6237_s16 = scalar_lea.vmem %s6401_s6, %s4532_s23 }
 0x17a   : > { %1451 = vst.msk [vmem:[#allocation2 + $0x40] sm:$0xf] %vm6553_vm9, %v6058_v5  ;;  %vm6558_vm9 = vmmov %vm6557_vm4  ;;  %v2487_v5 = vpop.permute.xlu1 %2486 }
 0x17b   : > { %2170 = vst.msk [vmem:[#allocation2 + $0x44] sm:$0xf] %vm6554_vm5, %v2073_v18  ;;  %2496 = vrot.lane.b32.xlu0 %v2456_v10, %s4404_s21  ;;  %vm6559_vm5 = vmmov %vm6552_vm13  ;;  %v2479_v34 = vpop.permute.xlu0 %2478 }
 0x17c   : > { %1655 = vst.msk [vmem:[#allocation2 + $0x40] sm:$0xf] %vm6555_vm12, %v1593_v8  ;;  %v1405_v44 = vpop.permute.xlu2 %1404  ;;  %vm6561_vm12 = vcmask 191616  }
 0x17d   : > { %2184 = vst.msk [vmem:[#allocation2 + $0x64] sm:$0xf] %vm6556_vm8, %v2085_v33  ;;  %vm6562_vm8 = vmmov %vm6557_vm4 }
 0x17e   : > { %2343 = vst.msk [vmem:[#allocation2 + $0x64] sm:$0xf] %vm6557_vm4, %v2296_v32  ;;  %4022 = vmatmul.msk.bf16.gmra.mxu1 %vm6552_vm13, %v4154_v60  ;;  %vm6563_vm4 = vcmask 388416   ;;  %vm6564_vm13 = vmmov %vm6559_vm5  ;;  %v2171_v32 = vld [vmem:[#allocation2 + $0x48] sm:$0x1] }
 0x17f   : > { %v1294_v41 = vld [vmem:[#allocation2 + $0x60] sm:$0xf]  ;;  %2339 = vst.msk [vmem:[#allocation2 + $0x44] sm:$0xf] %vm6558_vm9, %v2288_v51  ;;  %3930 = vmatmul.msk.bf16.gmra.mxu0 %vm6559_vm5, %v4173_v52  ;;  %vm6565_vm9 = vcmask 322816   ;;  %vm6566_vm5 = vmmov %vm6561_vm12  ;;  %v4156_v60 = vld [vmem:[#allocation2 + $0x28] sm:$0xff] }
 0x180   : > { %v1295_v42 = vsel %vm4642_vm6, %v1156_v56, %v1294_v41  ;;  %v2241_v45 = vld [vmem:[#allocation2 + $0x88] sm:$0xf]  ;;  %1290 = vst.msk [vmem:[#allocation2 + $0x54] sm:$0xf] %vm6560_vm11, %v1148_v7  ;;  %vm6567_vm11 = vmmov %vm6564_vm13  ;;  %v4175_v52 = vld [vmem:[#allocation2 + $0x38] sm:$0xff] }
 0x181   : > { %1296 = vst [vmem:[#allocation2 + $0x60] sm:$0xf] %v1295_v42  ;;  %v2242_v36 = vsel %vm5439_vm1, 0, %v2241_v45 }
 0x182   : > { %1455 = vst.msk [vmem:[#allocation2 + $0x60] sm:$0xf] %vm6561_vm12, %v6044_v15  ;;  %v2083_v20 = vpop.permute.xlu1 %2082  ;;  %vm6568_vm12 = vmmov %vm6567_vm11 }
 0x183   : > { %2243 = vst [vmem:[#allocation2 + $0x88] sm:$0xf] %v2242_v36  ;;  %v1858_v37 = vld [vmem:[#allocation2 + $0x40] sm:$0x1]  ;;  %v2071_v58 = vpop.permute.xlu0 %2070 }
 0x184   : > { %2366 = vst.msk [vmem:[#allocation2 + $0x88] sm:$0xf] %vm6562_vm8, %v4405_v38  ;;  %v1859_v59 = vsel %vm5198_vm0, 0, %v1858_v37  ;;  %v2286_v21 = vpop.permute.xlu2 %2285  ;;  %vm6569_vm8 = vmmov %vm6567_vm11 }
 0x185   : > { %2608 = vst.msk [vmem:[#allocation2 + $0x88] sm:$0xf] %vm6563_vm4, %v4405_v38  ;;  %v2548_v18 = vld [vmem:[#allocation2 + $0x64] sm:$0xf]  ;;  %4120 = vmatmul.msk.bf16.gmra.mxu2 %vm6564_vm13, %v4192_v39  ;;  %vm6570_vm4 = vcmask 257216   ;;  %vm6571_vm13 = vcmask 388416  }
 0x186   : > { %1860 = vst [vmem:[#allocation2 + $0x40] sm:$0x1] %v1859_v59  ;;  %v2540_v50 = vld [vmem:[#allocation2 + $0x44] sm:$0xf]  ;;  %v2549_v19 = vsel %vm5388_vm7, %v2487_v5, %v2548_v18  ;;  %v4157_v59 = vld [vmem:[#allocation2 + $0x30] sm:$0xff] }
 0x187   : > { %1663 = vst.msk [vmem:[#allocation2 + $0x60] sm:$0xf] %vm6565_vm9, %v6091_v28  ;;  %v2541_v15 = vsel %vm5388_vm7, %v2479_v34, %v2540_v50  ;;  %vm6572_vm9 = vmmov %vm6570_vm4 }
 0x188   : > { %1454 = vst.msk [vmem:[#allocation2 + $0x54] sm:$0xf] %vm6566_vm5, %v1405_v44  ;;  %vm6573_vm5 = vmmov %vm6571_vm13 }
 0x189   : > { %2542 = vst [vmem:[#allocation2 + $0x44] sm:$0xf] %v2541_v15 }
 0x18a   : > { %2550 = vst [vmem:[#allocation2 + $0x64] sm:$0xf] %v2549_v19  ;;  %v2477_v26 = vpop.permute.xlu1 %2476 }
 0x18b   : > { %v2294_v25 = vpop.permute.xlu0 %2293 }
 0x18c   : > { %v4185_v30 = vld [vmem:[#allocation2 + $0x88] sm:$0xff]  ;;  %v2485_v35 = vpop.permute.xlu2 %2484 }
 0x18d   : > { %v2167_v46 = vld [vmem:[#allocation2 + $0x40] sm:$0xf]  ;;  %3942 = vmatmul.msk.bf16.gmra.mxu3 %vm6567_vm11, %v4185_v30  ;;  %vm6574_vm11 = vmmov %vm6569_vm8 }
 0x18e   : > { %v1864_v8 = vld [vmem:[#allocation2 + $0x60] sm:$0x1]  ;;  %v2168_v28 = vsel %vm5439_vm1, %v2071_v58, %v2167_v46  ;;  %4023 = vmatmul.msk.bf16.gmra.mxu1 %vm6568_vm12, %v4155_v47  ;;  %vm6575_vm12 = vmmov %vm6569_vm8 }
 0x18f   : > { %v1865_v49 = vsel %vm5198_vm0, 0, %v1864_v8  ;;  %2169 = vst [vmem:[#allocation2 + $0x40] sm:$0xf] %v2168_v28  ;;  %3931 = vmatmul.msk.bf16.gmra.mxu0 %vm6569_vm8, %v4174_v54  ;;  %v1660_v33 = vld [vmem:[#allocation2 + $0x54] sm:$0xf]  ;;  %v4158_v54 = vld [vmem:[#allocation2 + $0x38] sm:$0xff] }
 0x190   : > { %1866 = vst [vmem:[#allocation2 + $0x60] sm:$0x1] %v1865_v49  ;;  %v2585_v23 = vld [vmem:[#allocation2 + $0x44] sm:$0x8] }
 0x191   : > { %v2586_v4 = vsel %vm5446_vm3, 0, %v2585_v23  ;;  %v2595_v2 = vld [vmem:[#allocation2 + $0x64] sm:$0x8]  ;;  %2338 = vst.msk [vmem:[#allocation2 + $0x40] sm:$0xf] %vm6570_vm4, %v2286_v21 }
 0x192   : > { %2587 = vst [vmem:[#allocation2 + $0x44] sm:$0x8] %v2586_v4  ;;  %v2596_v63 = vsel %vm5446_vm3, 0, %v2595_v2  ;;  %v2075_v51 = vpop.permute.xlu1 %2074  ;;  %v2178_v4 = vld [vmem:[#allocation2 + $0x58] sm:$0x1] }
 0x193   : > { %2597 = vst [vmem:[#allocation2 + $0x64] sm:$0x8] %v2596_v63  ;;  %v1599_v17 = vpop.permute.xlu0 %1598  ;;  %v2172_v62 = vsel %vm5198_vm0, %v2075_v51, %v2171_v32  ;;  %v3327_v63 = vpop.f32.mrf.mxu2 }
 0x194   : > { %2539 = vst.msk [vmem:[#allocation2 + $0x40] sm:$0xf] %vm6571_vm13, %v2477_v26  ;;  %v2087_v24 = vpop.permute.xlu2 %2086  ;;  %v1661_v9 = vsel %vm5094_vm14, %v1599_v17, %v1660_v33  ;;  %vm6576_vm13 = vmmov %vm6573_vm5  ;;  %v4165_v26 = vld [vmem:[#allocation2 + $0x70] sm:$0xff] }
 0x195   : > { %v2186_v3 = vsel %vm5198_vm0, %v2087_v24, %v2185_v31  ;;  %1662 = vst [vmem:[#allocation2 + $0x54] sm:$0xf] %v1661_v9  ;;  %v6222_v31 = vpop.f32.mrf.mxu3  ;;  %v4249_v9 = vld [vmem:[%s6237_s16] sm:$0xff]  }
 0x196   : > { %2187 = vst [vmem:[#allocation2 + $0x68] sm:$0x1] %v2186_v3  ;;  %v1215_v3 = vor.u32 %v1213_v55, %v6018_v22 }
 0x197   : > { %v2181_v11 = vld [vmem:[#allocation2 + $0x60] sm:$0xf]  ;;  %2173 = vst [vmem:[#allocation2 + $0x48] sm:$0x1] %v2172_v62 }
 0x198   : > { %v2182_v13 = vsel %vm5439_vm1, %v2083_v20, %v2181_v11  ;;  %v1204_v11 = vrot.slane %v1202_v43, 7 }
 0x199   : > { %2183 = vst [vmem:[#allocation2 + $0x60] sm:$0xf] %v2182_v13 }
 0x19a   : > { %2342 = vst.msk [vmem:[#allocation2 + $0x60] sm:$0xf] %vm6572_vm9, %v2294_v25  ;;  %vm6577_vm9 = vmmov %vm6569_vm8  ;;  %v1597_v34 = vpop.permute.xlu1 %1596  ;;  %v1208_v32 = vrot.slane %v1204_v11, 4 }
 0x19b   : > { %2547 = vst.msk [vmem:[#allocation2 + $0x60] sm:$0xf] %vm6573_vm5, %v2485_v35  ;;  %v4193_v56 = vld [vmem:[#allocation2 + $0x40] sm:$0xff]  ;;  %v1403_v44 = vpop.permute.xlu0 %1402  ;;  %vm6578_vm5 = vcmask 191616   ;;  %v3329_v62 = vpop.f32.mrf.mxu2 }
 0x19c   : > { %4121 = vmatmul.msk.bf16.gmra.mxu2 %vm6574_vm11, %v4193_v56  ;;  %v1707_v48 = vld [vmem:[#allocation2 + $0x54] sm:$0x8]  ;;  %1453 = vst.msk [vmem:[#allocation2 + $0x50] sm:$0xf] %vm6578_vm5, %v1403_v44  ;;  %vm6579_vm11 = vmmov %vm6570_vm4  ;;  %v4176_v37 = vld [vmem:[#allocation2 + $0x40] sm:$0xff]  ;;  %v1216_v43 = vsel %vm4738_vm10, %v1208_v32, %v1215_v3  ;;  %vm6595_vm10 = vcmask 191616  }
 0x19d   : > { %v2233_v10 = vld [vmem:[#allocation2 + $0x68] sm:$0xf]  ;;  %v1708_v42 = vsel %vm6548_vm15, 0, %v1707_v48  ;;  %vm6584_vm5 = vmmov %vm6577_vm9  ;;  %v4159_v22 = vld [vmem:[#allocation2 + $0x40] sm:$0xff] }
 0x19e   : > { %4024 = vmatmul.msk.bf16.gmra.mxu1 %vm6575_vm12, %v4156_v60  ;;  %v2234_v7 = vsel %vm5439_vm1, 0, %v2233_v10  ;;  %v2225_v45 = vld [vmem:[#allocation2 + $0x48] sm:$0xf]  ;;  %1709 = vst [vmem:[#allocation2 + $0x54] sm:$0x8] %v1708_v42  ;;  %vm6580_vm12 = vmmov %vm6576_vm13  ;;  %v6247_v60 = vpop.f32.mrf.mxu3  ;;  %v4250_v10 = vunpack.c.l.bf16 %v4249_v9 }
 0x19f   : > { %3932 = vmatmul.msk.bf16.gmra.mxu0 %vm6569_vm8, %v4175_v52  ;;  %2235 = vst [vmem:[#allocation2 + $0x68] sm:$0xf] %v2234_v7  ;;  %v2226_v36 = vsel %vm5439_vm1, 0, %v2225_v45  ;;  %vm6581_vm8 = vcmask 322816   ;;  %v4166_v7 = vld [vmem:[#allocation2 + $0x78] sm:$0xff] }
 0x1a0   : > { %2362 = vst.msk [vmem:[#allocation2 + $0x68] sm:$0xf] %vm6570_vm4, %v4405_v38  ;;  %vm6582_vm4 = vcmask 126016  }
 0x1a1   : > { %2598 = vst.msk [vmem:[#allocation2 + $0x68] sm:$0xf] %vm6576_vm13, %v4405_v38  ;;  %vm6583_vm13 = vmmov %vm6579_vm11 }
 0x1a2   : > { %v4163_v41 = vld [vmem:[#allocation2 + $0x60] sm:$0xff]  ;;  %2227 = vst [vmem:[#allocation2 + $0x48] sm:$0xf] %v2226_v36  ;;  %v2483_v19 = vpop.permute.xlu1 %2482 }
 0x1a3   : > { %4031 = vmatmul.msk.bf16.vlgmr.msrb.gmra.mxu3 %vm6577_vm9, %v4163_v41  ;;  %2358 = vst.msk [vmem:[#allocation2 + $0x48] sm:$0xf] %vm6579_vm11, %v4405_v38  ;;  %v2079_v5 = vpop.permute.xlu2 %2078  ;;  %v2292_v39 = vpop.permute.xlu0 %2291  ;;  %vm6585_vm11 = vmmov %vm6584_vm5  ;;  %v1043_v41 = vld [vmem:[#allocation2 + $0x90] sm:$0x1] }
 0x1a4   : > { %2588 = vst.msk [vmem:[#allocation2 + $0x48] sm:$0xf] %vm6580_vm12, %v4405_v38  ;;  %vm6586_vm12 = vmmov %vm6584_vm5  ;;  %v1044_v42 = vsel %vm4514_vm2, 0, %v1043_v41 }
 0x1a5   : > { %1659 = vst.msk [vmem:[#allocation2 + $0x50] sm:$0xf] %vm6581_vm8, %v1597_v34  ;;  %vm6587_vm8 = vmmov %vm6583_vm13 }
 0x1a6   : > { %2177 = vst.msk [vmem:[#allocation2 + $0x54] sm:$0xf] %vm6582_vm4, %v2079_v5  ;;  %vm6588_vm4 = vcmask 388416   ;;  %vm6598_vm2 = vmmov %vm6584_vm5 }
 0x1a7   : > { %2341 = vst.msk [vmem:[#allocation2 + $0x54] sm:$0xf] %vm6583_vm13, %v2292_v39  ;;  %vm6589_vm13 = vmmov %vm6584_vm5 }
 0x1a8   : > { %v4164_v21 = vld [vmem:[#allocation2 + $0x68] sm:$0xff]  ;;  %1045 = vst [vmem:[#allocation2 + $0x90] sm:$0x1] %v1044_v42 }
 0x1ab   : > { %v4194_v18 = vld [vmem:[#allocation2 + $0x48] sm:$0xff]  ;;  %v2077_v30 = vpop.permute.xlu2 %2076  ;;  %v2290_v8 = vpop.permute.xlu0 %2289 }
 0x1ac   : > { %v1861_v50 = vld [vmem:[#allocation2 + $0x50] sm:$0x1]  ;;  %4122 = vmatmul.msk.bf16.gmra.mxu2 %vm6585_vm11, %v4194_v18  ;;  %v4177_v23 = vld [vmem:[#allocation2 + $0x48] sm:$0xff]  ;;  %vm6591_vm11 = vmmov %vm6584_vm5 }
 0x1ad   : > { %v1862_v15 = vsel %vm5198_vm0, 0, %v1861_v50 }
 0x1ae   : > { %4025 = vmatmul.msk.bf16.gmra.mxu1 %vm6577_vm9, %v4157_v59  ;;  %1863 = vst [vmem:[#allocation2 + $0x50] sm:$0x1] %v1862_v15  ;;  %v2544_v58 = vld [vmem:[#allocation2 + $0x54] sm:$0xf]  ;;  %vm6590_vm9 = vmmov %vm6584_vm5 }
 0x1af   : > { %3933 = vmatmul.msk.bf16.gmra.mxu0 %vm6584_vm5, %v4176_v37  ;;  %v2545_v20 = vsel %vm5388_vm7, %v2483_v19, %v2544_v58  ;;  %v4251_v19 = vunpack.c.h.bf16 %v4249_v9  ;;  %v1207_v58 = vor.u32 %v1205_v12, %v1204_v11 }
 0x1b0   : > { %2546 = vst [vmem:[#allocation2 + $0x54] sm:$0xf] %v2545_v20 }
 0x1b3   : > { %4032 = vmatmul.msk.bf16.gmra.mxu3 %vm6586_vm12, %v4164_v21  ;;  %v2081_v2 = vpop.permute.xlu2 %2080  ;;  %vm6592_vm12 = vmmov %vm6587_vm8 }
 0x1b4   : > { %v2179_v25 = vsel %vm5198_vm0, %v2081_v2, %v2178_v4 }
 0x1b5   : > { %v2174_v47 = vld [vmem:[#allocation2 + $0x50] sm:$0xf]  ;;  %2180 = vst [vmem:[#allocation2 + $0x58] sm:$0x1] %v2179_v25  ;;  %v4201_v25 = vld [vmem:[#allocation2 + $0x80] sm:$0xff] }
 0x1b6   : > { %v2175_v46 = vsel %vm5439_vm1, %v2077_v30, %v2174_v47  ;;  %v4160_v30 = vld [vmem:[#allocation2 + $0x48] sm:$0xff]  ;;  %v1315_v47 = vld [vmem:[#allocation2 + $0x90] sm:$0xf] }
 0x1b7   : > { %v2590_v28 = vld [vmem:[#allocation2 + $0x54] sm:$0x8]  ;;  %2176 = vst [vmem:[#allocation2 + $0x50] sm:$0xf] %v2175_v46 }
 0x1b8   : > { %v2591_v49 = vsel %vm5446_vm3, 0, %v2590_v28  ;;  %2340 = vst.msk [vmem:[#allocation2 + $0x50] sm:$0xf] %vm6587_vm8, %v2290_v8  ;;  %vm6593_vm8 = vmmov %vm6588_vm4 }
 0x1b9   : > { %v2481_v35 = vpop.permute.xlu1 %2480  ;;  %2592 = vst [vmem:[#allocation2 + $0x54] sm:$0x8] %v2591_v49 }
 0x1ba   : > { %2543 = vst.msk [vmem:[#allocation2 + $0x50] sm:$0xf] %vm6588_vm4, %v2481_v35  ;;  %vm6594_vm4 = vcmask 60416  }
 0x1bb   : > { %1318 = vst.msk [vmem:[#allocation2 + $0x94] sm:$0xf] %vm6594_vm4, %v1216_v43  ;;  %v1419_v21 = vpop.permute.xlu2 %1418 }
 0x1bc   : > { %v2229_v13 = vld [vmem:[#allocation2 + $0x58] sm:$0xf] }
 0x1bd   : > { %v2230_v17 = vsel %vm5439_vm1, 0, %v2229_v13 }
 0x1be   : > { %4026 = vmatmul.msk.bf16.gmra.mxu1 %vm6589_vm13, %v4158_v54  ;;  %2231 = vst [vmem:[#allocation2 + $0x58] sm:$0xf] %v2230_v17  ;;  %vm6596_vm13 = vmmov %vm6584_vm5  ;;  %v1316_v54 = vsel %vm4642_vm6, %v1207_v58, %v1315_v47  ;;  %vm6604_vm6 = vcmask 322816  }
 0x1bf   : > { %3934 = vmatmul.msk.bf16.gmra.mxu0 %vm6590_vm9, %v4177_v23  ;;  %2360 = vst.msk [vmem:[#allocation2 + $0x58] sm:$0xf] %vm6592_vm12, %v4405_v38  ;;  %vm6597_vm9 = vmmov %vm6584_vm5 }
 0x1c0   : > { %2593 = vst.msk [vmem:[#allocation2 + $0x58] sm:$0xf] %vm6593_vm8, %v4405_v38  ;;  %vm6601_vm12 = vmmov %vm6598_vm2 }
 0x1c1   : > { %v4195_v24 = vld [vmem:[#allocation2 + $0x50] sm:$0xff]  ;;  %1317 = vst [vmem:[#allocation2 + $0x90] sm:$0xf] %v1316_v54  ;;  %vm6602_vm8 = vmmov %vm6594_vm4 }
 0x1c2   : > { %4123 = vmatmul.msk.bf16.gmra.mxu2 %vm6591_vm11, %v4195_v24  ;;  %v4178_v16 = vld [vmem:[#allocation2 + $0x50] sm:$0xff]  ;;  %vm6599_vm11 = vmmov %vm6594_vm4 }
 0x1c3   : > { %4033 = vmatmul.msk.bf16.gmra.mxu3 %vm6584_vm5, %v4165_v26  ;;  %vm6603_vm4 = vmmov %vm6598_vm2  ;;  %v2308_v2 = vpop.permute.xlu2 %2307  ;;  %v4161_v43 = vld [vmem:[#allocation2 + $0x50] sm:$0xff] }
 0x1c6   : > { %v3332_v18 = vpop.f32.mrf.mxu2 }
 0x1c7   : > { %v4196_v48 = vld [vmem:[#allocation2 + $0x58] sm:$0xff] }
 0x1c8   : > { %v3068_v33 = vpop.f32.mrf.mxu1  ;;  %v4179_v8 = vld [vmem:[#allocation2 + $0x58] sm:$0xff] }
 0x1cb   : > { %v1421_v55 = vpop.permute.xlu0 %1420  ;;  %v2306_v9 = vpop.permute.xlu2 %2305 }
 0x1cc   : > { %v2849_v51 = vpop.f32.mrf.mxu0  ;;  %1462 = vst.msk [vmem:[#allocation2 + $0x94] sm:$0xf] %vm6595_vm10, %v1421_v55  ;;  %v4180_v55 = vld [vmem:[#allocation2 + $0x60] sm:$0xff] }
 0x1cd   : > { %v3069_v56 = vadd.f32 %v3068_v33, %v2849_v51 }
 0x1ce   : > { %4027 = vmatmul.msk.bf16.gmra.mxu1 %vm6596_vm13, %v4159_v22  ;;  %v3333_v23 = vpop.f32.mrf.mxu2  ;;  %vm6606_vm13 = vmmov %vm6598_vm2  ;;  %v4202_v22 = vld [vmem:[#allocation2 + $0x88] sm:$0xff] }
 0x1cf   : > { %v3391_v52 = vadd.f32 %v3327_v63, %v3069_v56  ;;  %3935 = vmatmul.msk.bf16.gmra.mxu0 %vm6597_vm9, %v4178_v16  ;;  %vm6607_vm9 = vcmask 257216   ;;  %v4197_v63 = vld [vmem:[#allocation2 + $0x60] sm:$0xff]  ;;  %v4181_v23 = vld [vmem:[#allocation2 + $0x68] sm:$0xff] }
 0x1d0   : > { %v3070_v36 = vpop.f32.mrf.mxu1 }
 0x1d1   : > { %v3411_v44 = vadd.f32 %v6252_v29, %v3391_v52  ;;  %v2902_v50 = vpop.f32.mrf.mxu3  ;;  %v4198_v52 = vld [vmem:[#allocation2 + $0x68] sm:$0xff] }
 0x1d2   : > { %4124 = vmatmul.msk.bf16.gmra.mxu2 %vm6598_vm2, %v4196_v48 }
 0x1d3   : > { %v3459_v45 = vadd.f32 %v4250_v10, %v3411_v44  ;;  %4034 = vmatmul.msk.bf16.gmra.mxu3 %vm6584_vm5, %v4166_v7  ;;  %v1676_v5 = vld [vmem:[#allocation2 + $0x94] sm:$0xf]  ;;  %v1615_v39 = vpop.permute.xlu1 %1614  ;;  %vm6609_vm5 = vmmov %vm6598_vm2  ;;  %v2206_v7 = vld [vmem:[#allocation2 + $0x98] sm:$0x1] }
 0x1d4   : > { %v2851_v34 = vpop.f32.mrf.mxu0  ;;  %v1677_v1 = vsel %vm5094_vm14, %v1615_v39, %v1676_v5  ;;  %vm6600_vm14 = vmmov %vm6595_vm10  ;;  %vm6605_vm10 = vcmask 126016  }
 0x1d5   : > { %v3475_v37 = vpack.c.bf16 %v3459_v45, %v3459_v45  ;;  %v3071_v59 = vadd.f32 %v3070_v36, %v2851_v34  ;;  %1678 = vst [vmem:[#allocation2 + $0x94] sm:$0xf] %v1677_v1  ;;  %v4287_v45 = vld [vmem:[%s6237_s16 + $0x8] sm:$0xff]  }
 0x1d6   : > { %1461 = vst.msk [vmem:[#allocation2 + $0x90] sm:$0xf] %vm6600_vm14, %v1419_v21  ;;  %vm6612_vm14 = vcmask 388416   ;;  %v4254_v39 = vunpack.c.l.bf16 %v4287_v45 }
 0x1d7   : > { %3492 = vst.msk [vmem:[%s6265_s28] sm:$0xf] %vm6599_vm11, %v3475_v37  ;;  %v3392_v15 = vadd.f32 %v3329_v62, %v3071_v59  ;;  %vm6611_vm11 = vmmov %vm6607_vm9 }
 0x1d9   : > { %v3412_v20 = vadd.f32 %v6252_v29, %v3392_v15  ;;  %v2903_v14 = vpop.f32.mrf.mxu3 }
 0x1da   : > { %v4162_v14 = vld [vmem:[#allocation2 + $0x58] sm:$0xff] }
 0x1db   : > { %v3460_v6 = vadd.f32 %v4251_v19, %v3412_v20  ;;  %v3073_v46 = vpop.f32.mrf.mxu1  ;;  %v2103_v0 = vpop.permute.xlu1 %2102 }
 0x1dc   : > { %v2854_v28 = vpop.f32.mrf.mxu0  ;;  %v1727_v49 = vld [vmem:[#allocation2 + $0x94] sm:$0x8] }
 0x1dd   : > { %v3476_v35 = vpack.c.bf16 %v3460_v6, %v3460_v6  ;;  %v1728_v12 = vsel %vm6548_vm15, 0, %v1727_v49  ;;  %v1613_v4 = vpop.permute.xlu0 %1612  ;;  %vm6608_vm15 = vmmov %vm6598_vm2  ;;  %v4199_v46 = vld [vmem:[#allocation2 + $0x70] sm:$0xff] }
 0x1de   : > { %4028 = vmatmul.msk.bf16.gmra.mxu1 %vm6601_vm12, %v4160_v30  ;;  %1729 = vst [vmem:[#allocation2 + $0x94] sm:$0x8] %v1728_v12  ;;  %vm6613_vm12 = vmmov %vm6598_vm2  ;;  %v4255_v30 = vunpack.c.h.bf16 %v4287_v45 }
 0x1df   : > { %3493 = vst.msk [vmem:[%s6265_s28 + $0x4] sm:$0xf] %vm6602_vm8, %v3476_v35  ;;  %3936 = vmatmul.msk.bf16.gmra.mxu0 %vm6603_vm4, %v4179_v8  ;;  %vm6617_vm4 = vmmov %vm6598_vm2 }
 0x1e0   : > { %1675 = vst.msk [vmem:[#allocation2 + $0x90] sm:$0xf] %vm6604_vm6, %v1613_v4 }
 0x1e1   : > { %2205 = vst.msk [vmem:[#allocation2 + $0x94] sm:$0xf] %vm6605_vm10, %v2103_v0 }
 0x1e2   : > { %2349 = vst.msk [vmem:[#allocation2 + $0x94] sm:$0xf] %vm6607_vm9, %v2308_v2  ;;  %4125 = vmatmul.msk.bf16.gmra.mxu2 %vm6608_vm15, %v4197_v63  ;;  %v4200_v2 = vld [vmem:[#allocation2 + $0x78] sm:$0xff] }
 0x1e3   : > { %v3074_v26 = vpop.f32.mrf.mxu1  ;;  %4129 = vmatmul.msk.bf16.vlgmr.msra.gmra.mxu3 %vm6606_vm13, %v4201_v25  ;;  %v2101_v33 = vpop.permute.xlu1 %2100 }
 0x1e4   : > { %v2855_v27 = vpop.f32.mrf.mxu0 }
 0x1e5   : > { %v2499_v11 = vpop.permute.xlu0 %2498 }
 0x1e7   : > { %v1873_v24 = vld [vmem:[#allocation2 + $0x90] sm:$0x1] }
 0x1e8   : > { %v1874_v3 = vsel %vm5198_vm0, 0, %v1873_v24 }
 0x1e9   : > { %1875 = vst [vmem:[#allocation2 + $0x90] sm:$0x1] %v1874_v3  ;;  %v2560_v32 = vld [vmem:[#allocation2 + $0x94] sm:$0xf] }
 0x1ea   : > { %v2561_v17 = vsel %vm5388_vm7, %v2499_v11, %v2560_v32  ;;  %vm6610_vm7 = vmmov %vm6598_vm2  ;;  %v4288_v11 = vld [vmem:[%s6237_s16 + $0x10] sm:$0xff]  }
 0x1eb   : > { %v3076_v13 = vpop.f32.mrf.mxu1  ;;  %2562 = vst [vmem:[#allocation2 + $0x94] sm:$0xf] %v2561_v17  ;;  %v2105_v44 = vpop.permute.xlu1 %2104  ;;  %v4258_v17 = vunpack.c.l.bf16 %v4288_v11 }
 0x1ec   : > { %v2857_v16 = vpop.f32.mrf.mxu0  ;;  %v2207_v42 = vsel %vm5198_vm0, %v2105_v44, %v2206_v7  ;;  %vm6615_vm0 = vmmov %vm6607_vm9 }
 0x1ed   : > { %v2497_v56 = vpop.permute.xlu0 %2496  ;;  %v3077_v36 = vadd.f32 %v3076_v13, %v2857_v16  ;;  %2208 = vst [vmem:[#allocation2 + $0x98] sm:$0x1] %v2207_v42 }
 0x1ee   : > { %4029 = vmatmul.msk.bf16.gmra.mxu1 %vm6609_vm5, %v4161_v43 }
 0x1ef   : > { %3937 = vmatmul.msk.bf16.gmra.mxu0 %vm6598_vm2, %v4180_v55 }
 0x1f0   : > { %v2202_v51 = vld [vmem:[#allocation2 + $0x90] sm:$0xf] }
 0x1f1   : > { %v2203_v62 = vsel %vm5439_vm1, %v2101_v33, %v2202_v51 }
 0x1f2   : > { %v2610_v10 = vld [vmem:[#allocation2 + $0x94] sm:$0x8]  ;;  %2204 = vst [vmem:[#allocation2 + $0x90] sm:$0xf] %v2203_v62  ;;  %4126 = vmatmul.msk.bf16.gmra.mxu2 %vm6613_vm12, %v4198_v52  ;;  %v4259_v52 = vunpack.c.h.bf16 %v4288_v11 }
 0x1f3   : > { %v3078_v57 = vpop.f32.mrf.mxu1  ;;  %4130 = vmatmul.msk.bf16.gmra.mxu3 %vm6610_vm7, %v4202_v22  ;;  %v2611_v48 = vsel %vm5446_vm3, 0, %v2610_v10  ;;  %2348 = vst.msk [vmem:[#allocation2 + $0x90] sm:$0xf] %vm6611_vm11, %v2306_v9  ;;  %vm6614_vm3 = vmmov %vm6602_vm8 }
 0x1f4   : > { %v2859_v41 = vpop.f32.mrf.mxu0  ;;  %2612 = vst [vmem:[#allocation2 + $0x94] sm:$0x8] %v2611_v48  ;;  %v2245_v61 = vld [vmem:[#allocation2 + $0x98] sm:$0xf]  ;;  %vm6616_vm8 = vmmov %vm6612_vm14 }
 0x1f5   : > { %2559 = vst.msk [vmem:[#allocation2 + $0x90] sm:$0xf] %vm6612_vm14, %v2497_v56  ;;  %v3079_v50 = vadd.f32 %v3078_v57, %v2859_v41  ;;  %v2246_v15 = vsel %vm5439_vm1, 0, %v2245_v61  ;;  %vm6618_vm1 = vmmov %vm6598_vm2 }
 0x1f6   : > { %2247 = vst [vmem:[#allocation2 + $0x98] sm:$0xf] %v2246_v15  ;;  %vm6619_vm6 = vmmov %vm6614_vm3 }
 0x1f7   : > { %2368 = vst.msk [vmem:[#allocation2 + $0x98] sm:$0xf] %vm6615_vm0, %v4405_v38  ;;  %vm6620_vm10 = vmmov %vm6618_vm1 }
 0x1f8   : > { %v3335_v34 = vpop.f32.mrf.mxu2  ;;  %2613 = vst.msk [vmem:[#allocation2 + $0x98] sm:$0xf] %vm6616_vm8, %v4405_v38  ;;  %vm6621_vm13 = vmmov %vm6618_vm1 }
 0x1f9   : > { %v3393_v5 = vadd.f32 %v3335_v34, %v3077_v36  ;;  %vm6622_vm9 = vmmov %vm6618_vm1 }
 0x1fa   : > { %v6307_v18 = vpop.f32.mrf.mxu3  ;;  %vm6623_vm15 = vmmov %vm6618_vm1 }
 0x1fb   : > { %v3081_v37 = vpop.f32.mrf.mxu1  ;;  %v3413_v53 = vadd.f32 %v6252_v29, %v3393_v5  ;;  %vm6624_vm5 = vmmov %vm6614_vm3 }
 0x1fc   : > { %v2862_v59 = vpop.f32.mrf.mxu0  ;;  %v4203_v19 = vld [vmem:[#allocation2 + $0x90] sm:$0xff]  ;;  %vm6625_vm2 = vmmov %vm6614_vm3 }
 0x1fd   : > { %v3461_v1 = vadd.f32 %v4254_v39, %v3413_v53  ;;  %vm6626_vm7 = vmmov %vm6625_vm2 }
 0x1fe   : > { %4030 = vmatmul.msk.bf16.gmra.mxu1 %vm6621_vm13, %v4162_v14  ;;  %vm6627_vm11 = vmmov %vm6625_vm2 }
 0x1ff   : > { %v3477_v21 = vpack.c.bf16 %v3461_v1, %v3461_v1  ;;  %3938 = vmatmul.msk.bf16.gmra.mxu0 %vm6620_vm10, %v4181_v23  ;;  %v4204_v38 = vld [vmem:[#allocation2 + $0x98] sm:$0xff]  ;;  %vm6628_vm14 = vmmov %vm6625_vm2 }
 0x200   : > { %v3337_v58 = vpop.f32.mrf.mxu2  ;;  %vm6629_vm12 = vmmov %vm6625_vm2 }
 0x201   : > { %3494 = vst.msk [vmem:[%s6265_s28 + $0x8] sm:$0xf] %vm6614_vm3, %v3477_v21  ;;  %v3394_v20 = vadd.f32 %v3337_v58, %v3079_v50  ;;  %v4289_v50 = vld [vmem:[%s6237_s16 + $0x18] sm:$0xff]   ;;  %vm6630_vm3 = vmmov %vm6625_vm2 }
 0x202   : > { %4127 = vmatmul.msk.bf16.gmra.mxu2 %vm6618_vm1, %v4199_v46  ;;  %v6320_v28 = vpop.f32.mrf.mxu3  ;;  %v4262_v58 = vunpack.c.l.bf16 %v4289_v50  ;;  %vm6631_vm0 = vmmov %vm6625_vm2 }
 0x203   : > { %v3082_v47 = vpop.f32.mrf.mxu1  ;;  %v3414_v6 = vadd.f32 %v6252_v29, %v3394_v20  ;;  %4131 = vmatmul.msk.bf16.gmra.mxu3 %vm6617_vm4, %v4203_v19  ;;  %vm6632_vm8 = vmmov %vm6631_vm0 }
 0x204   : > { %v2863_v40 = vpop.f32.mrf.mxu0  ;;  %vm6633_vm4 = vmmov %vm6631_vm0 }
 0x205   : > { %v3462_v8 = vadd.f32 %v4255_v30, %v3414_v6  ;;  %vm6634_vm1 = vmmov %vm6631_vm0 }
 0x207   : > { %v3478_v54 = vpack.c.bf16 %v3462_v8, %v3462_v8 }
 0x208   : > { %v3340_v35 = vpop.f32.mrf.mxu2 }
 0x209   : > { %3495 = vst.msk [vmem:[%s6265_s28 + $0xc] sm:$0xf] %vm6619_vm6, %v3478_v54  ;;  %vm6635_vm6 = vmmov %vm6631_vm0 }
 0x20b   : > { %v3084_v49 = vpop.f32.mrf.mxu1 }
 0x20c   : > { %v2865_v12 = vpop.f32.mrf.mxu0 }
 0x20d   : > { %v3085_v3 = vadd.f32 %v3084_v49, %v2865_v12  ;;  %v4263_v49 = vunpack.c.h.bf16 %v4289_v50 }
 0x210   : > { %v2910_v4 = vpop.f32.mrf.mxu3  ;;  %v3341_v0 = vpop.f32.mrf.mxu2 }
 0x212   : > { %4128 = vmatmul.msk.bf16.gmra.mxu2 %vm6623_vm15, %v4200_v2 }
 0x213   : > { %v3086_v25 = vpop.f32.mrf.mxu1  ;;  %4132 = vmatmul.msk.bf16.gmra.mxu3 %vm6622_vm9, %v4204_v38 }
 0x214   : > { %v2867_v26 = vpop.f32.mrf.mxu0 }
 0x215   : > { %v3087_v22 = vadd.f32 %v3086_v25, %v2867_v26 }
 0x218   : > { %v2911_v27 = vpop.f32.mrf.mxu3 }
 0x21b   : > { %v3089_v63 = vpop.f32.mrf.mxu1 }
 0x21c   : > { %v2870_v24 = vpop.f32.mrf.mxu0 }
 0x21f   : > { %v3343_v32 = vpop.f32.mrf.mxu2 }
 0x220   : > { %v3395_v13 = vadd.f32 %v3343_v32, %v3085_v3  ;;  %v4292_v3 = vld [vmem:[%s6237_s16 + $0x30] sm:$0xff]  }
 0x222   : > { %v3415_v33 = vadd.f32 %v6252_v29, %v3395_v13 }
 0x223   : > { %v3090_v43 = vpop.f32.mrf.mxu1 }
 0x224   : > { %v2871_v16 = vpop.f32.mrf.mxu0  ;;  %v3463_v55 = vadd.f32 %v4258_v17, %v3415_v33  ;;  %v4274_v33 = vunpack.c.l.bf16 %v4292_v3  ;;  %v4290_v43 = vld [vmem:[%s6237_s16 + $0x20] sm:$0xff]  }
 0x226   : > { %v3479_v51 = vpack.c.bf16 %v3463_v55, %v3463_v55  ;;  %v3116_v9 = vpop.f32.mrf.mxu3 }
 0x227   : > { %v3345_v62 = vpop.f32.mrf.mxu2  ;;  %v3117_v32 = vadd.f32 %v3116_v9, %v6222_v31 }
 0x228   : > { %3496 = vst.msk [vmem:[%s6265_s28 + $0x10] sm:$0xf] %vm6624_vm5, %v3479_v51  ;;  %v3396_v56 = vadd.f32 %v3345_v62, %v3087_v22  ;;  %v4266_v62 = vunpack.c.l.bf16 %v4290_v43 }
 0x22a   : > { %v3416_v57 = vadd.f32 %v6252_v29, %v3396_v56 }
 0x22b   : > { %v3092_v10 = vpop.f32.mrf.mxu1 }
 0x22c   : > { %v2873_v7 = vpop.f32.mrf.mxu0  ;;  %v3464_v44 = vadd.f32 %v4259_v52, %v3416_v57 }
 0x22d   : > { %v3093_v21 = vadd.f32 %v3092_v10, %v2873_v7 }
 0x22e   : > { %v3480_v41 = vpack.c.bf16 %v3464_v44, %v3464_v44  ;;  %v3118_v48 = vpop.f32.mrf.mxu3  ;;  %v4275_v44 = vunpack.c.h.bf16 %v4292_v3 }
 0x22f   : > { %v3348_v45 = vpop.f32.mrf.mxu2  ;;  %v3119_v57 = vadd.f32 %v3118_v48, %v6247_v60 }
 0x230   : > { %3497 = vst.msk [vmem:[%s6265_s28 + $0x14] sm:$0xf] %vm6625_vm2, %v3480_v41 }
 0x233   : > { %v3094_v42 = vpop.f32.mrf.mxu1 }
 0x234   : > { %v2875_v36 = vpop.f32.mrf.mxu0 }
 0x235   : > { %v3095_v46 = vadd.f32 %v3094_v42, %v2875_v36 }
 0x236   : > { %v3121_v34 = vpop.f32.mrf.mxu3 }
 0x237   : > { %v3349_v39 = vpop.f32.mrf.mxu2 }
 0x23b   : > { %v3097_v5 = vpop.f32.mrf.mxu1 }
 0x23c   : > { %v2878_v37 = vpop.f32.mrf.mxu0  ;;  %v4267_v5 = vunpack.c.h.bf16 %v4290_v43 }
 0x23e   : > { %v3122_v53 = vpop.f32.mrf.mxu3 }
 0x243   : > { %v3098_v59 = vpop.f32.mrf.mxu1 }
 0x244   : > { %v2879_v1 = vpop.f32.mrf.mxu0 }
 0x245   : > { %v3351_v15 = vpop.f32.mrf.mxu2 }
 0x246   : > { %v6335_v61 = vpop.f32.mrf.mxu3  ;;  %v3397_v19 = vadd.f32 %v3351_v15, %v3093_v21 }
 0x248   : > { %v3417_v47 = vadd.f32 %v6252_v29, %v3397_v19 }
 0x24a   : > { %v3465_v40 = vadd.f32 %v4262_v58, %v3417_v47  ;;  %v3125_v47 = vadd.f32 %v6335_v61, %v6307_v18 }
 0x24b   : > { %v3100_v20 = vpop.f32.mrf.mxu1 }
 0x24c   : > { %v2881_v30 = vpop.f32.mrf.mxu0  ;;  %v3481_v8 = vpack.c.bf16 %v3465_v40, %v3465_v40 }
 0x24d   : > { %v3353_v54 = vpop.f32.mrf.mxu2  ;;  %v3101_v16 = vadd.f32 %v3100_v20, %v2881_v30  ;;  %v4293_v30 = vld [vmem:[%s6237_s16 + $0x38] sm:$0xff]  }
 0x24e   : > { %v6339_v6 = vpop.f32.mrf.mxu3  ;;  %3498 = vst.msk [vmem:[%s6265_s28 + $0x18] sm:$0xf] %vm6626_vm7, %v3481_v8  ;;  %v3398_v35 = vadd.f32 %v3353_v54, %v3095_v46  ;;  %v4278_v8 = vunpack.c.l.bf16 %v4293_v30  ;;  %v4291_v54 = vld [vmem:[%s6237_s16 + $0x28] sm:$0xff]  }
 0x24f   : > { %v3127_v18 = vadd.f32 %v6339_v6, %v6320_v28 }
 0x250   : > { %v3418_v12 = vadd.f32 %v6252_v29, %v3398_v35 }
 0x252   : > { %v3466_v4 = vadd.f32 %v4263_v49, %v3418_v12  ;;  %v4270_v12 = vunpack.c.l.bf16 %v4291_v54 }
 0x253   : > { %v3102_v23 = vpop.f32.mrf.mxu1 }
 0x254   : > { %v2883_v14 = vpop.f32.mrf.mxu0  ;;  %v3482_v0 = vpack.c.bf16 %v3466_v4, %v3466_v4 }
 0x255   : > { %v3356_v2 = vpop.f32.mrf.mxu2  ;;  %v3103_v41 = vadd.f32 %v3102_v23, %v2883_v14 }
 0x256   : > { %v3129_v38 = vpop.f32.mrf.mxu3  ;;  %3499 = vst.msk [vmem:[%s6265_s28 + $0x1c] sm:$0xf] %vm6627_vm11, %v3482_v0 }
 0x25b   : > { %v3105_v25 = vpop.f32.mrf.mxu1 }
 0x25c   : > { %v2886_v26 = vpop.f32.mrf.mxu0 }
 0x25d   : > { %v3357_v63 = vpop.f32.mrf.mxu2 }
 0x25e   : > { %v3130_v27 = vpop.f32.mrf.mxu3  ;;  %v4279_v63 = vunpack.c.h.bf16 %v4293_v30 }
 0x263   : > { %v3106_v24 = vpop.f32.mrf.mxu1 }
 0x264   : > { %v2887_v11 = vpop.f32.mrf.mxu0 }
 0x265   : > { %v3359_v22 = vpop.f32.mrf.mxu2 }
 0x266   : > { %v3375_v13 = vpop.f32.mrf.mxu3  ;;  %v3399_v51 = vadd.f32 %v3359_v22, %v3101_v16 }
 0x267   : > { %v3403_v17 = vadd.f32 %v3375_v13, %v3117_v32 }
 0x268   : > { %v3419_v52 = vadd.f32 %v6252_v29, %v3399_v51 }
 0x269   : > { %v3423_v55 = vadd.f32 %v6252_v29, %v3403_v17  ;;  %v4271_v17 = vunpack.c.h.bf16 %v4291_v54 }
 0x26a   : > { %v3467_v31 = vadd.f32 %v4266_v62, %v3419_v52 }
 0x26b   : > { %v3471_v56 = vadd.f32 %v4274_v33, %v3423_v55  ;;  %v3108_v59 = vpop.f32.mrf.mxu1 }
 0x26c   : > { %v3483_v42 = vpack.c.bf16 %v3467_v31, %v3467_v31  ;;  %v2889_v1 = vpop.f32.mrf.mxu0 }
 0x26d   : > { %v3487_v10 = vpack.c.bf16 %v3471_v56, %v3471_v56  ;;  %v3361_v36 = vpop.f32.mrf.mxu2  ;;  %v3109_v35 = vadd.f32 %v3108_v59, %v2889_v1 }
 0x26e   : > { %v3377_v7 = vpop.f32.mrf.mxu3  ;;  %3500 = vst.msk [vmem:[%s6265_s28 + $0x20] sm:$0xf] %vm6629_vm12, %v3483_v42  ;;  %v3400_v34 = vadd.f32 %v3361_v36, %v3103_v41 }
 0x26f   : > { %3504 = vst.msk [vmem:[%s6265_s28 + $0x30] sm:$0xf] %vm6628_vm14, %v3487_v10  ;;  %v3404_v9 = vadd.f32 %v3377_v7, %v3119_v57 }
 0x270   : > { %v3420_v48 = vadd.f32 %v6252_v29, %v3400_v34 }
 0x271   : > { %v3424_v45 = vadd.f32 %v6252_v29, %v3404_v9 }
 0x272   : > { %v3468_v53 = vadd.f32 %v4267_v5, %v3420_v48 }
 0x273   : > { %v3472_v60 = vadd.f32 %v4275_v44, %v3424_v45  ;;  %v3110_v58 = vpop.f32.mrf.mxu1 }
 0x274   : > { %v3484_v50 = vpack.c.bf16 %v3468_v53, %v3468_v53  ;;  %v2891_v20 = vpop.f32.mrf.mxu0 }
 0x275   : > { %v3488_v39 = vpack.c.bf16 %v3472_v60, %v3472_v60  ;;  %v3364_v21 = vpop.f32.mrf.mxu2  ;;  %v3111_v24 = vadd.f32 %v3110_v58, %v2891_v20 }
 0x276   : > { %v3380_v37 = vpop.f32.mrf.mxu3  ;;  %3501 = vst.msk [vmem:[%s6265_s28 + $0x24] sm:$0xf] %vm6631_vm0, %v3484_v50 }
 0x277   : > { %3505 = vst.msk [vmem:[%s6265_s28 + $0x34] sm:$0xf] %vm6630_vm3, %v3488_v39 }
 0x27b   : > { %v3113_v4 = vpop.f32.mrf.mxu1 }
 0x27c   : > { %v2894_v38 = vpop.f32.mrf.mxu0 }
 0x27d   : > { %v3365_v19 = vpop.f32.mrf.mxu2 }
 0x27e   : > { %v3381_v15 = vpop.f32.mrf.mxu3 }
 0x283   : > { %v3114_v28 = vpop.f32.mrf.mxu1 }
 0x284   : > { %v2895_v33 = vpop.f32.mrf.mxu0 }
 0x285   : > { %v3367_v23 = vpop.f32.mrf.mxu2 }
 0x286   : > { %v3383_v40 = vpop.f32.mrf.mxu3  ;;  %v3401_v14 = vadd.f32 %v3367_v23, %v3109_v35 }
 0x287   : > { %v3405_v46 = vadd.f32 %v3383_v40, %v3125_v47 }
 0x288   : > { %v3421_v2 = vadd.f32 %v6252_v29, %v3401_v14 }
 0x289   : > { %v3425_v49 = vadd.f32 %v6252_v29, %v3405_v46 }
 0x28a   : > { %v3469_v26 = vadd.f32 %v4270_v12, %v3421_v2 }
 0x28b   : > { %v3473_v0 = vadd.f32 %v4278_v8, %v3425_v49 }
 0x28c   : > { %v3485_v11 = vpack.c.bf16 %v3469_v26, %v3469_v26 }
 0x28d   : > { %v3489_v61 = vpack.c.bf16 %v3473_v0, %v3473_v0  ;;  %v3369_v32 = vpop.f32.mrf.mxu2 }
 0x28e   : > { %v3385_v25 = vpop.f32.mrf.mxu3  ;;  %3502 = vst.msk [vmem:[%s6265_s28 + $0x28] sm:$0xf] %vm6633_vm4, %v3485_v11  ;;  %v3402_v13 = vadd.f32 %v3369_v32, %v3111_v24 }
 0x28f   : > { %3506 = vst.msk [vmem:[%s6265_s28 + $0x38] sm:$0xf] %vm6632_vm8, %v3489_v61  ;;  %v3406_v27 = vadd.f32 %v3385_v25, %v3127_v18 }
 0x290   : > { %v3422_v43 = vadd.f32 %v6252_v29, %v3402_v13 }
 0x291   : > { %v3426_v3 = vadd.f32 %v6252_v29, %v3406_v27 }
 0x292   : > { %v3470_v55 = vadd.f32 %v4271_v17, %v3422_v43 }
 0x293   : > { %v3474_v6 = vadd.f32 %v4279_v63, %v3426_v3 }
 0x294   : > { %v3486_v51 = vpack.c.bf16 %v3470_v55, %v3470_v55 }
 0x295   : > { %v3490_v16 = vpack.c.bf16 %v3474_v6, %v3474_v6  ;;  %v3372_v62 = vpop.f32.mrf.mxu2 }
 0x296   : > { %v3388_v22 = vpop.f32.mrf.mxu3  ;;  %3503 = vst.msk [vmem:[%s6265_s28 + $0x2c] sm:$0xf] %vm6635_vm6, %v3486_v51 }
 0x297   : > { %3507 = vst.msk [vmem:[%s6265_s28 + $0x3c] sm:$0xf] %vm6634_vm1, %v3490_v16 }
 0x29d   : > { %v3373_v52 = vpop.f32.mrf.mxu2 }
 0x29e   : > { %v3389_v56 = vpop.f32.mrf.mxu3 }
 0x29f PF: > { %s23_s29 = sadd.s32 1, %s4398_s29   ;;  %s6636_s26 = sld [smem:[#allocation3_spill]] }
 0x2a0   : > { %p20_p12 = scmp.ge.s32.totalorder %s23_s29, 6   ;;  %s6637_s23 = sld [smem:[#allocation4_spill]] }
 0x2a1   : > { %s6638_s28 = sld [smem:[#allocation5_spill]]  ;;  %s6639_s25 = smov %s4390_s27 }
 0x2a2   :  { %22 = sbr.rel (!%p20_p12) target bundleno = 4 (0x4), region = 134 }
 0x2a6   : > { %s6640_s27 = smov %s6637_s23 }

</bundles_post_ra>
